<compile_context>
chip_gen: v7x
topology: tpu7x:2x2x1
jax: 0.10.0
libtpu: 0.0.40
codegen_flags: <defaults>
</compile_context>

<pallas_src>
import functools
import math

import jax
import jax.numpy as jnp
from jax.experimental import pallas as pl
from jax.experimental.pallas import tpu as pltpu


_VMEM_LIMIT = 32 * 1024 * 1024  # safe on v5e/v6e/v7x; the working set is tiny.


# ------------------------------ in-kernel helpers ---------------------------

def _layernorm(y, gamma, beta, eps):
    mean = jnp.mean(y, axis=-1, keepdims=True)
    var = jnp.mean((y - mean) ** 2, axis=-1, keepdims=True)
    return (y - mean) * jax.lax.rsqrt(var + eps) * gamma + beta


def _gelu(y):
    # TODO(synk): HF BERT uses exact erf-based GELU; tanh approximation here.
    c = math.sqrt(2.0 / math.pi)
    return 0.5 * y * (1.0 + jnp.tanh(c * (y + 0.044715 * y * y * y)))


# --------------------------- fused transformer layer ------------------------

def _bert_layer_kernel(x_ref, wqkv_ref, bqkv_ref, wo_ref, bo_ref,
                       ln1_g_ref, ln1_b_ref, wi_ref, bi_ref,
                       wo2_ref, bo2_ref, ln2_g_ref, ln2_b_ref,
                       *rest, num_heads, head_dim, eps, fuse_input_ln):
    if fuse_input_ln:
        in_g_ref, in_b_ref, o_ref, ctx_ref = rest
    else:
        o_ref, ctx_ref = rest

    H = num_heads * head_dim

    # ---- input tile (one batch, S rows), optional fused embedding LN -------
    x = x_ref[0].astype(jnp.float32)                                  # (S, H)
    if fuse_input_ln:
        x = _layernorm(x, in_g_ref[...], in_b_ref[...], eps)
    x_bf = x.astype(jnp.bfloat16)

    # ---- fused QKV projection (attention scale pre-folded into wqkv/bqkv) --
    qkv = jnp.dot(x_bf, wqkv_ref[...], preferred_element_type=jnp.float32)
    qkv = qkv + bqkv_ref[...]                                         # (S, 3H)

    # ---- multi-head self-attention on the VMEM-resident tile ---------------
    # TODO(synk): no attention_mask / padding support (full-length sequences).
    for h in range(num_heads):
        lo = h * head_dim
        q = qkv[:, lo:lo + head_dim].astype(jnp.bfloat16)             # (S, Dh)
        k = qkv[:, H + lo:H + lo + head_dim].astype(jnp.bfloat16)
        v = qkv[:, 2 * H + lo:2 * H + lo + head_dim].astype(jnp.bfloat16)
        # q @ k^T via dot_general contracting last dims (no XLU transpose).
        s = jax.lax.dot_general(q, k, (((1,), (1,)), ((), ())),
                                preferred_element_type=jnp.float32)   # (S, S)
        m = jnp.max(s, axis=-1, keepdims=True)
        p = jnp.exp(s - m)
        l = jnp.sum(p, axis=-1, keepdims=True)
        ctx = jnp.dot(p.astype(jnp.bfloat16), v,
                      preferred_element_type=jnp.float32)             # (S, Dh)
        ctx = ctx * pl.reciprocal(l, approx=True)
        ctx_ref[:, lo:lo + head_dim] = ctx.astype(jnp.bfloat16)

    # ---- attention output projection + residual + LN1 ----------------------
    attn = jnp.dot(ctx_ref[...], wo_ref[...],
                   preferred_element_type=jnp.float32)
    attn = attn + bo_ref[...] + x
    attn = _layernorm(attn, ln1_g_ref[...], ln1_b_ref[...], eps)      # (S, H)

    # ---- FFN up-projection with fused bias + GELU ---------------------------
    inter = jnp.dot(attn.astype(jnp.bfloat16), wi_ref[...],
                    preferred_element_type=jnp.float32) + bi_ref[...]
    inter = _gelu(inter)                                              # (S, I)

    # ---- FFN down-projection + residual + LN2 -------------------------------
    out = jnp.dot(inter.astype(jnp.bfloat16), wo2_ref[...],
                  preferred_element_type=jnp.float32)
    out = out + bo2_ref[...] + attn
    out = _layernorm(out, ln2_g_ref[...], ln2_b_ref[...], eps)

    o_ref[0] = out.astype(o_ref.dtype)


def bert_layer(x, p, num_heads, head_dim, input_ln=None, eps=1e-12):
    """One fused transformer encoder layer.  x: (B, S, H)."""
    B, S, H = x.shape
    I = p["wi"].shape[1]
    fuse_input_ln = input_ln is not None

    def const(shape):
        return pl.BlockSpec(shape, lambda b: (0,) * len(shape))

    in_specs = [
        pl.BlockSpec((1, S, H), lambda b: (b, 0, 0)),  # x (one batch / step)
        const((H, 3 * H)), const((1, 3 * H)),          # wqkv, bqkv
        const((H, H)), const((1, H)),                  # wo, bo
        const((1, H)), const((1, H)),                  # ln1 gamma/beta
        const((H, I)), const((1, I)),                  # wi, bi
        const((I, H)), const((1, H)),                  # wo2, bo2
        const((1, H)), const((1, H)),                  # ln2 gamma/beta
    ]
    args = [x, p["wqkv"], p["bqkv"], p["wo"], p["bo"], p["ln1_g"], p["ln1_b"],
            p["wi"], p["bi"], p["wo2"], p["bo2"], p["ln2_g"], p["ln2_b"]]
    if fuse_input_ln:
        in_specs += [const((1, H)), const((1, H))]     # embedding LN gamma/beta
        args += [input_ln[0], input_ln[1]]

    kernel = functools.partial(_bert_layer_kernel, num_heads=num_heads,
                               head_dim=head_dim, eps=eps,
                               fuse_input_ln=fuse_input_ln)
    return pl.pallas_call(
        kernel,
        out_shape=jax.ShapeDtypeStruct((B, S, H), jnp.bfloat16),
        grid_spec=pltpu.PrefetchScalarGridSpec(
            num_scalar_prefetch=0,
            grid=(B,),
            in_specs=in_specs,
            out_specs=pl.BlockSpec((1, S, H), lambda b: (b, 0, 0)),
            scratch_shapes=[pltpu.VMEM((S, H), jnp.bfloat16)],  # per-head ctx
        ),
        compiler_params=pltpu.CompilerParams(
            dimension_semantics=("parallel",),   # 1 batch per TC on v7x
            vmem_limit_bytes=_VMEM_LIMIT,
        ),
    )(*args)


# ------------------------- synthetic BERT parameters ------------------------

CFG = dict(
    vocab_size=128,
    hidden=128,
    num_heads=2,
    num_layers=2,
    intermediate=512,
    max_position=128,
    type_vocab=2,
)


def init_params(key, cfg):
    H = cfg["hidden"]
    I = cfg["intermediate"]
    Dh = H // cfg["num_heads"]
    scale = 1.0 / math.sqrt(Dh)

    def nrm(k, shape, s=0.02):
        return (s * jax.random.normal(k, shape)).astype(jnp.float32)

    keys = jax.random.split(key, 4 + cfg["num_layers"])
    params = {
        "word_emb": nrm(keys[0], (cfg["vocab_size"], H)),
        "pos_emb": nrm(keys[1], (cfg["max_position"], H)),
        "type_emb": nrm(keys[2], (cfg["type_vocab"], H)),
        "emb_ln_g": jnp.ones((1, H), jnp.float32),
        "emb_ln_b": jnp.zeros((1, H), jnp.float32),
        "layers": [],
    }
    for li in range(cfg["num_layers"]):
        lk = jax.random.split(keys[4 + li], 4)
        wqkv = nrm(lk[0], (H, 3 * H))
        bqkv = jnp.zeros((3 * H,), jnp.float32)
        # fold 1/sqrt(head_dim) attention scale into the Q projection
        wqkv = wqkv.at[:, :H].multiply(scale)
        bqkv = bqkv.at[:H].multiply(scale)
        params["layers"].append(dict(
            wqkv=wqkv.astype(jnp.bfloat16),          # pre-cast weights to bf16
            bqkv=bqkv.reshape(1, 3 * H),
            wo=nrm(lk[1], (H, H)).astype(jnp.bfloat16),
            bo=jnp.zeros((1, H), jnp.float32),
            ln1_g=jnp.ones((1, H), jnp.float32),
            ln1_b=jnp.zeros((1, H), jnp.float32),
            wi=nrm(lk[2], (H, I)).astype(jnp.bfloat16),
            bi=jnp.zeros((1, I), jnp.float32),
            wo2=nrm(lk[3], (I, H)).astype(jnp.bfloat16),
            bo2=jnp.zeros((1, H), jnp.float32),
            ln2_g=jnp.ones((1, H), jnp.float32),
            ln2_b=jnp.zeros((1, H), jnp.float32),
        ))
    return params


# ------------------------------- forward pass -------------------------------

def bert_forward(params, input_ids, seg, cfg=CFG):
    # Mirrors the PyTorch module: `seg` is accepted but unused
    # (self.bert(x) is called without token_type_ids -> zeros).
    del seg
    B, S = input_ids.shape
    H = cfg["hidden"]
    nH = cfg["num_heads"]
    Dh = H // nH

    token_type_ids = jnp.zeros((B, S), jnp.int32)
    x = (params["word_emb"][input_ids]
         + params["pos_emb"][:S][None, :, :]
         + params["type_emb"][token_type_ids])            # (B, S, H) fp32
    # dropout omitted (inference semantics)

    for li, layer in enumerate(params["layers"]):
        # embedding layernorm is fused into layer 0's kernel prologue
        input_ln = (params["emb_ln_g"], params["emb_ln_b"]) if li == 0 else None
        x = bert_layer(x, layer, nH, Dh, input_ln=input_ln)   # (B, S, H) bf16

    return x  # last_encoder_output


# ----------------------------------- main -----------------------------------

if __name__ == "__main__":
    key = jax.random.PRNGKey(0)
    pkey, ikey = jax.random.split(key)

    params = init_params(pkey, CFG)

    B, S = 2, CFG["max_position"]  # 2 x 128: small but lane-dense
    input_ids = jax.random.randint(ikey, (B, S), 0, CFG["vocab_size"],
                                   dtype=jnp.int32)
    seg = jnp.zeros((B, S), jnp.int32)

    forward = jax.jit(lambda p, ids, sg: bert_forward(p, ids, sg))
    out = jax.block_until_ready(forward(params, input_ids, seg))

    assert out.shape == (B, S, CFG["hidden"]), out.shape
    assert jnp.all(jnp.isfinite(out.astype(jnp.float32)))
    print("KERNEL_OK")
</pallas_src>

<mosaic_0001>
module attributes {stable_mosaic.version = 11 : i64} {
  func.func @_bert_layer_kernel(%arg0: i32, %arg1: memref<1x128x128xf32, #tpu.memory_space<vmem>>, %arg2: memref<128x384xbf16, #tpu.memory_space<vmem>>, %arg3: memref<1x384xf32, #tpu.memory_space<vmem>>, %arg4: memref<128x128xbf16, #tpu.memory_space<vmem>>, %arg5: memref<1x128xf32, #tpu.memory_space<vmem>>, %arg6: memref<1x128xf32, #tpu.memory_space<vmem>>, %arg7: memref<1x128xf32, #tpu.memory_space<vmem>>, %arg8: memref<128x512xbf16, #tpu.memory_space<vmem>>, %arg9: memref<1x512xf32, #tpu.memory_space<vmem>>, %arg10: memref<512x128xbf16, #tpu.memory_space<vmem>>, %arg11: memref<1x128xf32, #tpu.memory_space<vmem>>, %arg12: memref<1x128xf32, #tpu.memory_space<vmem>>, %arg13: memref<1x128xf32, #tpu.memory_space<vmem>>, %arg14: memref<1x128xf32, #tpu.memory_space<vmem>>, %arg15: memref<1x128xf32, #tpu.memory_space<vmem>>, %arg16: memref<1x128x128xbf16, #tpu.memory_space<vmem>>, %arg17: memref<128x128xbf16, #tpu.memory_space<vmem>>) attributes {dimension_semantics = [#tpu.dimension_semantics<parallel>], iteration_bounds = array<i64: 2>, scalar_prefetch = 0 : i64, scratch_operands = 1 : i64, tpu.core_type = #tpu.core_type<tc>, window_params = [{transform_indices = @transform_0, window_bounds = array<i64: 1, 128, 128>}, {pipeline_mode = #tpu.pipeline_mode<synchronous>, transform_indices = @transform_1, window_bounds = array<i64: 128, 384>}, {pipeline_mode = #tpu.pipeline_mode<synchronous>, transform_indices = @transform_2, window_bounds = array<i64: 1, 384>}, {pipeline_mode = #tpu.pipeline_mode<synchronous>, transform_indices = @transform_3, window_bounds = array<i64: 128, 128>}, {pipeline_mode = #tpu.pipeline_mode<synchronous>, transform_indices = @transform_4, window_bounds = array<i64: 1, 128>}, {pipeline_mode = #tpu.pipeline_mode<synchronous>, transform_indices = @transform_5, window_bounds = array<i64: 1, 128>}, {pipeline_mode = #tpu.pipeline_mode<synchronous>, transform_indices = @transform_6, window_bounds = array<i64: 1, 128>}, {pipeline_mode = #tpu.pipeline_mode<synchronous>, transform_indices = @transform_7, window_bounds = array<i64: 128, 512>}, {pipeline_mode = #tpu.pipeline_mode<synchronous>, transform_indices = @transform_8, window_bounds = array<i64: 1, 512>}, {pipeline_mode = #tpu.pipeline_mode<synchronous>, transform_indices = @transform_9, window_bounds = array<i64: 512, 128>}, {pipeline_mode = #tpu.pipeline_mode<synchronous>, transform_indices = @transform_10, window_bounds = array<i64: 1, 128>}, {pipeline_mode = #tpu.pipeline_mode<synchronous>, transform_indices = @transform_11, window_bounds = array<i64: 1, 128>}, {pipeline_mode = #tpu.pipeline_mode<synchronous>, transform_indices = @transform_12, window_bounds = array<i64: 1, 128>}, {pipeline_mode = #tpu.pipeline_mode<synchronous>, transform_indices = @transform_13, window_bounds = array<i64: 1, 128>}, {pipeline_mode = #tpu.pipeline_mode<synchronous>, transform_indices = @transform_14, window_bounds = array<i64: 1, 128>}, {transform_indices = @transform_15, window_bounds = array<i64: 1, 128, 128>}]} {
    %c0 = arith.constant 0 : index
    %c0_0 = arith.constant 0 : index
    %c0_1 = arith.constant 0 : index
    %0 = vector.load %arg1[%c0, %c0_0, %c0_1] : memref<1x128x128xf32, #tpu.memory_space<vmem>>, vector<1x128x128xf32>
    %1 = vector.shape_cast %0 : vector<1x128x128xf32> to vector<128x128xf32>
    %c0_2 = arith.constant 0 : index
    %c0_3 = arith.constant 0 : index
    %2 = vector.load %arg14[%c0_2, %c0_3] : memref<1x128xf32, #tpu.memory_space<vmem>>, vector<1x128xf32>
    %c0_4 = arith.constant 0 : index
    %c0_5 = arith.constant 0 : index
    %3 = vector.load %arg15[%c0_4, %c0_5] : memref<1x128xf32, #tpu.memory_space<vmem>>, vector<1x128xf32>
    %cst = arith.constant dense<0.000000e+00> : vector<128xf32>
    %4 = vector.multi_reduction <add>, %1, %cst [1] : vector<128x128xf32> to vector<128xf32>
    %5 = vector.shape_cast %4 : vector<128xf32> to vector<128x1xf32>
    %cst_6 = arith.constant 1.280000e+02 : f32
    %6 = vector.broadcast %cst_6 : f32 to vector<128x1xf32>
    %7 = arith.divf %5, %6 : vector<128x1xf32>
    %8 = vector.broadcast %7 : vector<128x1xf32> to vector<128x128xf32>
    %9 = arith.subf %1, %8 : vector<128x128xf32>
    %10 = arith.mulf %9, %9 : vector<128x128xf32>
    %cst_7 = arith.constant dense<0.000000e+00> : vector<128xf32>
    %11 = vector.multi_reduction <add>, %10, %cst_7 [1] : vector<128x128xf32> to vector<128xf32>
    %12 = vector.shape_cast %11 : vector<128xf32> to vector<128x1xf32>
    %cst_8 = arith.constant 1.280000e+02 : f32
    %13 = vector.broadcast %cst_8 : f32 to vector<128x1xf32>
    %14 = arith.divf %12, %13 : vector<128x1xf32>
    %15 = vector.broadcast %7 : vector<128x1xf32> to vector<128x128xf32>
    %16 = arith.subf %1, %15 : vector<128x128xf32>
    %cst_9 = arith.constant 9.99999996E-13 : f32
    %17 = vector.broadcast %cst_9 : f32 to vector<128x1xf32>
    %18 = arith.addf %14, %17 : vector<128x1xf32>
    %19 = math.rsqrt %18 : vector<128x1xf32>
    %20 = vector.broadcast %19 : vector<128x1xf32> to vector<128x128xf32>
    %21 = arith.mulf %16, %20 : vector<128x128xf32>
    %22 = vector.broadcast %2 : vector<1x128xf32> to vector<128x128xf32>
    %23 = arith.mulf %21, %22 : vector<128x128xf32>
    %24 = vector.broadcast %3 : vector<1x128xf32> to vector<128x128xf32>
    %25 = arith.addf %23, %24 : vector<128x128xf32>
    %26 = arith.truncf %25 : vector<128x128xf32> to vector<128x128xbf16>
    %c0_10 = arith.constant 0 : index
    %c0_11 = arith.constant 0 : index
    %27 = vector.load %arg2[%c0_10, %c0_11] : memref<128x384xbf16, #tpu.memory_space<vmem>>, vector<128x384xbf16>
    %cst_12 = arith.constant dense<0.000000e+00> : vector<128x384xf32>
    %28 = tpu.matmul %26, %27, %cst_12 {dimension_numbers = #tpu.dot_dimension_numbers<[1], [0], [0], [1], [0, 0, 1, 1], [], []>} : vector<128x128xbf16>, vector<128x384xbf16>, vector<128x384xf32> -> vector<128x384xf32>
    %c0_13 = arith.constant 0 : index
    %c0_14 = arith.constant 0 : index
    %29 = vector.load %arg3[%c0_13, %c0_14] : memref<1x384xf32, #tpu.memory_space<vmem>>, vector<1x384xf32>
    %30 = vector.broadcast %29 : vector<1x384xf32> to vector<128x384xf32>
    %31 = arith.addf %28, %30 : vector<128x384xf32>
    %32 = vector.extract_strided_slice %31 {offsets = [0, 0], sizes = [128, 64], strides = [1, 1]} : vector<128x384xf32> to vector<128x64xf32>
    %33 = arith.truncf %32 : vector<128x64xf32> to vector<128x64xbf16>
    %34 = vector.extract_strided_slice %31 {offsets = [0, 128], sizes = [128, 64], strides = [1, 1]} : vector<128x384xf32> to vector<128x64xf32>
    %35 = arith.truncf %34 : vector<128x64xf32> to vector<128x64xbf16>
    %36 = vector.extract_strided_slice %31 {offsets = [0, 256], sizes = [128, 64], strides = [1, 1]} : vector<128x384xf32> to vector<128x64xf32>
    %37 = arith.truncf %36 : vector<128x64xf32> to vector<128x64xbf16>
    %cst_15 = arith.constant dense<0.000000e+00> : vector<128x128xf32>
    %38 = tpu.matmul %33, %35, %cst_15 {dimension_numbers = #tpu.dot_dimension_numbers<[1], [1], [0], [0], [0, 0, 1, 0], [], []>} : vector<128x64xbf16>, vector<128x64xbf16>, vector<128x128xf32> -> vector<128x128xf32>
    %cst_16 = arith.constant dense<0xFF800000> : vector<128xf32>
    %39 = vector.multi_reduction <maximumf>, %38, %cst_16 [1] : vector<128x128xf32> to vector<128xf32>
    %40 = vector.shape_cast %39 : vector<128xf32> to vector<128x1xf32>
    %41 = vector.broadcast %40 : vector<128x1xf32> to vector<128x128xf32>
    %42 = arith.subf %38, %41 : vector<128x128xf32>
    %43 = math.exp %42 : vector<128x128xf32>
    %cst_17 = arith.constant dense<0.000000e+00> : vector<128xf32>
    %44 = vector.multi_reduction <add>, %43, %cst_17 [1] : vector<128x128xf32> to vector<128xf32>
    %45 = vector.shape_cast %44 : vector<128xf32> to vector<128x1xf32>
    %46 = arith.truncf %43 : vector<128x128xf32> to vector<128x128xbf16>
    %cst_18 = arith.constant dense<0.000000e+00> : vector<128x64xf32>
    %47 = tpu.matmul %46, %37, %cst_18 {dimension_numbers = #tpu.dot_dimension_numbers<[1], [0], [0], [1], [0, 0, 1, 1], [], []>} : vector<128x128xbf16>, vector<128x64xbf16>, vector<128x64xf32> -> vector<128x64xf32>
    %48 = tpu.reciprocal %45 {approx = true} : vector<128x1xf32> -> vector<128x1xf32>
    %49 = vector.broadcast %48 : vector<128x1xf32> to vector<128x64xf32>
    %50 = arith.mulf %47, %49 : vector<128x64xf32>
    %51 = arith.truncf %50 : vector<128x64xf32> to vector<128x64xbf16>
    %c0_19 = arith.constant 0 : index
    %c0_20 = arith.constant 0 : index
    %52 = vector.load %arg17[%c0_19, %c0_20] : memref<128x128xbf16, #tpu.memory_space<vmem>>, vector<128x64xbf16>
    tpu.vector_store %arg17[%c0_19, %c0_20], %51 {strides = array<i32>} : memref<128x128xbf16, #tpu.memory_space<vmem>>, vector<128x64xbf16>,
    %53 = vector.extract_strided_slice %31 {offsets = [0, 64], sizes = [128, 64], strides = [1, 1]} : vector<128x384xf32> to vector<128x64xf32>
    %54 = arith.truncf %53 : vector<128x64xf32> to vector<128x64xbf16>
    %55 = vector.extract_strided_slice %31 {offsets = [0, 192], sizes = [128, 64], strides = [1, 1]} : vector<128x384xf32> to vector<128x64xf32>
    %56 = arith.truncf %55 : vector<128x64xf32> to vector<128x64xbf16>
    %57 = vector.extract_strided_slice %31 {offsets = [0, 320], sizes = [128, 64], strides = [1, 1]} : vector<128x384xf32> to vector<128x64xf32>
    %58 = arith.truncf %57 : vector<128x64xf32> to vector<128x64xbf16>
    %cst_21 = arith.constant dense<0.000000e+00> : vector<128x128xf32>
    %59 = tpu.matmul %54, %56, %cst_21 {dimension_numbers = #tpu.dot_dimension_numbers<[1], [1], [0], [0], [0, 0, 1, 0], [], []>} : vector<128x64xbf16>, vector<128x64xbf16>, vector<128x128xf32> -> vector<128x128xf32>
    %cst_22 = arith.constant dense<0xFF800000> : vector<128xf32>
    %60 = vector.multi_reduction <maximumf>, %59, %cst_22 [1] : vector<128x128xf32> to vector<128xf32>
    %61 = vector.shape_cast %60 : vector<128xf32> to vector<128x1xf32>
    %62 = vector.broadcast %61 : vector<128x1xf32> to vector<128x128xf32>
    %63 = arith.subf %59, %62 : vector<128x128xf32>
    %64 = math.exp %63 : vector<128x128xf32>
    %cst_23 = arith.constant dense<0.000000e+00> : vector<128xf32>
    %65 = vector.multi_reduction <add>, %64, %cst_23 [1] : vector<128x128xf32> to vector<128xf32>
    %66 = vector.shape_cast %65 : vector<128xf32> to vector<128x1xf32>
    %67 = arith.truncf %64 : vector<128x128xf32> to vector<128x128xbf16>
    %cst_24 = arith.constant dense<0.000000e+00> : vector<128x64xf32>
    %68 = tpu.matmul %67, %58, %cst_24 {dimension_numbers = #tpu.dot_dimension_numbers<[1], [0], [0], [1], [0, 0, 1, 1], [], []>} : vector<128x128xbf16>, vector<128x64xbf16>, vector<128x64xf32> -> vector<128x64xf32>
    %69 = tpu.reciprocal %66 {approx = true} : vector<128x1xf32> -> vector<128x1xf32>
    %70 = vector.broadcast %69 : vector<128x1xf32> to vector<128x64xf32>
    %71 = arith.mulf %68, %70 : vector<128x64xf32>
    %72 = arith.truncf %71 : vector<128x64xf32> to vector<128x64xbf16>
    %c0_25 = arith.constant 0 : index
    %c64 = arith.constant 64 : index
    %73 = vector.load %arg17[%c0_25, %c64] : memref<128x128xbf16, #tpu.memory_space<vmem>>, vector<128x64xbf16>
    tpu.vector_store %arg17[%c0_25, %c64], %72 {strides = array<i32>} : memref<128x128xbf16, #tpu.memory_space<vmem>>, vector<128x64xbf16>,
    %c0_26 = arith.constant 0 : index
    %c0_27 = arith.constant 0 : index
    %74 = vector.load %arg17[%c0_26, %c0_27] : memref<128x128xbf16, #tpu.memory_space<vmem>>, vector<128x128xbf16>
    %c0_28 = arith.constant 0 : index
    %c0_29 = arith.constant 0 : index
    %75 = vector.load %arg4[%c0_28, %c0_29] : memref<128x128xbf16, #tpu.memory_space<vmem>>, vector<128x128xbf16>
    %cst_30 = arith.constant dense<0.000000e+00> : vector<128x128xf32>
    %76 = tpu.matmul %74, %75, %cst_30 {dimension_numbers = #tpu.dot_dimension_numbers<[1], [0], [0], [1], [0, 0, 1, 1], [], []>} : vector<128x128xbf16>, vector<128x128xbf16>, vector<128x128xf32> -> vector<128x128xf32>
    %c0_31 = arith.constant 0 : index
    %c0_32 = arith.constant 0 : index
    %77 = vector.load %arg5[%c0_31, %c0_32] : memref<1x128xf32, #tpu.memory_space<vmem>>, vector<1x128xf32>
    %78 = vector.broadcast %77 : vector<1x128xf32> to vector<128x128xf32>
    %79 = arith.addf %76, %78 : vector<128x128xf32>
    %80 = arith.addf %79, %25 : vector<128x128xf32>
    %c0_33 = arith.constant 0 : index
    %c0_34 = arith.constant 0 : index
    %81 = vector.load %arg6[%c0_33, %c0_34] : memref<1x128xf32, #tpu.memory_space<vmem>>, vector<1x128xf32>
    %c0_35 = arith.constant 0 : index
    %c0_36 = arith.constant 0 : index
    %82 = vector.load %arg7[%c0_35, %c0_36] : memref<1x128xf32, #tpu.memory_space<vmem>>, vector<1x128xf32>
    %cst_37 = arith.constant dense<0.000000e+00> : vector<128xf32>
    %83 = vector.multi_reduction <add>, %80, %cst_37 [1] : vector<128x128xf32> to vector<128xf32>
    %84 = vector.shape_cast %83 : vector<128xf32> to vector<128x1xf32>
    %cst_38 = arith.constant 1.280000e+02 : f32
    %85 = vector.broadcast %cst_38 : f32 to vector<128x1xf32>
    %86 = arith.divf %84, %85 : vector<128x1xf32>
    %87 = vector.broadcast %86 : vector<128x1xf32> to vector<128x128xf32>
    %88 = arith.subf %80, %87 : vector<128x128xf32>
    %89 = arith.mulf %88, %88 : vector<128x128xf32>
    %cst_39 = arith.constant dense<0.000000e+00> : vector<128xf32>
    %90 = vector.multi_reduction <add>, %89, %cst_39 [1] : vector<128x128xf32> to vector<128xf32>
    %91 = vector.shape_cast %90 : vector<128xf32> to vector<128x1xf32>
    %cst_40 = arith.constant 1.280000e+02 : f32
    %92 = vector.broadcast %cst_40 : f32 to vector<128x1xf32>
    %93 = arith.divf %91, %92 : vector<128x1xf32>
    %94 = vector.broadcast %86 : vector<128x1xf32> to vector<128x128xf32>
    %95 = arith.subf %80, %94 : vector<128x128xf32>
    %cst_41 = arith.constant 9.99999996E-13 : f32
    %96 = vector.broadcast %cst_41 : f32 to vector<128x1xf32>
    %97 = arith.addf %93, %96 : vector<128x1xf32>
    %98 = math.rsqrt %97 : vector<128x1xf32>
    %99 = vector.broadcast %98 : vector<128x1xf32> to vector<128x128xf32>
    %100 = arith.mulf %95, %99 : vector<128x128xf32>
    %101 = vector.broadcast %81 : vector<1x128xf32> to vector<128x128xf32>
    %102 = arith.mulf %100, %101 : vector<128x128xf32>
    %103 = vector.broadcast %82 : vector<1x128xf32> to vector<128x128xf32>
    %104 = arith.addf %102, %103 : vector<128x128xf32>
    %105 = arith.truncf %104 : vector<128x128xf32> to vector<128x128xbf16>
    %c0_42 = arith.constant 0 : index
    %c0_43 = arith.constant 0 : index
    %106 = vector.load %arg8[%c0_42, %c0_43] : memref<128x512xbf16, #tpu.memory_space<vmem>>, vector<128x512xbf16>
    %cst_44 = arith.constant dense<0.000000e+00> : vector<128x512xf32>
    %107 = tpu.matmul %105, %106, %cst_44 {dimension_numbers = #tpu.dot_dimension_numbers<[1], [0], [0], [1], [0, 0, 1, 1], [], []>} : vector<128x128xbf16>, vector<128x512xbf16>, vector<128x512xf32> -> vector<128x512xf32>
    %c0_45 = arith.constant 0 : index
    %c0_46 = arith.constant 0 : index
    %108 = vector.load %arg9[%c0_45, %c0_46] : memref<1x512xf32, #tpu.memory_space<vmem>>, vector<1x512xf32>
    %109 = vector.broadcast %108 : vector<1x512xf32> to vector<128x512xf32>
    %110 = arith.addf %107, %109 : vector<128x512xf32>
    %cst_47 = arith.constant 5.000000e-01 : f32
    %111 = vector.broadcast %cst_47 : f32 to vector<128x512xf32>
    %112 = arith.mulf %111, %110 : vector<128x512xf32>
    %cst_48 = arith.constant 4.471500e-02 : f32
    %113 = vector.broadcast %cst_48 : f32 to vector<128x512xf32>
    %114 = arith.mulf %113, %110 : vector<128x512xf32>
    %115 = arith.mulf %114, %110 : vector<128x512xf32>
    %116 = arith.mulf %115, %110 : vector<128x512xf32>
    %117 = arith.addf %110, %116 : vector<128x512xf32>
    %cst_49 = arith.constant 0.797884583 : f32
    %118 = vector.broadcast %cst_49 : f32 to vector<128x512xf32>
    %119 = arith.mulf %118, %117 : vector<128x512xf32>
    %120 = math.tanh %119 : vector<128x512xf32>
    %cst_50 = arith.constant 1.000000e+00 : f32
    %121 = vector.broadcast %cst_50 : f32 to vector<128x512xf32>
    %122 = arith.addf %121, %120 : vector<128x512xf32>
    %123 = arith.mulf %112, %122 : vector<128x512xf32>
    %124 = arith.truncf %123 : vector<128x512xf32> to vector<128x512xbf16>
    %c0_51 = arith.constant 0 : index
    %c0_52 = arith.constant 0 : index
    %125 = vector.load %arg10[%c0_51, %c0_52] : memref<512x128xbf16, #tpu.memory_space<vmem>>, vector<512x128xbf16>
    %cst_53 = arith.constant dense<0.000000e+00> : vector<128x128xf32>
    %126 = tpu.matmul %124, %125, %cst_53 {dimension_numbers = #tpu.dot_dimension_numbers<[1], [0], [0], [1], [0, 0, 1, 1], [], []>} : vector<128x512xbf16>, vector<512x128xbf16>, vector<128x128xf32> -> vector<128x128xf32>
    %c0_54 = arith.constant 0 : index
    %c0_55 = arith.constant 0 : index
    %127 = vector.load %arg11[%c0_54, %c0_55] : memref<1x128xf32, #tpu.memory_space<vmem>>, vector<1x128xf32>
    %128 = vector.broadcast %127 : vector<1x128xf32> to vector<128x128xf32>
    %129 = arith.addf %126, %128 : vector<128x128xf32>
    %130 = arith.addf %129, %104 : vector<128x128xf32>
    %c0_56 = arith.constant 0 : index
    %c0_57 = arith.constant 0 : index
    %131 = vector.load %arg12[%c0_56, %c0_57] : memref<1x128xf32, #tpu.memory_space<vmem>>, vector<1x128xf32>
    %c0_58 = arith.constant 0 : index
    %c0_59 = arith.constant 0 : index
    %132 = vector.load %arg13[%c0_58, %c0_59] : memref<1x128xf32, #tpu.memory_space<vmem>>, vector<1x128xf32>
    %cst_60 = arith.constant dense<0.000000e+00> : vector<128xf32>
    %133 = vector.multi_reduction <add>, %130, %cst_60 [1] : vector<128x128xf32> to vector<128xf32>
    %134 = vector.shape_cast %133 : vector<128xf32> to vector<128x1xf32>
    %cst_61 = arith.constant 1.280000e+02 : f32
    %135 = vector.broadcast %cst_61 : f32 to vector<128x1xf32>
    %136 = arith.divf %134, %135 : vector<128x1xf32>
    %137 = vector.broadcast %136 : vector<128x1xf32> to vector<128x128xf32>
    %138 = arith.subf %130, %137 : vector<128x128xf32>
    %139 = arith.mulf %138, %138 : vector<128x128xf32>
    %cst_62 = arith.constant dense<0.000000e+00> : vector<128xf32>
    %140 = vector.multi_reduction <add>, %139, %cst_62 [1] : vector<128x128xf32> to vector<128xf32>
    %141 = vector.shape_cast %140 : vector<128xf32> to vector<128x1xf32>
    %cst_63 = arith.constant 1.280000e+02 : f32
    %142 = vector.broadcast %cst_63 : f32 to vector<128x1xf32>
    %143 = arith.divf %141, %142 : vector<128x1xf32>
    %144 = vector.broadcast %136 : vector<128x1xf32> to vector<128x128xf32>
    %145 = arith.subf %130, %144 : vector<128x128xf32>
    %cst_64 = arith.constant 9.99999996E-13 : f32
    %146 = vector.broadcast %cst_64 : f32 to vector<128x1xf32>
    %147 = arith.addf %143, %146 : vector<128x1xf32>
    %148 = math.rsqrt %147 : vector<128x1xf32>
    %149 = vector.broadcast %148 : vector<128x1xf32> to vector<128x128xf32>
    %150 = arith.mulf %145, %149 : vector<128x128xf32>
    %151 = vector.broadcast %131 : vector<1x128xf32> to vector<128x128xf32>
    %152 = arith.mulf %150, %151 : vector<128x128xf32>
    %153 = vector.broadcast %132 : vector<1x128xf32> to vector<128x128xf32>
    %154 = arith.addf %152, %153 : vector<128x128xf32>
    %155 = arith.truncf %154 : vector<128x128xf32> to vector<128x128xbf16>
    %c0_65 = arith.constant 0 : index
    %c0_66 = arith.constant 0 : index
    %c0_67 = arith.constant 0 : index
    %156 = vector.load %arg16[%c0_65, %c0_66, %c0_67] : memref<1x128x128xbf16, #tpu.memory_space<vmem>>, vector<1x128x128xbf16>
    %157 = vector.shape_cast %156 : vector<1x128x128xbf16> to vector<128x128xbf16>
    %158 = vector.shape_cast %155 : vector<128x128xbf16> to vector<1x128x128xbf16>
    tpu.vector_store %arg16[%c0_65, %c0_66, %c0_67], %158 {strides = array<i32>} : memref<1x128x128xbf16, #tpu.memory_space<vmem>>, vector<1x128x128xbf16>,
    return
  }
  func.func @transform_0(%arg0: i32) -> (i32, i32, i32) {
    %c0_i32 = arith.constant 0 : i32
    %c0_i32_0 = arith.constant 0 : i32
    %c0_i32_1 = arith.constant 0 : i32
    return %arg0, %c0_i32, %c0_i32_0 : i32, i32, i32
  }
  func.func @transform_1(%arg0: i32) -> (i32, i32) {
    %c0_i32 = arith.constant 0 : i32
    %c0_i32_0 = arith.constant 0 : i32
    %c0_i32_1 = arith.constant 0 : i32
    return %c0_i32, %c0_i32_0 : i32, i32
  }
  func.func @transform_2(%arg0: i32) -> (i32, i32) {
    %c0_i32 = arith.constant 0 : i32
    %c0_i32_0 = arith.constant 0 : i32
    %c0_i32_1 = arith.constant 0 : i32
    return %c0_i32, %c0_i32_0 : i32, i32
  }
  func.func @transform_3(%arg0: i32) -> (i32, i32) {
    %c0_i32 = arith.constant 0 : i32
    %c0_i32_0 = arith.constant 0 : i32
    %c0_i32_1 = arith.constant 0 : i32
    return %c0_i32, %c0_i32_0 : i32, i32
  }
  func.func @transform_4(%arg0: i32) -> (i32, i32) {
    %c0_i32 = arith.constant 0 : i32
    %c0_i32_0 = arith.constant 0 : i32
    %c0_i32_1 = arith.constant 0 : i32
    return %c0_i32, %c0_i32_0 : i32, i32
  }
  func.func @transform_5(%arg0: i32) -> (i32, i32) {
    %c0_i32 = arith.constant 0 : i32
    %c0_i32_0 = arith.constant 0 : i32
    %c0_i32_1 = arith.constant 0 : i32
    return %c0_i32, %c0_i32_0 : i32, i32
  }
  func.func @transform_6(%arg0: i32) -> (i32, i32) {
    %c0_i32 = arith.constant 0 : i32
    %c0_i32_0 = arith.constant 0 : i32
    %c0_i32_1 = arith.constant 0 : i32
    return %c0_i32, %c0_i32_0 : i32, i32
  }
  func.func @transform_7(%arg0: i32) -> (i32, i32) {
    %c0_i32 = arith.constant 0 : i32
    %c0_i32_0 = arith.constant 0 : i32
    %c0_i32_1 = arith.constant 0 : i32
    return %c0_i32, %c0_i32_0 : i32, i32
  }
  func.func @transform_8(%arg0: i32) -> (i32, i32) {
    %c0_i32 = arith.constant 0 : i32
    %c0_i32_0 = arith.constant 0 : i32
    %c0_i32_1 = arith.constant 0 : i32
    return %c0_i32, %c0_i32_0 : i32, i32
  }
  func.func @transform_9(%arg0: i32) -> (i32, i32) {
    %c0_i32 = arith.constant 0 : i32
    %c0_i32_0 = arith.constant 0 : i32
    %c0_i32_1 = arith.constant 0 : i32
    return %c0_i32, %c0_i32_0 : i32, i32
  }
  func.func @transform_10(%arg0: i32) -> (i32, i32) {
    %c0_i32 = arith.constant 0 : i32
    %c0_i32_0 = arith.constant 0 : i32
    %c0_i32_1 = arith.constant 0 : i32
    return %c0_i32, %c0_i32_0 : i32, i32
  }
  func.func @transform_11(%arg0: i32) -> (i32, i32) {
    %c0_i32 = arith.constant 0 : i32
    %c0_i32_0 = arith.constant 0 : i32
    %c0_i32_1 = arith.constant 0 : i32
    return %c0_i32, %c0_i32_0 : i32, i32
  }
  func.func @transform_12(%arg0: i32) -> (i32, i32) {
    %c0_i32 = arith.constant 0 : i32
    %c0_i32_0 = arith.constant 0 : i32
    %c0_i32_1 = arith.constant 0 : i32
    return %c0_i32, %c0_i32_0 : i32, i32
  }
  func.func @transform_13(%arg0: i32) -> (i32, i32) {
    %c0_i32 = arith.constant 0 : i32
    %c0_i32_0 = arith.constant 0 : i32
    %c0_i32_1 = arith.constant 0 : i32
    return %c0_i32, %c0_i32_0 : i32, i32
  }
  func.func @transform_14(%arg0: i32) -> (i32, i32) {
    %c0_i32 = arith.constant 0 : i32
    %c0_i32_0 = arith.constant 0 : i32
    %c0_i32_1 = arith.constant 0 : i32
    return %c0_i32, %c0_i32_0 : i32, i32
  }
  func.func @transform_15(%arg0: i32) -> (i32, i32, i32) {
    %c0_i32 = arith.constant 0 : i32
    %c0_i32_0 = arith.constant 0 : i32
    %c0_i32_1 = arith.constant 0 : i32
    return %arg0, %c0_i32, %c0_i32_0 : i32, i32, i32
  }
}

module attributes {stable_mosaic.version = 11 : i64} {
  func.func @_bert_layer_kernel(%arg0: i32, %arg1: memref<1x128x128xbf16, #tpu.memory_space<vmem>>, %arg2: memref<128x384xbf16, #tpu.memory_space<vmem>>, %arg3: memref<1x384xf32, #tpu.memory_space<vmem>>, %arg4: memref<128x128xbf16, #tpu.memory_space<vmem>>, %arg5: memref<1x128xf32, #tpu.memory_space<vmem>>, %arg6: memref<1x128xf32, #tpu.memory_space<vmem>>, %arg7: memref<1x128xf32, #tpu.memory_space<vmem>>, %arg8: memref<128x512xbf16, #tpu.memory_space<vmem>>, %arg9: memref<1x512xf32, #tpu.memory_space<vmem>>, %arg10: memref<512x128xbf16, #tpu.memory_space<vmem>>, %arg11: memref<1x128xf32, #tpu.memory_space<vmem>>, %arg12: memref<1x128xf32, #tpu.memory_space<vmem>>, %arg13: memref<1x128xf32, #tpu.memory_space<vmem>>, %arg14: memref<1x128x128xbf16, #tpu.memory_space<vmem>>, %arg15: memref<128x128xbf16, #tpu.memory_space<vmem>>) attributes {dimension_semantics = [#tpu.dimension_semantics<parallel>], iteration_bounds = array<i64: 2>, scalar_prefetch = 0 : i64, scratch_operands = 1 : i64, tpu.core_type = #tpu.core_type<tc>, window_params = [{transform_indices = @transform_0, window_bounds = array<i64: 1, 128, 128>}, {pipeline_mode = #tpu.pipeline_mode<synchronous>, transform_indices = @transform_1, window_bounds = array<i64: 128, 384>}, {pipeline_mode = #tpu.pipeline_mode<synchronous>, transform_indices = @transform_2, window_bounds = array<i64: 1, 384>}, {pipeline_mode = #tpu.pipeline_mode<synchronous>, transform_indices = @transform_3, window_bounds = array<i64: 128, 128>}, {pipeline_mode = #tpu.pipeline_mode<synchronous>, transform_indices = @transform_4, window_bounds = array<i64: 1, 128>}, {pipeline_mode = #tpu.pipeline_mode<synchronous>, transform_indices = @transform_5, window_bounds = array<i64: 1, 128>}, {pipeline_mode = #tpu.pipeline_mode<synchronous>, transform_indices = @transform_6, window_bounds = array<i64: 1, 128>}, {pipeline_mode = #tpu.pipeline_mode<synchronous>, transform_indices = @transform_7, window_bounds = array<i64: 128, 512>}, {pipeline_mode = #tpu.pipeline_mode<synchronous>, transform_indices = @transform_8, window_bounds = array<i64: 1, 512>}, {pipeline_mode = #tpu.pipeline_mode<synchronous>, transform_indices = @transform_9, window_bounds = array<i64: 512, 128>}, {pipeline_mode = #tpu.pipeline_mode<synchronous>, transform_indices = @transform_10, window_bounds = array<i64: 1, 128>}, {pipeline_mode = #tpu.pipeline_mode<synchronous>, transform_indices = @transform_11, window_bounds = array<i64: 1, 128>}, {pipeline_mode = #tpu.pipeline_mode<synchronous>, transform_indices = @transform_12, window_bounds = array<i64: 1, 128>}, {transform_indices = @transform_13, window_bounds = array<i64: 1, 128, 128>}]} {
    %c0 = arith.constant 0 : index
    %c0_0 = arith.constant 0 : index
    %c0_1 = arith.constant 0 : index
    %0 = vector.load %arg1[%c0, %c0_0, %c0_1] : memref<1x128x128xbf16, #tpu.memory_space<vmem>>, vector<1x128x128xbf16>
    %1 = vector.shape_cast %0 : vector<1x128x128xbf16> to vector<128x128xbf16>
    %2 = arith.extf %1 : vector<128x128xbf16> to vector<128x128xf32>
    %3 = arith.truncf %2 : vector<128x128xf32> to vector<128x128xbf16>
    %c0_2 = arith.constant 0 : index
    %c0_3 = arith.constant 0 : index
    %4 = vector.load %arg2[%c0_2, %c0_3] : memref<128x384xbf16, #tpu.memory_space<vmem>>, vector<128x384xbf16>
    %cst = arith.constant dense<0.000000e+00> : vector<128x384xf32>
    %5 = tpu.matmul %3, %4, %cst {dimension_numbers = #tpu.dot_dimension_numbers<[1], [0], [0], [1], [0, 0, 1, 1], [], []>} : vector<128x128xbf16>, vector<128x384xbf16>, vector<128x384xf32> -> vector<128x384xf32>
    %c0_4 = arith.constant 0 : index
    %c0_5 = arith.constant 0 : index
    %6 = vector.load %arg3[%c0_4, %c0_5] : memref<1x384xf32, #tpu.memory_space<vmem>>, vector<1x384xf32>
    %7 = vector.broadcast %6 : vector<1x384xf32> to vector<128x384xf32>
    %8 = arith.addf %5, %7 : vector<128x384xf32>
    %9 = vector.extract_strided_slice %8 {offsets = [0, 0], sizes = [128, 64], strides = [1, 1]} : vector<128x384xf32> to vector<128x64xf32>
    %10 = arith.truncf %9 : vector<128x64xf32> to vector<128x64xbf16>
    %11 = vector.extract_strided_slice %8 {offsets = [0, 128], sizes = [128, 64], strides = [1, 1]} : vector<128x384xf32> to vector<128x64xf32>
    %12 = arith.truncf %11 : vector<128x64xf32> to vector<128x64xbf16>
    %13 = vector.extract_strided_slice %8 {offsets = [0, 256], sizes = [128, 64], strides = [1, 1]} : vector<128x384xf32> to vector<128x64xf32>
    %14 = arith.truncf %13 : vector<128x64xf32> to vector<128x64xbf16>
    %cst_6 = arith.constant dense<0.000000e+00> : vector<128x128xf32>
    %15 = tpu.matmul %10, %12, %cst_6 {dimension_numbers = #tpu.dot_dimension_numbers<[1], [1], [0], [0], [0, 0, 1, 0], [], []>} : vector<128x64xbf16>, vector<128x64xbf16>, vector<128x128xf32> -> vector<128x128xf32>
    %cst_7 = arith.constant dense<0xFF800000> : vector<128xf32>
    %16 = vector.multi_reduction <maximumf>, %15, %cst_7 [1] : vector<128x128xf32> to vector<128xf32>
    %17 = vector.shape_cast %16 : vector<128xf32> to vector<128x1xf32>
    %18 = vector.broadcast %17 : vector<128x1xf32> to vector<128x128xf32>
    %19 = arith.subf %15, %18 : vector<128x128xf32>
    %20 = math.exp %19 : vector<128x128xf32>
    %cst_8 = arith.constant dense<0.000000e+00> : vector<128xf32>
    %21 = vector.multi_reduction <add>, %20, %cst_8 [1] : vector<128x128xf32> to vector<128xf32>
    %22 = vector.shape_cast %21 : vector<128xf32> to vector<128x1xf32>
    %23 = arith.truncf %20 : vector<128x128xf32> to vector<128x128xbf16>
    %cst_9 = arith.constant dense<0.000000e+00> : vector<128x64xf32>
    %24 = tpu.matmul %23, %14, %cst_9 {dimension_numbers = #tpu.dot_dimension_numbers<[1], [0], [0], [1], [0, 0, 1, 1], [], []>} : vector<128x128xbf16>, vector<128x64xbf16>, vector<128x64xf32> -> vector<128x64xf32>
    %25 = tpu.reciprocal %22 {approx = true} : vector<128x1xf32> -> vector<128x1xf32>
    %26 = vector.broadcast %25 : vector<128x1xf32> to vector<128x64xf32>
    %27 = arith.mulf %24, %26 : vector<128x64xf32>
    %28 = arith.truncf %27 : vector<128x64xf32> to vector<128x64xbf16>
    %c0_10 = arith.constant 0 : index
    %c0_11 = arith.constant 0 : index
    %29 = vector.load %arg15[%c0_10, %c0_11] : memref<128x128xbf16, #tpu.memory_space<vmem>>, vector<128x64xbf16>
    tpu.vector_store %arg15[%c0_10, %c0_11], %28 {strides = array<i32>} : memref<128x128xbf16, #tpu.memory_space<vmem>>, vector<128x64xbf16>,
    %30 = vector.extract_strided_slice %8 {offsets = [0, 64], sizes = [128, 64], strides = [1, 1]} : vector<128x384xf32> to vector<128x64xf32>
    %31 = arith.truncf %30 : vector<128x64xf32> to vector<128x64xbf16>
    %32 = vector.extract_strided_slice %8 {offsets = [0, 192], sizes = [128, 64], strides = [1, 1]} : vector<128x384xf32> to vector<128x64xf32>
    %33 = arith.truncf %32 : vector<128x64xf32> to vector<128x64xbf16>
    %34 = vector.extract_strided_slice %8 {offsets = [0, 320], sizes = [128, 64], strides = [1, 1]} : vector<128x384xf32> to vector<128x64xf32>
    %35 = arith.truncf %34 : vector<128x64xf32> to vector<128x64xbf16>
    %cst_12 = arith.constant dense<0.000000e+00> : vector<128x128xf32>
    %36 = tpu.matmul %31, %33, %cst_12 {dimension_numbers = #tpu.dot_dimension_numbers<[1], [1], [0], [0], [0, 0, 1, 0], [], []>} : vector<128x64xbf16>, vector<128x64xbf16>, vector<128x128xf32> -> vector<128x128xf32>
    %cst_13 = arith.constant dense<0xFF800000> : vector<128xf32>
    %37 = vector.multi_reduction <maximumf>, %36, %cst_13 [1] : vector<128x128xf32> to vector<128xf32>
    %38 = vector.shape_cast %37 : vector<128xf32> to vector<128x1xf32>
    %39 = vector.broadcast %38 : vector<128x1xf32> to vector<128x128xf32>
    %40 = arith.subf %36, %39 : vector<128x128xf32>
    %41 = math.exp %40 : vector<128x128xf32>
    %cst_14 = arith.constant dense<0.000000e+00> : vector<128xf32>
    %42 = vector.multi_reduction <add>, %41, %cst_14 [1] : vector<128x128xf32> to vector<128xf32>
    %43 = vector.shape_cast %42 : vector<128xf32> to vector<128x1xf32>
    %44 = arith.truncf %41 : vector<128x128xf32> to vector<128x128xbf16>
    %cst_15 = arith.constant dense<0.000000e+00> : vector<128x64xf32>
    %45 = tpu.matmul %44, %35, %cst_15 {dimension_numbers = #tpu.dot_dimension_numbers<[1], [0], [0], [1], [0, 0, 1, 1], [], []>} : vector<128x128xbf16>, vector<128x64xbf16>, vector<128x64xf32> -> vector<128x64xf32>
    %46 = tpu.reciprocal %43 {approx = true} : vector<128x1xf32> -> vector<128x1xf32>
    %47 = vector.broadcast %46 : vector<128x1xf32> to vector<128x64xf32>
    %48 = arith.mulf %45, %47 : vector<128x64xf32>
    %49 = arith.truncf %48 : vector<128x64xf32> to vector<128x64xbf16>
    %c0_16 = arith.constant 0 : index
    %c64 = arith.constant 64 : index
    %50 = vector.load %arg15[%c0_16, %c64] : memref<128x128xbf16, #tpu.memory_space<vmem>>, vector<128x64xbf16>
    tpu.vector_store %arg15[%c0_16, %c64], %49 {strides = array<i32>} : memref<128x128xbf16, #tpu.memory_space<vmem>>, vector<128x64xbf16>,
    %c0_17 = arith.constant 0 : index
    %c0_18 = arith.constant 0 : index
    %51 = vector.load %arg15[%c0_17, %c0_18] : memref<128x128xbf16, #tpu.memory_space<vmem>>, vector<128x128xbf16>
    %c0_19 = arith.constant 0 : index
    %c0_20 = arith.constant 0 : index
    %52 = vector.load %arg4[%c0_19, %c0_20] : memref<128x128xbf16, #tpu.memory_space<vmem>>, vector<128x128xbf16>
    %cst_21 = arith.constant dense<0.000000e+00> : vector<128x128xf32>
    %53 = tpu.matmul %51, %52, %cst_21 {dimension_numbers = #tpu.dot_dimension_numbers<[1], [0], [0], [1], [0, 0, 1, 1], [], []>} : vector<128x128xbf16>, vector<128x128xbf16>, vector<128x128xf32> -> vector<128x128xf32>
    %c0_22 = arith.constant 0 : index
    %c0_23 = arith.constant 0 : index
    %54 = vector.load %arg5[%c0_22, %c0_23] : memref<1x128xf32, #tpu.memory_space<vmem>>, vector<1x128xf32>
    %55 = vector.broadcast %54 : vector<1x128xf32> to vector<128x128xf32>
    %56 = arith.addf %53, %55 : vector<128x128xf32>
    %57 = arith.addf %56, %2 : vector<128x128xf32>
    %c0_24 = arith.constant 0 : index
    %c0_25 = arith.constant 0 : index
    %58 = vector.load %arg6[%c0_24, %c0_25] : memref<1x128xf32, #tpu.memory_space<vmem>>, vector<1x128xf32>
    %c0_26 = arith.constant 0 : index
    %c0_27 = arith.constant 0 : index
    %59 = vector.load %arg7[%c0_26, %c0_27] : memref<1x128xf32, #tpu.memory_space<vmem>>, vector<1x128xf32>
    %cst_28 = arith.constant dense<0.000000e+00> : vector<128xf32>
    %60 = vector.multi_reduction <add>, %57, %cst_28 [1] : vector<128x128xf32> to vector<128xf32>
    %61 = vector.shape_cast %60 : vector<128xf32> to vector<128x1xf32>
    %cst_29 = arith.constant 1.280000e+02 : f32
    %62 = vector.broadcast %cst_29 : f32 to vector<128x1xf32>
    %63 = arith.divf %61, %62 : vector<128x1xf32>
    %64 = vector.broadcast %63 : vector<128x1xf32> to vector<128x128xf32>
    %65 = arith.subf %57, %64 : vector<128x128xf32>
    %66 = arith.mulf %65, %65 : vector<128x128xf32>
    %cst_30 = arith.constant dense<0.000000e+00> : vector<128xf32>
    %67 = vector.multi_reduction <add>, %66, %cst_30 [1] : vector<128x128xf32> to vector<128xf32>
    %68 = vector.shape_cast %67 : vector<128xf32> to vector<128x1xf32>
    %cst_31 = arith.constant 1.280000e+02 : f32
    %69 = vector.broadcast %cst_31 : f32 to vector<128x1xf32>
    %70 = arith.divf %68, %69 : vector<128x1xf32>
    %71 = vector.broadcast %63 : vector<128x1xf32> to vector<128x128xf32>
    %72 = arith.subf %57, %71 : vector<128x128xf32>
    %cst_32 = arith.constant 9.99999996E-13 : f32
    %73 = vector.broadcast %cst_32 : f32 to vector<128x1xf32>
    %74 = arith.addf %70, %73 : vector<128x1xf32>
    %75 = math.rsqrt %74 : vector<128x1xf32>
    %76 = vector.broadcast %75 : vector<128x1xf32> to vector<128x128xf32>
    %77 = arith.mulf %72, %76 : vector<128x128xf32>
    %78 = vector.broadcast %58 : vector<1x128xf32> to vector<128x128xf32>
    %79 = arith.mulf %77, %78 : vector<128x128xf32>
    %80 = vector.broadcast %59 : vector<1x128xf32> to vector<128x128xf32>
    %81 = arith.addf %79, %80 : vector<128x128xf32>
    %82 = arith.truncf %81 : vector<128x128xf32> to vector<128x128xbf16>
    %c0_33 = arith.constant 0 : index
    %c0_34 = arith.constant 0 : index
    %83 = vector.load %arg8[%c0_33, %c0_34] : memref<128x512xbf16, #tpu.memory_space<vmem>>, vector<128x512xbf16>
    %cst_35 = arith.constant dense<0.000000e+00> : vector<128x512xf32>
    %84 = tpu.matmul %82, %83, %cst_35 {dimension_numbers = #tpu.dot_dimension_numbers<[1], [0], [0], [1], [0, 0, 1, 1], [], []>} : vector<128x128xbf16>, vector<128x512xbf16>, vector<128x512xf32> -> vector<128x512xf32>
    %c0_36 = arith.constant 0 : index
    %c0_37 = arith.constant 0 : index
    %85 = vector.load %arg9[%c0_36, %c0_37] : memref<1x512xf32, #tpu.memory_space<vmem>>, vector<1x512xf32>
    %86 = vector.broadcast %85 : vector<1x512xf32> to vector<128x512xf32>
    %87 = arith.addf %84, %86 : vector<128x512xf32>
    %cst_38 = arith.constant 5.000000e-01 : f32
    %88 = vector.broadcast %cst_38 : f32 to vector<128x512xf32>
    %89 = arith.mulf %88, %87 : vector<128x512xf32>
    %cst_39 = arith.constant 4.471500e-02 : f32
    %90 = vector.broadcast %cst_39 : f32 to vector<128x512xf32>
    %91 = arith.mulf %90, %87 : vector<128x512xf32>
    %92 = arith.mulf %91, %87 : vector<128x512xf32>
    %93 = arith.mulf %92, %87 : vector<128x512xf32>
    %94 = arith.addf %87, %93 : vector<128x512xf32>
    %cst_40 = arith.constant 0.797884583 : f32
    %95 = vector.broadcast %cst_40 : f32 to vector<128x512xf32>
    %96 = arith.mulf %95, %94 : vector<128x512xf32>
    %97 = math.tanh %96 : vector<128x512xf32>
    %cst_41 = arith.constant 1.000000e+00 : f32
    %98 = vector.broadcast %cst_41 : f32 to vector<128x512xf32>
    %99 = arith.addf %98, %97 : vector<128x512xf32>
    %100 = arith.mulf %89, %99 : vector<128x512xf32>
    %101 = arith.truncf %100 : vector<128x512xf32> to vector<128x512xbf16>
    %c0_42 = arith.constant 0 : index
    %c0_43 = arith.constant 0 : index
    %102 = vector.load %arg10[%c0_42, %c0_43] : memref<512x128xbf16, #tpu.memory_space<vmem>>, vector<512x128xbf16>
    %cst_44 = arith.constant dense<0.000000e+00> : vector<128x128xf32>
    %103 = tpu.matmul %101, %102, %cst_44 {dimension_numbers = #tpu.dot_dimension_numbers<[1], [0], [0], [1], [0, 0, 1, 1], [], []>} : vector<128x512xbf16>, vector<512x128xbf16>, vector<128x128xf32> -> vector<128x128xf32>
    %c0_45 = arith.constant 0 : index
    %c0_46 = arith.constant 0 : index
    %104 = vector.load %arg11[%c0_45, %c0_46] : memref<1x128xf32, #tpu.memory_space<vmem>>, vector<1x128xf32>
    %105 = vector.broadcast %104 : vector<1x128xf32> to vector<128x128xf32>
    %106 = arith.addf %103, %105 : vector<128x128xf32>
    %107 = arith.addf %106, %81 : vector<128x128xf32>
    %c0_47 = arith.constant 0 : index
    %c0_48 = arith.constant 0 : index
    %108 = vector.load %arg12[%c0_47, %c0_48] : memref<1x128xf32, #tpu.memory_space<vmem>>, vector<1x128xf32>
    %c0_49 = arith.constant 0 : index
    %c0_50 = arith.constant 0 : index
    %109 = vector.load %arg13[%c0_49, %c0_50] : memref<1x128xf32, #tpu.memory_space<vmem>>, vector<1x128xf32>
    %cst_51 = arith.constant dense<0.000000e+00> : vector<128xf32>
    %110 = vector.multi_reduction <add>, %107, %cst_51 [1] : vector<128x128xf32> to vector<128xf32>
    %111 = vector.shape_cast %110 : vector<128xf32> to vector<128x1xf32>
    %cst_52 = arith.constant 1.280000e+02 : f32
    %112 = vector.broadcast %cst_52 : f32 to vector<128x1xf32>
    %113 = arith.divf %111, %112 : vector<128x1xf32>
    %114 = vector.broadcast %113 : vector<128x1xf32> to vector<128x128xf32>
    %115 = arith.subf %107, %114 : vector<128x128xf32>
    %116 = arith.mulf %115, %115 : vector<128x128xf32>
    %cst_53 = arith.constant dense<0.000000e+00> : vector<128xf32>
    %117 = vector.multi_reduction <add>, %116, %cst_53 [1] : vector<128x128xf32> to vector<128xf32>
    %118 = vector.shape_cast %117 : vector<128xf32> to vector<128x1xf32>
    %cst_54 = arith.constant 1.280000e+02 : f32
    %119 = vector.broadcast %cst_54 : f32 to vector<128x1xf32>
    %120 = arith.divf %118, %119 : vector<128x1xf32>
    %121 = vector.broadcast %113 : vector<128x1xf32> to vector<128x128xf32>
    %122 = arith.subf %107, %121 : vector<128x128xf32>
    %cst_55 = arith.constant 9.99999996E-13 : f32
    %123 = vector.broadcast %cst_55 : f32 to vector<128x1xf32>
    %124 = arith.addf %120, %123 : vector<128x1xf32>
    %125 = math.rsqrt %124 : vector<128x1xf32>
    %126 = vector.broadcast %125 : vector<128x1xf32> to vector<128x128xf32>
    %127 = arith.mulf %122, %126 : vector<128x128xf32>
    %128 = vector.broadcast %108 : vector<1x128xf32> to vector<128x128xf32>
    %129 = arith.mulf %127, %128 : vector<128x128xf32>
    %130 = vector.broadcast %109 : vector<1x128xf32> to vector<128x128xf32>
    %131 = arith.addf %129, %130 : vector<128x128xf32>
    %132 = arith.truncf %131 : vector<128x128xf32> to vector<128x128xbf16>
    %c0_56 = arith.constant 0 : index
    %c0_57 = arith.constant 0 : index
    %c0_58 = arith.constant 0 : index
    %133 = vector.load %arg14[%c0_56, %c0_57, %c0_58] : memref<1x128x128xbf16, #tpu.memory_space<vmem>>, vector<1x128x128xbf16>
    %134 = vector.shape_cast %133 : vector<1x128x128xbf16> to vector<128x128xbf16>
    %135 = vector.shape_cast %132 : vector<128x128xbf16> to vector<1x128x128xbf16>
    tpu.vector_store %arg14[%c0_56, %c0_57, %c0_58], %135 {strides = array<i32>} : memref<1x128x128xbf16, #tpu.memory_space<vmem>>, vector<1x128x128xbf16>,
    return
  }
  func.func @transform_0(%arg0: i32) -> (i32, i32, i32) {
    %c0_i32 = arith.constant 0 : i32
    %c0_i32_0 = arith.constant 0 : i32
    %c0_i32_1 = arith.constant 0 : i32
    return %arg0, %c0_i32, %c0_i32_0 : i32, i32, i32
  }
  func.func @transform_1(%arg0: i32) -> (i32, i32) {
    %c0_i32 = arith.constant 0 : i32
    %c0_i32_0 = arith.constant 0 : i32
    %c0_i32_1 = arith.constant 0 : i32
    return %c0_i32, %c0_i32_0 : i32, i32
  }
  func.func @transform_2(%arg0: i32) -> (i32, i32) {
    %c0_i32 = arith.constant 0 : i32
    %c0_i32_0 = arith.constant 0 : i32
    %c0_i32_1 = arith.constant 0 : i32
    return %c0_i32, %c0_i32_0 : i32, i32
  }
  func.func @transform_3(%arg0: i32) -> (i32, i32) {
    %c0_i32 = arith.constant 0 : i32
    %c0_i32_0 = arith.constant 0 : i32
    %c0_i32_1 = arith.constant 0 : i32
    return %c0_i32, %c0_i32_0 : i32, i32
  }
  func.func @transform_4(%arg0: i32) -> (i32, i32) {
    %c0_i32 = arith.constant 0 : i32
    %c0_i32_0 = arith.constant 0 : i32
    %c0_i32_1 = arith.constant 0 : i32
    return %c0_i32, %c0_i32_0 : i32, i32
  }
  func.func @transform_5(%arg0: i32) -> (i32, i32) {
    %c0_i32 = arith.constant 0 : i32
    %c0_i32_0 = arith.constant 0 : i32
    %c0_i32_1 = arith.constant 0 : i32
    return %c0_i32, %c0_i32_0 : i32, i32
  }
  func.func @transform_6(%arg0: i32) -> (i32, i32) {
    %c0_i32 = arith.constant 0 : i32
    %c0_i32_0 = arith.constant 0 : i32
    %c0_i32_1 = arith.constant 0 : i32
    return %c0_i32, %c0_i32_0 : i32, i32
  }
  func.func @transform_7(%arg0: i32) -> (i32, i32) {
    %c0_i32 = arith.constant 0 : i32
    %c0_i32_0 = arith.constant 0 : i32
    %c0_i32_1 = arith.constant 0 : i32
    return %c0_i32, %c0_i32_0 : i32, i32
  }
  func.func @transform_8(%arg0: i32) -> (i32, i32) {
    %c0_i32 = arith.constant 0 : i32
    %c0_i32_0 = arith.constant 0 : i32
    %c0_i32_1 = arith.constant 0 : i32
    return %c0_i32, %c0_i32_0 : i32, i32
  }
  func.func @transform_9(%arg0: i32) -> (i32, i32) {
    %c0_i32 = arith.constant 0 : i32
    %c0_i32_0 = arith.constant 0 : i32
    %c0_i32_1 = arith.constant 0 : i32
    return %c0_i32, %c0_i32_0 : i32, i32
  }
  func.func @transform_10(%arg0: i32) -> (i32, i32) {
    %c0_i32 = arith.constant 0 : i32
    %c0_i32_0 = arith.constant 0 : i32
    %c0_i32_1 = arith.constant 0 : i32
    return %c0_i32, %c0_i32_0 : i32, i32
  }
  func.func @transform_11(%arg0: i32) -> (i32, i32) {
    %c0_i32 = arith.constant 0 : i32
    %c0_i32_0 = arith.constant 0 : i32
    %c0_i32_1 = arith.constant 0 : i32
    return %c0_i32, %c0_i32_0 : i32, i32
  }
  func.func @transform_12(%arg0: i32) -> (i32, i32) {
    %c0_i32 = arith.constant 0 : i32
    %c0_i32_0 = arith.constant 0 : i32
    %c0_i32_1 = arith.constant 0 : i32
    return %c0_i32, %c0_i32_0 : i32, i32
  }
  func.func @transform_13(%arg0: i32) -> (i32, i32, i32) {
    %c0_i32 = arith.constant 0 : i32
    %c0_i32_0 = arith.constant 0 : i32
    %c0_i32_1 = arith.constant 0 : i32
    return %arg0, %c0_i32, %c0_i32_0 : i32, i32, i32
  }
}

</mosaic_0001>

<bundles_post_ra>
// kernel: _lambda_.3
= control target key start
LH: loop header
LB: loop body
LE: loop exit
PB: predicated region body
PF: predicated region fallthrough
CT: control target
= control target key end

     0   :  { %18 = vsyncpa [#allocation4], 0  ;;  %s7708_s0 = inlined_call_operand.vmem [shape: bf16[2,128,128], index: 0, kind: input, shape index: {}]   ;;  %s7709_s1 = inlined_call_operand.vmem [shape: bf16[128,384], index: 1, kind: input, shape index: {}]   ;;  %s7710_s2 = inlined_call_operand.vmem [shape: f32[1,384], index: 2, kind: input, shape index: {}]   ;;  %s7711_s3 = inlined_call_operand.vmem [shape: bf16[128,128], index: 3, kind: input, shape index: {}]   ;;  %s7712_s4 = inlined_call_operand.vmem [shape: f32[1,128], index: 4, kind: input, shape index: {}]   ;;  %s7713_s5 = inlined_call_operand.vmem [shape: f32[1,128], index: 5, kind: input, shape index: {}]   ;;  %s7714_s6 = inlined_call_operand.vmem [shape: f32[1,128], index: 6, kind: input, shape index: {}]   ;;  %s7715_s7 = inlined_call_operand.vmem [shape: bf16[128,512], index: 7, kind: input, shape index: {}]   ;;  %s7716_s8 = inlined_call_operand.vmem [shape: f32[1,512], index: 8, kind: input, shape index: {}]   ;;  %s7717_s9 = inlined_call_operand.vmem [shape: bf16[512,128], index: 9, kind: input, shape index: {}]   ;;  %s7718_s10 = inlined_call_operand.vmem [shape: f32[1,128], index: 10, kind: input, shape index: {}]   ;;  %s7719_s11 = inlined_call_operand.vmem [shape: f32[1,128], index: 11, kind: input, shape index: {}]   ;;  %s7720_s12 = inlined_call_operand.vmem [shape: f32[1,128], index: 12, kind: input, shape index: {}]   ;;  %s7721_s13 = inlined_call_operand.hbm [shape: bf16[2,128,128], index: 13, kind: output, shape index: {}]  }
   0x1   :  { %20 = vsyncpa [#allocation4 + $0x1], 0  ;;  %s5498_s25 = smov 0   ;;  %s5500_s26 = smov 0  }
   0x2   :  { %s5502_s27 = smov 0   ;;  %s5504_s28 = smov 0  }
   0x3 LB: > { %7777 = sst [smem:[#allocation6_spill]] %s5418_s27  ;;  %s5519_s29 = sadd.s32 4294967295, %s5422_s28   ;;  %s5422_s28 = sphi %s5504_s28, %s7889_s28   ;;  %s5418_s27 = sphi %s5502_s27, %s7891_s27   ;;  %s5414_s26 = sphi %s5500_s26, %s7893_s26   ;;  %s5410_s25 = sphi %s5498_s25, %s7892_s25  }
   0x4   : > { %s4187_s30 = sadd.s32 4294967294, %s5422_s28   ;;  %s5523_s14 = sadd.s32 1, %s5422_s28  }
   0x5   : > { %7778 = sst [smem:[#allocation7_spill]] %s5523_s14  ;;  %s311_s15 = sadd.s32 1, %s5418_s27 }
   0x6   : > { %s308_s16 = ssub.s32 %s5422_s28, %s5523_s14  ;;  %p321_p0 = scmp.ne.s32.totalorder %s5418_s27, %s5414_s26 }
   0x7   : > { %p309_p1 = scmp.eq.s32.totalorder %s308_s16, 0  ;;  %p322_p2 = scmp.eq.s32.totalorder %s5519_s29, 1 }
   0x8   : > { %p327_p3 = scmp.ne.s32.totalorder %s5414_s26, %s5410_s25  ;;  %p328_p4 = scmp.eq.s32.totalorder %s4187_s30, 1 }
   0x9   : > { %s5534_s17 = scalar_select %p309_p1, %s5418_s27, %s311_s15  }
   0xa   : > { %p5536_p5 = por %p322_p2, %p321_p0  ;;  %p5540_p6 = por %p328_p4, %p327_p3 }
   0xb   : > { %7779 = sst [smem:[#allocation8_spill]] %s5534_s17  ;;  %p4190_p7 = scmp.ge.s32.totalorder %s5422_s28, 1 }
   0xc   : > { %p390_p8 = scmp.lt.s32.totalorder %s5422_s28, 3 }
   0xe   : > { %p391_p9 = pnand %p4190_p7, %p390_p8 }
  0x10   : > { %394 = sbr.rel (%p391_p9) target bundleno = 3019 (0xbcb), region = 72 }
  0x17   : > { %v4896_v0 = vld [vmem:[%s7709_s1 + $0x4] ss:$12 sps:$4 sm:$0xff]   ;;  %p434_p10 = scmp.lt.s32.totalorder %s5519_s29, 1  ;;  %v4898_v1 = vld [vmem:[%s7709_s1] ss:$12 sps:$4 sm:$0xff]   ;;  %v5424_v2 = vmov 0   ;;  %v506_v33 = vlaneseq }
  0x18   : > { %729 = vmatprep.mubr.bf16.mxu0 %v5424_v2  ;;  %697 = vmatprep.subr.bf16.mxu0 %v4896_v0  ;;  %v4899_v3 = vld [vmem:[%s7709_s1 + $0x1c] ss:$12 sps:$4 sm:$0xff]   ;;  %v4901_v4 = vld [vmem:[%s7709_s1 + $0x18] ss:$12 sps:$4 sm:$0xff]   ;;  %v4902_v5 = vld [vmem:[%s7709_s1 + $0x34] ss:$12 sps:$4 sm:$0xff]  }
  0x19   : > { %s435_s15 = scalar_select %p434_p10, %s5519_s29, 1  ;;  %698 = vmatpush1.bf16.msra.mxu0 %v4898_v1  ;;  %v4904_v6 = vld [vmem:[%s7709_s1 + $0x30] ss:$12 sps:$4 sm:$0xff]   ;;  %v4905_v7 = vld [vmem:[%s7709_s1 + $0x4c] ss:$12 sps:$4 sm:$0xff]   ;;  %v5641_v34 = vshrl.u32 %v506_v33, 7 }
  0x1a   : > { %699 = vmatprep.subr.bf16.mxu0 %v4899_v3  ;;  %v4907_v9 = vld [vmem:[%s7709_s1 + $0x48] ss:$12 sps:$4 sm:$0xff]   ;;  %v4908_v10 = vld [vmem:[%s7709_s1 + $0x64] ss:$12 sps:$4 sm:$0xff]   ;;  %v4910_v12 = vld [vmem:[%s7709_s1 + $0x60] ss:$12 sps:$4 sm:$0xff]  }
  0x1b   : > { %s4341_s22 = sshll.u32 %s435_s15, 6  ;;  %v4927_v11 = vld [vmem:[%s7709_s1 + $0x8] ss:$12 sps:$4 sm:$0xff]   ;;  %v4929_v13 = vld [vmem:[%s7709_s1 + $0x20] ss:$12 sps:$4 sm:$0xff]   ;;  %v508_v35 = vsub.s32 0, %v5641_v34 }
  0x1c   : > { %s5570_s30 = scalar_lea.vmem %s7708_s0, %s4341_s22  ;;  %4630 = vmatprep.subr.bf16.mxu1 %v4927_v11  ;;  %v4911_v14 = vld [vmem:[%s7709_s1 + $0x7c] ss:$12 sps:$4 sm:$0xff]   ;;  %v4930_v15 = vld [vmem:[%s7709_s1 + $0x38] ss:$12 sps:$4 sm:$0xff]   ;;  %v4914_v17 = vld [vmem:[%s7709_s1 + $0x94] ss:$12 sps:$4 sm:$0xff]  }
  0x1d   : > { %700 = vmatpush1.bf16.msra.mxu0 %v4901_v4  ;;  %v440_v8 = vld [vmem:[%s5570_s30] sm:$0xff]   ;;  %4631 = vmatpush3.bf16.msra.mxu1 %v4927_v11  ;;  %v4916_v18 = vld [vmem:[%s7709_s1 + $0x90] ss:$12 sps:$4 sm:$0xff]   ;;  %v4917_v20 = vld [vmem:[%s7709_s1 + $0xac] ss:$12 sps:$4 sm:$0xff]   ;;  %v512_v37 = vsub.s32 1, %v5641_v34 }
  0x1e   : > { %701 = vmatprep.subr.bf16.mxu0 %v4902_v5  ;;  %4646 = vmatprep.mubr.bf16.mxu1 %v440_v8  ;;  %v4913_v16 = vld [vmem:[%s7709_s1 + $0x78] ss:$12 sps:$4 sm:$0xff]   ;;  %v4931_v19 = vld [vmem:[%s7709_s1 + $0x50] ss:$12 sps:$4 sm:$0xff]   ;;  %v4932_v21 = vld [vmem:[%s7709_s1 + $0x68] ss:$12 sps:$4 sm:$0xff]  }
  0x1f   : > { %4632 = vmatprep.subr.bf16.mxu1 %v4929_v13  ;;  %v4919_v22 = vld [vmem:[%s7709_s1 + $0xa8] ss:$12 sps:$4 sm:$0xff]   ;;  %v4933_v23 = vld [vmem:[%s7709_s1 + $0x80] ss:$12 sps:$4 sm:$0xff]   ;;  %v4934_v24 = vld [vmem:[%s7709_s1 + $0x98] ss:$12 sps:$4 sm:$0xff]  }
  0x20   : > { %v442_v25 = vld [vmem:[%s5570_s30 + $0x8] sm:$0xff]   ;;  %v4935_v26 = vld [vmem:[%s7709_s1 + $0xb0] ss:$12 sps:$4 sm:$0xff]   ;;  %v448_v29 = vld [vmem:[%s5570_s30 + $0x20] sm:$0xff]   ;;  %vm931_vm0 = vcmask 523264   ;;  %v516_v50 = vsub.s32 2, %v5641_v34 }
  0x21   : > { %702 = vmatpush1.bf16.msra.mxu0 %v4904_v6  ;;  %4633 = vmatpush3.bf16.msra.mxu1 %v4929_v13  ;;  %v444_v27 = vld [vmem:[%s5570_s30 + $0x10] sm:$0xff]   ;;  %v446_v28 = vld [vmem:[%s5570_s30 + $0x18] sm:$0xff]   ;;  %v450_v30 = vld [vmem:[%s5570_s30 + $0x28] sm:$0xff]   ;;  %s7725_s23 = smov 64   ;;  %vm1856_vm1 = vcmask 1048064   ;;  %s431_s15 = sand.u32 1, %s5414_s26  }
  0x22   : > { %703 = vmatprep.subr.bf16.mxu0 %v4905_v7  ;;  %4634 = vmatprep.subr.bf16.mxu1 %v4930_v15  ;;  %v452_v31 = vld [vmem:[%s5570_s30 + $0x30] sm:$0xff]   ;;  %v454_v32 = vld [vmem:[%s5570_s30 + $0x38] sm:$0xff]   ;;  %v504_v36 = vld [vmem:[%s7710_s2] sm:$0x7]  ;;  %s4191_s14 = sshll.u32 %s431_s15, 6  ;;  %s5426_s27 = smov [#allocation3]  }
  0x23   : > { %v5650_v38 = vrot.slane %v504_v36, %v508_v35  ;;  %v5654_v40 = vrot.slane %v504_v36, %v512_v37  ;;  %v5672_v58 = vrot.slane %v504_v36, %v516_v50  ;;  %s7602_s22 = scalar_lea.vmem [#allocation3], %s4191_s14  ;;  %s5364_s21 = sshll.u32 %s5426_s27, 4  ;;  %s5365_s21 = int_to_ptr.vmem [resolvable:$false] %s5364_s21 }
  0x24   : > { %s4125_s24 = sshll.u32 %s7602_s22, 4  ;;  %s5366_s14 = scalar_lea.vmem %s5365_s21, 2048  ;;  %s7660_s24 = int_to_ptr.vmem [resolvable:$true] %s4125_s24 }
  0x25   : > { %704 = vmatpush1.bf16.msra.mxu0 %v4907_v9  ;;  %4635 = vmatpush3.bf16.msra.mxu1 %v4930_v15  ;;  %p5367_p0 = scmp.lt.s32.totalorder %s7660_s24, %s5365_s21 }
  0x26   : > { %705 = vmatprep.subr.bf16.mxu0 %v4908_v10  ;;  %4636 = vmatprep.subr.bf16.mxu1 %v4931_v19 }
  0x29   : > { %706 = vmatpush1.bf16.msra.mxu0 %v4910_v12  ;;  %4637 = vmatpush3.bf16.msra.mxu1 %v4931_v19 }
  0x2a   : > { %707 = vmatprep.subr.bf16.mxu0 %v4911_v14  ;;  %4638 = vmatprep.subr.bf16.mxu1 %v4932_v21 }
  0x2d   : > { %708 = vmatpush1.bf16.msra.mxu0 %v4913_v16  ;;  %4639 = vmatpush3.bf16.msra.mxu1 %v4932_v21 }
  0x2e   : > { %709 = vmatprep.subr.bf16.mxu0 %v4914_v17  ;;  %4640 = vmatprep.subr.bf16.mxu1 %v4933_v23 }
  0x31   : > { %710 = vmatpush1.bf16.msra.mxu0 %v4916_v18  ;;  %4641 = vmatpush3.bf16.msra.mxu1 %v4933_v23 }
  0x32   : > { %711 = vmatprep.subr.bf16.mxu0 %v4917_v20  ;;  %4642 = vmatprep.subr.bf16.mxu1 %v4934_v24 }
  0x35   : > { %712 = vmatpush1.bf16.msra.mxu0 %v4919_v22  ;;  %4643 = vmatpush3.bf16.msra.mxu1 %v4934_v24 }
  0x36   : > { %4644 = vmatprep.subr.bf16.mxu1 %v4935_v26 }
  0x38   : > { %730 = vmatmul.mubr.bf16.vlgmr.msra.gmra.mrb[0].mxu0 %v440_v8 }
  0x39   : > { %739 = vmatprep.mubr.bf16.mxu0 %v5424_v2  ;;  %4645 = vmatpush3.bf16.msra.mxu1 %v4935_v26 }
  0x3c   : > { %4647 = vmatmul.mubr.bf16.vlgmr.msra.gmra.mrb[0].mxu1 %v442_v25 }
  0x3d   : > { %4650 = vmatprep.mubr.bf16.mxu1 %v444_v27 }
  0x40   : > { %740 = vmatmul.mubr.bf16.gmra.mrb[4].mxu0 %v442_v25 }
  0x41   : > { %749 = vmatprep.mubr.bf16.mxu0 %v5424_v2 }
  0x44   : > { %4651 = vmatmul.mubr.bf16.gmra.mrb[4].mxu1 %v446_v28 }
  0x45   : > { %4654 = vmatprep.mubr.bf16.mxu1 %v448_v29 }
  0x48   : > { %750 = vmatmul.mubr.bf16.gmra.mrb[8].mxu0 %v444_v27 }
  0x49   : > { %759 = vmatprep.mubr.bf16.mxu0 %v5424_v2 }
  0x4c   : > { %4655 = vmatmul.mubr.bf16.gmra.mrb[8].mxu1 %v450_v30 }
  0x4d   : > { %4658 = vmatprep.mubr.bf16.mxu1 %v452_v31 }
  0x50   : > { %760 = vmatmul.mubr.bf16.gmra.mrb[12].mxu0 %v446_v28 }
  0x51   : > { %769 = vmatprep.mubr.bf16.mxu0 %v5424_v2 }
  0x54   : > { %4659 = vmatmul.mubr.bf16.gmra.mrb[12].mxu1 %v454_v32 }
  0x58   : > { %770 = vmatmul.mubr.bf16.gmra.mrb[16].mxu0 %v448_v29 }
  0x59   : > { %779 = vmatprep.mubr.bf16.mxu0 %v5424_v2 }
  0x60   : > { %780 = vmatmul.mubr.bf16.gmra.mrb[20].mxu0 %v450_v30 }
  0x61   : > { %789 = vmatprep.mubr.bf16.mxu0 %v5424_v2 }
  0x68   : > { %790 = vmatmul.mubr.bf16.gmra.mrb[24].mxu0 %v452_v31 }
  0x69   : > { %799 = vmatprep.mubr.bf16.mxu0 %v5424_v2 }
  0x70   : > { %800 = vmatmul.mubr.bf16.gmra.mrb[28].mxu0 %v454_v32 }
 0x10b   : > { %v731_v39 = vpop.f32.mrb[0].mxu0 }
 0x10c   : > { %v733_v41 = vpop.f32.mrb[1].mxu0  ;;  %v732_v43 = vadd.f32 %v731_v39, %v5650_v38 }
 0x10d   : > { %v735_v42 = vpop.f32.mrb[2].mxu0  ;;  %v734_v46 = vadd.f32 %v733_v41, %v5654_v40 }
 0x10e   : > { %v736_v44 = vadd.f32 %v735_v42, %v5650_v38  ;;  %v737_v45 = vpop.f32.mrb[3].mxu0 }
 0x10f   : > { %v738_v47 = vadd.f32 %v737_v45, %v5654_v40  ;;  %v4648_v62 = vpop.f32.mrb[0].mxu1 }
 0x110   : > { %v5660_v48 = vpack.c.bf16 %v736_v44, %v732_v43  ;;  %v853_v0 = vadd.f32 %v4648_v62, %v5672_v58  ;;  %v844_v1 = vpop.f32.mrb[1].mxu1 }
 0x111   : > { %v915_v49 = vpack.c.bf16 %v738_v47, %v734_v46  ;;  %v845_v3 = vadd.f32 %v844_v1, %v5672_v58  ;;  %v4649_v4 = vpop.f32.mrb[2].mxu1 }
 0x112   : > { %4678 = vmatprep.mubr.msk.bf16.mxu0 %vm931_vm0, %v5660_v48  ;;  %v856_v7 = vadd.f32 %v4649_v4, %v5672_v58  ;;  %v847_v8 = vpop.f32.mrb[3].mxu1 }
 0x113   : > { %v741_v51 = vpop.f32.mrb[4].mxu0  ;;  %1374 = vrot.lane.b32.xlu0 %v915_v49, %s7725_s23  ;;  %4838 = vmatprep.subr.msk.bf16.mxu0 %vm931_vm0, %v915_v49  ;;  %v957_v52 = vsel %vm931_vm0, %v915_v49, 0  ;;  %v848_v11 = vadd.f32 %v847_v8, %v5672_v58 }
 0x114   : > { %v742_v53 = vadd.f32 %v741_v51, %v5650_v38  ;;  %v743_v54 = vpop.f32.mrb[5].mxu0  ;;  %4663 = vmatpush3.bf16.xpose.msra.mxu0 %v957_v52  ;;  %v5686_v13 = vpack.c.bf16 %v856_v7, %v853_v0 }
 0x115   : > { %v745_v55 = vpop.f32.mrb[6].mxu0  ;;  %v744_v59 = vadd.f32 %v743_v54, %v5654_v40  ;;  %v5689_v16 = vpack.c.bf16 %v848_v11, %v845_v3 }
 0x116   : > { %v746_v56 = vadd.f32 %v745_v55, %v5650_v38  ;;  %v747_v57 = vpop.f32.mrb[7].mxu0 }
 0x117   : > { %v748_v60 = vadd.f32 %v747_v57, %v5654_v40  ;;  %v4652_v20 = vpop.f32.mrb[4].mxu1  ;;  %4694 = vmatprep.subr.bf16.mxu1 %v5689_v16 }
 0x118   : > { %v5676_v61 = vpack.c.bf16 %v746_v56, %v742_v53  ;;  %v869_v22 = vadd.f32 %v4652_v20, %v5672_v58  ;;  %v860_v23 = vpop.f32.mrb[5].mxu1  ;;  %4695 = vmatpush3.bf16.msra.mxu1 %v5689_v16 }
 0x119   : > { %v916_v63 = vpack.c.bf16 %v748_v60, %v744_v59  ;;  %v861_v24 = vadd.f32 %v860_v23, %v5672_v58  ;;  %v4653_v25 = vpop.f32.mrb[6].mxu1  ;;  %4696 = vmatprep.subr.bf16.mxu1 %v5686_v13 }
 0x11a   : > { %v872_v28 = vadd.f32 %v4653_v25, %v5672_v58  ;;  %v863_v29 = vpop.f32.mrb[7].mxu1 }
 0x11b   : > { %v751_v5 = vpop.f32.mrb[8].mxu0  ;;  %1376 = vrot.lane.b32.xlu1 %v916_v63, %s7725_s23  ;;  %4839 = vmatprep.subr.msk.bf16.mxu0 %vm931_vm0, %v916_v63  ;;  %v960_v6 = vsel %vm931_vm0, %v916_v63, 0  ;;  %v864_v32 = vadd.f32 %v863_v29, %v5672_v58 }
 0x11c   : > { %v752_v9 = vadd.f32 %v751_v5, %v5650_v38  ;;  %v753_v10 = vpop.f32.mrb[9].mxu0  ;;  %4665 = vmatpush3.bf16.xpose.msra.mxu0 %v960_v6  ;;  %v5706_v36 = vpack.c.bf16 %v872_v28, %v869_v22  ;;  %4697 = vmatpush3.bf16.msra.mxu1 %v5686_v13 }
 0x11d   : > { %v755_v12 = vpop.f32.mrb[10].mxu0  ;;  %v754_v17 = vadd.f32 %v753_v10, %v5654_v40  ;;  %v5710_v42 = vpack.c.bf16 %v864_v32, %v861_v24 }
 0x11e   : > { %v756_v14 = vadd.f32 %v755_v12, %v5650_v38  ;;  %v757_v15 = vpop.f32.mrb[11].mxu0 }
 0x11f   : > { %v758_v18 = vadd.f32 %v757_v15, %v5654_v40  ;;  %v4656_v46 = vpop.f32.mrb[8].mxu1  ;;  %4698 = vmatprep.subr.bf16.mxu1 %v5710_v42 }
 0x120   : > { %v5693_v19 = vpack.c.bf16 %v756_v14, %v752_v9  ;;  %v885_v49 = vadd.f32 %v4656_v46, %v5672_v58  ;;  %v876_v51 = vpop.f32.mrb[9].mxu1  ;;  %4699 = vmatpush3.bf16.msra.mxu1 %v5710_v42 }
 0x121   : > { %v917_v21 = vpack.c.bf16 %v758_v18, %v754_v17  ;;  %v877_v52 = vadd.f32 %v876_v51, %v5672_v58  ;;  %v4657_v53 = vpop.f32.mrb[10].mxu1  ;;  %4700 = vmatprep.subr.bf16.mxu1 %v5706_v36 }
 0x122   : > { %v888_v56 = vadd.f32 %v4657_v53, %v5672_v58  ;;  %v879_v57 = vpop.f32.mrb[11].mxu1 }
 0x123   : > { %v761_v26 = vpop.f32.mrb[12].mxu0  ;;  %1378 = vrot.lane.b32.xlu0 %v917_v21, %s7725_s23  ;;  %4840 = vmatprep.subr.msk.bf16.mxu0 %vm931_vm0, %v917_v21  ;;  %v963_v27 = vsel %vm931_vm0, %v917_v21, 0  ;;  %v880_v62 = vadd.f32 %v879_v57, %v5672_v58 }
 0x124   : > { %v762_v30 = vadd.f32 %v761_v26, %v5650_v38  ;;  %v763_v31 = vpop.f32.mrb[13].mxu0  ;;  %4667 = vmatpush3.bf16.xpose.msra.mxu0 %v963_v27  ;;  %v5730_v0 = vpack.c.bf16 %v888_v56, %v885_v49  ;;  %4701 = vmatpush3.bf16.msra.mxu1 %v5706_v36 }
 0x125   : > { %v765_v33 = vpop.f32.mrb[14].mxu0  ;;  %v764_v43 = vadd.f32 %v763_v31, %v5654_v40  ;;  %v5734_v4 = vpack.c.bf16 %v880_v62, %v877_v52 }
 0x126   : > { %v766_v39 = vadd.f32 %v765_v33, %v5650_v38  ;;  %v767_v41 = vpop.f32.mrb[15].mxu0 }
 0x127   : > { %v768_v44 = vadd.f32 %v767_v41, %v5654_v40  ;;  %v4660_v8 = vpop.f32.mrb[12].mxu1  ;;  %4702 = vmatprep.subr.bf16.mxu1 %v5734_v4 }
 0x128   : > { %v5714_v45 = vpack.c.bf16 %v766_v39, %v762_v30  ;;  %v901_v10 = vadd.f32 %v4660_v8, %v5672_v58  ;;  %v892_v11 = vpop.f32.mrb[13].mxu1  ;;  %4703 = vmatpush3.bf16.msra.mxu1 %v5734_v4 }
 0x129   : > { %v5717_v47 = vpack.c.bf16 %v768_v44, %v764_v43  ;;  %v893_v12 = vadd.f32 %v892_v11, %v5672_v58  ;;  %v4661_v14 = vpop.f32.mrb[14].mxu1  ;;  %4704 = vmatprep.subr.bf16.mxu1 %v5730_v0 }
 0x12a   : > { %v904_v18 = vadd.f32 %v4661_v14, %v5672_v58  ;;  %v895_v20 = vpop.f32.mrb[15].mxu1 }
 0x12b   : > { %v771_v54 = vpop.f32.mrb[16].mxu0  ;;  %4841 = vmatprep.subr.msk.bf16.mxu0 %vm931_vm0, %v5717_v47  ;;  %v966_v55 = vsel %vm931_vm0, %v5717_v47, 0  ;;  %v896_v23 = vadd.f32 %v895_v20, %v5672_v58 }
 0x12c   : > { %v772_v59 = vadd.f32 %v771_v54, %v5650_v38  ;;  %v773_v60 = vpop.f32.mrb[17].mxu0  ;;  %4669 = vmatpush3.bf16.xpose.msra.mxu0 %v966_v55  ;;  %v5754_v25 = vpack.c.bf16 %v904_v18, %v901_v10  ;;  %4705 = vmatpush3.bf16.msra.mxu1 %v5730_v0 }
 0x12d   : > { %v775_v63 = vpop.f32.mrb[18].mxu0  ;;  %v774_v5 = vadd.f32 %v773_v60, %v5654_v40  ;;  %v5758_v28 = vpack.c.bf16 %v896_v23, %v893_v12 }
 0x12e   : > { %v776_v1 = vadd.f32 %v775_v63, %v5650_v38  ;;  %v777_v3 = vpop.f32.mrb[19].mxu0 }
 0x12f   : > { %v778_v6 = vadd.f32 %v777_v3, %v5654_v40  ;;  %4706 = vmatprep.subr.bf16.mxu1 %v5758_v28 }
 0x130   : > { %v5738_v7 = vpack.c.bf16 %v776_v1, %v772_v59  ;;  %4707 = vmatpush3.bf16.msra.mxu1 %v5758_v28 }
 0x131   : > { %v5741_v9 = vpack.c.bf16 %v778_v6, %v774_v5  ;;  %4708 = vmatprep.subr.bf16.mxu1 %v5754_v25 }
 0x133   : > { %v781_v15 = vpop.f32.mrb[20].mxu0  ;;  %4842 = vmatprep.subr.msk.bf16.mxu0 %vm931_vm0, %v5741_v9  ;;  %v969_v17 = vsel %vm931_vm0, %v5741_v9, 0 }
 0x134   : > { %v782_v21 = vadd.f32 %v781_v15, %v5650_v38  ;;  %v783_v22 = vpop.f32.mrb[21].mxu0  ;;  %4671 = vmatpush3.bf16.xpose.msra.mxu0 %v969_v17  ;;  %4709 = vmatpush3.bf16.msra.mxu1 %v5754_v25 }
 0x135   : > { %v785_v24 = vpop.f32.mrb[22].mxu0  ;;  %v784_v29 = vadd.f32 %v783_v22, %v5654_v40 }
 0x136   : > { %v786_v26 = vadd.f32 %v785_v24, %v5650_v38  ;;  %v787_v27 = vpop.f32.mrb[23].mxu0 }
 0x137   : > { %v788_v30 = vadd.f32 %v787_v27, %v5654_v40 }
 0x138   : > { %v5762_v31 = vpack.c.bf16 %v786_v26, %v782_v21 }
 0x139   : > { %v5765_v32 = vpack.c.bf16 %v788_v30, %v784_v29 }
 0x13b   : > { %v791_v58 = vpop.f32.mrb[24].mxu0  ;;  %4843 = vmatprep.subr.msk.bf16.mxu0 %vm931_vm0, %v5765_v32  ;;  %v972_v33 = vsel %vm931_vm0, %v5765_v32, 0 }
 0x13c   : > { %v792_v39 = vadd.f32 %v791_v58, %v5650_v38  ;;  %v793_v41 = vpop.f32.mrb[25].mxu0  ;;  %4673 = vmatpush3.bf16.xpose.msra.mxu0 %v972_v33 }
 0x13d   : > { %v795_v43 = vpop.f32.mrb[26].mxu0  ;;  %v794_v49 = vadd.f32 %v793_v41, %v5654_v40 }
 0x13e   : > { %v796_v44 = vadd.f32 %v795_v43, %v5650_v38  ;;  %v797_v46 = vpop.f32.mrb[27].mxu0 }
 0x13f   : > { %v798_v51 = vadd.f32 %v797_v46, %v5654_v40 }
 0x140   : > { %v5778_v52 = vpack.c.bf16 %v796_v44, %v792_v39 }
 0x141   : > { %v921_v53 = vpack.c.bf16 %v798_v51, %v794_v49 }
 0x143   : > { %v801_v54 = vpop.f32.mrb[28].mxu0  ;;  %4844 = vmatprep.subr.msk.bf16.mxu0 %vm931_vm0, %v921_v53  ;;  %v975_v55 = vsel %vm931_vm0, %v921_v53, 0 }
 0x144   : > { %v802_v56 = vadd.f32 %v801_v54, %v5650_v38  ;;  %v803_v57 = vpop.f32.mrb[29].mxu0  ;;  %4675 = vmatpush3.bf16.xpose.msra.mxu0 %v975_v55 }
 0x145   : > { %v805_v59 = vpop.f32.mrb[30].mxu0  ;;  %v804_v63 = vadd.f32 %v803_v57, %v5654_v40 }
 0x146   : > { %v806_v60 = vadd.f32 %v805_v59, %v5650_v38  ;;  %v807_v62 = vpop.f32.mrb[31].mxu0 }
 0x147   : > { %v808_v1 = vadd.f32 %v807_v62, %v5654_v40 }
 0x148   : > { %v914_v3 = vpack.c.bf16 %v806_v60, %v802_v56 }
 0x149   : > { %v922_v5 = vpack.c.bf16 %v808_v1, %v804_v63 }
 0x14b   : > { %4845 = vmatprep.subr.msk.bf16.mxu0 %vm931_vm0, %v922_v5  ;;  %v978_v6 = vsel %vm931_vm0, %v922_v5, 0 }
 0x14c   : > { %4677 = vmatpush3.bf16.xpose.msra.mxu0 %v978_v6 }
 0x153   : > { %4679 = vmatmul.mubr.msk.bf16.vlgmr.msra.gmra.mrb[32].mxu0 %vm931_vm0, %v5676_v61 }
 0x154   : > { %4682 = vmatprep.mubr.msk.bf16.mxu0 %vm931_vm0, %v5693_v19 }
 0x15b   : > { %4683 = vmatmul.mubr.msk.bf16.gmra.mrb[36].mxu0 %vm931_vm0, %v5714_v45 }
 0x15c   : > { %4686 = vmatprep.mubr.msk.bf16.mxu0 %vm931_vm0, %v5738_v7 }
 0x163   : > { %4687 = vmatmul.mubr.msk.bf16.gmra.mrb[40].mxu0 %vm931_vm0, %v5762_v31 }
 0x164   : > { %4690 = vmatprep.mubr.msk.bf16.mxu0 %vm931_vm0, %v5778_v52 }
 0x16b   : > { %4691 = vmatmul.mubr.msk.bf16.gmra.mrb[44].mxu0 %vm931_vm0, %v914_v3 }
 0x185   : > { %v5801_v38 = vpop.permute.xlu0 %1374 }
 0x186   : > { %4846 = vmatprep.subr.msk.bf16.mxu1 %vm931_vm0, %v5801_v38  ;;  %v1415_v43 = vsel %vm931_vm0, %v5801_v38, 0 }
 0x226   : > { %v4680_v40 = vpop.f32.mrb[32].mxu0 }
 0x227   : > { %1081 = vmax.xlane.f32.xlu1 %v4680_v40  ;;  %v1014_v8 = vpop.f32.mrb[33].mxu0 }
 0x228   : > { %1077 = vmax.xlane.f32.xlu0 %v1014_v8  ;;  %v4681_v10 = vpop.f32.mrb[34].mxu0 }
 0x229   : > { %v1017_v11 = vpop.f32.mrb[35].mxu0 }
 0x22b   : > { %1083 = vmax.xlane.f32.xlu1 %v4681_v10 }
 0x22c   : > { %1079 = vmax.xlane.f32.xlu0 %v1017_v11 }
 0x22e   : > { %v5805_v12 = vpop.f32.mrb[36].mxu0 }
 0x22f   : > { %v5807_v14 = vpop.f32.mrb[37].mxu0 }
 0x230   : > { %v5809_v15 = vpop.f32.mrb[38].mxu0 }
 0x231   : > { %v5811_v17 = vpop.f32.mrb[39].mxu0 }
 0x236   : > { %v5813_v18 = vpop.f32.mrb[40].mxu0 }
 0x237   : > { %v5815_v20 = vpop.f32.mrb[41].mxu0 }
 0x238   : > { %v5817_v21 = vpop.f32.mrb[42].mxu0 }
 0x239   : > { %v5819_v22 = vpop.f32.mrb[43].mxu0 }
 0x23c   : > { %1380 = vrot.lane.b32.xlu1 %v5717_v47, %s7725_s23 }
 0x23e   : > { %v5823_v23 = vpop.f32.mrb[44].mxu0 }
 0x23f   : > { %v5825_v24 = vpop.f32.mrb[45].mxu0 }
 0x240   : > { %v5827_v26 = vpop.f32.mrb[46].mxu0 }
 0x241   : > { %v5829_v27 = vpop.f32.mrb[47].mxu0 }
 0x242   : > { %1382 = vrot.lane.b32.xlu0 %v5741_v9, %s7725_s23 }
 0x260   : > { %1085 = vmax.xlane.f32.xlu1 %v5807_v14 }
 0x261   : > { %1089 = vmax.xlane.f32.xlu0 %v5805_v12 }
 0x264   : > { %1091 = vmax.xlane.f32.xlu1 %v5809_v15 }
 0x265   : > { %1093 = vmax.xlane.f32.xlu0 %v5815_v20 }
 0x268   : > { %1087 = vmax.xlane.f32.xlu1 %v5811_v17 }
 0x269   : > { %1095 = vmax.xlane.f32.xlu0 %v5819_v22 }
 0x26c   : > { %1097 = vmax.xlane.f32.xlu1 %v5813_v18 }
 0x26d   : > { %1105 = vmax.xlane.f32.xlu0 %v5823_v23 }
 0x270   : > { %1099 = vmax.xlane.f32.xlu1 %v5817_v21 }
 0x274   : > { %1101 = vmax.xlane.f32.xlu1 %v5825_v24 }
 0x278   : > { %1107 = vmax.xlane.f32.xlu1 %v5827_v26 }
 0x27c   : > { %1103 = vmax.xlane.f32.xlu1 %v5829_v27 }
 0x283   : > { %1386 = vrot.lane.b32.xlu0 %v921_v53, %s7725_s23 }
 0x287   : > { %1388 = vrot.lane.b32.xlu0 %v922_v5, %s7725_s23 }
 0x28b   : > { %1350 = vrot.lane.b32.xlu0 %v5660_v48, %s7725_s23  ;;  %v1377_v48 = vpop.permute.xlu1 %1376 }
 0x28c   : > { %v1418_v44 = vsel %vm931_vm0, %v1377_v48, 0 }
 0x28d   : > { %1384 = vrot.lane.b32.xlu1 %v5765_v32, %s7725_s23 }
 0x28f   : > { %1354 = vrot.lane.b32.xlu0 %v5693_v19, %s7725_s23 }
 0x291   : > { %1352 = vrot.lane.b32.xlu1 %v5676_v61, %s7725_s23  ;;  %v1379_v61 = vpop.permute.xlu0 %1378 }
 0x292   : > { %v1421_v46 = vsel %vm931_vm0, %v1379_v61, 0 }
 0x293   : > { %1358 = vrot.lane.b32.xlu0 %v5738_v7, %s7725_s23 }
 0x295   : > { %1356 = vrot.lane.b32.xlu1 %v5714_v45, %s7725_s23 }
 0x297   : > { %1362 = vrot.lane.b32.xlu0 %v5778_v52, %s7725_s23 }
 0x299   : > { %1360 = vrot.lane.b32.xlu1 %v5762_v31, %s7725_s23 }
 0x29b   : > { %1663 = vrot.lane.b32.xlu0 %v5689_v16, %s7725_s23 }
 0x29d   : > { %1364 = vrot.lane.b32.xlu1 %v914_v3, %s7725_s23 }
 0x29f   : > { %1667 = vrot.lane.b32.xlu0 %v5710_v42, %s7725_s23 }
 0x2a1   : > { %1665 = vrot.lane.b32.xlu1 %v5686_v13, %s7725_s23 }
 0x2a3   : > { %1669 = vrot.lane.b32.xlu0 %v5706_v36, %s7725_s23 }
 0x2a7   : > { %1671 = vrot.lane.b32.xlu0 %v5734_v4, %s7725_s23 }
 0x2b4   : > { %v1082_v19 = vpop.xlane.xlu1 %1081 }
 0x2b5   : > { %v1078_v45 = vpop.xlane.xlu0 %1077  ;;  %v1111_v16 = vsub.f32 %v4680_v40, %v1082_v19 }
 0x2b6   : > { %v1109_v47 = vsub.f32 %v1014_v8, %v1078_v45 }
 0x2b7   : > { %v1129_v31 = vmul.f32 1.442695, %v1111_v16 }
 0x2b8   : > { %v1125_v7 = vmul.f32 1.442695, %v1109_v47  ;;  %v1084_v9 = vpop.xlane.xlu1 %1083 }
 0x2b9   : > { %v1112_v29 = vsub.f32 %v4681_v10, %v1084_v9  ;;  %v1080_v30 = vpop.xlane.xlu0 %1079 }
 0x2ba   : > { %v1110_v42 = vsub.f32 %v1017_v11, %v1080_v30  ;;  %5032 = vpow2.f32 %v1125_v7 }
 0x2bb   : > { %v1131_v32 = vmul.f32 1.442695, %v1112_v29 }
 0x2bc   : > { %v1127_v13 = vmul.f32 1.442695, %v1110_v42  ;;  %v1381_v49 = vpop.permute.xlu1 %1380 }
 0x2bd   : > { %5034 = vpow2.f32 %v1131_v32  ;;  %v1424_v51 = vsel %vm931_vm0, %v1381_v49, 0  ;;  %v1383_v52 = vpop.permute.xlu0 %1382 }
 0x2be   : > { %5036 = vpow2.f32 %v1127_v13  ;;  %v1427_v53 = vsel %vm931_vm0, %v1383_v52, 0 }
 0x2bf   : > { %5038 = vpow2.f32 %v1129_v31 }
 0x2c4   : > { %v5874_v36 = vpop.eup %5032 }
 0x2c7   : > { %v5876_v4 = vpop.eup %5034 }
 0x2c8   : > { %v5878_v58 = vpop.eup %5036 }
 0x2c9   : > { %v5880_v33 = vpop.eup %5038  ;;  %v1189_v39 = vpack.c.bf16 %v5878_v58, %v5874_v36 }
 0x2ca   : > { %v1190_v41 = vpack.c.bf16 %v5876_v4, %v5880_v33 }
 0x2cb   : > { %4710 = vmatprep.mubr.bf16.mxu1 %v1189_v39 }
 0x2cc   : > { %4711 = vmatmul.mubr.bf16.vlgmr.msra.gmra.mrb[16].mxu1 %v1190_v41 }
 0x2cd   : > { %4727 = vmatpush3.bf16.xpose.msra.mxu1 %v1415_v43 }
 0x2ce   : > { %4847 = vmatprep.subr.msk.bf16.mxu1 %vm931_vm0, %v1377_v48 }
 0x2d5   : > { %4729 = vmatpush3.bf16.xpose.msra.mxu1 %v1418_v44 }
 0x2d6   : > { %4848 = vmatprep.subr.msk.bf16.mxu1 %vm931_vm0, %v1379_v61 }
 0x2dd   : > { %4731 = vmatpush3.bf16.xpose.msra.mxu1 %v1421_v46 }
 0x2de   : > { %4849 = vmatprep.subr.msk.bf16.mxu1 %vm931_vm0, %v1381_v49 }
 0x2e5   : > { %4733 = vmatpush3.bf16.xpose.msra.mxu1 %v1424_v51 }
 0x2e6   : > { %4850 = vmatprep.subr.msk.bf16.mxu1 %vm931_vm0, %v1383_v52 }
 0x2ed   : > { %4735 = vmatpush3.bf16.xpose.msra.mxu1 %v1427_v53  ;;  %v1086_v54 = vpop.xlane.xlu1 %1085 }
 0x2ee   : > { %v1113_v55 = vsub.f32 %v5807_v14, %v1086_v54  ;;  %v1090_v56 = vpop.xlane.xlu0 %1089 }
 0x2ef   : > { %v1115_v57 = vsub.f32 %v5805_v12, %v1090_v56 }
 0x2f0   : > { %v1133_v60 = vmul.f32 1.442695, %v1113_v55 }
 0x2f1   : > { %v1092_v59 = vpop.xlane.xlu1 %1091  ;;  %v1137_v1 = vmul.f32 1.442695, %v1115_v57 }
 0x2f2   : > { %v1116_v62 = vsub.f32 %v5809_v15, %v1092_v59  ;;  %v1094_v63 = vpop.xlane.xlu0 %1093  ;;  %5040 = vpow2.f32 %v1133_v60 }
 0x2f3   : > { %v1117_v3 = vsub.f32 %v5815_v20, %v1094_v63  ;;  %5042 = vpow2.f32 %v1137_v1 }
 0x2f4   : > { %v1139_v5 = vmul.f32 1.442695, %v1116_v62 }
 0x2f5   : > { %v1141_v6 = vmul.f32 1.442695, %v1117_v3  ;;  %v1088_v38 = vpop.xlane.xlu1 %1087 }
 0x2f6   : > { %v1114_v40 = vsub.f32 %v5811_v17, %v1088_v38  ;;  %v1096_v8 = vpop.xlane.xlu0 %1095  ;;  %5044 = vpow2.f32 %v1139_v5 }
 0x2f7   : > { %v1118_v10 = vsub.f32 %v5819_v22, %v1096_v8  ;;  %5046 = vpow2.f32 %v1141_v6 }
 0x2f8   : > { %v1135_v11 = vmul.f32 1.442695, %v1114_v40 }
 0x2f9   : > { %v1143_v12 = vmul.f32 1.442695, %v1118_v10  ;;  %v1098_v14 = vpop.xlane.xlu1 %1097 }
 0x2fa   : > { %5048 = vpow2.f32 %v1135_v11  ;;  %v1119_v15 = vsub.f32 %v5813_v18, %v1098_v14  ;;  %v1106_v48 = vpop.xlane.xlu0 %1105 }
 0x2fb   : > { %5050 = vpow2.f32 %v1143_v12  ;;  %v1123_v43 = vsub.f32 %v5823_v23, %v1106_v48 }
 0x2fc   : > { %v1145_v20 = vmul.f32 1.442695, %v1119_v15  ;;  %v5904_v17 = vpop.eup %5040 }
 0x2fd   : > { %v1100_v61 = vpop.xlane.xlu1 %1099  ;;  %v5906_v16 = vpop.eup %5042 }
 0x2fe   : > { %v1120_v19 = vsub.f32 %v5817_v21, %v1100_v61  ;;  %v1387_v45 = vpop.permute.xlu0 %1386  ;;  %5052 = vpow2.f32 %v1145_v20 }
 0x2ff   : > { %v1433_v63 = vsel %vm931_vm0, %v1387_v45, 0 }
 0x300   : > { %v1147_v47 = vmul.f32 1.442695, %v1120_v19  ;;  %v5908_v7 = vpop.eup %5044 }
 0x301   : > { %v1102_v22 = vpop.xlane.xlu1 %1101  ;;  %v5910_v29 = vpop.eup %5046  ;;  %v1192_v39 = vpack.c.bf16 %v5908_v7, %v5906_v16 }
 0x302   : > { %5054 = vpow2.f32 %v1147_v47  ;;  %v1389_v9 = vpop.permute.xlu0 %1388  ;;  %v1121_v30 = vsub.f32 %v5825_v24, %v1102_v22 }
 0x303   : > { %v1436_v11 = vsel %vm931_vm0, %v1389_v9, 0 }
 0x304   : > { %v5912_v18 = vpop.eup %5048  ;;  %v1149_v44 = vmul.f32 1.442695, %v1121_v30 }
 0x305   : > { %v5915_v42 = vpop.eup %5050  ;;  %v1108_v21 = vpop.xlane.xlu1 %1107  ;;  %v1191_v31 = vpack.c.bf16 %v5912_v18, %v5904_v17 }
 0x306   : > { %v1124_v32 = vsub.f32 %v5827_v26, %v1108_v21  ;;  %v1351_v13 = vpop.permute.xlu0 %1350  ;;  %v1193_v41 = vpack.c.bf16 %v5915_v42, %v5910_v29  ;;  %v1153_v26 = vmul.f32 1.442695, %v1123_v43  ;;  %5056 = vpow2.f32 %v1149_v44 }
 0x307   : > { %4714 = vmatprep.mubr.bf16.mxu1 %v1191_v31 }
 0x308   : > { %4715 = vmatmul.mubr.bf16.gmra.mrb[20].mxu1 %v1192_v39  ;;  %v1155_v24 = vmul.f32 1.442695, %v1124_v32  ;;  %v5926_v52 = vpop.eup %5052 }
 0x309   : > { %4718 = vmatprep.mubr.bf16.mxu1 %v1193_v41  ;;  %v1104_v46 = vpop.xlane.xlu1 %1103 }
 0x30a   : > { %v1122_v49 = vsub.f32 %v5829_v27, %v1104_v46  ;;  %v1355_v51 = vpop.permute.xlu0 %1354  ;;  %5058 = vpow2.f32 %v1155_v24 }
 0x30c   : > { %v5928_v53 = vpop.eup %5054  ;;  %v1151_v54 = vmul.f32 1.442695, %v1122_v49 }
 0x30d   : > { %v1385_v55 = vpop.permute.xlu1 %1384  ;;  %v1194_v23 = vpack.c.bf16 %v5928_v53, %v5926_v52 }
 0x30e   : > { %5060 = vpow2.f32 %v1151_v54  ;;  %v1359_v56 = vpop.permute.xlu0 %1358  ;;  %4851 = vmatprep.subr.msk.bf16.mxu1 %vm931_vm0, %v1385_v55  ;;  %v1430_v57 = vsel %vm931_vm0, %v1385_v55, 0 }
 0x30f   : > { %5062 = vpow2.f32 %v1153_v26  ;;  %4737 = vmatpush3.bf16.xpose.msra.mxu1 %v1430_v57 }
 0x310   : > { %4719 = vmatmul.mubr.bf16.gmra.mrb[24].mxu1 %v1194_v23  ;;  %4852 = vmatprep.subr.msk.bf16.mxu1 %vm931_vm0, %v1387_v45  ;;  %v5935_v62 = vpop.eup %5056 }
 0x311   : > { %v1353_v27 = vpop.permute.xlu1 %1352 }
 0x312   : > { %v1363_v59 = vpop.permute.xlu0 %1362 }
 0x314   : > { %v5938_v3 = vpop.eup %5058 }
 0x315   : > { %v1357_v60 = vpop.permute.xlu1 %1356 }
 0x316   : > { %v1664_v1 = vpop.permute.xlu0 %1663 }
 0x317   : > { %4739 = vmatpush3.bf16.xpose.msra.mxu1 %v1433_v63  ;;  %4758 = vmatprep.subr.bf16.mxu0 %v1664_v1 }
 0x318   : > { %v5940_v5 = vpop.eup %5060  ;;  %4853 = vmatprep.subr.msk.bf16.mxu1 %vm931_vm0, %v1389_v9  ;;  %4759 = vmatpush3.bf16.msra.mxu0 %v1664_v1 }
 0x319   : > { %v5943_v6 = vpop.eup %5062  ;;  %v1361_v38 = vpop.permute.xlu1 %1360  ;;  %v1195_v40 = vpack.c.bf16 %v5940_v5, %v5935_v62 }
 0x31a   : > { %v1196_v8 = vpack.c.bf16 %v5938_v3, %v5943_v6  ;;  %v1668_v12 = vpop.permute.xlu0 %1667 }
 0x31b   : > { %4722 = vmatprep.mubr.bf16.mxu1 %v1195_v40 }
 0x31c   : > { %4723 = vmatmul.mubr.bf16.gmra.mrb[28].mxu1 %v1196_v8 }
 0x31d   : > { %4742 = vmatprep.mubr.msk.bf16.mxu1 %vm931_vm0, %v1351_v13  ;;  %v1365_v10 = vpop.permute.xlu1 %1364 }
 0x31e   : > { %v1670_v15 = vpop.permute.xlu0 %1669 }
 0x31f   : > { %4741 = vmatpush3.bf16.xpose.msra.mxu1 %v1436_v11 }
 0x321   : > { %v1666_v14 = vpop.permute.xlu1 %1665 }
 0x322   : > { %4760 = vmatprep.subr.bf16.mxu0 %v1666_v14  ;;  %v1672_v48 = vpop.permute.xlu0 %1671 }
 0x323   : > { %4761 = vmatpush3.bf16.msra.mxu0 %v1666_v14 }
 0x324   : > { %4762 = vmatprep.subr.bf16.mxu0 %v1668_v12 }
 0x326   : > { %4743 = vmatmul.mubr.msk.bf16.vlgmr.msra.gmra.mrb[32].mxu1 %vm931_vm0, %v1353_v27 }
 0x327   : > { %4746 = vmatprep.mubr.msk.bf16.mxu1 %vm931_vm0, %v1355_v51  ;;  %4763 = vmatpush3.bf16.msra.mxu0 %v1668_v12 }
 0x328   : > { %4764 = vmatprep.subr.bf16.mxu0 %v1670_v15 }
 0x32b   : > { %4765 = vmatpush3.bf16.msra.mxu0 %v1670_v15 }
 0x32c   : > { %4766 = vmatprep.subr.bf16.mxu0 %v1672_v48 }
 0x32e   : > { %4747 = vmatmul.mubr.msk.bf16.gmra.mrb[36].mxu1 %vm931_vm0, %v1357_v60 }
 0x32f   : > { %4750 = vmatprep.mubr.msk.bf16.mxu1 %vm931_vm0, %v1359_v56  ;;  %4767 = vmatpush3.bf16.msra.mxu0 %v1672_v48 }
 0x336   : > { %4751 = vmatmul.mubr.msk.bf16.gmra.mrb[40].mxu1 %vm931_vm0, %v1361_v38 }
 0x337   : > { %4754 = vmatprep.mubr.msk.bf16.mxu1 %vm931_vm0, %v1363_v59 }
 0x33e   : > { %4755 = vmatmul.mubr.msk.bf16.gmra.mrb[44].mxu1 %vm931_vm0, %v1365_v10 }
 0x33f   : > { %2534 = vmatprep.mubr.bf16.mxu1 %v5424_v2 }
 0x39f   : > { %v5959_v20 = vpop.f32.mrb[16].mxu1 }
 0x3a0   : > { %v5961_v61 = vpop.f32.mrb[17].mxu1 }
 0x3a1   : > { %v5963_v19 = vpop.f32.mrb[18].mxu1 }
 0x3a2   : > { %v5965_v45 = vpop.f32.mrb[19].mxu1 }
 0x3db   : > { %v5967_v47 = vpop.f32.mrb[20].mxu1 }
 0x3dc   : > { %v5969_v22 = vpop.f32.mrb[21].mxu1 }
 0x3dd   : > { %v5971_v9 = vpop.f32.mrb[22].mxu1 }
 0x3de   : > { %v5973_v30 = vpop.f32.mrb[23].mxu1 }
 0x3e3   : > { %v5975_v21 = vpop.f32.mrb[24].mxu1 }
 0x3e4   : > { %v5977_v31 = vpop.f32.mrb[25].mxu1 }
 0x3e5   : > { %v5979_v32 = vpop.f32.mrb[26].mxu1 }
 0x3e6   : > { %v5981_v13 = vpop.f32.mrb[27].mxu1 }
 0x3ef   : > { %v5983_v39 = vpop.f32.mrb[28].mxu1 }
 0x3f0   : > { %v5985_v41 = vpop.f32.mrb[29].mxu1 }
 0x3f1   : > { %v5987_v43 = vpop.f32.mrb[30].mxu1 }
 0x3f2   : > { %v5989_v44 = vpop.f32.mrb[31].mxu1 }
 0x3f9   : > { %v4744_v24 = vpop.f32.mrb[32].mxu1 }
 0x3fa   : > { %1539 = vmax.xlane.f32.xlu1 %v4744_v24  ;;  %v1472_v46 = vpop.f32.mrb[33].mxu1 }
 0x3fb   : > { %1535 = vmax.xlane.f32.xlu0 %v1472_v46  ;;  %v4745_v49 = vpop.f32.mrb[34].mxu1 }
 0x3fc   : > { %v1475_v51 = vpop.f32.mrb[35].mxu1 }
 0x3fe   : > { %1541 = vmax.xlane.f32.xlu1 %v4745_v49 }
 0x401   : > { %v4748_v26 = vpop.f32.mrb[36].mxu1 }
 0x402   : > { %1537 = vmax.xlane.f32.xlu1 %v1475_v51  ;;  %v5991_v54 = vpop.f32.mrb[37].mxu1 }
 0x403   : > { %1543 = vmax.xlane.f32.xlu0 %v5991_v54  ;;  %v4749_v55 = vpop.f32.mrb[38].mxu1 }
 0x404   : > { %v5994_v23 = vpop.f32.mrb[39].mxu1 }
 0x406   : > { %1547 = vmax.xlane.f32.xlu1 %v4748_v26 }
 0x409   : > { %v5996_v56 = vpop.f32.mrb[40].mxu1 }
 0x40a   : > { %1549 = vmax.xlane.f32.xlu1 %v4749_v55  ;;  %v5998_v57 = vpop.f32.mrb[41].mxu1 }
 0x40b   : > { %v6000_v27 = vpop.f32.mrb[42].mxu1 }
 0x40c   : > { %v6002_v59 = vpop.f32.mrb[43].mxu1 }
 0x40e   : > { %1545 = vmax.xlane.f32.xlu1 %v5994_v23 }
 0x411   : > { %v6005_v60 = vpop.f32.mrb[44].mxu1 }
 0x412   : > { %v6007_v63 = vpop.f32.mrb[45].mxu1 }
 0x413   : > { %v6009_v1 = vpop.f32.mrb[46].mxu1 }
 0x414   : > { %v6011_v38 = vpop.f32.mrb[47].mxu1 }
 0x419   : > { %1675 = vrot.lane.b32.xlu0 %v5758_v28, %s7725_s23 }
 0x41d   : > { %1677 = vrot.lane.b32.xlu0 %v5754_v25, %s7725_s23 }
 0x41f   : > { %1673 = vrot.lane.b32.xlu1 %v5730_v0, %s7725_s23 }
 0x43c   : > { %1551 = vmax.xlane.f32.xlu0 %v5998_v57 }
 0x440   : > { %1555 = vmax.xlane.f32.xlu0 %v5996_v56 }
 0x443   : > { %1553 = vmax.xlane.f32.xlu1 %v6002_v59 }
 0x444   : > { %1557 = vmax.xlane.f32.xlu0 %v6000_v27 }
 0x447   : > { %1561 = vmax.xlane.f32.xlu1 %v6011_v38 }
 0x448   : > { %1559 = vmax.xlane.f32.xlu0 %v6007_v63 }
 0x44b   : > { %1565 = vmax.xlane.f32.xlu1 %v6009_v1 }
 0x44c   : > { %1563 = vmax.xlane.f32.xlu0 %v6005_v60 }
 0x44f   : > { %1159 = vadd.xlane.f32.xlu1 %v5878_v58 }
 0x450   : > { %1157 = vadd.xlane.f32.xlu0 %v5874_v36 }
 0x453   : > { %1163 = vadd.xlane.f32.xlu1 %v5876_v4 }
 0x454   : > { %1161 = vadd.xlane.f32.xlu0 %v5880_v33 }
 0x457   : > { %1167 = vadd.xlane.f32.xlu1 %v5912_v18 }
 0x458   : > { %1165 = vadd.xlane.f32.xlu0 %v5904_v17 }
 0x45b   : > { %1171 = vadd.xlane.f32.xlu1 %v5908_v7 }
 0x45c   : > { %1169 = vadd.xlane.f32.xlu0 %v5906_v16 }
 0x45f   : > { %1173 = vadd.xlane.f32.xlu1 %v5910_v29 }
 0x460   : > { %1175 = vadd.xlane.f32.xlu0 %v5915_v42 }
 0x463   : > { %1179 = vadd.xlane.f32.xlu1 %v5928_v53 }
 0x487   : > { %v1540_v0 = vpop.xlane.xlu1 %1539 }
 0x488   : > { %v1569_v25 = vsub.f32 %v4744_v24, %v1540_v0  ;;  %v1536_v28 = vpop.xlane.xlu0 %1535 }
 0x489   : > { %v1567_v36 = vsub.f32 %v1472_v46, %v1536_v28 }
 0x48a   : > { %v1587_v4 = vmul.f32 1.442695, %v1569_v25 }
 0x48b   : > { %v1583_v58 = vmul.f32 1.442695, %v1567_v36  ;;  %v1542_v33 = vpop.xlane.xlu1 %1541 }
 0x48c   : > { %5064 = vpow2.f32 %v1587_v4  ;;  %v1570_v18 = vsub.f32 %v4745_v49, %v1542_v33 }
 0x48d   : > { %5066 = vpow2.f32 %v1583_v58 }
 0x48e   : > { %v1589_v17 = vmul.f32 1.442695, %v1570_v18 }
 0x48f   : > { %v1538_v7 = vpop.xlane.xlu1 %1537 }
 0x490   : > { %5068 = vpow2.f32 %v1589_v17  ;;  %v1568_v16 = vsub.f32 %v1475_v51, %v1538_v7  ;;  %v1544_v42 = vpop.xlane.xlu0 %1543 }
 0x491   : > { %v1571_v10 = vsub.f32 %v5991_v54, %v1544_v42 }
 0x492   : > { %v1585_v40 = vmul.f32 1.442695, %v1568_v16 }
 0x493   : > { %v1548_v29 = vpop.xlane.xlu1 %1547  ;;  %v1591_v46 = vmul.f32 1.442695, %v1571_v10 }
 0x494   : > { %5070 = vpow2.f32 %v1585_v40  ;;  %v1573_v8 = vsub.f32 %v4748_v26, %v1548_v29  ;;  %v1676_v54 = vpop.permute.xlu0 %1675 }
 0x496   : > { %v5065_v53 = vpop.eup %5064  ;;  %v1595_v11 = vmul.f32 1.442695, %v1573_v8 }
 0x497   : > { %1619 = vadd.xlane.f32.xlu0 %v5065_v53  ;;  %v1550_v12 = vpop.xlane.xlu1 %1549  ;;  %v5067_v15 = vpop.eup %5066 }
 0x498   : > { %v1574_v14 = vsub.f32 %v4749_v55, %v1550_v12  ;;  %5072 = vpow2.f32 %v1595_v11 }
 0x49a   : > { %v5069_v48 = vpop.eup %5068  ;;  %v1597_v24 = vmul.f32 1.442695, %v1574_v14 }
 0x49b   : > { %1615 = vadd.xlane.f32.xlu0 %v5067_v15  ;;  %1621 = vadd.xlane.f32.xlu1 %v5069_v48  ;;  %v1546_v49 = vpop.xlane.xlu1 %1545  ;;  %v1648_v51 = vpack.c.bf16 %v5069_v48, %v5065_v53 }
 0x49c   : > { %5074 = vpow2.f32 %v1597_v24  ;;  %v1572_v0 = vsub.f32 %v5994_v23, %v1546_v49  ;;  %v1678_v23 = vpop.permute.xlu0 %1677 }
 0x49d   : > { %5076 = vpow2.f32 %v1591_v46 }
 0x49e   : > { %v5071_v26 = vpop.eup %5070  ;;  %v1593_v25 = vmul.f32 1.442695, %v1572_v0 }
 0x49f   : > { %1177 = vadd.xlane.f32.xlu0 %v5926_v52  ;;  %1617 = vadd.xlane.f32.xlu1 %v5071_v26  ;;  %v1674_v55 = vpop.permute.xlu1 %1673  ;;  %v1647_v28 = vpack.c.bf16 %v5071_v26, %v5067_v15 }
 0x4a0   : > { %5078 = vpow2.f32 %v1593_v25  ;;  %4768 = vmatprep.subr.bf16.mxu0 %v1674_v55 }
 0x4a1   : > { %4769 = vmatpush3.bf16.msra.mxu0 %v1674_v55  ;;  %4774 = vmatprep.mubr.bf16.mxu0 %v1647_v28 }
 0x4a2   : > { %4770 = vmatprep.subr.bf16.mxu0 %v1676_v54  ;;  %v5073_v36 = vpop.eup %5072 }
 0x4a3   : > { %1183 = vadd.xlane.f32.xlu0 %v5940_v5  ;;  %1181 = vadd.xlane.f32.xlu1 %v5935_v62 }
 0x4a5   : > { %4771 = vmatpush3.bf16.msra.mxu0 %v1676_v54 }
 0x4a6   : > { %v5075_v4 = vpop.eup %5074  ;;  %4772 = vmatprep.subr.bf16.mxu0 %v1678_v23 }
 0x4a7   : > { %1627 = vadd.xlane.f32.xlu0 %v5073_v36  ;;  %1629 = vadd.xlane.f32.xlu1 %v5075_v4  ;;  %v1650_v52 = vpack.c.bf16 %v5075_v4, %v5073_v36  ;;  %v5077_v58 = vpop.eup %5076 }
 0x4a9   : > { %4773 = vmatpush3.bf16.msra.mxu0 %v1678_v23 }
 0x4aa   : > { %v5079_v33 = vpop.eup %5078 }
 0x4ab   : > { %1623 = vadd.xlane.f32.xlu0 %v5077_v58  ;;  %1625 = vadd.xlane.f32.xlu1 %v5079_v33  ;;  %v1649_v18 = vpack.c.bf16 %v5079_v33, %v5077_v58 }
 0x4ac   : > { %4775 = vmatmul.mubr.bf16.vlgmr.msra.gmra.mrb[48].mxu0 %v1648_v51 }
 0x4ad   : > { %4778 = vmatprep.mubr.bf16.mxu0 %v1649_v18 }
 0x4b4   : > { %4779 = vmatmul.mubr.bf16.gmra.mrb[52].mxu0 %v1650_v52 }
 0x4c9   : > { %v1552_v5 = vpop.xlane.xlu0 %1551 }
 0x4ca   : > { %v1575_v62 = vsub.f32 %v5998_v57, %v1552_v5 }
 0x4cc   : > { %v1599_v16 = vmul.f32 1.442695, %v1575_v62 }
 0x4cd   : > { %v1556_v17 = vpop.xlane.xlu0 %1555 }
 0x4ce   : > { %v1577_v7 = vsub.f32 %v5996_v56, %v1556_v17 }
 0x4d0   : > { %v1603_v40 = vmul.f32 1.442695, %v1577_v7  ;;  %v1554_v29 = vpop.xlane.xlu1 %1553 }
 0x4d1   : > { %v1576_v42 = vsub.f32 %v6002_v59, %v1554_v29  ;;  %v1558_v8 = vpop.xlane.xlu0 %1557 }
 0x4d2   : > { %5080 = vpow2.f32 %v1603_v40  ;;  %v1578_v53 = vsub.f32 %v6000_v27, %v1558_v8 }
 0x4d3   : > { %v1601_v10 = vmul.f32 1.442695, %v1576_v42  ;;  %5082 = vpow2.f32 %v1599_v16 }
 0x4d4   : > { %v1605_v11 = vmul.f32 1.442695, %v1578_v53  ;;  %v1562_v12 = vpop.xlane.xlu1 %1561 }
 0x4d5   : > { %5084 = vpow2.f32 %v1601_v10  ;;  %v1580_v14 = vsub.f32 %v6011_v38, %v1562_v12  ;;  %v1560_v57 = vpop.xlane.xlu0 %1559 }
 0x4d6   : > { %5086 = vpow2.f32 %v1605_v11  ;;  %v1579_v56 = vsub.f32 %v6007_v63, %v1560_v57 }
 0x4d7   : > { %v1609_v15 = vmul.f32 1.442695, %v1580_v14 }
 0x4d8   : > { %v1607_v48 = vmul.f32 1.442695, %v1579_v56  ;;  %v1566_v24 = vpop.xlane.xlu1 %1565 }
 0x4d9   : > { %5088 = vpow2.f32 %v1609_v15  ;;  %v1582_v59 = vsub.f32 %v6009_v1, %v1566_v24  ;;  %v1564_v46 = vpop.xlane.xlu0 %1563 }
 0x4da   : > { %5090 = vpow2.f32 %v1607_v48  ;;  %v1581_v27 = vsub.f32 %v6005_v60, %v1564_v46 }
 0x4db   : > { %v1613_v49 = vmul.f32 1.442695, %v1582_v59 }
 0x4dc   : > { %v5081_v51 = vpop.eup %5080  ;;  %v1611_v0 = vmul.f32 1.442695, %v1581_v27  ;;  %v1160_v26 = vpop.xlane.xlu1 %1159 }
 0x4dd   : > { %5092 = vpow2.f32 %v1613_v49  ;;  %v1158_v38 = vpop.xlane.xlu0 %1157  ;;  %1635 = vadd.xlane.f32.xlu0 %v5081_v51  ;;  %v5083_v25 = vpop.eup %5082 }
 0x4de   : > { %5094 = vpow2.f32 %v1611_v0 }
 0x4df   : > { %v5085_v63 = vpop.eup %5084  ;;  %5096 = vrcp.f32 %v1160_v26 }
 0x4e0   : > { %v5087_v54 = vpop.eup %5086  ;;  %5098 = vrcp.f32 %v1158_v38  ;;  %v1164_v55 = vpop.xlane.xlu1 %1163  ;;  %v1651_v28 = vpack.c.bf16 %v5085_v63, %v5083_v25 }
 0x4e1   : > { %5100 = vrcp.f32 %v1164_v55  ;;  %v1162_v1 = vpop.xlane.xlu0 %1161  ;;  %1631 = vadd.xlane.f32.xlu0 %v5083_v25  ;;  %1637 = vadd.xlane.f32.xlu1 %v5087_v54  ;;  %v1652_v60 = vpack.c.bf16 %v5087_v54, %v5081_v51 }
 0x4e2   : > { %5102 = vrcp.f32 %v1162_v1  ;;  %4782 = vmatprep.mubr.bf16.mxu0 %v1651_v28 }
 0x4e3   : > { %v5089_v36 = vpop.eup %5088  ;;  %4783 = vmatmul.mubr.bf16.gmra.mrb[56].mxu0 %v1652_v60 }
 0x4e4   : > { %v5091_v23 = vpop.eup %5090  ;;  %v1168_v4 = vpop.xlane.xlu1 %1167 }
 0x4e5   : > { %5104 = vrcp.f32 %v1168_v4  ;;  %v1166_v52 = vpop.xlane.xlu0 %1165  ;;  %1633 = vadd.xlane.f32.xlu1 %v5085_v63  ;;  %v1653_v58 = vpack.c.bf16 %v5089_v36, %v5091_v23 }
 0x4e6   : > { %5106 = vrcp.f32 %v1166_v52 }
 0x4e7   : > { %v5093_v33 = vpop.eup %5092  ;;  %4786 = vmatprep.mubr.bf16.mxu0 %v1653_v58  ;;  %v4936_v58 = vld [vmem:[%s7711_s3] sm:$0xff]  }
 0x4e8   : > { %v5095_v18 = vpop.eup %5094  ;;  %v1172_v5 = vpop.xlane.xlu1 %1171  ;;  %4790 = vmatprep.subr.bf16.mxu0 %v4936_v58 }
 0x4e9   : > { %v5097_v62 = vpop.eup %5096  ;;  %5108 = vrcp.f32 %v1172_v5  ;;  %v1170_v17 = vpop.xlane.xlu0 %1169  ;;  %1643 = vadd.xlane.f32.xlu0 %v5095_v18  ;;  %1645 = vadd.xlane.f32.xlu1 %v5093_v33  ;;  %v1654_v7 = vpack.c.bf16 %v5093_v33, %v5095_v18  ;;  %v4941_v33 = vld [vmem:[%s7711_s3 + $0x28] sm:$0xff]  }
 0x4ea   : > { %v5099_v16 = vpop.eup %5098  ;;  %5110 = vrcp.f32 %v1170_v17  ;;  %v1311_v40 = vmul.f32 %v5097_v62, %v5965_v45  ;;  %4791 = vmatpush3.bf16.msra.mxu0 %v4936_v58  ;;  %v4942_v62 = vld [vmem:[%s7711_s3 + $0x30] sm:$0xff]   ;;  %v4943_v17 = vld [vmem:[%s7711_s3 + $0x38] sm:$0xff]  }
 0x4eb   : > { %v5101_v29 = vpop.eup %5100  ;;  %4787 = vmatmul.mubr.bf16.gmra.mrb[60].mxu0 %v1654_v7  ;;  %v1310_v42 = vmul.f32 %v5099_v16, %v5961_v61 }
 0x4ec   : > { %v5103_v8 = vpop.eup %5102  ;;  %v1174_v53 = vpop.xlane.xlu1 %1173  ;;  %v1313_v10 = vmul.f32 %v5101_v29, %v5963_v19 }
 0x4ed   : > { %5112 = vrcp.f32 %v1174_v53  ;;  %v1176_v11 = vpop.xlane.xlu0 %1175  ;;  %1639 = vadd.xlane.f32.xlu0 %v5091_v23  ;;  %1641 = vadd.xlane.f32.xlu1 %v5089_v36  ;;  %v1312_v12 = vmul.f32 %v5103_v8, %v5959_v20  ;;  %v1326_v14 = vpack.c.bf16 %v1311_v40, %v1310_v42 }
 0x4ee   : > { %5114 = vrcp.f32 %v1176_v11 }
 0x4ef   : > { %v5105_v57 = vpop.eup %5104  ;;  %v1327_v56 = vpack.c.bf16 %v1313_v10, %v1312_v12  ;;  %1334 = vst.msk [vmem:[#allocation2] sm:$0xff] %vm931_vm0, %v1326_v14 }
 0x4f0   : > { %v5107_v45 = vpop.eup %5106  ;;  %v1315_v15 = vmul.f32 %v5105_v57, %v5973_v30 }
 0x4f1   : > { %1335 = vst.msk [vmem:[#allocation2 + $0x8] sm:$0xff] %vm931_vm0, %v1327_v56  ;;  %v1314_v61 = vmul.f32 %v5107_v45, %v5969_v22  ;;  %v1180_v22 = vpop.xlane.xlu1 %1179 }
 0x4f2   : > { %5116 = vrcp.f32 %v1180_v22 }
 0x4f3   : > { %v5109_v19 = vpop.eup %5108  ;;  %v1328_v48 = vpack.c.bf16 %v1315_v15, %v1314_v61 }
 0x4f4   : > { %v5111_v24 = vpop.eup %5110  ;;  %v1317_v59 = vmul.f32 %v5109_v19, %v5971_v9 }
 0x4f5   : > { %v1316_v20 = vmul.f32 %v5111_v24, %v5967_v47  ;;  %1336 = vst.msk [vmem:[#allocation2 + $0x10] sm:$0xff] %vm931_vm0, %v1328_v48 }
 0x4f7   : > { %v5113_v46 = vpop.eup %5112  ;;  %v1329_v27 = vpack.c.bf16 %v1317_v59, %v1316_v20 }
 0x4f8   : > { %v5115_v49 = vpop.eup %5114  ;;  %v1318_v51 = vmul.f32 %v5113_v46, %v5977_v31 }
 0x4f9   : > { %1337 = vst.msk [vmem:[#allocation2 + $0x18] sm:$0xff] %vm931_vm0, %v1329_v27  ;;  %v1319_v30 = vmul.f32 %v5115_v49, %v5981_v13 }
 0x4fb   : > { %v1330_v0 = vpack.c.bf16 %v1319_v30, %v1318_v51 }
 0x4fc   : > { %v5117_v31 = vpop.eup %5116 }
 0x4fd   : > { %1338 = vst.msk [vmem:[#allocation2 + $0x20] sm:$0xff] %vm931_vm0, %v1330_v0  ;;  %v1321_v13 = vmul.f32 %v5117_v31, %v5979_v32  ;;  %v4938_v32 = vld [vmem:[%s7711_s3 + $0x10] sm:$0xff]  }
 0x524   : > { %v1620_v26 = vpop.xlane.xlu0 %1619 }
 0x528   : > { %v1616_v38 = vpop.xlane.xlu0 %1615  ;;  %v1622_v9 = vpop.xlane.xlu1 %1621 }
 0x52c   : > { %v1178_v47 = vpop.xlane.xlu0 %1177  ;;  %v1618_v25 = vpop.xlane.xlu1 %1617 }
 0x52d   : > { %5118 = vrcp.f32 %v1178_v47 }
 0x530   : > { %v1184_v63 = vpop.xlane.xlu0 %1183  ;;  %v1182_v54 = vpop.xlane.xlu1 %1181 }
 0x531   : > { %5120 = vrcp.f32 %v1184_v63 }
 0x532   : > { %5122 = vrcp.f32 %v1182_v54 }
 0x533   : > { %5124 = vrcp.f32 %v1620_v26 }
 0x534   : > { %5126 = vrcp.f32 %v1616_v38  ;;  %v1628_v18 = vpop.xlane.xlu0 %1627  ;;  %v1630_v5 = vpop.xlane.xlu1 %1629 }
 0x535   : > { %5128 = vrcp.f32 %v1622_v9 }
 0x536   : > { %5130 = vrcp.f32 %v1618_v25 }
 0x537   : > { %v5119_v55 = vpop.eup %5118  ;;  %5132 = vrcp.f32 %v1628_v18 }
 0x538   : > { %v1320_v28 = vmul.f32 %v5119_v55, %v5975_v21  ;;  %v4937_v21 = vld [vmem:[%s7711_s3 + $0x8] sm:$0xff]   ;;  %v1624_v7 = vpop.xlane.xlu0 %1623  ;;  %v1626_v16 = vpop.xlane.xlu1 %1625  ;;  %5134 = vrcp.f32 %v1630_v5 }
 0x539   : > { %4792 = vmatprep.subr.bf16.mxu0 %v4937_v21  ;;  %5136 = vrcp.f32 %v1624_v7 }
 0x53a   : > { %v1331_v1 = vpack.c.bf16 %v1321_v13, %v1320_v28  ;;  %4793 = vmatpush3.bf16.msra.mxu0 %v4937_v21  ;;  %5138 = vrcp.f32 %v1626_v16 }
 0x53b   : > { %v5121_v60 = vpop.eup %5120  ;;  %4794 = vmatprep.subr.bf16.mxu0 %v4938_v32 }
 0x53c   : > { %v5123_v36 = vpop.eup %5122  ;;  %1339 = vst.msk [vmem:[#allocation2 + $0x28] sm:$0xff] %vm931_vm0, %v1331_v1  ;;  %v1323_v23 = vmul.f32 %v5121_v60, %v5989_v44  ;;  %v4940_v44 = vld [vmem:[%s7711_s3 + $0x20] sm:$0xff]  }
 0x53d   : > { %v1322_v4 = vmul.f32 %v5123_v36, %v5985_v41  ;;  %v4939_v41 = vld [vmem:[%s7711_s3 + $0x18] sm:$0xff]   ;;  %v5125_v40 = vpop.eup %5124 }
 0x53e   : > { %4795 = vmatpush3.bf16.msra.mxu0 %v4938_v32  ;;  %v5127_v42 = vpop.eup %5126 }
 0x53f   : > { %v1332_v52 = vpack.c.bf16 %v1323_v23, %v1322_v4  ;;  %4796 = vmatprep.subr.bf16.mxu0 %v4939_v41  ;;  %v5129_v10 = vpop.eup %5128 }
 0x540   : > { %v5131_v14 = vpop.eup %5130 }
 0x541   : > { %1340 = vst.msk [vmem:[#allocation2 + $0x30] sm:$0xff] %vm931_vm0, %v1332_v52  ;;  %v5133_v19 = vpop.eup %5132 }
 0x542   : > { %4797 = vmatpush3.bf16.msra.mxu0 %v4939_v41  ;;  %v5135_v24 = vpop.eup %5134 }
 0x543   : > { %4798 = vmatprep.subr.bf16.mxu0 %v4940_v44  ;;  %v5137_v20 = vpop.eup %5136 }
 0x544   : > { %v5139_v27 = vpop.eup %5138 }
 0x546   : > { %4799 = vmatpush3.bf16.msra.mxu0 %v4940_v44 }
 0x547   : > { %4800 = vmatprep.subr.bf16.mxu0 %v4941_v33 }
 0x54a   : > { %4801 = vmatpush3.bf16.msra.mxu0 %v4941_v33 }
 0x54b   : > { %4802 = vmatprep.subr.bf16.mxu0 %v4942_v62 }
 0x54e   : > { %4803 = vmatpush3.bf16.msra.mxu0 %v4942_v62 }
 0x54f   : > { %4804 = vmatprep.subr.bf16.mxu0 %v4943_v17 }
 0x552   : > { %4805 = vmatpush3.bf16.msra.mxu0 %v4943_v17 }
 0x56a   : > { %v1636_v47 = vpop.xlane.xlu0 %1635 }
 0x56b   : > { %5140 = vrcp.f32 %v1636_v47 }
 0x56e   : > { %v1638_v9 = vpop.xlane.xlu1 %1637  ;;  %v1632_v63 = vpop.xlane.xlu0 %1631 }
 0x56f   : > { %5142 = vrcp.f32 %v1632_v63 }
 0x570   : > { %5144 = vrcp.f32 %v1638_v9 }
 0x572   : > { %v1634_v25 = vpop.xlane.xlu1 %1633 }
 0x573   : > { %5146 = vrcp.f32 %v1634_v25  ;;  %v5352_v25 = vld [vmem:[%s5570_s30] sm:$0xff]  }
 0x574   : > { %v456_v63 = vunpack.c.l.bf16 %v5352_v25 }
 0x575   : > { %v5141_v13 = vpop.eup %5140 }
 0x576   : > { %v1644_v54 = vpop.xlane.xlu0 %1643  ;;  %v1646_v31 = vpop.xlane.xlu1 %1645 }
 0x577   : > { %5148 = vrcp.f32 %v1644_v54 }
 0x578   : > { %5150 = vrcp.f32 %v1646_v31 }
 0x579   : > { %v5143_v60 = vpop.eup %5142 }
 0x57a   : > { %v1640_v55 = vpop.xlane.xlu0 %1639  ;;  %v1642_v28 = vpop.xlane.xlu1 %1641 }
 0x57b   : > { %5152 = vrcp.f32 %v1640_v55  ;;  %v5145_v23 = vpop.eup %5144 }
 0x57c   : > { %5154 = vrcp.f32 %v1642_v28  ;;  %v457_v28 = vunpack.c.h.bf16 %v5352_v25 }
 0x57d   : > { %v5147_v52 = vpop.eup %5146 }
 0x57f   : > { %v4776_v29 = vpop.f32.mrb[48].mxu0 }
 0x580   : > { %v1802_v8 = vmul.f32 %v5125_v40, %v4776_v29  ;;  %v1721_v53 = vpop.f32.mrb[49].mxu0 }
 0x581   : > { %v1800_v11 = vmul.f32 %v5127_v42, %v1721_v53  ;;  %v4777_v12 = vpop.f32.mrb[50].mxu0  ;;  %v5149_v33 = vpop.eup %5148 }
 0x582   : > { %v1803_v57 = vmul.f32 %v5129_v10, %v4777_v12  ;;  %v1724_v56 = vpop.f32.mrb[51].mxu0  ;;  %v5151_v5 = vpop.eup %5150 }
 0x583   : > { %v1801_v45 = vmul.f32 %v5131_v14, %v1724_v56 }
 0x584   : > { %v1817_v15 = vpack.c.bf16 %v1803_v57, %v1802_v8 }
 0x585   : > { %v1816_v61 = vpack.c.bf16 %v1801_v45, %v1800_v11  ;;  %v5153_v17 = vpop.eup %5152 }
 0x586   : > { %1834 = vrot.lane.b32.xlu1 %v1817_v15, %s7725_s23  ;;  %v5155_v16 = vpop.eup %5154 }
 0x587   : > { %v4780_v48 = vpop.f32.mrb[52].mxu0  ;;  %1832 = vrot.lane.b32.xlu0 %v1816_v61, %s7725_s23 }
 0x588   : > { %v1737_v59 = vpop.f32.mrb[53].mxu0  ;;  %v1806_v49 = vmul.f32 %v5133_v19, %v4780_v48 }
 0x589   : > { %v4781_v46 = vpop.f32.mrb[54].mxu0  ;;  %v1804_v0 = vmul.f32 %v5137_v20, %v1737_v59 }
 0x58a   : > { %v1807_v51 = vmul.f32 %v5135_v24, %v4781_v46  ;;  %v1740_v30 = vpop.f32.mrb[55].mxu0 }
 0x58b   : > { %v1805_v22 = vmul.f32 %v5139_v27, %v1740_v30 }
 0x58c   : > { %v1819_v26 = vpack.c.bf16 %v1807_v51, %v1806_v49 }
 0x58d   : > { %v1818_v38 = vpack.c.bf16 %v1805_v22, %v1804_v0 }
 0x58e   : > { %1838 = vrot.lane.b32.xlu1 %v1819_v26, %s7725_s23 }
 0x58f   : > { %1836 = vrot.lane.b32.xlu0 %v1818_v38, %s7725_s23 }
 0x5ae   : > { %1185 = vadd.xlane.f32.xlu0 %v5943_v6 }
 0x5b2   : > { %1187 = vadd.xlane.f32.xlu1 %v5938_v3 }
 0x5b6   : > { %v4784_v1 = vpop.f32.mrb[56].mxu0 }
 0x5b7   : > { %v1753_v36 = vpop.f32.mrb[57].mxu0  ;;  %v1810_v58 = vmul.f32 %v5141_v13, %v4784_v1 }
 0x5b8   : > { %v4785_v4 = vpop.f32.mrb[58].mxu0  ;;  %v1808_v6 = vmul.f32 %v5143_v60, %v1753_v36 }
 0x5b9   : > { %v1811_v21 = vmul.f32 %v5145_v23, %v4785_v4  ;;  %v1756_v32 = vpop.f32.mrb[59].mxu0  ;;  %v5353_v23 = vld [vmem:[%s5570_s30 + $0x8] sm:$0xff]  }
 0x5ba   : > { %v1809_v41 = vmul.f32 %v5147_v52, %v1756_v32  ;;  %v458_v4 = vunpack.c.l.bf16 %v5353_v23 }
 0x5bb   : > { %v1821_v44 = vpack.c.bf16 %v1811_v21, %v1810_v58  ;;  %v459_v58 = vunpack.c.h.bf16 %v5353_v23 }
 0x5bc   : > { %v1820_v3 = vpack.c.bf16 %v1809_v41, %v1808_v6 }
 0x5be   : > { %v4788_v18 = vpop.f32.mrb[60].mxu0 }
 0x5bf   : > { %v1769_v62 = vpop.f32.mrb[61].mxu0  ;;  %v1814_v40 = vmul.f32 %v5149_v33, %v4788_v18 }
 0x5c0   : > { %v4789_v7 = vpop.f32.mrb[62].mxu0  ;;  %v1812_v8 = vmul.f32 %v5153_v17, %v1769_v62 }
 0x5c1   : > { %v1815_v29 = vmul.f32 %v5151_v5, %v4789_v7  ;;  %v1772_v42 = vpop.f32.mrb[63].mxu0 }
 0x5c2   : > { %v1813_v53 = vmul.f32 %v5155_v16, %v1772_v42  ;;  %v5355_v16 = vld [vmem:[%s5570_s30 + $0x18] sm:$0xff]  }
 0x5c3   : > { %v1823_v10 = vpack.c.bf16 %v1815_v29, %v1814_v40  ;;  %1842 = vrot.lane.b32.xlu1 %v1821_v44, %s7725_s23  ;;  %v463_v40 = vunpack.c.h.bf16 %v5355_v16 }
 0x5c4   : > { %v1822_v11 = vpack.c.bf16 %v1813_v53, %v1812_v8  ;;  %1840 = vrot.lane.b32.xlu0 %v1820_v3, %s7725_s23  ;;  %v5354_v3 = vld [vmem:[%s5570_s30 + $0x10] sm:$0xff]   ;;  %v462_v8 = vunpack.c.l.bf16 %v5355_v16 }
 0x5c5   : > { %v461_v33 = vunpack.c.h.bf16 %v5354_v3  ;;  %v460_v62 = vunpack.c.l.bf16 %v5354_v3  ;;  %v4952_v3 = vld [vmem:[%s7715_s7 + $0x24] ss:$16 sps:$4 sm:$0xff]  }
 0x5c7   : > { %1844 = vrot.lane.b32.xlu1 %v1822_v11, %s7725_s23 }
 0x5cb   : > { %1846 = vrot.lane.b32.xlu1 %v1823_v10, %s7725_s23  ;;  %s7665_s23 = scalar_lea.sflag [#allocation4], %s431_s15 }
 0x5f8   : > { %v1835_v12 = vpop.permute.xlu1 %1834 }
 0x5f9   : > { %1858 = vst.msk [vmem:[#allocation2 + $0x8] sm:$0xff] %vm1856_vm1, %v1835_v12  ;;  %v1833_v14 = vpop.permute.xlu0 %1832 }
 0x5fa   : > { %1857 = vst.msk [vmem:[#allocation2] sm:$0xff] %vm1856_vm1, %v1833_v14 }
 0x600   : > { %v1839_v57 = vpop.permute.xlu1 %1838  ;;  %v1866_v15 = vld [vmem:[#allocation2 + $0x8] sm:$0xff] }
 0x601   : > { %1860 = vst.msk [vmem:[#allocation2 + $0x18] sm:$0xff] %vm1856_vm1, %v1839_v57  ;;  %v1837_v56 = vpop.permute.xlu0 %1836  ;;  %v1865_v45 = vld [vmem:[#allocation2] sm:$0xff] }
 0x602   : > { %1859 = vst.msk [vmem:[#allocation2 + $0x10] sm:$0xff] %vm1856_vm1, %v1837_v56  ;;  %4806 = vmatprep.mubr.bf16.mxu0 %v1865_v45  ;;  %v5356_v57 = vld [vmem:[%s5570_s30 + $0x20] sm:$0xff]  }
 0x603   : > { %4807 = vmatmul.mubr.bf16.vlgmr.msra.gmra.mrb[64].mxu0 %v1866_v15  ;;  %v464_v56 = vunpack.c.l.bf16 %v5356_v57 }
 0x608   : > { %v1868_v19 = vld [vmem:[#allocation2 + $0x18] sm:$0xff] }
 0x609   : > { %v1867_v61 = vld [vmem:[#allocation2 + $0x10] sm:$0xff] }
 0x60a   : > { %4810 = vmatprep.mubr.bf16.mxu0 %v1867_v61 }
 0x60b   : > { %4811 = vmatmul.mubr.bf16.gmra.mrb[68].mxu0 %v1868_v19  ;;  %v465_v19 = vunpack.c.h.bf16 %v5356_v57 }
 0x63b   : > { %v1186_v48 = vpop.xlane.xlu0 %1185 }
 0x63c   : > { %5156 = vrcp.f32 %v1186_v48 }
 0x63f   : > { %v1841_v24 = vpop.permute.xlu0 %1840  ;;  %v1188_v59 = vpop.xlane.xlu1 %1187 }
 0x640   : > { %1861 = vst.msk [vmem:[#allocation2 + $0x20] sm:$0xff] %vm1856_vm1, %v1841_v24  ;;  %5158 = vrcp.f32 %v1188_v59  ;;  %v5357_v24 = vld [vmem:[%s5570_s30 + $0x28] sm:$0xff]  }
 0x641   : > { %v466_v59 = vunpack.c.l.bf16 %v5357_v24 }
 0x643   : > { %v1843_v20 = vpop.permute.xlu1 %1842 }
 0x644   : > { %1862 = vst.msk [vmem:[#allocation2 + $0x28] sm:$0xff] %vm1856_vm1, %v1843_v20 }
 0x646   : > { %v5157_v49 = vpop.eup %5156 }
 0x647   : > { %v1845_v46 = vpop.permute.xlu1 %1844  ;;  %v1869_v27 = vld [vmem:[#allocation2 + $0x20] sm:$0xff]  ;;  %v1324_v30 = vmul.f32 %v5157_v49, %v5983_v39  ;;  %v467_v49 = vunpack.c.h.bf16 %v5357_v24 }
 0x648   : > { %1863 = vst.msk [vmem:[#allocation2 + $0x30] sm:$0xff] %vm1856_vm1, %v1845_v46  ;;  %4814 = vmatprep.mubr.bf16.mxu0 %v1869_v27  ;;  %v6121_v39 = vld [vmem:[%s7712_s4] ss:$0 sm:$0xff] }
 0x64a   : > { %v5159_v51 = vpop.eup %5158 }
 0x64b   : > { %v1325_v0 = vmul.f32 %v5159_v51, %v5987_v43  ;;  %v1870_v22 = vld [vmem:[#allocation2 + $0x28] sm:$0xff]  ;;  %v1847_v38 = vpop.permute.xlu1 %1846 }
 0x64c   : > { %4815 = vmatmul.mubr.bf16.gmra.mrb[72].mxu0 %v1870_v22 }
 0x64d   : > { %v1333_v26 = vpack.c.bf16 %v1325_v0, %v1324_v30 }
 0x64f   : > { %1341 = vst.msk [vmem:[#allocation2 + $0x38] sm:$0xff] %vm931_vm0, %v1333_v26  ;;  %v1871_v9 = vld [vmem:[#allocation2 + $0x30] sm:$0xff] }
 0x650   : > { %1864 = vst.msk [vmem:[#allocation2 + $0x38] sm:$0xff] %vm1856_vm1, %v1847_v38  ;;  %4818 = vmatprep.mubr.bf16.mxu0 %v1871_v9  ;;  %v5358_v38 = vld [vmem:[%s5570_s30 + $0x30] sm:$0xff]  }
 0x651   : > { %v468_v9 = vunpack.c.l.bf16 %v5358_v38 }
 0x657   : > { %v1872_v47 = vld [vmem:[#allocation2 + $0x38] sm:$0xff] }
 0x658   : > { %4819 = vmatmul.mubr.bf16.gmra.mrb[76].mxu0 %v1872_v47 }
 0x659   : > { %2647 = vmatprep.mubr.bf16.mxu0 %v5424_v2 }
 0x6d6   : > { %v4808_v43 = vpop.f32.mrb[64].mxu0 }
 0x6d7   : > { %v1978_v54 = vpop.f32.mrb[65].mxu0  ;;  %v1987_v1 = vadd.f32 %v4808_v43, %v6121_v39 }
 0x6d8   : > { %v1979_v31 = vadd.f32 %v6121_v39, %v1978_v54  ;;  %v4809_v55 = vpop.f32.mrb[66].mxu0 }
 0x6d9   : > { %v1981_v13 = vpop.f32.mrb[67].mxu0  ;;  %v1990_v21 = vadd.f32 %v4809_v55, %v6121_v39  ;;  %v6135_v6 = vadd.f32 %v1987_v1, %v458_v4 }
 0x6da   : > { %v1982_v60 = vadd.f32 %v6121_v39, %v1981_v13  ;;  %v6127_v36 = vadd.f32 %v1979_v31, %v456_v63  ;;  %v469_v63 = vunpack.c.h.bf16 %v5358_v38  ;;  %v5359_v31 = vld [vmem:[%s5570_s30 + $0x38] sm:$0xff]   ;;  %s4358_s30 = sshll.u32 %s5519_s29, 10  ;;  %s5360_s29 = scalar_lea.vmem %s7660_s24, 1024 }
 0x6db   : > { %v6139_v5 = vadd.f32 %v1990_v21, %v459_v58  ;;  %v470_v55 = vunpack.c.l.bf16 %v5359_v31  ;;  %s7658_s17 = scalar_lea.hbm %s7721_s13, %s4358_s30  ;;  %p5361_p11 = scmp.ne.s32.totalorder %s7660_s24, %s5360_s29 }
 0x6dc   : > { %v6130_v52 = vadd.f32 %v1982_v60, %v457_v28  ;;  %2059 = vadd.xlane.f32.xlu0 %v6127_v36  ;;  %v471_v60 = vunpack.c.h.bf16 %v5359_v31  ;;  %v4967_v31 = vld [vmem:[%s7715_s7 + $0x6c] ss:$16 sps:$4 sm:$0xff]   ;;  %p5368_p1 = scmp.lt.s32.totalorder %s5366_s14, %s5360_s29 }
 0x6dd   : > { %p5362_p12 = pnand %p5361_p11, %p5536_p5 }
 0x6de   : > { %2061 = vadd.xlane.f32.xlu1 %v6130_v52  ;;  %v4812_v32 = vpop.f32.mrb[68].mxu0  ;;  %p5369_p2 = por %p5368_p1, %p5367_p0 }
 0x6df   : > { %v1994_v41 = vpop.f32.mrb[69].mxu0  ;;  %v2003_v53 = vadd.f32 %v4812_v32, %v6121_v39  ;;  %v4944_v32 = vld [vmem:[%s7715_s7] ss:$16 sps:$4 sm:$0xff]   ;;  %p5363_p13 = pneg %p5362_p12 }
 0x6e0   : > { %v4813_v44 = vpop.f32.mrb[70].mxu0  ;;  %2063 = vadd.xlane.f32.xlu0 %v6135_v6  ;;  %v1995_v17 = vadd.f32 %v6121_v39, %v1994_v41  ;;  %v4947_v41 = vld [vmem:[%s7715_s7 + $0x8] ss:$16 sps:$4 sm:$0xff]  }
 0x6e1   : > { %v1997_v18 = vpop.f32.mrb[71].mxu0  ;;  %v2006_v29 = vadd.f32 %v4813_v44, %v6121_v39  ;;  %v6155_v12 = vadd.f32 %v2003_v53, %v462_v8  ;;  %v4949_v44 = vld [vmem:[%s7715_s7 + $0xc] ss:$16 sps:$4 sm:$0xff]   ;;  %p5370_p3 = pnand %p5369_p2, %p5363_p13 }
 0x6e2   : > { %v1998_v7 = vadd.f32 %v6121_v39, %v1997_v18  ;;  %v6149_v10 = vadd.f32 %v1995_v17, %v460_v62  ;;  %2615 = vmatprep.subr.bf16.mxu0 %v4949_v44  ;;  %v4950_v18 = vld [vmem:[%s7715_s7 + $0x20] ss:$16 sps:$4 sm:$0xff]   ;;  %v4953_v62 = vld [vmem:[%s7715_s7 + $0x28] ss:$16 sps:$4 sm:$0xff]  }
 0x6e3   : > { %v6152_v11 = vadd.f32 %v2006_v29, %v463_v40  ;;  %2616 = vmatpush1.bf16.msra.mxu0 %v4947_v41  ;;  %v4979_v41 = vld [vmem:[%s7715_s7 + $0xac] ss:$16 sps:$4 sm:$0xff]   ;;  %v4974_v44 = vld [vmem:[%s7715_s7 + $0xa0] ss:$16 sps:$4 sm:$0xff]  }
 0x6e4   : > { %v6145_v42 = vadd.f32 %v1998_v7, %v461_v33  ;;  %2065 = vadd.xlane.f32.xlu0 %v6139_v5  ;;  %v4955_v33 = vld [vmem:[%s7715_s7 + $0x2c] ss:$16 sps:$4 sm:$0xff]  }
 0x6e5   : > { %2617 = vmatprep.subr.bf16.mxu0 %v4955_v33  ;;  %v4982_v33 = vld [vmem:[%s7715_s7 + $0xc4] ss:$16 sps:$4 sm:$0xff]  }
 0x6e6   : > { %2069 = vadd.xlane.f32.xlu1 %v6145_v42 }
 0x6e7   : > { %2618 = vmatpush1.bf16.msra.mxu0 %v4953_v62  ;;  %v4980_v62 = vld [vmem:[%s7715_s7 + $0xc0] ss:$16 sps:$4 sm:$0xff]  }
 0x6e8   : > { %2067 = vadd.xlane.f32.xlu0 %v6149_v10 }
 0x6ea   : > { %2073 = vadd.xlane.f32.xlu1 %v6152_v11 }
 0x6ec   : > { %2071 = vadd.xlane.f32.xlu0 %v6155_v12 }
 0x71f   : > { %v4816_v14 = vpop.f32.mrb[72].mxu0 }
 0x720   : > { %v2010_v45 = vpop.f32.mrb[73].mxu0  ;;  %v2019_v20 = vadd.f32 %v4816_v14, %v6121_v39 }
 0x721   : > { %v2011_v15 = vadd.f32 %v6121_v39, %v2010_v45  ;;  %v4817_v61 = vpop.f32.mrb[74].mxu0 }
 0x722   : > { %v2013_v48 = vpop.f32.mrb[75].mxu0  ;;  %v2022_v51 = vadd.f32 %v4817_v61, %v6121_v39  ;;  %v6170_v0 = vadd.f32 %v2019_v20, %v466_v59 }
 0x723   : > { %v6163_v46 = vadd.f32 %v2011_v15, %v464_v56  ;;  %v2014_v27 = vadd.f32 %v6121_v39, %v2013_v48 }
 0x724   : > { %v6173_v22 = vadd.f32 %v2022_v51, %v467_v49 }
 0x725   : > { %v6167_v30 = vadd.f32 %v2014_v27, %v465_v19  ;;  %2075 = vadd.xlane.f32.xlu0 %v6163_v46 }
 0x727   : > { %2077 = vadd.xlane.f32.xlu1 %v6167_v30 }
 0x729   : > { %2079 = vadd.xlane.f32.xlu0 %v6170_v0 }
 0x72b   : > { %2081 = vadd.xlane.f32.xlu1 %v6173_v22  ;;  %v4820_v26 = vpop.f32.mrb[76].mxu0 }
 0x72c   : > { %v2026_v47 = vpop.f32.mrb[77].mxu0  ;;  %v2035_v28 = vadd.f32 %v4820_v26, %v6121_v39 }
 0x72d   : > { %v2027_v43 = vadd.f32 %v6121_v39, %v2026_v47  ;;  %v4821_v25 = vpop.f32.mrb[78].mxu0 }
 0x72e   : > { %v2029_v54 = vpop.f32.mrb[79].mxu0  ;;  %v2038_v23 = vadd.f32 %v4821_v25, %v6121_v39  ;;  %v6188_v58 = vadd.f32 %v2035_v28, %v470_v55  ;;  %v4961_v25 = vld [vmem:[%s7715_s7 + $0x4c] ss:$16 sps:$4 sm:$0xff]   ;;  %v4962_v55 = vld [vmem:[%s7715_s7 + $0x60] ss:$16 sps:$4 sm:$0xff]  }
 0x72f   : > { %v6181_v13 = vadd.f32 %v2027_v43, %v468_v9  ;;  %v2030_v1 = vadd.f32 %v6121_v39, %v2029_v54  ;;  %v4946_v39 = vld [vmem:[%s7715_s7 + $0x4] ss:$16 sps:$4 sm:$0xff]   ;;  %2619 = vmatprep.subr.bf16.mxu0 %v4961_v25  ;;  %v4965_v28 = vld [vmem:[%s7715_s7 + $0x68] ss:$16 sps:$4 sm:$0xff]  }
 0x730   : > { %v6191_v21 = vadd.f32 %v2038_v23, %v471_v60  ;;  %2502 = vmatprep.subr.bf16.mxu1 %v4946_v39  ;;  %v4964_v54 = vld [vmem:[%s7715_s7 + $0x64] ss:$16 sps:$4 sm:$0xff]   ;;  %v4973_v60 = vld [vmem:[%s7715_s7 + $0x8c] ss:$16 sps:$4 sm:$0xff]   ;;  %v4968_v23 = vld [vmem:[%s7715_s7 + $0x80] ss:$16 sps:$4 sm:$0xff]  }
 0x731   : > { %v6185_v4 = vadd.f32 %v2030_v1, %v469_v63  ;;  %2083 = vadd.xlane.f32.xlu0 %v6181_v13  ;;  %2503 = vmatpush1.bf16.msra.mxu1 %v4944_v32  ;;  %v4959_v63 = vld [vmem:[%s7715_s7 + $0x48] ss:$16 sps:$4 sm:$0xff]   ;;  %v4970_v1 = vld [vmem:[%s7715_s7 + $0x84] ss:$16 sps:$4 sm:$0xff]  }
 0x732   : > { %2504 = vmatprep.subr.bf16.mxu1 %v4952_v3  ;;  %2620 = vmatpush1.bf16.msra.mxu0 %v4959_v63  ;;  %v4971_v32 = vld [vmem:[%s7715_s7 + $0x88] ss:$16 sps:$4 sm:$0xff]   ;;  %v4976_v39 = vld [vmem:[%s7715_s7 + $0xa4] ss:$16 sps:$4 sm:$0xff]  }
 0x733   : > { %2085 = vadd.xlane.f32.xlu1 %v6185_v4  ;;  %2621 = vmatprep.subr.bf16.mxu0 %v4967_v31  ;;  %v4977_v3 = vld [vmem:[%s7715_s7 + $0xa8] ss:$16 sps:$4 sm:$0xff]  }
 0x735   : > { %2087 = vadd.xlane.f32.xlu0 %v6188_v58  ;;  %2505 = vmatpush1.bf16.msra.mxu1 %v4950_v18  ;;  %v4985_v18 = vld [vmem:[%s7715_s7 + $0xcc] ss:$16 sps:$4 sm:$0xff]  }
 0x736   : > { %2622 = vmatpush1.bf16.msra.mxu0 %v4965_v28 }
 0x737   : > { %2089 = vadd.xlane.f32.xlu1 %v6191_v21  ;;  %2623 = vmatprep.subr.bf16.mxu0 %v4973_v60 }
 0x73a   : > { %2624 = vmatpush1.bf16.msra.mxu0 %v4971_v32 }
 0x73b   : > { %2625 = vmatprep.subr.bf16.mxu0 %v4979_v41 }
 0x73e   : > { %2626 = vmatpush1.bf16.msra.mxu0 %v4977_v3 }
 0x73f   : > { %2627 = vmatprep.subr.bf16.mxu0 %v4985_v18 }
 0x769   : > { %v2060_v17 = vpop.xlane.xlu0 %2059 }
 0x76a   : > { %v2092_v7 = vmul.f32 0.0078125, %v2060_v17  ;;  %v4983_v17 = vld [vmem:[%s7715_s7 + $0xc8] ss:$16 sps:$4 sm:$0xff]  }
 0x76b   : > { %v2062_v16 = vpop.xlane.xlu1 %2061  ;;  %2628 = vmatpush1.bf16.msra.mxu0 %v4983_v17 }
 0x76c   : > { %v6220_v40 = vsub.f32 %v6127_v36, %v2092_v7  ;;  %v2093_v29 = vmul.f32 0.0078125, %v2062_v16  ;;  %v4986_v7 = vld [vmem:[%s7715_s7 + $0xe0] ss:$16 sps:$4 sm:$0xff]   ;;  %v4988_v16 = vld [vmem:[%s7715_s7 + $0xe4] ss:$16 sps:$4 sm:$0xff]  }
 0x76d   : > { %v2064_v8 = vpop.xlane.xlu0 %2063 }
 0x76e   : > { %v6223_v53 = vsub.f32 %v6130_v52, %v2093_v29  ;;  %v2094_v14 = vmul.f32 0.0078125, %v2064_v8  ;;  %v2124_v57 = vmul.f32 %v6220_v40, %v6220_v40  ;;  %v4989_v29 = vld [vmem:[%s7715_s7 + $0xe8] ss:$16 sps:$4 sm:$0xff]   ;;  %v4991_v8 = vld [vmem:[%s7715_s7 + $0xec] ss:$16 sps:$4 sm:$0xff]  }
 0x76f   : > { %2629 = vmatprep.subr.bf16.mxu0 %v4991_v8 }
 0x770   : > { %v6228_v56 = vsub.f32 %v6135_v6, %v2094_v14  ;;  %2140 = vadd.xlane.f32.xlu0 %v2124_v57  ;;  %v2125_v45 = vmul.f32 %v6223_v53, %v6223_v53  ;;  %2630 = vmatpush1.bf16.msra.mxu0 %v4989_v29  ;;  %v6374_v29 = vld [vmem:[%s7713_s5] ss:$0 sm:$0xff] }
 0x771   : > { %v2066_v15 = vpop.xlane.xlu0 %2065 }
 0x772   : > { %v2095_v61 = vmul.f32 0.0078125, %v2066_v15  ;;  %2142 = vadd.xlane.f32.xlu1 %v2125_v45  ;;  %v2126_v36 = vmul.f32 %v6228_v56, %v6228_v56 }
 0x773   : > { %v2070_v19 = vpop.xlane.xlu1 %2069 }
 0x774   : > { %v6235_v52 = vsub.f32 %v6139_v5, %v2095_v61  ;;  %v2097_v48 = vmul.f32 0.0078125, %v2070_v19  ;;  %2144 = vadd.xlane.f32.xlu0 %v2126_v36 }
 0x775   : > { %v2068_v24 = vpop.xlane.xlu0 %2067 }
 0x776   : > { %v6238_v6 = vsub.f32 %v6145_v42, %v2097_v48  ;;  %v2096_v59 = vmul.f32 0.0078125, %v2068_v24  ;;  %v2127_v20 = vmul.f32 %v6235_v52, %v6235_v52 }
 0x777   : > { %v2074_v27 = vpop.xlane.xlu1 %2073 }
 0x778   : > { %v6243_v49 = vsub.f32 %v6149_v10, %v2096_v59  ;;  %v2099_v51 = vmul.f32 0.0078125, %v2074_v27  ;;  %2146 = vadd.xlane.f32.xlu1 %v2127_v20  ;;  %v2129_v9 = vmul.f32 %v6238_v6, %v6238_v6 }
 0x779   : > { %v2072_v26 = vpop.xlane.xlu0 %2071 }
 0x77a   : > { %v6246_v5 = vsub.f32 %v6152_v11, %v2099_v51  ;;  %v2098_v38 = vmul.f32 0.0078125, %v2072_v26  ;;  %v2128_v42 = vmul.f32 %v6243_v49, %v6243_v49  ;;  %v4958_v11 = vld [vmem:[%s7715_s7 + $0x44] ss:$16 sps:$4 sm:$0xff]  }
 0x77b   : > { %2506 = vmatprep.subr.bf16.mxu1 %v4958_v11 }
 0x77c   : > { %v6253_v47 = vsub.f32 %v6155_v12, %v2098_v38  ;;  %2150 = vadd.xlane.f32.xlu1 %v2129_v9  ;;  %2148 = vadd.xlane.f32.xlu0 %v2128_v42  ;;  %v2131_v10 = vmul.f32 %v6246_v5, %v6246_v5  ;;  %v4956_v12 = vld [vmem:[%s7715_s7 + $0x40] ss:$16 sps:$4 sm:$0xff]  }
 0x77d   : > { %2507 = vmatpush1.bf16.msra.mxu1 %v4956_v12 }
 0x77e   : > { %v2130_v43 = vmul.f32 %v6253_v47, %v6253_v47  ;;  %2508 = vmatprep.subr.bf16.mxu1 %v4964_v54 }
 0x780   : > { %2154 = vadd.xlane.f32.xlu1 %v2131_v10  ;;  %2152 = vadd.xlane.f32.xlu0 %v2130_v43 }
 0x781   : > { %2509 = vmatpush1.bf16.msra.mxu1 %v4962_v55 }
 0x782   : > { %2510 = vmatprep.subr.bf16.mxu1 %v4970_v1 }
 0x785   : > { %2511 = vmatpush1.bf16.msra.mxu1 %v4968_v23 }
 0x786   : > { %2512 = vmatprep.subr.bf16.mxu1 %v4976_v39 }
 0x789   : > { %2513 = vmatpush1.bf16.msra.mxu1 %v4974_v44 }
 0x78a   : > { %2514 = vmatprep.subr.bf16.mxu1 %v4982_v33 }
 0x78d   : > { %2515 = vmatpush1.bf16.msra.mxu1 %v4980_v62 }
 0x78e   : > { %2516 = vmatprep.subr.bf16.mxu1 %v4988_v16 }
 0x791   : > { %2517 = vmatpush1.bf16.msra.mxu1 %v4986_v7 }
 0x7b2   : > { %v2076_v14 = vpop.xlane.xlu0 %2075 }
 0x7b3   : > { %v2100_v57 = vmul.f32 0.0078125, %v2076_v14 }
 0x7b4   : > { %v2078_v45 = vpop.xlane.xlu1 %2077 }
 0x7b5   : > { %v6332_v15 = vsub.f32 %v6163_v46, %v2100_v57  ;;  %v2101_v61 = vmul.f32 0.0078125, %v2078_v45 }
 0x7b6   : > { %v2080_v36 = vpop.xlane.xlu0 %2079 }
 0x7b7   : > { %v6335_v19 = vsub.f32 %v6167_v30, %v2101_v61  ;;  %v2102_v48 = vmul.f32 0.0078125, %v2080_v36  ;;  %v2132_v24 = vmul.f32 %v6332_v15, %v6332_v15 }
 0x7b8   : > { %v2082_v59 = vpop.xlane.xlu1 %2081 }
 0x7b9   : > { %v6340_v20 = vsub.f32 %v6170_v0, %v2102_v48  ;;  %v2103_v27 = vmul.f32 0.0078125, %v2082_v59  ;;  %2156 = vadd.xlane.f32.xlu0 %v2132_v24  ;;  %v2133_v51 = vmul.f32 %v6335_v19, %v6335_v19 }
 0x7bb   : > { %v6345_v46 = vsub.f32 %v6173_v22, %v2103_v27  ;;  %2158 = vadd.xlane.f32.xlu1 %v2133_v51  ;;  %v2134_v30 = vmul.f32 %v6340_v20, %v6340_v20 }
 0x7bd   : > { %2160 = vadd.xlane.f32.xlu0 %v2134_v30  ;;  %v2135_v26 = vmul.f32 %v6345_v46, %v6345_v46 }
 0x7be   : > { %v2084_v38 = vpop.xlane.xlu0 %2083 }
 0x7bf   : > { %v2104_v9 = vmul.f32 0.0078125, %v2084_v38  ;;  %2162 = vadd.xlane.f32.xlu1 %v2135_v26  ;;  %v6382_v38 = vld [vmem:[%s7714_s6] ss:$0 sm:$0xff] }
 0x7c0   : > { %v2086_v0 = vpop.xlane.xlu1 %2085 }
 0x7c1   : > { %v6352_v42 = vsub.f32 %v6181_v13, %v2104_v9  ;;  %v2105_v10 = vmul.f32 0.0078125, %v2086_v0 }
 0x7c2   : > { %v2088_v43 = vpop.xlane.xlu0 %2087 }
 0x7c3   : > { %v6355_v22 = vsub.f32 %v6185_v4, %v2105_v10  ;;  %v2106_v11 = vmul.f32 0.0078125, %v2088_v43  ;;  %v2136_v25 = vmul.f32 %v6352_v42, %v6352_v42 }
 0x7c4   : > { %v2090_v12 = vpop.xlane.xlu1 %2089 }
 0x7c5   : > { %v6360_v63 = vsub.f32 %v6188_v58, %v2106_v11  ;;  %v2107_v54 = vmul.f32 0.0078125, %v2090_v12  ;;  %2164 = vadd.xlane.f32.xlu0 %v2136_v25  ;;  %v2137_v31 = vmul.f32 %v6355_v22, %v6355_v22 }
 0x7c7   : > { %v6365_v13 = vsub.f32 %v6191_v21, %v2107_v54  ;;  %2166 = vadd.xlane.f32.xlu1 %v2137_v31  ;;  %v2138_v4 = vmul.f32 %v6360_v63, %v6360_v63 }
 0x7c9   : > { %2168 = vadd.xlane.f32.xlu0 %v2138_v4  ;;  %v2139_v55 = vmul.f32 %v6365_v13, %v6365_v13 }
 0x7cb   : > { %2170 = vadd.xlane.f32.xlu1 %v2139_v55 }
 0x7fd   : > { %v2141_v28 = vpop.xlane.xlu0 %2140 }
 0x7fe   : > { %v2172_v58 = vmul.f32 0.0078125, %v2141_v28 }
 0x7ff   : > { %v2143_v1 = vpop.xlane.xlu1 %2142 }
 0x800   : > { %v2188_v60 = vadd.f32 1e-12, %v2172_v58  ;;  %v2173_v23 = vmul.f32 0.0078125, %v2143_v1 }
 0x801   : > { %v2145_v32 = vpop.xlane.xlu0 %2144 }
 0x802   : > { %5160 = vrsqrt.f32 %v2188_v60  ;;  %v2189_v39 = vadd.f32 1e-12, %v2173_v23  ;;  %v2174_v41 = vmul.f32 0.0078125, %v2145_v32 }
 0x804   : > { %5162 = vrsqrt.f32 %v2189_v39  ;;  %v2190_v21 = vadd.f32 1e-12, %v2174_v41 }
 0x805   : > { %v2147_v44 = vpop.xlane.xlu1 %2146 }
 0x806   : > { %5164 = vrsqrt.f32 %v2190_v21  ;;  %v2175_v3 = vmul.f32 0.0078125, %v2147_v44 }
 0x808   : > { %v2191_v33 = vadd.f32 1e-12, %v2175_v3 }
 0x809   : > { %v2151_v18 = vpop.xlane.xlu1 %2150  ;;  %v2149_v62 = vpop.xlane.xlu0 %2148 }
 0x80a   : > { %5166 = vrsqrt.f32 %v2191_v33  ;;  %v2177_v17 = vmul.f32 0.0078125, %v2151_v18  ;;  %v2176_v7 = vmul.f32 0.0078125, %v2149_v62 }
 0x80c   : > { %v5161_v16 = vpop.eup %5160  ;;  %v2193_v8 = vadd.f32 1e-12, %v2177_v17  ;;  %v2192_v14 = vadd.f32 1e-12, %v2176_v7 }
 0x80d   : > { %v2220_v57 = vmul.f32 %v5161_v16, %v6220_v40  ;;  %v2155_v45 = vpop.xlane.xlu1 %2154  ;;  %v2153_v61 = vpop.xlane.xlu0 %2152 }
 0x80e   : > { %v5163_v36 = vpop.eup %5162  ;;  %5168 = vrsqrt.f32 %v2193_v8  ;;  %v2179_v48 = vmul.f32 0.0078125, %v2155_v45  ;;  %v2178_v24 = vmul.f32 0.0078125, %v2153_v61 }
 0x80f   : > { %v2242_v59 = vmul.f32 %v6374_v29, %v2220_v57  ;;  %v2221_v27 = vmul.f32 %v5163_v36, %v6223_v53  ;;  %5170 = vrsqrt.f32 %v2192_v14 }
 0x810   : > { %v5165_v51 = vpop.eup %5164  ;;  %v2195_v30 = vadd.f32 1e-12, %v2179_v48  ;;  %v2194_v26 = vadd.f32 1e-12, %v2178_v24 }
 0x811   : > { %v2243_v40 = vmul.f32 %v6374_v29, %v2221_v27  ;;  %v6386_v9 = vadd.f32 %v6382_v38, %v2242_v59  ;;  %v2222_v53 = vmul.f32 %v5165_v51, %v6228_v56 }
 0x812   : > { %5172 = vrsqrt.f32 %v2195_v30 }
 0x813   : > { %7782 = vst [vmem:[#allocation9_spill] sm:$0xff] %v6386_v9  ;;  %v6389_v0 = vadd.f32 %v6382_v38, %v2243_v40  ;;  %5174 = vrsqrt.f32 %v2194_v26  ;;  %v2244_v25 = vmul.f32 %v6374_v29, %v2222_v53 }
 0x814   : > { %v5167_v10 = vpop.eup %5166 }
 0x815   : > { %7783 = vst [vmem:[#allocation10_spill] sm:$0xff] %v6389_v0  ;;  %v2280_v43 = vpack.c.bf16 %v6389_v0, %v6386_v9  ;;  %v2223_v11 = vmul.f32 %v5167_v10, %v6235_v52  ;;  %v6405_v52 = vadd.f32 %v6382_v38, %v2244_v25 }
 0x817   : > { %2535 = vmatmul.mubr.bf16.vlgmr.msra.gmra.mrb[48].mxu1 %v2280_v43  ;;  %2648 = vmatmul.mubr.bf16.vlgmr.msra.gmra.mrb[80].mxu0 %v2280_v43  ;;  %v2245_v12 = vmul.f32 %v6374_v29, %v2223_v11  ;;  %7785 = vst [vmem:[#allocation12_spill] sm:$0xff] %v6405_v52 }
 0x818   : > { %v5169_v54 = vpop.eup %5168  ;;  %2544 = vmatprep.mubr.bf16.mxu1 %v5424_v2  ;;  %2657 = vmatprep.mubr.bf16.mxu0 %v5424_v2 }
 0x819   : > { %v5171_v31 = vpop.eup %5170  ;;  %v6400_v56 = vadd.f32 %v6382_v38, %v2245_v12  ;;  %v2225_v4 = vmul.f32 %v5169_v54, %v6238_v6 }
 0x81a   : > { %v2224_v55 = vmul.f32 %v5171_v31, %v6243_v49 }
 0x81b   : > { %7784 = vst [vmem:[#allocation11_spill] sm:$0xff] %v6400_v56  ;;  %v2281_v58 = vpack.c.bf16 %v6400_v56, %v6405_v52  ;;  %v2247_v60 = vmul.f32 %v6374_v29, %v2225_v4 }
 0x81c   : > { %v5173_v28 = vpop.eup %5172  ;;  %v2246_v1 = vmul.f32 %v6374_v29, %v2224_v55 }
 0x81d   : > { %v5175_v23 = vpop.eup %5174  ;;  %v6417_v49 = vadd.f32 %v6382_v38, %v2247_v60  ;;  %v2227_v39 = vmul.f32 %v5173_v28, %v6246_v5 }
 0x81e   : > { %v6414_v6 = vadd.f32 %v6382_v38, %v2246_v1  ;;  %v2226_v32 = vmul.f32 %v5175_v23, %v6253_v47 }
 0x81f   : > { %2545 = vmatmul.mubr.bf16.gmra.mrb[52].mxu1 %v2281_v58  ;;  %2658 = vmatmul.mubr.bf16.gmra.mrb[84].mxu0 %v2281_v58  ;;  %7787 = vst [vmem:[#allocation14_spill] sm:$0xff] %v6417_v49  ;;  %v2249_v44 = vmul.f32 %v6374_v29, %v2227_v39 }
 0x820   : > { %2554 = vmatprep.mubr.bf16.mxu1 %v5424_v2  ;;  %2667 = vmatprep.mubr.bf16.mxu0 %v5424_v2  ;;  %7786 = vst [vmem:[#allocation13_spill] sm:$0xff] %v6414_v6  ;;  %v2282_v41 = vpack.c.bf16 %v6417_v49, %v6414_v6  ;;  %v2248_v21 = vmul.f32 %v6374_v29, %v2226_v32 }
 0x821   : > { %v6431_v47 = vadd.f32 %v6382_v38, %v2249_v44 }
 0x822   : > { %v6428_v3 = vadd.f32 %v6382_v38, %v2248_v21 }
 0x823   : > { %7789 = vst [vmem:[#allocation16_spill] sm:$0xff] %v6431_v47 }
 0x824   : > { %7788 = vst [vmem:[#allocation15_spill] sm:$0xff] %v6428_v3  ;;  %v2283_v5 = vpack.c.bf16 %v6431_v47, %v6428_v3 }
 0x827   : > { %2555 = vmatmul.mubr.bf16.gmra.mrb[56].mxu1 %v2282_v41  ;;  %2668 = vmatmul.mubr.bf16.gmra.mrb[88].mxu0 %v2282_v41 }
 0x828   : > { %2564 = vmatprep.mubr.bf16.mxu1 %v5424_v2  ;;  %2677 = vmatprep.mubr.bf16.mxu0 %v5424_v2 }
 0x82f   : > { %2565 = vmatmul.mubr.bf16.gmra.mrb[60].mxu1 %v2283_v5  ;;  %2678 = vmatmul.mubr.bf16.gmra.mrb[92].mxu0 %v2283_v5 }
 0x830   : > { %2574 = vmatprep.mubr.bf16.mxu1 %v5424_v2  ;;  %2687 = vmatprep.mubr.bf16.mxu0 %v5424_v2 }
 0x846   : > { %v2157_v33 = vpop.xlane.xlu0 %2156 }
 0x847   : > { %v2180_v18 = vmul.f32 0.0078125, %v2157_v33 }
 0x848   : > { %v2159_v62 = vpop.xlane.xlu1 %2158 }
 0x849   : > { %v2196_v17 = vadd.f32 1e-12, %v2180_v18  ;;  %v2181_v7 = vmul.f32 0.0078125, %v2159_v62 }
 0x84a   : > { %v2161_v16 = vpop.xlane.xlu0 %2160 }
 0x84b   : > { %5176 = vrsqrt.f32 %v2196_v17  ;;  %v2197_v8 = vadd.f32 1e-12, %v2181_v7  ;;  %v2182_v14 = vmul.f32 0.0078125, %v2161_v16 }
 0x84c   : > { %v2163_v57 = vpop.xlane.xlu1 %2162 }
 0x84d   : > { %5178 = vrsqrt.f32 %v2197_v8  ;;  %v2198_v45 = vadd.f32 1e-12, %v2182_v14  ;;  %v2183_v61 = vmul.f32 0.0078125, %v2163_v57  ;;  %v4992_v14 = vld [vmem:[%s7717_s9 + $0x40] sm:$0xff]  }
 0x84e   : > { %v6483_v57 = vld [vmem:[%s7717_s9 + $0xc0] sm:$0xff]   ;;  %4502 = vmatprep.subr.bf16.mxu1 %v4992_v14 }
 0x84f   : > { %5180 = vrsqrt.f32 %v2198_v45  ;;  %v2199_v36 = vadd.f32 1e-12, %v2183_v61  ;;  %4566 = vmatprep.subr.bf16.mxu0 %v6483_v57 }
 0x851   : > { %5182 = vrsqrt.f32 %v2199_v36 }
 0x852   : > { %v2165_v48 = vpop.xlane.xlu0 %2164 }
 0x853   : > { %v2184_v24 = vmul.f32 0.0078125, %v2165_v48  ;;  %v4996_v48 = vld [vmem:[%s7717_s9 + $0x48] sm:$0xff]  }
 0x854   : > { %v2167_v59 = vpop.xlane.xlu1 %2166 }
 0x855   : > { %v5177_v27 = vpop.eup %5176  ;;  %v2200_v51 = vadd.f32 1e-12, %v2184_v24  ;;  %v2185_v30 = vmul.f32 0.0078125, %v2167_v59  ;;  %v6506_v24 = vld [vmem:[%s7717_s9 + $0xc8] sm:$0xff]  }
 0x856   : > { %v2169_v26 = vpop.xlane.xlu0 %2168  ;;  %v2228_v40 = vmul.f32 %v5177_v27, %v6332_v15  ;;  %7797 = vst [vmem:[#allocation24_spill] sm:$0xff] %v6506_v24 }
 0x857   : > { %v5179_v53 = vpop.eup %5178  ;;  %5184 = vrsqrt.f32 %v2200_v51  ;;  %v2201_v10 = vadd.f32 1e-12, %v2185_v30  ;;  %v2186_v43 = vmul.f32 0.0078125, %v2169_v26  ;;  %v5000_v30 = vld [vmem:[%s7717_s9 + $0x50] sm:$0xff]  }
 0x858   : > { %v2171_v11 = vpop.xlane.xlu1 %2170  ;;  %v2229_v25 = vmul.f32 %v5179_v53, %v6335_v19  ;;  %v2250_v12 = vmul.f32 %v6374_v29, %v2228_v40  ;;  %v6533_v26 = vld [vmem:[%s7717_s9 + $0xd0] sm:$0xff]   ;;  %v5004_v53 = vld [vmem:[%s7717_s9 + $0x58] sm:$0xff]  }
 0x859   : > { %v5181_v54 = vpop.eup %5180  ;;  %5186 = vrsqrt.f32 %v2201_v10  ;;  %v2187_v31 = vmul.f32 0.0078125, %v2171_v11  ;;  %v2202_v28 = vadd.f32 1e-12, %v2186_v43  ;;  %7801 = vst [vmem:[#allocation28_spill] sm:$0xff] %v6533_v26  ;;  %v6542_v40 = vld [vmem:[%s7717_s9 + $0x90] sm:$0xff]   ;;  %v6551_v10 = vld [vmem:[%s7717_s9 + $0xd8] sm:$0xff]  }
 0x85a   : > { %v2251_v4 = vmul.f32 %v6374_v29, %v2229_v25  ;;  %v6442_v1 = vadd.f32 %v6382_v38, %v2250_v12  ;;  %v2230_v60 = vmul.f32 %v5181_v54, %v6340_v20  ;;  %7802 = vst [vmem:[#allocation29_spill] sm:$0xff] %v6542_v40  ;;  %7803 = vst [vmem:[#allocation30_spill] sm:$0xff] %v6551_v10  ;;  %v5006_v43 = vld [vmem:[%s7717_s9 + $0x18] sm:$0xff]   ;;  %v5008_v25 = vld [vmem:[%s7717_s9 + $0x60] sm:$0xff]  }
 0x85b   : > { %v5183_v55 = vpop.eup %5182  ;;  %v2203_v58 = vadd.f32 1e-12, %v2187_v31  ;;  %v6559_v11 = vld [vmem:[%s7717_s9 + $0x98] sm:$0xff]   ;;  %v6569_v12 = vld [vmem:[%s7717_s9 + $0xe0] sm:$0xff]  }
 0x85c   : > { %7790 = vst [vmem:[#allocation17_spill] sm:$0xff] %v6442_v1  ;;  %v6445_v15 = vadd.f32 %v6382_v38, %v2251_v4  ;;  %v2231_v19 = vmul.f32 %v5183_v55, %v6345_v46  ;;  %v2252_v39 = vmul.f32 %v6374_v29, %v2230_v60  ;;  %7804 = vst [vmem:[#allocation31_spill] sm:$0xff] %v6559_v11  ;;  %v5010_v54 = vld [vmem:[%s7717_s9 + $0x20] sm:$0xff]   ;;  %v5012_v4 = vld [vmem:[%s7717_s9 + $0x68] sm:$0xff]  }
 0x85d   : > { %5188 = vrsqrt.f32 %v2203_v58  ;;  %7805 = vst [vmem:[#allocation32_spill] sm:$0xff] %v6569_v12  ;;  %v6577_v31 = vld [vmem:[%s7717_s9 + $0xa0] sm:$0xff]   ;;  %v6587_v55 = vld [vmem:[%s7717_s9 + $0xe8] sm:$0xff]   ;;  %v5016_v60 = vld [vmem:[%s7717_s9 + $0x70] sm:$0xff]  }
 0x85e   : > { %7791 = vst [vmem:[#allocation18_spill] sm:$0xff] %v6445_v15  ;;  %v2284_v23 = vpack.c.bf16 %v6445_v15, %v6442_v1  ;;  %v2253_v32 = vmul.f32 %v6374_v29, %v2231_v19  ;;  %5190 = vrsqrt.f32 %v2202_v28  ;;  %v6459_v21 = vadd.f32 %v6382_v38, %v2252_v39  ;;  %7806 = vst [vmem:[#allocation33_spill] sm:$0xff] %v6577_v31  ;;  %v5014_v28 = vld [vmem:[%s7717_s9 + $0x28] sm:$0xff]   ;;  %v6605_v19 = vld [vmem:[%s7717_s9 + $0xf0] sm:$0xff]  }
 0x85f   : > { %7807 = vst [vmem:[#allocation34_spill] sm:$0xff] %v6587_v55  ;;  %v6595_v58 = vld [vmem:[%s7717_s9 + $0xa8] sm:$0xff]   ;;  %7809 = vst [vmem:[#allocation36_spill] sm:$0xff] %v6605_v19  ;;  %v5020_v39 = vld [vmem:[%s7717_s9 + $0x78] sm:$0xff]  }
 0x860   : > { %2575 = vmatmul.mubr.bf16.gmra.mrb[64].mxu1 %v2284_v23  ;;  %2688 = vmatmul.mubr.bf16.gmra.mrb[96].mxu0 %v2284_v23  ;;  %v6456_v20 = vadd.f32 %v6382_v38, %v2253_v32  ;;  %7793 = vst [vmem:[#allocation20_spill] sm:$0xff] %v6459_v21  ;;  %7808 = vst [vmem:[#allocation35_spill] sm:$0xff] %v6595_v58  ;;  %v5018_v23 = vld [vmem:[%s7717_s9 + $0x30] sm:$0xff]  }
 0x861   : > { %v5185_v41 = vpop.eup %5184  ;;  %2584 = vmatprep.mubr.bf16.mxu1 %v5424_v2  ;;  %2697 = vmatprep.mubr.bf16.mxu0 %v5424_v2  ;;  %v6613_v32 = vld [vmem:[%s7717_s9 + $0xb0] sm:$0xff]  }
 0x862   : > { %7792 = vst [vmem:[#allocation19_spill] sm:$0xff] %v6456_v20  ;;  %v2232_v44 = vmul.f32 %v5185_v41, %v6352_v42  ;;  %v2285_v33 = vpack.c.bf16 %v6456_v20, %v6459_v21  ;;  %7810 = vst [vmem:[#allocation37_spill] sm:$0xff] %v6613_v32  ;;  %v6623_v41 = vld [vmem:[%s7717_s9 + $0xf8] sm:$0xff]  }
 0x863   : > { %v5187_v46 = vpop.eup %5186  ;;  %7811 = vst [vmem:[#allocation38_spill] sm:$0xff] %v6623_v41 }
 0x864   : > { %v2233_v5 = vmul.f32 %v5187_v46, %v6355_v22  ;;  %v2254_v17 = vmul.f32 %v6374_v29, %v2232_v44  ;;  %v5022_v46 = vld [vmem:[%s7717_s9 + $0x38] sm:$0xff]  }
 0x865   : > { %v6631_v44 = vld [vmem:[%s7717_s9 + $0xb8] sm:$0xff]  }
 0x866   : > { %v2255_v18 = vmul.f32 %v6374_v29, %v2233_v5  ;;  %v6474_v22 = vadd.f32 %v6382_v38, %v2254_v17  ;;  %7812 = vst [vmem:[#allocation39_spill] sm:$0xff] %v6631_v44  ;;  %v2320_v5 = vld [vmem:[%s7716_s8] sm:$0xf] }
 0x867   : > { %v5189_v62 = vpop.eup %5188  ;;  %v6650_v17 = vrot.slane %v2320_v5, %v512_v37 }
 0x868   : > { %2585 = vmatmul.mubr.bf16.gmra.mrb[68].mxu1 %v2285_v33  ;;  %2698 = vmatmul.mubr.bf16.gmra.mrb[100].mxu0 %v2285_v33  ;;  %v5191_v7 = vpop.eup %5190  ;;  %v6470_v16 = vadd.f32 %v6382_v38, %v2255_v18  ;;  %v2235_v42 = vmul.f32 %v5189_v62, %v6365_v13  ;;  %7795 = vst [vmem:[#allocation22_spill] sm:$0xff] %v6474_v22  ;;  %v6495_v13 = vld [vmem:[%s7717_s9 + $0x80] sm:$0xff]   ;;  %v2336_v33 = vsub.s32 3, %v5641_v34 }
 0x869   : > { %2594 = vmatprep.mubr.bf16.mxu1 %v5424_v2  ;;  %2707 = vmatprep.mubr.bf16.mxu0 %v5424_v2  ;;  %v2234_v8 = vmul.f32 %v5191_v7, %v6360_v63  ;;  %v4994_v63 = vld [vmem:[%s7717_s9] sm:$0xff]   ;;  %7796 = vst [vmem:[#allocation23_spill] sm:$0xff] %v6495_v13  ;;  %v6642_v18 = vrot.slane %v2320_v5, %v508_v35  ;;  %7815 = vst [vmem:[#allocation42_spill] sm:$0xff] %v6650_v17 }
 0x86a   : > { %7794 = vst [vmem:[#allocation21_spill] sm:$0xff] %v6470_v16  ;;  %v2286_v45 = vpack.c.bf16 %v6470_v16, %v6474_v22  ;;  %v2257_v61 = vmul.f32 %v6374_v29, %v2235_v42  ;;  %4503 = vmatpush3.bf16.msra.mxu1 %v4994_v63  ;;  %4567 = vmatpush3.bf16.msra.mxu0 %v6495_v13 }
 0x86b   : > { %v2256_v36 = vmul.f32 %v6374_v29, %v2234_v8  ;;  %v4998_v29 = vld [vmem:[%s7717_s9 + $0x8] sm:$0xff]   ;;  %4504 = vmatprep.subr.bf16.mxu1 %v4996_v48  ;;  %4568 = vmatprep.subr.bf16.mxu0 %v6506_v24  ;;  %7813 = vst [vmem:[#allocation40_spill] sm:$0xff] %v6642_v18  ;;  %v6646_v62 = vrot.slane %v2320_v5, %v516_v50 }
 0x86c   : > { %v6509_v59 = vadd.f32 %v6382_v38, %v2257_v61  ;;  %v6652_v7 = vrot.slane %v2320_v5, %v2336_v33 }
 0x86d   : > { %v6522_v27 = vadd.f32 %v6382_v38, %v2256_v36  ;;  %v5002_v38 = vld [vmem:[%s7717_s9 + $0x10] sm:$0xff]   ;;  %7814 = vst [vmem:[#allocation41_spill] sm:$0xff] %v6646_v62 }
 0x86e   : > { %7798 = vst [vmem:[#allocation25_spill] sm:$0xff] %v6509_v59  ;;  %4505 = vmatpush3.bf16.msra.mxu1 %v4998_v29  ;;  %7816 = vst [vmem:[#allocation43_spill] sm:$0xff] %v6652_v7 }
 0x86f   : > { %7800 = vst [vmem:[#allocation27_spill] sm:$0xff] %v6522_v27  ;;  %v2287_v51 = vpack.c.bf16 %v6509_v59, %v6522_v27  ;;  %4506 = vmatprep.subr.bf16.mxu1 %v5000_v30 }
 0x870   : > { %2595 = vmatmul.mubr.bf16.gmra.mrb[72].mxu1 %v2286_v45  ;;  %2708 = vmatmul.mubr.bf16.gmra.mrb[104].mxu0 %v2286_v45 }
 0x871   : > { %2604 = vmatprep.mubr.bf16.mxu1 %v5424_v2  ;;  %2717 = vmatprep.mubr.bf16.mxu0 %v5424_v2  ;;  %v6518_v2 = vld [vmem:[%s7717_s9 + $0x88] sm:$0xff]  }
 0x872   : > { %7799 = vst [vmem:[#allocation26_spill] sm:$0xff] %v6518_v2  ;;  %4569 = vmatpush3.bf16.msra.mxu0 %v6518_v2  ;;  %4507 = vmatpush3.bf16.msra.mxu1 %v5002_v38 }
 0x873   : > { %4570 = vmatprep.subr.bf16.mxu0 %v6533_v26  ;;  %4508 = vmatprep.subr.bf16.mxu1 %v5004_v53 }
 0x876   : > { %4571 = vmatpush3.bf16.msra.mxu0 %v6542_v40  ;;  %4509 = vmatpush3.bf16.msra.mxu1 %v5006_v43 }
 0x877   : > { %4572 = vmatprep.subr.bf16.mxu0 %v6551_v10  ;;  %4510 = vmatprep.subr.bf16.mxu1 %v5008_v25 }
 0x878   : > { %2605 = vmatmul.mubr.bf16.gmra.mrb[76].mxu1 %v2287_v51  ;;  %2718 = vmatmul.mubr.bf16.gmra.mrb[108].mxu0 %v2287_v51 }
 0x87a   : > { %4573 = vmatpush3.bf16.msra.mxu0 %v6559_v11  ;;  %4511 = vmatpush3.bf16.msra.mxu1 %v5010_v54 }
 0x87b   : > { %4574 = vmatprep.subr.bf16.mxu0 %v6569_v12  ;;  %4512 = vmatprep.subr.bf16.mxu1 %v5012_v4 }
 0x87e   : > { %4575 = vmatpush3.bf16.msra.mxu0 %v6577_v31  ;;  %4513 = vmatpush3.bf16.msra.mxu1 %v5014_v28 }
 0x87f   : > { %4576 = vmatprep.subr.bf16.mxu0 %v6587_v55  ;;  %4514 = vmatprep.subr.bf16.mxu1 %v5016_v60 }
 0x882   : > { %4577 = vmatpush3.bf16.msra.mxu0 %v6595_v58  ;;  %4515 = vmatpush3.bf16.msra.mxu1 %v5018_v23 }
 0x883   : > { %4578 = vmatprep.subr.bf16.mxu0 %v6605_v19  ;;  %4516 = vmatprep.subr.bf16.mxu1 %v5020_v39 }
 0x886   : > { %4579 = vmatpush3.bf16.msra.mxu0 %v6613_v32  ;;  %4517 = vmatpush3.bf16.msra.mxu1 %v5022_v46 }
 0x887   : > { %4580 = vmatprep.subr.bf16.mxu0 %v6623_v41  ;;  %4822 = vmatprep.subr.bf16.mxu1 %v6483_v57 }
 0x88a   : > { %4581 = vmatpush3.bf16.msra.mxu0 %v6631_v44 }
 0x8ea   : > { %v2536_v42 = vpop.f32.mrb[48].mxu1  ;;  %v2649_v8 = vpop.f32.mrb[80].mxu0 }
 0x8eb   : > { %v2537_v14 = vadd.f32 %v2536_v42, %v6642_v18  ;;  %v2650_v57 = vadd.f32 %v2649_v8, %v6646_v62  ;;  %v2538_v45 = vpop.f32.mrb[49].mxu1  ;;  %v2651_v61 = vpop.f32.mrb[81].mxu0 }
 0x8ec   : > { %v6657_v35 = vadd.f32 %v2538_v45, %v6650_v17  ;;  %v6660_v50 = vadd.f32 %v2651_v61, %v6652_v7  ;;  %v2540_v63 = vpop.f32.mrb[50].mxu1  ;;  %v2653_v34 = vpop.f32.mrb[82].mxu0 }
 0x8ed   : > { %v2792_v37 = vmul.f32 0.044715, %v2537_v14  ;;  %v2794_v36 = vmul.f32 0.044715, %v2650_v57  ;;  %v2541_v29 = vadd.f32 %v2540_v63, %v6642_v18  ;;  %v2654_v51 = vadd.f32 %v2653_v34, %v6646_v62  ;;  %v2542_v30 = vpop.f32.mrb[51].mxu1  ;;  %v2655_v38 = vpop.f32.mrb[83].mxu0 }
 0x8ee   : > { %v2793_v48 = vmul.f32 0.044715, %v6657_v35  ;;  %v2795_v25 = vmul.f32 0.044715, %v6660_v50  ;;  %v6667_v54 = vadd.f32 %v2542_v30, %v6650_v17  ;;  %v6670_v39 = vadd.f32 %v2655_v38, %v6652_v7 }
 0x8ef   : > { %v2856_v53 = vmul.f32 %v2792_v37, %v2537_v14  ;;  %v2858_v43 = vmul.f32 %v2794_v36, %v2650_v57  ;;  %v2796_v4 = vmul.f32 0.044715, %v2541_v29  ;;  %v2798_v23 = vmul.f32 0.044715, %v2654_v51 }
 0x8f0   : > { %v2857_v46 = vmul.f32 %v2793_v48, %v6657_v35  ;;  %v2859_v45 = vmul.f32 %v2795_v25, %v6660_v50  ;;  %v2797_v63 = vmul.f32 0.044715, %v6667_v54 }
 0x8f1   : > { %v2920_v28 = vmul.f32 %v2856_v53, %v2537_v14  ;;  %v2922_v60 = vmul.f32 %v2858_v43, %v2650_v57  ;;  %v2860_v5 = vmul.f32 %v2796_v4, %v2541_v29  ;;  %v2862_v61 = vmul.f32 %v2798_v23, %v2654_v51 }
 0x8f2   : > { %v2546_v33 = vpop.f32.mrb[52].mxu1  ;;  %v2659_v42 = vpop.f32.mrb[84].mxu0  ;;  %v6681_v4 = vmul.f32 0.5, %v2537_v14  ;;  %v2799_v23 = vmul.f32 0.044715, %v6670_v39  ;;  %v6699_v21 = vmul.f32 %v2859_v45, %v6660_v50 }
 0x8f3   : > { %v2984_v8 = vadd.f32 %v2920_v28, %v2537_v14  ;;  %v2548_v34 = vpop.f32.mrb[53].mxu1  ;;  %v2661_v37 = vpop.f32.mrb[85].mxu0  ;;  %v2986_v36 = vadd.f32 %v2922_v60, %v2650_v57  ;;  %v2924_v30 = vmul.f32 %v2860_v5, %v2541_v29  ;;  %v6676_v53 = vadd.f32 %v2546_v33, %v6642_v18 }
 0x8f4   : > { %v6679_v38 = vadd.f32 %v2659_v42, %v6646_v62  ;;  %v2550_v48 = vpop.f32.mrb[54].mxu1  ;;  %v2663_v43 = vpop.f32.mrb[86].mxu0  ;;  %v6683_v28 = vmul.f32 0.5, %v2650_v57  ;;  %v2926_v25 = vmul.f32 %v2862_v61, %v2654_v51  ;;  %v6686_v60 = vmul.f32 0.5, %v2541_v29 }
 0x8f5   : > { %v2552_v59 = vpop.f32.mrb[55].mxu1  ;;  %v2665_v27 = vpop.f32.mrb[87].mxu0  ;;  %v3048_v16 = vmul.f32 0.7978846, %v2984_v8  ;;  %v2988_v5 = vadd.f32 %v2924_v30, %v2541_v29  ;;  %v6688_v33 = vmul.f32 0.5, %v2654_v51  ;;  %v6693_v14 = vadd.f32 %v2548_v34, %v6650_v17 }
 0x8f6   : > { %7817 = vst [vmem:[#allocation44_spill] sm:$0xff] %v6679_v38  ;;  %v2990_v22 = vadd.f32 %v2926_v25, %v2654_v51  ;;  %v2800_v42 = vmul.f32 0.044715, %v6676_v53  ;;  %v2802_v20 = vmul.f32 0.044715, %v6679_v38  ;;  %v6696_v61 = vmul.f32 %v2857_v46, %v6657_v35 }
 0x8f7   : > { %v3050_v57 = vmul.f32 0.7978846, %v2986_v36  ;;  %v2861_v8 = vmul.f32 %v2797_v63, %v6667_v54  ;;  %v2863_v29 = vmul.f32 %v2799_v23, %v6670_v39  ;;  %v2801_v51 = vmul.f32 0.044715, %v6693_v14 }
 0x8f8   : > { %v6705_v30 = vadd.f32 %v2661_v37, %v6652_v7  ;;  %v6708_v25 = vadd.f32 %v2550_v48, %v6642_v18  ;;  %5192 = vtanh.f32 %v3048_v16  ;;  %v3052_v34 = vmul.f32 0.7978846, %v2988_v5 }
 0x8f9   : > { %v3054_v36 = vmul.f32 0.7978846, %v2990_v22  ;;  %v6711_v46 = vadd.f32 %v2663_v43, %v6646_v62  ;;  %v2864_v63 = vmul.f32 %v2800_v42, %v6676_v53  ;;  %v2866_v23 = vmul.f32 %v2802_v20, %v6679_v38 }
 0x8fa   : > { %7818 = vst [vmem:[#allocation45_spill] sm:$0xff] %v6708_v25  ;;  %v2556_v45 = vpop.f32.mrb[56].mxu1  ;;  %v2669_v15 = vpop.f32.mrb[88].mxu0  ;;  %v2803_v1 = vmul.f32 0.044715, %v6705_v30  ;;  %v2865_v48 = vmul.f32 %v2801_v51, %v6693_v14  ;;  %v6720_v22 = vadd.f32 %v2552_v59, %v6650_v17  ;;  %v6723_v43 = vadd.f32 %v2665_v27, %v6652_v7 }
 0x8fb   : > { %7819 = vst [vmem:[#allocation46_spill] sm:$0xff] %v6711_v46  ;;  %v2804_v37 = vmul.f32 0.044715, %v6708_v25  ;;  %v2558_v47 = vpop.f32.mrb[57].mxu1  ;;  %v2671_v3 = vpop.f32.mrb[89].mxu0  ;;  %5194 = vtanh.f32 %v3050_v57  ;;  %v6726_v20 = vmul.f32 %v2861_v8, %v6667_v54  ;;  %v6729_v49 = vadd.f32 %v2556_v45, %v6642_v18 }
 0x8fc   : > { %v2806_v16 = vmul.f32 0.044715, %v6711_v46  ;;  %v2560_v5 = vpop.f32.mrb[58].mxu1  ;;  %v2673_v42 = vpop.f32.mrb[90].mxu0  ;;  %v6732_v6 = vadd.f32 %v2669_v15, %v6646_v62  ;;  %5196 = vtanh.f32 %v3052_v34  ;;  %v6735_v59 = vmul.f32 %v2863_v29, %v6670_v39 }
 0x8fd   : > { %v2562_v51 = vpop.f32.mrb[59].mxu1  ;;  %v2675_v56 = vpop.f32.mrb[91].mxu0  ;;  %v2867_v27 = vmul.f32 %v2803_v1, %v6705_v30  ;;  %v2805_v52 = vmul.f32 0.044715, %v6720_v22  ;;  %v6740_v57 = vmul.f32 %v2864_v63, %v6676_v53  ;;  %v2868_v8 = vmul.f32 %v2804_v37, %v6708_v25 }
 0x8fe   : > { %v2807_v45 = vmul.f32 0.044715, %v6723_v43  ;;  %v6745_v15 = vadd.f32 %v2558_v47, %v6650_v17  ;;  %5198 = vtanh.f32 %v3054_v36  ;;  %v6748_v34 = vmul.f32 %v2866_v23, %v6679_v38 }
 0x8ff   : > { %7820 = vst [vmem:[#allocation47_spill] sm:$0xff] %v6740_v57  ;;  %v6751_v29 = vmul.f32 %v2865_v48, %v6693_v14  ;;  %v2870_v1 = vmul.f32 %v2806_v16, %v6711_v46  ;;  %v2808_v0 = vmul.f32 0.044715, %v6729_v49  ;;  %v2810_v63 = vmul.f32 0.044715, %v6732_v6 }
 0x900   : > { %7821 = vst [vmem:[#allocation48_spill] sm:$0xff] %v6748_v34  ;;  %v6757_v37 = vadd.f32 %v2671_v3, %v6652_v7  ;;  %v6760_v9 = vadd.f32 %v2560_v5, %v6642_v18  ;;  %v6763_v47 = vmul.f32 %v2867_v27, %v6705_v30  ;;  %v2869_v36 = vmul.f32 %v2805_v52, %v6720_v22 }
 0x901   : > { %v2809_v23 = vmul.f32 0.044715, %v6745_v15  ;;  %v6768_v48 = vadd.f32 %v2673_v42, %v6646_v62  ;;  %v6771_v41 = vmul.f32 %v2868_v8, %v6708_v25  ;;  %v2871_v3 = vmul.f32 %v2807_v45, %v6723_v43 }
 0x902   : > { %v2566_v16 = vpop.f32.mrb[60].mxu1  ;;  %v2679_v44 = vpop.f32.mrb[92].mxu0  ;;  %v2811_v5 = vmul.f32 0.044715, %v6757_v37  ;;  %v2812_v32 = vmul.f32 0.044715, %v6760_v9  ;;  %v6780_v42 = vadd.f32 %v2562_v51, %v6650_v17  ;;  %v6783_v55 = vadd.f32 %v2675_v56, %v6652_v7 }
 0x903   : > { %7822 = vst [vmem:[#allocation49_spill] sm:$0xff] %v6771_v41  ;;  %v2568_v27 = vpop.f32.mrb[61].mxu1  ;;  %v2681_v19 = vpop.f32.mrb[93].mxu0  ;;  %v2814_v52 = vmul.f32 0.044715, %v6768_v48  ;;  %v6786_v8 = vadd.f32 %v2566_v16, %v6642_v18  ;;  %v6789_v12 = vmul.f32 %v2870_v1, %v6711_v46  ;;  %v2872_v11 = vmul.f32 %v2808_v0, %v6729_v49 }
 0x904   : > { %v6776_v58 = vpop.eup %5192  ;;  %v2570_v45 = vpop.f32.mrb[62].mxu1  ;;  %v2874_v10 = vmul.f32 %v2810_v63, %v6732_v6  ;;  %v6794_v40 = vadd.f32 %v2679_v44, %v6646_v62  ;;  %v6797_v56 = vmul.f32 %v2869_v36, %v6720_v22  ;;  %v2813_v16 = vmul.f32 0.044715, %v6780_v42 }
 0x905   : > { %v2683_v31 = vpop.f32.mrb[94].mxu0  ;;  %7823 = vst [vmem:[#allocation50_spill] sm:$0xff] %v6789_v12  ;;  %v2572_v51 = vpop.f32.mrb[63].mxu1  ;;  %v2815_v2 = vmul.f32 0.044715, %v6783_v55  ;;  %v6803_v13 = vmul.f32 %v2871_v3, %v6723_v43  ;;  %v2873_v0 = vmul.f32 %v2809_v23, %v6745_v15  ;;  %v6808_v63 = vadd.f32 %v2568_v27, %v6650_v17 }
 0x906   : > { %7824 = vst [vmem:[#allocation51_spill] sm:$0xff] %v6794_v40  ;;  %v2685_v26 = vpop.f32.mrb[95].mxu0  ;;  %v2816_v24 = vmul.f32 0.044715, %v6786_v8  ;;  %v5195_v1 = vpop.eup %5194  ;;  %v2818_v44 = vmul.f32 0.044715, %v6794_v40  ;;  %v2875_v36 = vmul.f32 %v2811_v5, %v6757_v37  ;;  %v2876_v46 = vmul.f32 %v2812_v32, %v6760_v9 }
 0x907   : > { %v5197_v12 = vpop.eup %5196  ;;  %v2878_v34 = vmul.f32 %v2814_v52, %v6768_v48  ;;  %v2877_v38 = vmul.f32 %v2813_v16, %v6780_v42  ;;  %v2879_v41 = vmul.f32 %v2815_v2, %v6783_v55  ;;  %v2817_v3 = vmul.f32 0.044715, %v6808_v63 }
 0x908   : > { %v6817_v23 = vadd.f32 %v2681_v19, %v6652_v7  ;;  %v6820_v25 = vadd.f32 %v2570_v45, %v6642_v18  ;;  %v5199_v27 = vpop.eup %5198  ;;  %v6823_v57 = vmul.f32 %v2872_v11, %v6729_v49  ;;  %v6826_v32 = vmul.f32 %v2874_v10, %v6732_v6 }
 0x909   : > { %v2880_v5 = vmul.f32 %v2816_v24, %v6786_v8  ;;  %v6830_v52 = vadd.f32 %v2683_v31, %v6646_v62  ;;  %v6833_v2 = vmul.f32 %v2873_v0, %v6745_v15  ;;  %v2882_v19 = vmul.f32 %v2818_v44, %v6794_v40 }
 0x90a   : > { %v2881_v45 = vmul.f32 %v2817_v3, %v6808_v63  ;;  %v2819_v16 = vmul.f32 0.044715, %v6817_v23  ;;  %v6839_v11 = vmul.f32 %v2875_v36, %v6757_v37  ;;  %v6842_v10 = vmul.f32 %v2876_v46, %v6760_v9 }
 0x90b   : > { %v2820_v24 = vmul.f32 0.044715, %v6820_v25  ;;  %v2822_v31 = vmul.f32 0.044715, %v6830_v52  ;;  %v6847_v62 = vmul.f32 %v2878_v34, %v6768_v48  ;;  %v6850_v0 = vmul.f32 %v2877_v38, %v6780_v42 }
 0x90c   : > { %v6853_v44 = vmul.f32 %v2879_v41, %v6783_v55  ;;  %v6856_v3 = vadd.f32 %v2572_v51, %v6650_v17  ;;  %v6859_v36 = vmul.f32 %v2880_v5, %v6786_v8  ;;  %v2883_v46 = vmul.f32 %v2819_v16, %v6817_v23 }
 0x90d   : > { %v6863_v18 = vadd.f32 %v2685_v26, %v6652_v7  ;;  %v2985_v34 = vadd.f32 %v6696_v61, %v6657_v35  ;;  %v6868_v38 = vmul.f32 %v2882_v19, %v6794_v40  ;;  %v6871_v41 = vmul.f32 %v2881_v45, %v6808_v63 }
 0x90e   : > { %v6874_v51 = vmul.f32 0.5, %v6657_v35  ;;  %v2989_v5 = vadd.f32 %v6726_v20, %v6667_v54  ;;  %v2884_v16 = vmul.f32 %v2820_v24, %v6820_v25  ;;  %v2886_v26 = vmul.f32 %v2822_v31, %v6830_v52 }
 0x90f   : > { %7825 = vst [vmem:[#allocation52_spill] sm:$0xff] %v6868_v38  ;;  %v6881_v7 = vmul.f32 0.5, %v6667_v54  ;;  %v3049_v61 = vmul.f32 0.7978846, %v2985_v34  ;;  %v2821_v19 = vmul.f32 0.044715, %v6856_v3  ;;  %v2987_v45 = vadd.f32 %v6699_v21, %v6660_v50 }
 0x910   : > { %v3053_v17 = vmul.f32 0.7978846, %v2989_v5  ;;  %v2991_v35 = vadd.f32 %v6735_v59, %v6670_v39  ;;  %v6889_v38 = vmul.f32 %v2883_v46, %v6817_v23  ;;  %v2823_v20 = vmul.f32 0.044715, %v6863_v18 }
 0x911   : > { %5200 = vtanh.f32 %v3049_v61  ;;  %v3176_v24 = vadd.f32 1.0, %v6776_v58  ;;  %v3051_v54 = vmul.f32 0.7978846, %v2987_v45  ;;  %v3180_v34 = vadd.f32 1.0, %v5197_v12 }
 0x912   : > { %5202 = vtanh.f32 %v3053_v17  ;;  %v3055_v31 = vmul.f32 0.7978846, %v2991_v35  ;;  %v6894_v5 = vmul.f32 %v2884_v16, %v6820_v25  ;;  %v6897_v21 = vmul.f32 0.5, %v6660_v50 }
 0x913   : > { %v3178_v40 = vadd.f32 1.0, %v5195_v1  ;;  %v3182_v59 = vadd.f32 1.0, %v5199_v27  ;;  %5204 = vtanh.f32 %v3051_v54  ;;  %v6900_v46 = vmul.f32 %v3176_v24, %v6681_v4  ;;  %v7827_v24 = vld [vmem:[#allocation45_spill] sm:$0xff] }
 0x914   : > { %v6903_v61 = vmul.f32 %v3180_v34, %v6686_v60  ;;  %v2993_v58 = vadd.f32 %v6751_v29, %v6693_v14  ;;  %5206 = vtanh.f32 %v3055_v31  ;;  %v2997_v50 = vadd.f32 %v6797_v56, %v6720_v22  ;;  %v7828_v54 = vld [vmem:[#allocation49_spill] sm:$0xff]  ;;  %v7829_v34 = vld [vmem:[#allocation44_spill] sm:$0xff] }
 0x915   : > { %v6908_v12 = vmul.f32 %v3178_v40, %v6683_v28  ;;  %v6911_v17 = vmul.f32 %v3182_v59, %v6688_v33  ;;  %v2885_v1 = vmul.f32 %v2821_v19, %v6856_v3  ;;  %v2887_v4 = vmul.f32 %v2823_v20, %v6863_v18  ;;  %v7826_v19 = vld [vmem:[#allocation47_spill] sm:$0xff]  ;;  %v7830_v59 = vld [vmem:[#allocation48_spill] sm:$0xff] }
 0x916   : > { %v3304_v60 = vpack.c.bf16 %v6903_v61, %v6900_v46  ;;  %v3057_v27 = vmul.f32 0.7978846, %v2993_v58  ;;  %v3061_v16 = vmul.f32 0.7978846, %v2997_v50  ;;  %v2995_v40 = vadd.f32 %v6763_v47, %v6705_v30  ;;  %v7831_v50 = vld [vmem:[#allocation46_spill] sm:$0xff] }
 0x917   : > { %v3306_v29 = vpack.c.bf16 %v6911_v17, %v6908_v12  ;;  %v2999_v28 = vadd.f32 %v6803_v13, %v6723_v43  ;;  %v6926_v33 = vmul.f32 %v2886_v26, %v6830_v52  ;;  %v2735_v56 = vmul.f32 0.5, %v6670_v39  ;;  %v7835_v17 = vld [vmem:[#allocation26_spill] sm:$0xff] }
 0x918   : > { %5208 = vtanh.f32 %v3057_v27  ;;  %v2992_v45 = vadd.f32 %v7826_v19, %v6676_v53  ;;  %v3059_v35 = vmul.f32 0.7978846, %v2995_v40  ;;  %v2996_v31 = vadd.f32 %v7828_v54, %v7827_v24  ;;  %v7832_v27 = vld [vmem:[#allocation50_spill] sm:$0xff] }
 0x919   : > { %5210 = vtanh.f32 %v3061_v16  ;;  %v3063_v20 = vmul.f32 0.7978846, %v2999_v28  ;;  %v6934_v47 = vmul.f32 %v2885_v1, %v6856_v3  ;;  %v6937_v13 = vmul.f32 %v2887_v4, %v6863_v18 }
 0x91a   : > { %v3056_v26 = vmul.f32 0.7978846, %v2992_v45  ;;  %v2994_v39 = vadd.f32 %v7830_v59, %v7829_v34  ;;  %v2737_v61 = vmul.f32 0.5, %v6693_v14  ;;  %5212 = vtanh.f32 %v3059_v35 }
 0x91b   : > { %v5201_v46 = vpop.eup %5200  ;;  %v3060_v58 = vmul.f32 0.7978846, %v2996_v31  ;;  %v2998_v16 = vadd.f32 %v7832_v27, %v7831_v50  ;;  %v2741_v1 = vmul.f32 0.5, %v6720_v22  ;;  %5214 = vtanh.f32 %v3063_v20 }
 0x91c   : > { %v5203_v40 = vpop.eup %5202  ;;  %v3177_v28 = vadd.f32 1.0, %v5201_v46  ;;  %v3058_v19 = vmul.f32 0.7978846, %v2994_v39  ;;  %5216 = vtanh.f32 %v3056_v26  ;;  %v3001_v54 = vadd.f32 %v6833_v2, %v6745_v15 }
 0x91d   : > { %v3181_v4 = vadd.f32 1.0, %v5203_v40  ;;  %v3062_v45 = vmul.f32 0.7978846, %v2998_v16  ;;  %v5205_v59 = vpop.eup %5204  ;;  %v2739_v35 = vmul.f32 0.5, %v6705_v30  ;;  %5218 = vtanh.f32 %v3060_v58 }
 0x91e   : > { %v3241_v14 = vmul.f32 %v3177_v28, %v6874_v51  ;;  %v3005_v31 = vadd.f32 %v6850_v0, %v6780_v42  ;;  %v5207_v46 = vpop.eup %5206  ;;  %v3179_v20 = vadd.f32 1.0, %v5205_v59  ;;  %5220 = vtanh.f32 %v3058_v19 }
 0x91f   : > { %v3245_v22 = vmul.f32 %v3181_v4, %v6881_v7  ;;  %v3065_v39 = vmul.f32 0.7978846, %v3001_v54  ;;  %v3183_v26 = vadd.f32 1.0, %v5207_v46  ;;  %v2743_v27 = vmul.f32 0.5, %v6723_v43 }
 0x920   : > { %5222 = vtanh.f32 %v3062_v45  ;;  %v3069_v2 = vmul.f32 0.7978846, %v3005_v31  ;;  %v2736_v51 = vmul.f32 0.5, %v6676_v53  ;;  %v3003_v30 = vadd.f32 %v6839_v11, %v6757_v37  ;;  %v7833_v31 = vld [vmem:[#allocation23_spill] sm:$0xff] }
 0x921   : > { %v3305_v16 = vpack.c.bf16 %v3245_v22, %v3241_v14  ;;  %5224 = vtanh.f32 %v3065_v39  ;;  %v3243_v0 = vmul.f32 %v3179_v20, %v6897_v21  ;;  %v3247_v40 = vmul.f32 %v3183_v26, %v2735_v56 }
 0x922   : > { %v5209_v58 = vpop.eup %5208  ;;  %5226 = vtanh.f32 %v3069_v2  ;;  %v3007_v7 = vadd.f32 %v6853_v44, %v6783_v55  ;;  %v2740_v19 = vmul.f32 0.5, %v7827_v24  ;;  %v3067_v4 = vmul.f32 0.7978846, %v3003_v30 }
 0x923   : > { %v5211_v28 = vpop.eup %5210  ;;  %3631 = vmatprep.mubr.bf16.mxu1 %v3305_v16  ;;  %v3185_v43 = vadd.f32 1.0, %v5209_v58  ;;  %v3000_v53 = vadd.f32 %v6823_v57, %v6729_v49  ;;  %v3307_v45 = vpack.c.bf16 %v3247_v40, %v3243_v0  ;;  %v3004_v21 = vadd.f32 %v6842_v10, %v6760_v9 }
 0x924   : > { %3632 = vmatmul.mubr.bf16.vlgmr.msra.gmra.mrb[80].mxu1 %v3304_v60  ;;  %v3189_v11 = vadd.f32 1.0, %v5211_v28  ;;  %v3071_v54 = vmul.f32 0.7978846, %v3007_v7  ;;  %v5213_v56 = vpop.eup %5212  ;;  %v2738_v44 = vmul.f32 0.5, %v7829_v34  ;;  %5228 = vtanh.f32 %v3067_v4  ;;  %v7834_v60 = vld [vmem:[#allocation24_spill] sm:$0xff] }
 0x925   : > { %v3249_v59 = vmul.f32 %v3185_v43, %v2737_v61  ;;  %v3064_v14 = vmul.f32 0.7978846, %v3000_v53  ;;  %4830 = vmatpush3.bf16.msra.mxu1 %v7833_v31  ;;  %v5215_v24 = vpop.eup %5214  ;;  %3728 = vmatprep.mubr.bf16.mxu0 %v3307_v45  ;;  %v3187_v22 = vadd.f32 1.0, %v5213_v56  ;;  %v3068_v57 = vmul.f32 0.7978846, %v3004_v21 }
 0x926   : > { %v3253_v46 = vmul.f32 %v3189_v11, %v2741_v1  ;;  %5230 = vtanh.f32 %v3071_v54  ;;  %4823 = vmatprep.subr.bf16.mxu1 %v7834_v60  ;;  %v5217_v20 = vpop.eup %5216  ;;  %3729 = vmatmul.mubr.bf16.vlgmr.msra.gmra.mrb[112].mxu0 %v3306_v29  ;;  %v3191_v10 = vadd.f32 1.0, %v5215_v24  ;;  %v2742_v34 = vmul.f32 0.5, %v7831_v50 }
 0x927   : > { %5232 = vtanh.f32 %v3064_v14  ;;  %v3002_v61 = vadd.f32 %v6826_v32, %v6732_v6  ;;  %v5219_v39 = vpop.eup %5218  ;;  %v3251_v1 = vmul.f32 %v3187_v22, %v2739_v35  ;;  %v3184_v2 = vadd.f32 1.0, %v5217_v20  ;;  %v7836_v35 = vld [vmem:[#allocation28_spill] sm:$0xff]  ;;  %v7838_v14 = vld [vmem:[#allocation30_spill] sm:$0xff] }
 0x928   : > { %v3309_v26 = vpack.c.bf16 %v3253_v46, %v3249_v59  ;;  %5234 = vtanh.f32 %v3068_v57  ;;  %v5221_v16 = vpop.eup %5220  ;;  %v3255_v30 = vmul.f32 %v3191_v10, %v2743_v27  ;;  %v3188_v58 = vadd.f32 1.0, %v5219_v39  ;;  %v7839_v39 = vld [vmem:[#allocation31_spill] sm:$0xff] }
 0x929   : > { %v3006_v0 = vadd.f32 %v6847_v62, %v6768_v48  ;;  %v3066_v12 = vmul.f32 0.7978846, %v3002_v61  ;;  %4831 = vmatpush3.bf16.msra.mxu1 %v7835_v17  ;;  %v3248_v50 = vmul.f32 %v3184_v2, %v2736_v51  ;;  %v3186_v40 = vadd.f32 1.0, %v5221_v16 }
 0x92a   : > { %v5223_v29 = vpop.eup %5222  ;;  %3639 = vmatprep.mubr.bf16.mxu1 %v3309_v26  ;;  %v2745_v32 = vmul.f32 0.5, %v6745_v15  ;;  %v2749_v7 = vmul.f32 0.5, %v6780_v42  ;;  %4824 = vmatprep.subr.bf16.mxu1 %v7836_v35  ;;  %v3311_v43 = vpack.c.bf16 %v3255_v30, %v3251_v1  ;;  %v3252_v27 = vmul.f32 %v3188_v58, %v2740_v19  ;;  %v7837_v42 = vld [vmem:[#allocation29_spill] sm:$0xff]  ;;  %v7840_v58 = vld [vmem:[#allocation32_spill] sm:$0xff] }
 0x92b   : > { %v5225_v28 = vpop.eup %5224  ;;  %v3190_v4 = vadd.f32 1.0, %v5223_v29  ;;  %v3070_v53 = vmul.f32 0.7978846, %v3006_v0  ;;  %v3250_v62 = vmul.f32 %v3186_v40, %v2738_v44  ;;  %5236 = vtanh.f32 %v3066_v12 }
 0x92c   : > { %v5227_v45 = vpop.eup %5226  ;;  %v3193_v11 = vadd.f32 1.0, %v5225_v28  ;;  %v3009_v54 = vadd.f32 %v6871_v41, %v6808_v63  ;;  %3736 = vmatprep.mubr.bf16.mxu0 %v3311_v43  ;;  %v3308_v51 = vpack.c.bf16 %v3252_v27, %v3248_v50  ;;  %v2747_v56 = vmul.f32 0.5, %v6757_v37 }
 0x92d   : > { %v3254_v21 = vmul.f32 %v3190_v4, %v2742_v34  ;;  %v3197_v15 = vadd.f32 1.0, %v5227_v45  ;;  %5238 = vtanh.f32 %v3070_v53  ;;  %4832 = vmatpush3.bf16.msra.mxu1 %v7837_v42  ;;  %v2751_v19 = vmul.f32 0.5, %v6783_v55  ;;  %v7845_v42 = vld [vmem:[#allocation40_spill] sm:$0xff] }
 0x92e   : > { %v3013_v59 = vadd.f32 %v6934_v47, %v6856_v3  ;;  %v3073_v44 = vmul.f32 0.7978846, %v3009_v54  ;;  %4825 = vmatprep.subr.bf16.mxu1 %v7838_v14  ;;  %v5229_v31 = vpop.eup %5228  ;;  %3640 = vmatmul.mubr.bf16.gmra.mrb[84].mxu1 %v3308_v51  ;;  %v3257_v24 = vmul.f32 %v3193_v11, %v2745_v32  ;;  %v3011_v22 = vadd.f32 %v6889_v38, %v6817_v23  ;;  %v7844_v51 = vld [vmem:[#allocation34_spill] sm:$0xff] }
 0x92f   : > { %v3310_v41 = vpack.c.bf16 %v3254_v21, %v3250_v62  ;;  %v3261_v46 = vmul.f32 %v3197_v15, %v2749_v7  ;;  %v3195_v60 = vadd.f32 1.0, %v5229_v31  ;;  %v3015_v55 = vadd.f32 %v6937_v13, %v6863_v18  ;;  %v7842_v62 = vld [vmem:[#allocation51_spill] sm:$0xff] }
 0x930   : > { %v5231_v57 = vpop.eup %5230  ;;  %v3077_v20 = vmul.f32 0.7978846, %v3013_v59  ;;  %5240 = vtanh.f32 %v3073_v44  ;;  %v2744_v34 = vmul.f32 0.5, %v6729_v49  ;;  %v3075_v61 = vmul.f32 0.7978846, %v3011_v22 }
 0x931   : > { %v5233_v37 = vpop.eup %5232  ;;  %3737 = vmatmul.mubr.bf16.gmra.mrb[116].mxu0 %v3310_v41  ;;  %v3313_v47 = vpack.c.bf16 %v3261_v46, %v3257_v24  ;;  %v3199_v10 = vadd.f32 1.0, %v5231_v57  ;;  %4833 = vmatpush3.bf16.msra.mxu1 %v7839_v39  ;;  %v2748_v1 = vmul.f32 0.5, %v6760_v9  ;;  %v3079_v2 = vmul.f32 0.7978846, %v3015_v55  ;;  %v7849_v39 = vld [vmem:[#allocation36_spill] sm:$0xff] }
 0x932   : > { %v5235_v26 = vpop.eup %5234  ;;  %v3192_v38 = vadd.f32 1.0, %v5233_v37  ;;  %5242 = vtanh.f32 %v3077_v20  ;;  %4826 = vmatprep.subr.bf16.mxu1 %v7840_v58  ;;  %v3259_v13 = vmul.f32 %v3195_v60, %v2747_v56  ;;  %v2746_v29 = vmul.f32 0.5, %v6732_v6  ;;  %v7841_v6 = vld [vmem:[#allocation33_spill] sm:$0xff]  ;;  %v7847_v60 = vld [vmem:[#allocation42_spill] sm:$0xff] }
 0x933   : > { %v2576_v16 = vpop.f32.mrb[64].mxu1  ;;  %v2689_v30 = vpop.f32.mrb[96].mxu0  ;;  %3647 = vmatprep.mubr.bf16.mxu1 %v3313_v47  ;;  %v3263_v0 = vmul.f32 %v3199_v10, %v2751_v19  ;;  %v3196_v12 = vadd.f32 1.0, %v5235_v26  ;;  %5244 = vtanh.f32 %v3075_v61  ;;  %v3008_v9 = vadd.f32 %v6859_v36, %v6786_v8  ;;  %v7846_v19 = vld [vmem:[#allocation41_spill] sm:$0xff]  ;;  %v7848_v47 = vld [vmem:[#allocation35_spill] sm:$0xff] }
 0x934   : > { %v2578_v17 = vpop.f32.mrb[65].mxu1  ;;  %v2691_v49 = vpop.f32.mrb[97].mxu0  ;;  %5246 = vtanh.f32 %v3079_v2  ;;  %v3012_v50 = vadd.f32 %v6894_v5, %v6820_v25  ;;  %v3256_v35 = vmul.f32 %v3192_v38, %v2744_v34  ;;  %v2750_v43 = vmul.f32 0.5, %v6768_v48  ;;  %v7843_v5 = vld [vmem:[#allocation52_spill] sm:$0xff] }
 0x935   : > { %v7000_v40 = vpop.f32.mrb[66].mxu1  ;;  %v7002_v32 = vpop.f32.mrb[98].mxu0  ;;  %v3315_v7 = vpack.c.bf16 %v3263_v0, %v3259_v13  ;;  %v3260_v28 = vmul.f32 %v3196_v12, %v2748_v1  ;;  %4834 = vmatpush3.bf16.msra.mxu1 %v7841_v6  ;;  %v3072_v36 = vmul.f32 0.7978846, %v3008_v9  ;;  %v3010_v11 = vadd.f32 %v7843_v5, %v7842_v62 }
 0x936   : > { %v7005_v27 = vpop.f32.mrb[67].mxu1  ;;  %v7007_v4 = vpop.f32.mrb[99].mxu0  ;;  %v3076_v45 = vmul.f32 0.7978846, %v3012_v50  ;;  %v3014_v54 = vadd.f32 %v6926_v33, %v6830_v52  ;;  %4827 = vmatprep.subr.bf16.mxu1 %v7844_v51  ;;  %v7016_v56 = vadd.f32 %v2576_v16, %v7845_v42  ;;  %v7019_v59 = vadd.f32 %v2689_v30, %v7846_v19  ;;  %v7850_v16 = vld [vmem:[#allocation43_spill] sm:$0xff] }
 0x937   : > { %v5237_v53 = vpop.eup %5236  ;;  %3744 = vmatprep.mubr.bf16.mxu0 %v3315_v7  ;;  %v3312_v48 = vpack.c.bf16 %v3260_v28, %v3256_v35  ;;  %5248 = vtanh.f32 %v3072_v36  ;;  %v3074_v14 = vmul.f32 0.7978846, %v3010_v11  ;;  %v2753_v33 = vmul.f32 0.5, %v6808_v63  ;;  %v7851_v35 = vld [vmem:[#allocation37_spill] sm:$0xff] }
 0x938   : > { %v5239_v21 = vpop.eup %5238  ;;  %v3194_v15 = vadd.f32 1.0, %v5237_v53  ;;  %v3078_v31 = vmul.f32 0.7978846, %v3014_v54  ;;  %v2757_v24 = vmul.f32 0.5, %v6856_v3  ;;  %5250 = vtanh.f32 %v3076_v45  ;;  %v7852_v53 = vld [vmem:[#allocation38_spill] sm:$0xff] }
 0x939   : > { %v3198_v44 = vadd.f32 1.0, %v5239_v21  ;;  %3648 = vmatmul.mubr.bf16.gmra.mrb[88].mxu1 %v3312_v48  ;;  %5252 = vtanh.f32 %v3074_v14  ;;  %v2824_v57 = vmul.f32 0.044715, %v7016_v56  ;;  %v7025_v20 = vadd.f32 %v2578_v17, %v7847_v60  ;;  %v7853_v14 = vld [vmem:[#allocation39_spill] sm:$0xff] }
 0x93a   : > { %v3258_v41 = vmul.f32 %v3194_v15, %v2746_v29  ;;  %v5241_v46 = vpop.eup %5240  ;;  %4835 = vmatpush3.bf16.msra.mxu1 %v7848_v47  ;;  %v2755_v34 = vmul.f32 0.5, %v6817_v23  ;;  %v2759_v63 = vmul.f32 0.5, %v6863_v18  ;;  %5254 = vtanh.f32 %v3078_v31 }
 0x93b   : > { %v3262_v22 = vmul.f32 %v3198_v44, %v2750_v43  ;;  %v2586_v55 = vpop.f32.mrb[68].mxu1  ;;  %v2699_v37 = vpop.f32.mrb[100].mxu0  ;;  %v3201_v10 = vadd.f32 1.0, %v5241_v46  ;;  %4828 = vmatprep.subr.bf16.mxu1 %v7849_v39  ;;  %v2752_v38 = vmul.f32 0.5, %v6786_v8  ;;  %v2826_v2 = vmul.f32 0.044715, %v7019_v59 }
 0x93c   : > { %v2588_v3 = vpop.f32.mrb[69].mxu1  ;;  %v7030_v61 = vpop.f32.mrb[101].mxu0  ;;  %v7036_v30 = vadd.f32 %v2691_v49, %v7850_v16  ;;  %v2756_v0 = vmul.f32 0.5, %v6820_v25  ;;  %v2825_v12 = vmul.f32 0.044715, %v7025_v20  ;;  %v2754_v49 = vmul.f32 0.5, %v7842_v62 }
 0x93d   : > { %v5243_v26 = vpop.eup %5242  ;;  %v3314_v1 = vpack.c.bf16 %v3262_v22, %v3258_v41  ;;  %v7038_v58 = vpop.f32.mrb[70].mxu1  ;;  %v2888_v50 = vmul.f32 %v2824_v57, %v7016_v56  ;;  %v7052_v7 = vadd.f32 %v7000_v40, %v7845_v42  ;;  %v3265_v25 = vmul.f32 %v3201_v10, %v2753_v33 }
 0x93e   : > { %v7040_v23 = vpop.f32.mrb[102].mxu0  ;;  %v5245_v18 = vpop.eup %5244  ;;  %v3205_v13 = vadd.f32 1.0, %v5243_v26  ;;  %4836 = vmatpush3.bf16.msra.mxu1 %v7851_v35  ;;  %v7057_v6 = vadd.f32 %v7002_v32, %v7846_v19  ;;  %v2758_v36 = vmul.f32 0.5, %v6830_v52  ;;  %v2890_v45 = vmul.f32 %v2826_v2, %v7019_v59 }
 0x93f   : > { %v7044_v17 = vpop.f32.mrb[71].mxu1  ;;  %v7046_v29 = vpop.f32.mrb[103].mxu0  ;;  %3745 = vmatmul.mubr.bf16.gmra.mrb[120].mxu0 %v3314_v1  ;;  %v3203_v9 = vadd.f32 1.0, %v5245_v18  ;;  %4829 = vmatprep.subr.bf16.mxu1 %v7852_v53  ;;  %v2827_v62 = vmul.f32 0.044715, %v7036_v30  ;;  %v7065_v40 = vadd.f32 %v7005_v27, %v7847_v60  ;;  %v2889_v51 = vmul.f32 %v2825_v12, %v7025_v20 }
 0x940   : > { %v5247_v8 = vpop.eup %5246  ;;  %v3269_v28 = vmul.f32 %v3205_v13, %v2757_v24  ;;  %v7069_v32 = vmul.f32 %v2888_v50, %v7016_v56  ;;  %v2828_v48 = vmul.f32 0.044715, %v7052_v7  ;;  %v2830_v52 = vmul.f32 0.044715, %v7057_v6 }
 0x941   : > { %v3207_v43 = vadd.f32 1.0, %v5247_v8  ;;  %v3267_v11 = vmul.f32 %v3203_v9, %v2755_v34  ;;  %v5249_v21 = vpop.eup %5248  ;;  %v7075_v15 = vadd.f32 %v7007_v4, %v7850_v16  ;;  %v7079_v24 = vadd.f32 %v2586_v55, %v7845_v42 }
 0x942   : > { %v3317_v5 = vpack.c.bf16 %v3269_v28, %v3265_v25  ;;  %4837 = vmatpush3.bf16.msra.mxu1 %v7853_v14  ;;  %v5251_v31 = vpop.eup %5250  ;;  %v3200_v33 = vadd.f32 1.0, %v5249_v21  ;;  %v7082_v46 = vadd.f32 %v2699_v37, %v7846_v19  ;;  %v7087_v10 = vmul.f32 %v2890_v45, %v7019_v59 }
 0x943   : > { %v3271_v54 = vmul.f32 %v3207_v43, %v2759_v63  ;;  %v2596_v44 = vpop.f32.mrb[72].mxu1  ;;  %v2709_v27 = vpop.f32.mrb[104].mxu0  ;;  %v3204_v4 = vadd.f32 1.0, %v5251_v31  ;;  %v2829_v34 = vmul.f32 0.044715, %v7065_v40  ;;  %v7091_v63 = vadd.f32 %v2588_v3, %v7847_v60 }
 0x944   : > { %3655 = vmatprep.mubr.bf16.mxu1 %v3317_v5  ;;  %7854 = vst [vmem:[#allocation47_spill] sm:$0xff] %v7082_v46  ;;  %v2598_v22 = vpop.f32.mrb[73].mxu1  ;;  %v7084_v57 = vpop.f32.mrb[105].mxu0  ;;  %v7096_v37 = vmul.f32 %v2889_v51, %v7025_v20  ;;  %v2891_v1 = vmul.f32 %v2827_v62, %v7036_v30  ;;  %v2831_v2 = vmul.f32 0.044715, %v7075_v15  ;;  %v3264_v12 = vmul.f32 %v3200_v33, %v2752_v38 }
 0x945   : > { %v3319_v41 = vpack.c.bf16 %v3271_v54, %v3267_v11  ;;  %v5253_v47 = vpop.eup %5252  ;;  %v7093_v39 = vpop.f32.mrb[74].mxu1  ;;  %v3268_v8 = vmul.f32 %v3204_v4, %v2756_v0  ;;  %v2892_v3 = vmul.f32 %v2828_v48, %v7052_v7  ;;  %v2894_v35 = vmul.f32 %v2830_v52, %v7057_v6 }
 0x946   : > { %v5255_v55 = vpop.eup %5254  ;;  %v3202_v26 = vadd.f32 1.0, %v5253_v47  ;;  %v2713_v18 = vpop.f32.mrb[106].mxu0  ;;  %v2832_v25 = vmul.f32 0.044715, %v7079_v24  ;;  %v2834_v28 = vmul.f32 0.044715, %v7082_v46  ;;  %v7106_v43 = vadd.f32 %v7030_v61, %v7850_v16 }
 0x947   : > { %3752 = vmatprep.mubr.bf16.mxu0 %v3319_v41  ;;  %v2602_v13 = vpop.f32.mrb[75].mxu1  ;;  %v3206_v9 = vadd.f32 1.0, %v5255_v55  ;;  %v2715_v50 = vpop.f32.mrb[107].mxu0  ;;  %v3316_v53 = vpack.c.bf16 %v3268_v8, %v3264_v12  ;;  %v2833_v38 = vmul.f32 0.044715, %v7091_v63  ;;  %v2893_v0 = vmul.f32 %v2829_v34, %v7065_v40 }
 0x948   : > { %v3266_v45 = vmul.f32 %v3202_v26, %v2754_v49  ;;  %v2895_v5 = vmul.f32 %v2831_v2, %v7075_v15  ;;  %v2835_v11 = vmul.f32 0.044715, %v7106_v43  ;;  %v7114_v54 = vadd.f32 %v7038_v58, %v7845_v42 }
 0x949   : > { %v3270_v62 = vmul.f32 %v3206_v9, %v2758_v36  ;;  %3656 = vmatmul.mubr.bf16.gmra.mrb[92].mxu1 %v3316_v53  ;;  %v7118_v61 = vadd.f32 %v7040_v23, %v7846_v19  ;;  %v7122_v49 = vadd.f32 %v7044_v17, %v7847_v60  ;;  %v7126_v36 = vadd.f32 %v7046_v29, %v7850_v16 }
 0x94a   : > { %v7129_v52 = vmul.f32 %v2891_v1, %v7036_v30  ;;  %v7132_v58 = vmul.f32 %v2892_v3, %v7052_v7  ;;  %v2896_v14 = vmul.f32 %v2832_v25, %v7079_v24  ;;  %v2898_v23 = vmul.f32 %v2834_v28, %v7082_v46 }
 0x94b   : > { %v3318_v51 = vpack.c.bf16 %v3270_v62, %v3266_v45  ;;  %v2606_v21 = vpop.f32.mrb[76].mxu1  ;;  %v2719_v48 = vpop.f32.mrb[108].mxu0  ;;  %v2897_v17 = vmul.f32 %v2833_v38, %v7091_v63  ;;  %v2899_v29 = vmul.f32 %v2835_v11, %v7106_v43  ;;  %v2836_v33 = vmul.f32 0.044715, %v7114_v54 }
 0x94c   : > { %v2608_v31 = vpop.f32.mrb[77].mxu1  ;;  %v2721_v41 = vpop.f32.mrb[109].mxu0  ;;  %v7140_v47 = vadd.f32 %v2596_v44, %v7845_v42  ;;  %v7143_v4 = vmul.f32 %v2894_v35, %v7057_v6  ;;  %v2838_v34 = vmul.f32 0.044715, %v7118_v61  ;;  %v2710_v55 = vadd.f32 %v2709_v27, %v7846_v19 }
 0x94d   : > { %3753 = vmatmul.mubr.bf16.gmra.mrb[124].mxu0 %v3318_v51  ;;  %v7148_v26 = vadd.f32 %v2598_v22, %v7847_v60  ;;  %v2610_v1 = vpop.f32.mrb[78].mxu1  ;;  %v2723_v2 = vpop.f32.mrb[110].mxu0  ;;  %v7151_v12 = vmul.f32 %v2893_v0, %v7065_v40  ;;  %v7154_v8 = vmul.f32 %v2895_v5, %v7075_v15  ;;  %v2837_v44 = vmul.f32 0.044715, %v7122_v49 }
 0x94e   : > { %7855 = vst [vmem:[#allocation45_spill] sm:$0xff] %v7140_v47  ;;  %v2839_v9 = vmul.f32 0.044715, %v7126_v36  ;;  %v2612_v3 = vpop.f32.mrb[79].mxu1  ;;  %v2725_v35 = vpop.f32.mrb[111].mxu0  ;;  %v7159_v25 = vmul.f32 %v2896_v14, %v7079_v24  ;;  %v7164_v53 = vmul.f32 %v2898_v23, %v7082_v46  ;;  %v7167_v45 = vmul.f32 %v2897_v17, %v7091_v63 }
 0x94f   : > { %v2840_v27 = vmul.f32 0.044715, %v7140_v47  ;;  %v2842_v22 = vmul.f32 0.044715, %v2710_v55  ;;  %v2841_v28 = vmul.f32 0.044715, %v7148_v26  ;;  %v7170_v62 = vmul.f32 %v2899_v29, %v7106_v43 }
 0x950   : > { %7856 = vst [vmem:[#allocation49_spill] sm:$0xff] %v7164_v53  ;;  %v2900_v38 = vmul.f32 %v2836_v33, %v7114_v54  ;;  %v2902_v0 = vmul.f32 %v2838_v34, %v7118_v61  ;;  %v7176_v11 = vadd.f32 %v7084_v57, %v7850_v16  ;;  %v7180_v51 = vadd.f32 %v7093_v39, %v7845_v42 }
 0x951   : > { %v2906_v5 = vmul.f32 %v2842_v22, %v2710_v55  ;;  %v2901_v14 = vmul.f32 %v2837_v44, %v7122_v49  ;;  %v2714_v23 = vadd.f32 %v2713_v18, %v7846_v19  ;;  %v7185_v17 = vadd.f32 %v2602_v13, %v7847_v60 }
 0x952   : > { %v7188_v29 = vadd.f32 %v2715_v50, %v7850_v16  ;;  %v2903_v33 = vmul.f32 %v2839_v9, %v7126_v36  ;;  %v2904_v34 = vmul.f32 %v2840_v27, %v7140_v47  ;;  %v2905_v22 = vmul.f32 %v2841_v28, %v7148_v26 }
 0x953   : > { %v2970_v57 = vmul.f32 %v2906_v5, %v2710_v55  ;;  %v7194_v39 = vmul.f32 %v2900_v38, %v7114_v54  ;;  %v2843_v44 = vmul.f32 0.044715, %v7176_v11  ;;  %v2846_v53 = vmul.f32 0.044715, %v2714_v23 }
 0x954   : > { %v7198_v18 = vadd.f32 %v2606_v21, %v7845_v42  ;;  %v7201_v13 = vmul.f32 %v2902_v0, %v7118_v61  ;;  %v7203_v50 = vmul.f32 0.5, %v2710_v55  ;;  %v2844_v9 = vmul.f32 0.044715, %v7180_v51 }
 0x955   : > { %7857 = vst [vmem:[#allocation44_spill] sm:$0xff] %v7194_v39  ;;  %v2845_v27 = vmul.f32 0.044715, %v7185_v17  ;;  %v3034_v5 = vadd.f32 %v2970_v57, %v2710_v55  ;;  %v2910_v28 = vmul.f32 %v2846_v53, %v2714_v23  ;;  %v2847_v38 = vmul.f32 0.044715, %v7188_v29 }
 0x956   : > { %7858 = vst [vmem:[#allocation48_spill] sm:$0xff] %v7201_v13  ;;  %7859 = vst [vmem:[#allocation46_spill] sm:$0xff] %v7203_v50  ;;  %v7209_v46 = vadd.f32 %v2719_v48, %v7846_v19  ;;  %v7212_v39 = vmul.f32 %v2901_v14, %v7122_v49  ;;  %v7215_v21 = vmul.f32 %v2903_v33, %v7126_v36  ;;  %v2848_v57 = vmul.f32 0.044715, %v7198_v18 }
 0x957   : > { %v7218_v0 = vmul.f32 %v2904_v34, %v7140_v47  ;;  %v7221_v50 = vmul.f32 %v2905_v22, %v7148_v26  ;;  %v2907_v55 = vmul.f32 %v2843_v44, %v7176_v11  ;;  %v2974_v53 = vmul.f32 %v2910_v28, %v2714_v23 }
 0x958   : > { %v2850_v48 = vmul.f32 0.044715, %v7209_v46  ;;  %v2908_v13 = vmul.f32 %v2844_v9, %v7180_v51  ;;  %v2909_v14 = vmul.f32 %v2845_v27, %v7185_v17  ;;  %v7229_v33 = vadd.f32 %v2608_v31, %v7847_v60 }
 0x959   : > { %7860 = vst [vmem:[#allocation50_spill] sm:$0xff] %v7218_v0  ;;  %7861 = vst [vmem:[#allocation23_spill] sm:$0xff] %v7221_v50  ;;  %v7232_v34 = vadd.f32 %v2721_v41, %v7850_v16  ;;  %v3098_v0 = vmul.f32 0.7978846, %v3034_v5  ;;  %v3038_v22 = vadd.f32 %v2974_v53, %v2714_v23  ;;  %v2911_v47 = vmul.f32 %v2847_v38, %v7188_v29 }
 0x95a   : > { %v7236_v44 = vadd.f32 %v2610_v1, %v7845_v42  ;;  %v2849_v28 = vmul.f32 0.044715, %v7229_v33  ;;  %v7241_v9 = vadd.f32 %v2723_v2, %v7846_v19  ;;  %v7244_v31 = vadd.f32 %v2612_v3, %v7847_v60 }
 0x95b   : > { %v2851_v50 = vmul.f32 0.044715, %v7232_v34  ;;  %v3102_v27 = vmul.f32 0.7978846, %v3038_v22  ;;  %v2912_v41 = vmul.f32 %v2848_v57, %v7198_v18  ;;  %v2914_v5 = vmul.f32 %v2850_v48, %v7209_v46 }
 0x95c   : > { %v2852_v38 = vmul.f32 0.044715, %v7236_v44  ;;  %v7250_v42 = vmul.f32 %v2907_v55, %v7176_v11  ;;  %v7252_v1 = vmul.f32 0.5, %v2714_v23  ;;  %v2853_v53 = vmul.f32 0.044715, %v7244_v31 }
 0x95d   : > { %v7256_v19 = vadd.f32 %v2725_v35, %v7850_v16  ;;  %v7259_v60 = vmul.f32 %v2908_v13, %v7180_v51  ;;  %v7262_v2 = vmul.f32 %v2909_v14, %v7185_v17  ;;  %v2913_v3 = vmul.f32 %v2849_v28, %v7229_v33 }
 0x95e   : > { %v2915_v57 = vmul.f32 %v2851_v50, %v7232_v34  ;;  %5256 = vtanh.f32 %v3098_v0  ;;  %v7267_v55 = vmul.f32 %v2911_v47, %v7188_v29  ;;  %v2916_v23 = vmul.f32 %v2852_v38, %v7236_v44 }
 0x95f   : > { %v2854_v48 = vmul.f32 0.044715, %v7241_v9  ;;  %5258 = vtanh.f32 %v3102_v27  ;;  %v7272_v16 = vmul.f32 %v2912_v41, %v7198_v18  ;;  %v7275_v35 = vmul.f32 %v2914_v5, %v7209_v46 }
 0x960   : > { %v3017_v13 = vadd.f32 %v7096_v37, %v7025_v20  ;;  %v2917_v50 = vmul.f32 %v2853_v53, %v7244_v31  ;;  %v7281_v0 = vmul.f32 0.044715, %v7256_v19  ;;  %v7284_v47 = vmul.f32 0.5, %v7025_v20 }
 0x961   : > { %7862 = vst [vmem:[#allocation24_spill] sm:$0xff] %v7275_v35  ;;  %v3021_v14 = vadd.f32 %v7151_v12, %v7065_v40  ;;  %v7289_v22 = vmul.f32 %v2913_v3, %v7229_v33  ;;  %v7292_v28 = vmul.f32 %v2915_v57, %v7232_v34  ;;  %v3019_v37 = vadd.f32 %v7129_v52, %v7036_v30 }
 0x962   : > { %v3081_v27 = vmul.f32 0.7978846, %v3017_v13  ;;  %v7297_v41 = vmul.f32 %v2916_v23, %v7236_v44  ;;  %v7300_v5 = vmul.f32 %v2854_v48, %v7241_v9  ;;  %v3023_v12 = vadd.f32 %v7154_v8, %v7075_v15 }
 0x963   : > { %v3085_v20 = vmul.f32 0.7978846, %v3021_v14  ;;  %v3083_v38 = vmul.f32 0.7978846, %v3019_v37  ;;  %v3016_v53 = vadd.f32 %v7069_v32, %v7016_v56  ;;  %v3020_v3 = vadd.f32 %v7132_v58, %v7052_v7 }
 0x964   : > { %5260 = vtanh.f32 %v3081_v27  ;;  %v7309_v52 = vmul.f32 %v2917_v50, %v7244_v31  ;;  %v2765_v57 = vmul.f32 0.5, %v7065_v40  ;;  %v3087_v23 = vmul.f32 0.7978846, %v3023_v12 }
 0x965   : > { %5262 = vtanh.f32 %v3085_v20  ;;  %v3080_v48 = vmul.f32 0.7978846, %v3016_v53  ;;  %v3084_v13 = vmul.f32 0.7978846, %v3020_v3  ;;  %v3018_v8 = vadd.f32 %v7087_v10, %v7019_v59  ;;  %v7863_v3 = vld [vmem:[#allocation44_spill] sm:$0xff] }
 0x966   : > { %5264 = vtanh.f32 %v3083_v38  ;;  %v2763_v14 = vmul.f32 0.5, %v7036_v30  ;;  %v2767_v32 = vmul.f32 0.5, %v7075_v15  ;;  %v3022_v58 = vadd.f32 %v7143_v4, %v7057_v6 }
 0x967   : > { %5266 = vtanh.f32 %v3087_v23  ;;  %v3082_v50 = vmul.f32 0.7978846, %v3018_v8  ;;  %v3025_v40 = vadd.f32 %v7167_v45, %v7091_v63  ;;  %v3029_v27 = vadd.f32 %v7212_v39, %v7122_v49 }
 0x968   : > { %5268 = vtanh.f32 %v3080_v48  ;;  %v7322_v37 = vpop.eup %5256  ;;  %v2760_v10 = vmul.f32 0.5, %v7016_v56  ;;  %v7326_v30 = vmul.f32 0.5, %v7052_v7  ;;  %v3086_v15 = vmul.f32 0.7978846, %v3022_v58  ;;  %v7865_v58 = vld [vmem:[#allocation49_spill] sm:$0xff] }
 0x969   : > { %5270 = vtanh.f32 %v3084_v13  ;;  %v7328_v20 = vpop.eup %5258  ;;  %v3089_v4 = vmul.f32 0.7978846, %v3025_v40  ;;  %v3093_v12 = vmul.f32 0.7978846, %v3029_v27  ;;  %v3027_v45 = vadd.f32 %v7170_v62, %v7106_v43 }
 0x96a   : > { %5272 = vtanh.f32 %v3082_v50  ;;  %v2762_v38 = vmul.f32 0.5, %v7019_v59  ;;  %v7334_v39 = vmul.f32 0.5, %v7057_v6  ;;  %v3031_v56 = vadd.f32 %v7215_v21, %v7126_v36  ;;  %v7864_v21 = vld [vmem:[#allocation47_spill] sm:$0xff] }
 0x96b   : > { %5274 = vtanh.f32 %v3086_v15  ;;  %v3091_v7 = vmul.f32 0.7978846, %v3027_v45  ;;  %v3024_v53 = vadd.f32 %v7159_v25, %v7079_v24  ;;  %v3028_v23 = vadd.f32 %v7863_v3, %v7114_v54  ;;  %v7866_v15 = vld [vmem:[#allocation48_spill] sm:$0xff] }
 0x96c   : > { %5276 = vtanh.f32 %v3089_v4  ;;  %v2769_v48 = vmul.f32 0.5, %v7091_v63  ;;  %v7344_v62 = vmul.f32 0.5, %v7122_v49  ;;  %v3095_v59 = vmul.f32 0.7978846, %v3031_v56 }
 0x96d   : > { %5278 = vtanh.f32 %v3093_v12  ;;  %v3088_v13 = vmul.f32 0.7978846, %v3024_v53  ;;  %v3092_v8 = vmul.f32 0.7978846, %v3028_v23  ;;  %v3026_v50 = vadd.f32 %v7865_v58, %v7864_v21 }
 0x96e   : > { %v5261_v6 = vpop.eup %5260  ;;  %5280 = vtanh.f32 %v3091_v7  ;;  %v2771_v25 = vmul.f32 0.5, %v7106_v43  ;;  %v3030_v63 = vadd.f32 %v7866_v15, %v7118_v61  ;;  %v7352_v12 = vmul.f32 0.5, %v7126_v36 }
 0x96f   : > { %v5263_v40 = vpop.eup %5262  ;;  %v3209_v27 = vadd.f32 1.0, %v5261_v6  ;;  %5282 = vtanh.f32 %v3095_v59  ;;  %v3090_v45 = vmul.f32 0.7978846, %v3026_v50  ;;  %v7867_v59 = vld [vmem:[#allocation23_spill] sm:$0xff]  ;;  %v3037_v36 = vadd.f32 %v7262_v2, %v7185_v17 }
 0x970   : > { %v5265_v4 = vpop.eup %5264  ;;  %v3213_v49 = vadd.f32 1.0, %v5263_v40  ;;  %5284 = vtanh.f32 %v3088_v13  ;;  %v3094_v3 = vmul.f32 0.7978846, %v3030_v63  ;;  %v3033_v58 = vadd.f32 %v7867_v59, %v7148_v26 }
 0x971   : > { %v5267_v56 = vpop.eup %5266  ;;  %v3273_v7 = vmul.f32 %v3209_v27, %v7284_v47  ;;  %v3211_v53 = vadd.f32 1.0, %v5265_v4  ;;  %5286 = vtanh.f32 %v3092_v8 }
 0x972   : > { %v5269_v23 = vpop.eup %5268  ;;  %v3277_v6 = vmul.f32 %v3213_v49, %v2765_v57  ;;  %v3215_v43 = vadd.f32 1.0, %v5267_v56  ;;  %5288 = vtanh.f32 %v3090_v45  ;;  %v3097_v8 = vmul.f32 0.7978846, %v3033_v58 }
 0x973   : > { %v5271_v15 = vpop.eup %5270  ;;  %v3275_v40 = vmul.f32 %v3211_v53, %v2763_v14  ;;  %v3208_v35 = vadd.f32 1.0, %v5269_v23  ;;  %5290 = vtanh.f32 %v3094_v3  ;;  %v2768_v49 = vmul.f32 0.5, %v7079_v24 }
 0x974   : > { %v5273_v13 = vpop.eup %5272  ;;  %v3321_v50 = vpack.c.bf16 %v3277_v6, %v3273_v7  ;;  %v3279_v47 = vmul.f32 %v3215_v43, %v2767_v32  ;;  %v3212_v27 = vadd.f32 1.0, %v5271_v15  ;;  %v3101_v45 = vmul.f32 0.7978846, %v3037_v36  ;;  %v7868_v6 = vld [vmem:[#allocation45_spill] sm:$0xff]  ;;  %v7869_v43 = vld [vmem:[#allocation50_spill] sm:$0xff] }
 0x975   : > { %v5275_v63 = vpop.eup %5274  ;;  %v3272_v4 = vmul.f32 %v3208_v35, %v2760_v10  ;;  %v3210_v57 = vadd.f32 1.0, %v5273_v13  ;;  %5292 = vtanh.f32 %v3097_v8  ;;  %v2772_v32 = vmul.f32 0.5, %v7114_v54 }
 0x976   : > { %v5277_v56 = vpop.eup %5276  ;;  %3663 = vmatprep.mubr.bf16.mxu1 %v3321_v50  ;;  %v3323_v59 = vpack.c.bf16 %v3279_v47, %v3275_v40  ;;  %v3276_v14 = vmul.f32 %v3212_v27, %v7326_v30  ;;  %v3214_v53 = vadd.f32 1.0, %v5275_v63  ;;  %5294 = vtanh.f32 %v3101_v45 }
 0x977   : > { %v5279_v3 = vpop.eup %5278  ;;  %v3274_v2 = vmul.f32 %v3210_v57, %v2762_v38  ;;  %v3217_v23 = vadd.f32 1.0, %v5277_v56  ;;  %v3032_v58 = vadd.f32 %v7869_v43, %v7868_v6  ;;  %v2770_v36 = vmul.f32 0.5, %v7864_v21 }
 0x978   : > { %v5281_v7 = vpop.eup %5280  ;;  %3760 = vmatprep.mubr.bf16.mxu0 %v3323_v59  ;;  %v3320_v35 = vpack.c.bf16 %v3276_v14, %v3272_v4  ;;  %v3278_v10 = vmul.f32 %v3214_v53, %v7334_v39  ;;  %v3221_v24 = vadd.f32 1.0, %v5279_v3  ;;  %v3036_v38 = vadd.f32 %v7259_v60, %v7180_v51 }
 0x979   : > { %v5283_v15 = vpop.eup %5282  ;;  %v3281_v40 = vmul.f32 %v3217_v23, %v2769_v48  ;;  %v3219_v30 = vadd.f32 1.0, %v5281_v7  ;;  %v3096_v27 = vmul.f32 0.7978846, %v3032_v58  ;;  %v2774_v4 = vmul.f32 0.5, %v7118_v61 }
 0x97a   : > { %v5285_v13 = vpop.eup %5284  ;;  %3664 = vmatmul.mubr.bf16.gmra.mrb[96].mxu1 %v3320_v35  ;;  %v3322_v54 = vpack.c.bf16 %v3278_v10, %v3274_v2  ;;  %v3285_v50 = vmul.f32 %v3221_v24, %v7344_v62  ;;  %v3223_v47 = vadd.f32 1.0, %v5283_v15  ;;  %v3100_v57 = vmul.f32 0.7978846, %v3036_v38 }
 0x97b   : > { %v5287_v39 = vpop.eup %5286  ;;  %v3283_v8 = vmul.f32 %v3219_v30, %v2771_v25  ;;  %v3216_v63 = vadd.f32 1.0, %v5285_v13  ;;  %5296 = vtanh.f32 %v3096_v27  ;;  %v3041_v62 = vadd.f32 %v7289_v22, %v7229_v33 }
 0x97c   : > { %v5289_v48 = vpop.eup %5288  ;;  %3761 = vmatmul.mubr.bf16.gmra.mrb[128].mxu0 %v3322_v54  ;;  %v3325_v45 = vpack.c.bf16 %v3285_v50, %v3281_v40  ;;  %v3287_v21 = vmul.f32 %v3223_v47, %v7352_v12  ;;  %v3220_v56 = vadd.f32 1.0, %v5287_v39  ;;  %5298 = vtanh.f32 %v3100_v57 }
 0x97d   : > { %v5291_v60 = vpop.eup %5290  ;;  %v3280_v59 = vmul.f32 %v3216_v63, %v2768_v49  ;;  %v3218_v14 = vadd.f32 1.0, %v5289_v48  ;;  %v3045_v61 = vadd.f32 %v7309_v52, %v7244_v31  ;;  %v2919_v2 = vmul.f32 %v7281_v0, %v7256_v19 }
 0x97e   : > { %3671 = vmatprep.mubr.bf16.mxu1 %v3325_v45  ;;  %v3327_v25 = vpack.c.bf16 %v3287_v21, %v3283_v8  ;;  %v3284_v53 = vmul.f32 %v3220_v56, %v2772_v32  ;;  %v3222_v3 = vadd.f32 1.0, %v5291_v60  ;;  %v2777_v23 = vmul.f32 0.5, %v7148_v26  ;;  %v7870_v8 = vld [vmem:[#allocation46_spill] sm:$0xff] }
 0x97f   : > { %v3282_v12 = vmul.f32 %v3218_v14, %v2770_v36  ;;  %v3105_v7 = vmul.f32 0.7978846, %v3041_v62  ;;  %v5293_v49 = vpop.eup %5292  ;;  %v3109_v24 = vmul.f32 0.7978846, %v3045_v61  ;;  %v3040_v22 = vadd.f32 %v7272_v16, %v7198_v18 }
 0x980   : > { %3768 = vmatprep.mubr.bf16.mxu0 %v3327_v25  ;;  %v3324_v35 = vpack.c.bf16 %v3284_v53, %v3280_v59  ;;  %v3286_v10 = vmul.f32 %v3222_v3, %v2774_v4  ;;  %v5295_v32 = vpop.eup %5294  ;;  %v2781_v43 = vmul.f32 0.5, %v7185_v17  ;;  %v3225_v58 = vadd.f32 1.0, %v5293_v49 }
 0x981   : > { %5300 = vtanh.f32 %v3105_v7  ;;  %v3044_v0 = vadd.f32 %v7297_v41, %v7236_v44  ;;  %v3229_v26 = vadd.f32 1.0, %v5295_v32  ;;  %v3104_v15 = vmul.f32 0.7978846, %v3040_v22 }
 0x982   : > { %3672 = vmatmul.mubr.bf16.gmra.mrb[100].mxu1 %v3324_v35  ;;  %v3326_v52 = vpack.c.bf16 %v3286_v10, %v3282_v12  ;;  %5302 = vtanh.f32 %v3109_v24  ;;  %v2983_v40 = vmul.f32 %v2919_v2, %v7256_v19  ;;  %v3289_v30 = vmul.f32 %v3225_v58, %v2777_v23 }
 0x983   : > { %v3108_v36 = vmul.f32 0.7978846, %v3044_v0  ;;  %v3035_v16 = vadd.f32 %v7250_v42, %v7176_v11  ;;  %v3293_v38 = vmul.f32 %v3229_v26, %v2781_v43  ;;  %5304 = vtanh.f32 %v3104_v15 }
 0x984   : > { %3769 = vmatmul.mubr.bf16.gmra.mrb[132].mxu0 %v3326_v52  ;;  %v3039_v17 = vadd.f32 %v7267_v55, %v7188_v29  ;;  %v3226_v41 = vadd.f32 1.0, %v7322_v37  ;;  %v2982_v13 = vmul.f32 %v7300_v5, %v7241_v9  ;;  %v3230_v50 = vadd.f32 1.0, %v7328_v20 }
 0x985   : > { %5306 = vtanh.f32 %v3108_v36  ;;  %v3099_v54 = vmul.f32 0.7978846, %v3035_v16  ;;  %v5297_v47 = vpop.eup %5296  ;;  %v3329_v27 = vpack.c.bf16 %v3293_v38, %v3289_v30  ;;  %v2776_v39 = vmul.f32 0.5, %v7868_v6 }
 0x986   : > { %v3103_v42 = vmul.f32 0.7978846, %v3039_v17  ;;  %v7394_v63 = vmul.f32 %v3226_v41, %v7870_v8  ;;  %v5299_v4 = vpop.eup %5298  ;;  %v3224_v57 = vadd.f32 1.0, %v5297_v47  ;;  %v7397_v55 = vmul.f32 %v3230_v50, %v7252_v1  ;;  %v7871_v1 = vld [vmem:[#allocation24_spill] sm:$0xff] }
 0x987   : > { %5308 = vtanh.f32 %v3099_v54  ;;  %v3043_v5 = vadd.f32 %v7292_v28, %v7232_v34  ;;  %3679 = vmatprep.mubr.bf16.mxu1 %v3329_v27  ;;  %v2780_v37 = vmul.f32 0.5, %v7180_v51  ;;  %v3228_v20 = vadd.f32 1.0, %v5299_v4 }
 0x988   : > { %5310 = vtanh.f32 %v3103_v42  ;;  %v3047_v6 = vadd.f32 %v2983_v40, %v7256_v19  ;;  %v3288_v48 = vmul.f32 %v3224_v57, %v2776_v39  ;;  %v3330_v45 = vpack.c.bf16 %v7397_v55, %v7394_v63 }
 0x989   : > { %v3107_v21 = vmul.f32 0.7978846, %v3043_v5  ;;  %v3292_v56 = vmul.f32 %v3228_v20, %v2780_v37  ;;  %v3042_v59 = vadd.f32 %v7871_v1, %v7209_v46  ;;  %v3046_v14 = vadd.f32 %v2982_v13, %v7241_v9 }
 0x98a   : > { %v3111_v60 = vmul.f32 0.7978846, %v3047_v6  ;;  %v2785_v3 = vmul.f32 0.5, %v7229_v33  ;;  %v2789_v61 = vmul.f32 0.5, %v7244_v31  ;;  %v2784_v24 = vmul.f32 0.5, %v7198_v18 }
 0x98b   : > { %v5301_v28 = vpop.eup %5300  ;;  %5312 = vtanh.f32 %v3107_v21  ;;  %v3328_v51 = vpack.c.bf16 %v3292_v56, %v3288_v48  ;;  %v3106_v53 = vmul.f32 0.7978846, %v3042_v59  ;;  %v3110_v12 = vmul.f32 0.7978846, %v3046_v14 }
 0x98c   : > { %v5303_v62 = vpop.eup %5302  ;;  %v3233_v25 = vadd.f32 1.0, %v5301_v28  ;;  %5314 = vtanh.f32 %v3111_v60  ;;  %v2788_v22 = vmul.f32 0.5, %v7236_v44  ;;  %v2779_v26 = vmul.f32 0.5, %v7176_v11 }
 0x98d   : > { %v3237_v2 = vadd.f32 1.0, %v5303_v62  ;;  %v5305_v23 = vpop.eup %5304  ;;  %3680 = vmatmul.mubr.bf16.gmra.mrb[104].mxu1 %v3328_v51  ;;  %5316 = vtanh.f32 %v3106_v53  ;;  %v2783_v15 = vmul.f32 0.5, %v7188_v29  ;;  %v2787_v41 = vmul.f32 0.5, %v7232_v34  ;;  %v7872_v62 = vld [vmem:[#allocation9_spill] sm:$0xff]  ;;  %v7873_v53 = vld [vmem:[#allocation10_spill] sm:$0xff] }
 0x98e   : > { %v3297_v49 = vmul.f32 %v3233_v25, %v2785_v3  ;;  %v3232_v10 = vadd.f32 1.0, %v5305_v23  ;;  %5318 = vtanh.f32 %v3110_v12  ;;  %v2791_v13 = vmul.f32 0.5, %v7256_v19  ;;  %v7421_v19 = vld [vmem:[%s7718_s10] ss:$0 sm:$0xff] }
 0x98f   : > { %v5307_v7 = vpop.eup %5306  ;;  %v3301_v35 = vmul.f32 %v3237_v2, %v2789_v61  ;;  %v2786_v39 = vmul.f32 0.5, %v7209_v46  ;;  %v2790_v42 = vmul.f32 0.5, %v7241_v9 }
 0x990   : > { %v3236_v32 = vadd.f32 1.0, %v5307_v7  ;;  %v3296_v0 = vmul.f32 %v3232_v10, %v2784_v24 }
 0x991   : > { %v5309_v43 = vpop.eup %5308  ;;  %v3333_v58 = vpack.c.bf16 %v3301_v35, %v3297_v49 }
 0x992   : > { %v5311_v33 = vpop.eup %5310  ;;  %v3300_v31 = vmul.f32 %v3236_v32, %v2788_v22  ;;  %v3227_v52 = vadd.f32 1.0, %v5309_v43 }
 0x993   : > { %3687 = vmatprep.mubr.bf16.mxu1 %v3333_v58  ;;  %v3231_v40 = vadd.f32 1.0, %v5311_v33 }
 0x994   : > { %v3332_v30 = vpack.c.bf16 %v3300_v31, %v3296_v0  ;;  %v3291_v16 = vmul.f32 %v3227_v52, %v2779_v26  ;;  %v7874_v31 = vld [vmem:[#allocation12_spill] sm:$0xff] }
 0x995   : > { %v5313_v36 = vpop.eup %5312  ;;  %v3295_v38 = vmul.f32 %v3231_v40, %v2783_v15  ;;  %v7875_v15 = vld [vmem:[#allocation11_spill] sm:$0xff] }
 0x996   : > { %v5315_v18 = vpop.eup %5314  ;;  %3688 = vmatmul.mubr.bf16.gmra.mrb[108].mxu1 %v3332_v30  ;;  %v3235_v44 = vadd.f32 1.0, %v5313_v36 }
 0x997   : > { %v3331_v17 = vpack.c.bf16 %v3295_v38, %v3291_v16  ;;  %v3239_v54 = vadd.f32 1.0, %v5315_v18  ;;  %v5317_v50 = vpop.eup %5316 }
 0x998   : > { %v5319_v47 = vpop.eup %5318  ;;  %v3299_v11 = vmul.f32 %v3235_v44, %v2787_v41  ;;  %v3234_v29 = vadd.f32 1.0, %v5317_v50 }
 0x999   : > { %3776 = vmatprep.mubr.bf16.mxu1 %v3331_v17  ;;  %v3303_v27 = vmul.f32 %v3239_v54, %v2791_v13  ;;  %v3238_v8 = vadd.f32 1.0, %v5319_v47 }
 0x99a   : > { %v3298_v4 = vmul.f32 %v3234_v29, %v2786_v39  ;;  %v7876_v39 = vld [vmem:[#allocation13_spill] sm:$0xff] }
 0x99b   : > { %v3335_v63 = vpack.c.bf16 %v3303_v27, %v3299_v11  ;;  %v3302_v57 = vmul.f32 %v3238_v8, %v2790_v42  ;;  %v7877_v8 = vld [vmem:[#allocation14_spill] sm:$0xff] }
 0x99d   : > { %v3334_v55 = vpack.c.bf16 %v3302_v57, %v3298_v4 }
 0x99e   : > { %3777 = vmatmul.mubr.bf16.vlgmr.msra.gmra.mrb[112].mxu1 %v3330_v45 }
 0x99f   : > { %3784 = vmatprep.mubr.bf16.mxu1 %v3335_v63 }
 0x9a6   : > { %3785 = vmatmul.mubr.bf16.gmra.mrb[116].mxu1 %v3334_v55 }
 0x9f7   : > { %v4518_v34 = vpop.f32.mrb[80].mxu1 }
 0x9f8   : > { %v4519_v5 = vpop.f32.mrb[81].mxu1 }
 0x9f9   : > { %v4520_v37 = vadd.f32 %v4519_v5, %v4518_v34  ;;  %v4521_v20 = vpop.f32.mrb[82].mxu1  ;;  %v4582_v46 = vpop.f32.mrb[112].mxu0 }
 0x9fa   : > { %v4522_v6 = vpop.f32.mrb[83].mxu1  ;;  %v4583_v48 = vpop.f32.mrb[113].mxu0 }
 0x9fb   : > { %v3634_v9 = vadd.f32 %v4520_v37, %v7421_v19  ;;  %v4523_v21 = vadd.f32 %v4522_v6, %v4521_v20  ;;  %v4584_v56 = vadd.f32 %v4583_v48, %v4582_v46  ;;  %v4585_v45 = vpop.f32.mrb[114].mxu0 }
 0x9fc   : > { %v4586_v1 = vpop.f32.mrb[115].mxu0 }
 0x9fd   : > { %v3637_v60 = vadd.f32 %v4523_v21, %v7421_v19  ;;  %v3731_v59 = vadd.f32 %v4584_v56, %v3634_v9  ;;  %v4587_v14 = vadd.f32 %v4586_v1, %v4585_v45 }
 0x9ff   : > { %v3734_v28 = vadd.f32 %v4587_v14, %v3637_v60  ;;  %v7426_v51 = vadd.f32 %v3731_v59, %v7872_v62  ;;  %v7878_v59 = vld [vmem:[#allocation15_spill] sm:$0xff] }
 0xa01   : > { %v4524_v25 = vpop.f32.mrb[84].mxu1  ;;  %3811 = vadd.xlane.f32.xlu0 %v7426_v51  ;;  %v7430_v3 = vadd.f32 %v3734_v28, %v7873_v53  ;;  %v7879_v28 = vld [vmem:[#allocation16_spill] sm:$0xff] }
 0xa02   : > { %v4525_v61 = vpop.f32.mrb[85].mxu1 }
 0xa03   : > { %v4526_v12 = vadd.f32 %v4525_v61, %v4524_v25  ;;  %v4527_v23 = vpop.f32.mrb[86].mxu1  ;;  %3813 = vadd.xlane.f32.xlu1 %v7430_v3 }
 0xa04   : > { %v4588_v2 = vpop.f32.mrb[116].mxu0  ;;  %v4528_v49 = vpop.f32.mrb[87].mxu1 }
 0xa05   : > { %v4589_v7 = vpop.f32.mrb[117].mxu0  ;;  %v3642_v35 = vadd.f32 %v4526_v12, %v7421_v19  ;;  %v4529_v22 = vadd.f32 %v4528_v49, %v4527_v23 }
 0xa06   : > { %v4590_v10 = vadd.f32 %v4589_v7, %v4588_v2  ;;  %v4591_v24 = vpop.f32.mrb[118].mxu0 }
 0xa07   : > { %v4592_v32 = vpop.f32.mrb[119].mxu0  ;;  %v3645_v58 = vadd.f32 %v4529_v22, %v7421_v19 }
 0xa08   : > { %v3739_v43 = vadd.f32 %v4590_v10, %v3642_v35  ;;  %v4593_v33 = vadd.f32 %v4592_v32, %v4591_v24 }
 0xa0a   : > { %v3742_v0 = vadd.f32 %v4593_v33, %v3645_v58  ;;  %v7436_v52 = vadd.f32 %v3739_v43, %v7874_v31  ;;  %v7880_v31 = vld [vmem:[#allocation17_spill] sm:$0xff] }
 0xa0c   : > { %v4530_v26 = vpop.f32.mrb[88].mxu1  ;;  %3815 = vadd.xlane.f32.xlu0 %v7436_v52  ;;  %v7440_v40 = vadd.f32 %v3742_v0, %v7875_v15 }
 0xa0d   : > { %v4531_v30 = vpop.f32.mrb[89].mxu1 }
 0xa0e   : > { %v4532_v36 = vadd.f32 %v4531_v30, %v4530_v26  ;;  %v4533_v16 = vpop.f32.mrb[90].mxu1  ;;  %3817 = vadd.xlane.f32.xlu1 %v7440_v40 }
 0xa0f   : > { %v4534_v38 = vpop.f32.mrb[91].mxu1 }
 0xa10   : > { %v4535_v18 = vadd.f32 %v4534_v38, %v4533_v16  ;;  %v3650_v17 = vadd.f32 %v4532_v36, %v7421_v19  ;;  %v7881_v38 = vld [vmem:[#allocation18_spill] sm:$0xff] }
 0xa12   : > { %v4594_v44 = vpop.f32.mrb[120].mxu0  ;;  %v3653_v50 = vadd.f32 %v4535_v18, %v7421_v19 }
 0xa13   : > { %v4595_v41 = vpop.f32.mrb[121].mxu0 }
 0xa14   : > { %v4596_v13 = vadd.f32 %v4595_v41, %v4594_v44  ;;  %v4597_v54 = vpop.f32.mrb[122].mxu0 }
 0xa15   : > { %v4598_v47 = vpop.f32.mrb[123].mxu0 }
 0xa16   : > { %v3747_v11 = vadd.f32 %v4596_v13, %v3650_v17  ;;  %v4599_v27 = vadd.f32 %v4598_v47, %v4597_v54 }
 0xa18   : > { %v3750_v29 = vadd.f32 %v4599_v27, %v3653_v50  ;;  %v7446_v42 = vadd.f32 %v3747_v11, %v7876_v39 }
 0xa1a   : > { %3819 = vadd.xlane.f32.xlu0 %v7446_v42  ;;  %v7450_v63 = vadd.f32 %v3750_v29, %v7877_v8  ;;  %v7882_v8 = vld [vmem:[#allocation20_spill] sm:$0xff] }
 0xa1c   : > { %3821 = vadd.xlane.f32.xlu1 %v7450_v63  ;;  %v4536_v4 = vpop.f32.mrb[92].mxu1 }
 0xa1d   : > { %v4537_v57 = vpop.f32.mrb[93].mxu1 }
 0xa1e   : > { %v4538_v34 = vadd.f32 %v4537_v57, %v4536_v4  ;;  %v4539_v5 = vpop.f32.mrb[94].mxu1  ;;  %v7883_v57 = vld [vmem:[#allocation19_spill] sm:$0xff] }
 0xa1f   : > { %v4540_v20 = vpop.f32.mrb[95].mxu1 }
 0xa20   : > { %v4600_v55 = vpop.f32.mrb[124].mxu0  ;;  %v3658_v46 = vadd.f32 %v4538_v34, %v7421_v19  ;;  %v4541_v48 = vadd.f32 %v4540_v20, %v4539_v5 }
 0xa21   : > { %v4601_v37 = vpop.f32.mrb[125].mxu0 }
 0xa22   : > { %v4602_v6 = vadd.f32 %v4601_v37, %v4600_v55  ;;  %v4603_v9 = vpop.f32.mrb[126].mxu0  ;;  %v3661_v45 = vadd.f32 %v4541_v48, %v7421_v19 }
 0xa23   : > { %v4604_v21 = vpop.f32.mrb[127].mxu0 }
 0xa24   : > { %v3755_v56 = vadd.f32 %v4602_v6, %v3658_v46  ;;  %v4605_v60 = vadd.f32 %v4604_v21, %v4603_v9 }
 0xa26   : > { %v3758_v1 = vadd.f32 %v4605_v60, %v3661_v45  ;;  %v7456_v14 = vadd.f32 %v3755_v56, %v7878_v59 }
 0xa28   : > { %3823 = vadd.xlane.f32.xlu0 %v7456_v14  ;;  %v7460_v62 = vadd.f32 %v3758_v1, %v7879_v28 }
 0xa2a   : > { %3825 = vadd.xlane.f32.xlu1 %v7460_v62 }
 0xa4d   : > { %v4542_v25 = vpop.f32.mrb[96].mxu1 }
 0xa4e   : > { %v4543_v53 = vpop.f32.mrb[97].mxu1 }
 0xa4f   : > { %v4606_v61 = vpop.f32.mrb[128].mxu0  ;;  %v4544_v2 = vadd.f32 %v4543_v53, %v4542_v25  ;;  %v4545_v12 = vpop.f32.mrb[98].mxu1 }
 0xa50   : > { %v4607_v23 = vpop.f32.mrb[129].mxu0  ;;  %v4546_v7 = vpop.f32.mrb[99].mxu1 }
 0xa51   : > { %v3666_v49 = vadd.f32 %v4544_v2, %v7421_v19  ;;  %v4608_v35 = vadd.f32 %v4607_v23, %v4606_v61  ;;  %v4609_v10 = vpop.f32.mrb[130].mxu0  ;;  %v4547_v24 = vadd.f32 %v4546_v7, %v4545_v12 }
 0xa52   : > { %v4610_v22 = vpop.f32.mrb[131].mxu0 }
 0xa53   : > { %v3763_v32 = vadd.f32 %v4608_v35, %v3666_v49  ;;  %v3669_v43 = vadd.f32 %v4547_v24, %v7421_v19  ;;  %v4611_v58 = vadd.f32 %v4610_v22, %v4609_v10  ;;  %v7884_v49 = vld [vmem:[#allocation22_spill] sm:$0xff]  ;;  %v7885_v24 = vld [vmem:[#allocation21_spill] sm:$0xff] }
 0xa55   : > { %v3766_v33 = vadd.f32 %v4611_v58, %v3669_v43  ;;  %v4548_v0 = vpop.f32.mrb[100].mxu1  ;;  %v7466_v26 = vadd.f32 %v3763_v32, %v7880_v31 }
 0xa56   : > { %v4549_v15 = vpop.f32.mrb[101].mxu1 }
 0xa57   : > { %v4612_v30 = vpop.f32.mrb[132].mxu0  ;;  %v4550_v36 = vadd.f32 %v4549_v15, %v4548_v0  ;;  %v4551_v16 = vpop.f32.mrb[102].mxu1  ;;  %3827 = vadd.xlane.f32.xlu0 %v7466_v26  ;;  %v7470_v18 = vadd.f32 %v3766_v33, %v7881_v38 }
 0xa58   : > { %v4613_v44 = vpop.f32.mrb[133].mxu0  ;;  %v4552_v17 = vpop.f32.mrb[103].mxu1 }
 0xa59   : > { %v3674_v41 = vadd.f32 %v4550_v36, %v7421_v19  ;;  %v4614_v13 = vadd.f32 %v4613_v44, %v4612_v30  ;;  %v4615_v54 = vpop.f32.mrb[134].mxu0  ;;  %v4553_v50 = vadd.f32 %v4552_v17, %v4551_v16  ;;  %3829 = vadd.xlane.f32.xlu1 %v7470_v18  ;;  %v7886_v16 = vld [vmem:[#allocation27_spill] sm:$0xff]  ;;  %v7887_v44 = vld [vmem:[#allocation25_spill] sm:$0xff] }
 0xa5a   : > { %v4616_v47 = vpop.f32.mrb[135].mxu0 }
 0xa5b   : > { %v3771_v11 = vadd.f32 %v4614_v13, %v3674_v41  ;;  %v3677_v27 = vadd.f32 %v4553_v50, %v7421_v19  ;;  %v4617_v29 = vadd.f32 %v4616_v47, %v4615_v54 }
 0xa5d   : > { %v3774_v39 = vadd.f32 %v4617_v29, %v3677_v27  ;;  %v7476_v4 = vadd.f32 %v3771_v11, %v7882_v8 }
 0xa5f   : > { %3831 = vadd.xlane.f32.xlu0 %v7476_v4  ;;  %v7480_v55 = vadd.f32 %v3774_v39, %v7883_v57 }
 0xa60   : > { %v4554_v34 = vpop.f32.mrb[104].mxu1 }
 0xa61   : > { %3833 = vadd.xlane.f32.xlu1 %v7480_v55  ;;  %v4555_v5 = vpop.f32.mrb[105].mxu1 }
 0xa62   : > { %v4556_v37 = vadd.f32 %v4555_v5, %v4554_v34  ;;  %v4557_v20 = vpop.f32.mrb[106].mxu1 }
 0xa63   : > { %v4558_v46 = vpop.f32.mrb[107].mxu1 }
 0xa64   : > { %v4559_v6 = vadd.f32 %v4558_v46, %v4557_v20  ;;  %v3682_v28 = vadd.f32 %v4556_v37, %v7421_v19 }
 0xa66   : > { %v3685_v2 = vadd.f32 %v4559_v6, %v7421_v19 }
 0xa69   : > { %v4560_v9 = vpop.f32.mrb[108].mxu1 }
 0xa6a   : > { %v4561_v48 = vpop.f32.mrb[109].mxu1 }
 0xa6b   : > { %v4562_v21 = vadd.f32 %v4561_v48, %v4560_v9  ;;  %v4563_v56 = vpop.f32.mrb[110].mxu1 }
 0xa6c   : > { %v4564_v45 = vpop.f32.mrb[111].mxu1 }
 0xa6d   : > { %v4565_v60 = vadd.f32 %v4564_v45, %v4563_v56  ;;  %v3690_v43 = vadd.f32 %v4562_v21, %v7421_v19 }
 0xa6f   : > { %v3693_v31 = vadd.f32 %v4565_v60, %v7421_v19 }
 0xa71   : > { %v4618_v1 = vpop.f32.mrb[112].mxu1 }
 0xa72   : > { %v4619_v59 = vpop.f32.mrb[113].mxu1 }
 0xa73   : > { %v4620_v25 = vadd.f32 %v4619_v59, %v4618_v1  ;;  %v4621_v53 = vpop.f32.mrb[114].mxu1 }
 0xa74   : > { %v4622_v61 = vpop.f32.mrb[115].mxu1 }
 0xa75   : > { %v3779_v12 = vadd.f32 %v4620_v25, %v3682_v28  ;;  %v4623_v23 = vadd.f32 %v4622_v61, %v4621_v53 }
 0xa77   : > { %v3782_v7 = vadd.f32 %v4623_v23, %v3685_v2  ;;  %v7486_v35 = vadd.f32 %v3779_v12, %v7884_v49 }
 0xa79   : > { %v4624_v10 = vpop.f32.mrb[116].mxu1  ;;  %3835 = vadd.xlane.f32.xlu0 %v7486_v35  ;;  %v7490_v22 = vadd.f32 %v3782_v7, %v7885_v24 }
 0xa7a   : > { %v4625_v32 = vpop.f32.mrb[117].mxu1 }
 0xa7b   : > { %v4626_v58 = vadd.f32 %v4625_v32, %v4624_v10  ;;  %v4627_v33 = vpop.f32.mrb[118].mxu1  ;;  %3837 = vadd.xlane.f32.xlu1 %v7490_v22 }
 0xa7c   : > { %v4628_v0 = vpop.f32.mrb[119].mxu1 }
 0xa7d   : > { %v3787_v15 = vadd.f32 %v4626_v58, %v3690_v43  ;;  %v4629_v30 = vadd.f32 %v4628_v0, %v4627_v33 }
 0xa7f   : > { %v3790_v36 = vadd.f32 %v4629_v30, %v3693_v31  ;;  %v7496_v38 = vadd.f32 %v3787_v15, %v7886_v16 }
 0xa81   : > { %3839 = vadd.xlane.f32.xlu0 %v7496_v38  ;;  %v7500_v17 = vadd.f32 %v3790_v36, %v7887_v44 }
 0xa83   : > { %3841 = vadd.xlane.f32.xlu1 %v7500_v17 }
 0xa8e   : > { %v3812_v41 = vpop.xlane.xlu0 %3811 }
 0xa8f   : > { %v3843_v13 = vmul.f32 0.0078125, %v3812_v41 }
 0xa90   : > { %v3814_v54 = vpop.xlane.xlu1 %3813 }
 0xa91   : > { %v7504_v50 = vsub.f32 %v7426_v51, %v3843_v13  ;;  %v3844_v19 = vmul.f32 0.0078125, %v3814_v54 }
 0xa93   : > { %v7507_v47 = vsub.f32 %v7430_v3, %v3844_v19  ;;  %v3875_v11 = vmul.f32 %v7504_v50, %v7504_v50 }
 0xa95   : > { %3891 = vadd.xlane.f32.xlu0 %v3875_v11  ;;  %v3876_v27 = vmul.f32 %v7507_v47, %v7507_v47 }
 0xa97   : > { %3893 = vadd.xlane.f32.xlu1 %v3876_v27 }
 0xa99   : > { %v3816_v29 = vpop.xlane.xlu0 %3815 }
 0xa9a   : > { %v3845_v39 = vmul.f32 0.0078125, %v3816_v29 }
 0xa9b   : > { %v3818_v8 = vpop.xlane.xlu1 %3817 }
 0xa9c   : > { %v7514_v57 = vsub.f32 %v7436_v52, %v3845_v39  ;;  %v3846_v51 = vmul.f32 0.0078125, %v3818_v8 }
 0xa9e   : > { %v7517_v34 = vsub.f32 %v7440_v40, %v3846_v51  ;;  %v3877_v3 = vmul.f32 %v7514_v57, %v7514_v57 }
 0xaa0   : > { %3895 = vadd.xlane.f32.xlu0 %v3877_v3  ;;  %v3878_v5 = vmul.f32 %v7517_v34, %v7517_v34 }
 0xaa2   : > { %3897 = vadd.xlane.f32.xlu1 %v3878_v5 }
 0xaa7   : > { %v3820_v37 = vpop.xlane.xlu0 %3819 }
 0xaa8   : > { %v3847_v20 = vmul.f32 0.0078125, %v3820_v37  ;;  %v7586_v37 = vld [vmem:[%s7719_s11] ss:$0 sm:$0xff] }
 0xaa9   : > { %v3822_v46 = vpop.xlane.xlu1 %3821 }
 0xaaa   : > { %v7524_v6 = vsub.f32 %v7446_v42, %v3847_v20  ;;  %v3848_v52 = vmul.f32 0.0078125, %v3822_v46 }
 0xaac   : > { %v7527_v9 = vsub.f32 %v7450_v63, %v3848_v52  ;;  %v3879_v40 = vmul.f32 %v7524_v6, %v7524_v6 }
 0xaae   : > { %3899 = vadd.xlane.f32.xlu0 %v3879_v40  ;;  %v3880_v48 = vmul.f32 %v7527_v9, %v7527_v9 }
 0xab0   : > { %3901 = vadd.xlane.f32.xlu1 %v3880_v48 }
 0xab5   : > { %v3824_v21 = vpop.xlane.xlu0 %3823 }
 0xab6   : > { %v3849_v56 = vmul.f32 0.0078125, %v3824_v21  ;;  %v7595_v21 = vld [vmem:[%s7720_s12] ss:$0 sm:$0xff] }
 0xab7   : > { %v3826_v45 = vpop.xlane.xlu1 %3825 }
 0xab8   : > { %v7534_v60 = vsub.f32 %v7456_v14, %v3849_v56  ;;  %v3850_v42 = vmul.f32 0.0078125, %v3826_v45 }
 0xaba   : > { %v7537_v1 = vsub.f32 %v7460_v62, %v3850_v42  ;;  %v3881_v63 = vmul.f32 %v7534_v60, %v7534_v60 }
 0xabc   : > { %3903 = vadd.xlane.f32.xlu0 %v3881_v63  ;;  %v3882_v59 = vmul.f32 %v7537_v1, %v7537_v1 }
 0xabe   : > { %3905 = vadd.xlane.f32.xlu1 %v3882_v59 }
 0xae4   : > { %v3828_v28 = vpop.xlane.xlu0 %3827 }
 0xae5   : > { %v3851_v25 = vmul.f32 0.0078125, %v3828_v28 }
 0xae6   : > { %v3830_v53 = vpop.xlane.xlu1 %3829 }
 0xae7   : > { %v7544_v61 = vsub.f32 %v7466_v26, %v3851_v25  ;;  %v3852_v14 = vmul.f32 0.0078125, %v3830_v53 }
 0xae9   : > { %v7547_v2 = vsub.f32 %v7470_v18, %v3852_v14  ;;  %v3883_v62 = vmul.f32 %v7544_v61, %v7544_v61 }
 0xaeb   : > { %3907 = vadd.xlane.f32.xlu0 %v3883_v62  ;;  %v3884_v12 = vmul.f32 %v7547_v2, %v7547_v2 }
 0xaec   : > { %v3832_v23 = vpop.xlane.xlu0 %3831 }
 0xaed   : > { %v3853_v7 = vmul.f32 0.0078125, %v3832_v23  ;;  %3909 = vadd.xlane.f32.xlu1 %v3884_v12 }
 0xaee   : > { %v3834_v49 = vpop.xlane.xlu1 %3833 }
 0xaef   : > { %v7554_v10 = vsub.f32 %v7476_v4, %v3853_v7  ;;  %v3854_v26 = vmul.f32 0.0078125, %v3834_v49 }
 0xaf1   : > { %v7557_v24 = vsub.f32 %v7480_v55, %v3854_v26  ;;  %v3885_v18 = vmul.f32 %v7554_v10, %v7554_v10 }
 0xaf3   : > { %3911 = vadd.xlane.f32.xlu0 %v3885_v18  ;;  %v3886_v32 = vmul.f32 %v7557_v24, %v7557_v24 }
 0xaf5   : > { %3913 = vadd.xlane.f32.xlu1 %v3886_v32 }
 0xb06   : > { %v3836_v43 = vpop.xlane.xlu0 %3835 }
 0xb07   : > { %v3855_v58 = vmul.f32 0.0078125, %v3836_v43 }
 0xb08   : > { %v3838_v33 = vpop.xlane.xlu1 %3837 }
 0xb09   : > { %v7564_v0 = vsub.f32 %v7486_v35, %v3855_v58  ;;  %v3856_v4 = vmul.f32 0.0078125, %v3838_v33 }
 0xb0b   : > { %v7567_v31 = vsub.f32 %v7490_v22, %v3856_v4  ;;  %v3887_v55 = vmul.f32 %v7564_v0, %v7564_v0 }
 0xb0d   : > { %3915 = vadd.xlane.f32.xlu0 %v3887_v55  ;;  %v3888_v15 = vmul.f32 %v7567_v31, %v7567_v31 }
 0xb0e   : > { %v3840_v30 = vpop.xlane.xlu0 %3839 }
 0xb0f   : > { %v3857_v36 = vmul.f32 0.0078125, %v3840_v30  ;;  %3917 = vadd.xlane.f32.xlu1 %v3888_v15 }
 0xb10   : > { %v3842_v16 = vpop.xlane.xlu1 %3841 }
 0xb11   : > { %v7574_v44 = vsub.f32 %v7496_v38, %v3857_v36  ;;  %v3858_v35 = vmul.f32 0.0078125, %v3842_v16 }
 0xb13   : > { %v7577_v41 = vsub.f32 %v7500_v17, %v3858_v35  ;;  %v3889_v22 = vmul.f32 %v7574_v44, %v7574_v44 }
 0xb15   : > { %3919 = vadd.xlane.f32.xlu0 %v3889_v22  ;;  %v3890_v13 = vmul.f32 %v7577_v41, %v7577_v41 }
 0xb17   : > { %3921 = vadd.xlane.f32.xlu1 %v3890_v13 }
 0xb22   : > { %v3892_v54 = vpop.xlane.xlu0 %3891 }
 0xb23   : > { %v3923_v19 = vmul.f32 0.0078125, %v3892_v54 }
 0xb24   : > { %v3894_v11 = vpop.xlane.xlu1 %3893 }
 0xb25   : > { %v3939_v27 = vadd.f32 1e-12, %v3923_v19  ;;  %v3924_v29 = vmul.f32 0.0078125, %v3894_v11 }
 0xb27   : > { %5320 = vrsqrt.f32 %v3939_v27  ;;  %v3940_v38 = vadd.f32 1e-12, %v3924_v29 }
 0xb29   : > { %5322 = vrsqrt.f32 %v3940_v38 }
 0xb2d   : > { %v3896_v39 = vpop.xlane.xlu0 %3895 }
 0xb2e   : > { %v3925_v17 = vmul.f32 0.0078125, %v3896_v39 }
 0xb2f   : > { %v3898_v8 = vpop.xlane.xlu1 %3897 }
 0xb30   : > { %v3941_v51 = vadd.f32 1e-12, %v3925_v17  ;;  %v3926_v3 = vmul.f32 0.0078125, %v3898_v8 }
 0xb31   : > { %v5321_v5 = vpop.eup %5320 }
 0xb32   : > { %5324 = vrsqrt.f32 %v3941_v51  ;;  %v3942_v20 = vadd.f32 1e-12, %v3926_v3  ;;  %v3971_v46 = vmul.f32 %v5321_v5, %v7504_v50 }
 0xb33   : > { %v5323_v52 = vpop.eup %5322 }
 0xb34   : > { %5326 = vrsqrt.f32 %v3942_v20  ;;  %v3993_v40 = vmul.f32 %v7586_v37, %v3971_v46  ;;  %v3972_v48 = vmul.f32 %v5323_v52, %v7507_v47 }
 0xb36   : > { %v3994_v56 = vmul.f32 %v7586_v37, %v3972_v48  ;;  %v4015_v45 = vadd.f32 %v7595_v21, %v3993_v40 }
 0xb38   : > { %v4016_v50 = vadd.f32 %v7595_v21, %v3994_v56 }
 0xb3a   : > { %v4362_v63 = vpack.c.bf16 %v4016_v50, %v4015_v45 }
 0xb3b   : > { %v3900_v42 = vpop.xlane.xlu0 %3899 }
 0xb3c   : > { %v3927_v59 = vmul.f32 0.0078125, %v3900_v42  ;;  %v5325_v28 = vpop.eup %5324  ;;  %4363 = vst [vmem:[%s7602_s22] sm:$0xff] %v4362_v63  }
 0xb3d   : > { %v3902_v25 = vpop.xlane.xlu1 %3901  ;;  %v3973_v47 = vmul.f32 %v5325_v28, %v7514_v57 }
 0xb3e   : > { %v3943_v53 = vadd.f32 1e-12, %v3927_v59  ;;  %v3928_v14 = vmul.f32 0.0078125, %v3902_v25  ;;  %v5327_v62 = vpop.eup %5326 }
 0xb3f   : > { %v3995_v12 = vmul.f32 %v7586_v37, %v3973_v47  ;;  %v3974_v23 = vmul.f32 %v5327_v62, %v7517_v34 }
 0xb40   : > { %5328 = vrsqrt.f32 %v3943_v53  ;;  %v3944_v7 = vadd.f32 1e-12, %v3928_v14 }
 0xb41   : > { %v3996_v49 = vmul.f32 %v7586_v37, %v3974_v23  ;;  %v4017_v26 = vadd.f32 %v7595_v21, %v3995_v12 }
 0xb42   : > { %5330 = vrsqrt.f32 %v3944_v7 }
 0xb43   : > { %v4018_v18 = vadd.f32 %v7595_v21, %v3996_v49 }
 0xb45   : > { %v4367_v32 = vpack.c.bf16 %v4018_v18, %v4017_v26 }
 0xb47   : > { %4399 = vst [vmem:[%s7602_s22 + $0x8] sm:$0xff] %v4367_v32  }
 0xb49   : > { %v3904_v43 = vpop.xlane.xlu0 %3903 }
 0xb4a   : > { %v5329_v57 = vpop.eup %5328  ;;  %v3929_v58 = vmul.f32 0.0078125, %v3904_v43 }
 0xb4b   : > { %v3975_v33 = vmul.f32 %v5329_v57, %v7524_v6  ;;  %v3906_v4 = vpop.xlane.xlu1 %3905 }
 0xb4c   : > { %v5331_v55 = vpop.eup %5330  ;;  %v3945_v34 = vadd.f32 1e-12, %v3929_v58  ;;  %v3930_v15 = vmul.f32 0.0078125, %v3906_v4 }
 0xb4d   : > { %v3997_v30 = vmul.f32 %v7586_v37, %v3975_v33  ;;  %v3976_v36 = vmul.f32 %v5331_v55, %v7527_v9 }
 0xb4e   : > { %5332 = vrsqrt.f32 %v3945_v34  ;;  %v3946_v16 = vadd.f32 1e-12, %v3930_v15 }
 0xb4f   : > { %v3998_v35 = vmul.f32 %v7586_v37, %v3976_v36  ;;  %v4019_v22 = vadd.f32 %v7595_v21, %v3997_v30 }
 0xb50   : > { %5334 = vrsqrt.f32 %v3946_v16 }
 0xb51   : > { %v4020_v13 = vadd.f32 %v7595_v21, %v3998_v35 }
 0xb53   : > { %v4372_v54 = vpack.c.bf16 %v4020_v13, %v4019_v22 }
 0xb55   : > { %4400 = vst [vmem:[%s7602_s22 + $0x10] sm:$0xff] %v4372_v54  }
 0xb58   : > { %v5333_v6 = vpop.eup %5332 }
 0xb59   : > { %v3977_v19 = vmul.f32 %v5333_v6, %v7534_v60 }
 0xb5a   : > { %v5335_v11 = vpop.eup %5334 }
 0xb5b   : > { %v3999_v27 = vmul.f32 %v7586_v37, %v3977_v19  ;;  %v3978_v9 = vmul.f32 %v5335_v11, %v7537_v1 }
 0xb5d   : > { %v4000_v29 = vmul.f32 %v7586_v37, %v3978_v9  ;;  %v4021_v38 = vadd.f32 %v7595_v21, %v3999_v27 }
 0xb5f   : > { %v4022_v39 = vadd.f32 %v7595_v21, %v4000_v29 }
 0xb61   : > { %v4377_v17 = vpack.c.bf16 %v4022_v39, %v4021_v38 }
 0xb63   : > { %4401 = vst [vmem:[%s7602_s22 + $0x18] sm:$0xff] %v4377_v17  }
 0xb78   : > { %v3908_v8 = vpop.xlane.xlu0 %3907 }
 0xb79   : > { %v3931_v51 = vmul.f32 0.0078125, %v3908_v8 }
 0xb7a   : > { %v3910_v3 = vpop.xlane.xlu1 %3909 }
 0xb7b   : > { %v3947_v5 = vadd.f32 1e-12, %v3931_v51  ;;  %v3932_v20 = vmul.f32 0.0078125, %v3910_v3 }
 0xb7d   : > { %5336 = vrsqrt.f32 %v3947_v5  ;;  %v3948_v60 = vadd.f32 1e-12, %v3932_v20 }
 0xb7f   : > { %5338 = vrsqrt.f32 %v3948_v60 }
 0xb80   : > { %v3912_v46 = vpop.xlane.xlu0 %3911 }
 0xb81   : > { %v3933_v52 = vmul.f32 0.0078125, %v3912_v46 }
 0xb82   : > { %v3914_v40 = vpop.xlane.xlu1 %3913 }
 0xb83   : > { %v3949_v1 = vadd.f32 1e-12, %v3933_v52  ;;  %v3934_v48 = vmul.f32 0.0078125, %v3914_v40 }
 0xb85   : > { %5340 = vrsqrt.f32 %v3949_v1  ;;  %v3950_v56 = vadd.f32 1e-12, %v3934_v48 }
 0xb87   : > { %v5337_v45 = vpop.eup %5336  ;;  %5342 = vrsqrt.f32 %v3950_v56 }
 0xb88   : > { %v3979_v50 = vmul.f32 %v5337_v45, %v7544_v61 }
 0xb89   : > { %v5339_v42 = vpop.eup %5338 }
 0xb8a   : > { %v4001_v63 = vmul.f32 %v7586_v37, %v3979_v50  ;;  %v3980_v59 = vmul.f32 %v5339_v42, %v7547_v2 }
 0xb8c   : > { %v4002_v28 = vmul.f32 %v7586_v37, %v3980_v59  ;;  %v4023_v25 = vadd.f32 %v7595_v21, %v4001_v63 }
 0xb8e   : > { %v4024_v47 = vadd.f32 %v7595_v21, %v4002_v28 }
 0xb8f   : > { %v5341_v53 = vpop.eup %5340 }
 0xb90   : > { %v4382_v14 = vpack.c.bf16 %v4024_v47, %v4023_v25  ;;  %v3981_v62 = vmul.f32 %v5341_v53, %v7554_v10 }
 0xb91   : > { %v5343_v12 = vpop.eup %5342 }
 0xb92   : > { %4402 = vst [vmem:[%s7602_s22 + $0x20] sm:$0xff] %v4382_v14   ;;  %v4003_v61 = vmul.f32 %v7586_v37, %v3981_v62  ;;  %v3982_v23 = vmul.f32 %v5343_v12, %v7557_v24 }
 0xb94   : > { %v4004_v7 = vmul.f32 %v7586_v37, %v3982_v23  ;;  %v4025_v2 = vadd.f32 %v7595_v21, %v4003_v61 }
 0xb96   : > { %v4026_v49 = vadd.f32 %v7595_v21, %v4004_v7 }
 0xb98   : > { %v4387_v26 = vpack.c.bf16 %v4026_v49, %v4025_v2 }
 0xb9a   : > { %4403 = vst [vmem:[%s7602_s22 + $0x28] sm:$0xff] %v4387_v26   ;;  %v3916_v18 = vpop.xlane.xlu0 %3915 }
 0xb9b   : > { %v3935_v32 = vmul.f32 0.0078125, %v3916_v18 }
 0xb9c   : > { %v3918_v43 = vpop.xlane.xlu1 %3917 }
 0xb9d   : > { %v3951_v57 = vadd.f32 1e-12, %v3935_v32  ;;  %v3936_v58 = vmul.f32 0.0078125, %v3918_v43 }
 0xb9f   : > { %5344 = vrsqrt.f32 %v3951_v57  ;;  %v3952_v10 = vadd.f32 1e-12, %v3936_v58 }
 0xba1   : > { %5346 = vrsqrt.f32 %v3952_v10 }
 0xba2   : > { %v3920_v33 = vpop.xlane.xlu0 %3919 }
 0xba3   : > { %v3937_v4 = vmul.f32 0.0078125, %v3920_v33 }
 0xba4   : > { %v3922_v55 = vpop.xlane.xlu1 %3921 }
 0xba5   : > { %v3953_v24 = vadd.f32 1e-12, %v3937_v4  ;;  %v3938_v34 = vmul.f32 0.0078125, %v3922_v55 }
 0xba7   : > { %5348 = vrsqrt.f32 %v3953_v24  ;;  %v3954_v15 = vadd.f32 1e-12, %v3938_v34 }
 0xba9   : > { %v5345_v30 = vpop.eup %5344  ;;  %5350 = vrsqrt.f32 %v3954_v15 }
 0xbaa   : > { %v3983_v36 = vmul.f32 %v5345_v30, %v7564_v0 }
 0xbab   : > { %v5347_v16 = vpop.eup %5346 }
 0xbac   : > { %v4005_v35 = vmul.f32 %v7586_v37, %v3983_v36  ;;  %v3984_v22 = vmul.f32 %v5347_v16, %v7567_v31 }
 0xbae   : > { %v4006_v13 = vmul.f32 %v7586_v37, %v3984_v22  ;;  %v4027_v54 = vadd.f32 %v7595_v21, %v4005_v35 }
 0xbb0   : > { %v4028_v6 = vadd.f32 %v7595_v21, %v4006_v13 }
 0xbb1   : > { %v5349_v19 = vpop.eup %5348 }
 0xbb2   : > { %v4392_v11 = vpack.c.bf16 %v4028_v6, %v4027_v54  ;;  %v3985_v27 = vmul.f32 %v5349_v19, %v7574_v44 }
 0xbb3   : > { %v5351_v9 = vpop.eup %5350 }
 0xbb4   : > { %4404 = vst [vmem:[%s7602_s22 + $0x30] sm:$0xff] %v4392_v11   ;;  %v4007_v0 = vmul.f32 %v7586_v37, %v3985_v27  ;;  %v3986_v29 = vmul.f32 %v5351_v9, %v7577_v41 }
 0xbb6   : > { %v4008_v31 = vmul.f32 %v7586_v37, %v3986_v29  ;;  %v4029_v38 = vadd.f32 %v7595_v21, %v4007_v0 }
 0xbb8   : > { %v4030_v39 = vadd.f32 %v7595_v21, %v4008_v31 }
 0xbba   : > { %v4397_v44 = vpack.c.bf16 %v4030_v39, %v4029_v38 }
 0xbbc   : > { %4405 = vst [vmem:[%s7602_s22 + $0x38] sm:$0xff] %v4397_v44  }
 0xbbd   : > { %5373 = shalt.err (!%p5370_p3)
}
 0xbbe   : > { %s5374_s15 = scalar_lea.hbm %s7658_s17, 1024  ;;  %s5378_s16 = scalar_lea.hbm %s7721_s13, 2048 }
 0xbbf   : > { %p5375_p4 = scmp.ne.s32.totalorder %s7658_s17, %s5374_s15  ;;  %p5379_p9 = scmp.lt.u32.totalorder %s7658_s17, %s7721_s13 }
 0xbc0   : > { %p5380_p10 = scmp.lt.u32.totalorder %s5378_s16, %s5374_s15  ;;  %p5382_p12 = scmp.lt.u32.totalorder %s5374_s15, %s7658_s17 }
 0xbc1   : > { %p5376_p7 = pnand %p5375_p4, %p5536_p5 }
 0xbc2   : > { %p5381_p11 = por %p5380_p10, %p5379_p9 }
 0xbc3   : > { %p5377_p8 = pneg %p5376_p7 }
 0xbc4   : > { %p5383_p13 = por %p5382_p12, %p5381_p11 }
 0xbc6   : > { %p5384_p0 = pnand %p5383_p13, %p5377_p8 }
 0xbc8   : > { %5387 = shalt.err (!%p5384_p0)
}
 0xbc9   : > { %s5427_s29 = smov 4   ;;  %s7888_s21 = smov 64  }
 0xbca   : > { %4854 = dma.vmem_to_hbm [thread:$0]  (%p5536_p5), %s7660_s24, 1024, %s7658_s17, %s7665_s23, %s7888_s21, %s7888_s21, %s5427_s29  }
 0xbcb PF: > { %p4860_p1 = scmp.ge.s32.totalorder %s5422_s28, 2  ;;  %s4140_s14 = sand.u32 1, %s5410_s25  }
 0xbcc   : > { %s4141_s15 = scalar_lea.sflag [#allocation4], %s4140_s14 }
 0xbcd   : > { %p4857_p2 = pnand %p4860_p1, %p5540_p6 }
 0xbcf   : > { %5405 = dma.done.wait (!%p4857_p2), %s4141_s15, 1024  }
 0xbd0   : > { %5407 = vsyncadd (!%p4857_p2), %s4141_s15, 4294966272  ;;  %s7889_s28 = sld [smem:[#allocation7_spill]]  ;;  %s7890_s18 = sld [smem:[#allocation6_spill]] }
 0xbd1   : > { %s7891_s27 = sld [smem:[#allocation8_spill]]  ;;  %s7892_s25 = smov %s5414_s26 }
 0xbd6   : > { %p23_p3 = scmp.ge.s32.totalorder %s7889_s28, 4   ;;  %s7893_s26 = smov %s7890_s18 }
 0xbd8   :  { %25 = sbr.rel (!%p23_p3) target bundleno = 3 (0x3), region = 107 }
 0xbdf   :  { %4146 = vsyncpa [#allocation4], 1 }
 0xbe0   :  { %4148 = vsyncpa [#allocation4 + $0x1], 1 }

// kernel: _lambda_.2
= control target key start
LH: loop header
LB: loop body
LE: loop exit
PB: predicated region body
PF: predicated region fallthrough
CT: control target
= control target key end

     0   :  { %s5620_s18 = smov 0   ;;  %s7935_s0 = inlined_call_operand.vmem [shape: f32[2,128,128], index: 0, kind: input, shape index: {}]   ;;  %s7936_s1 = inlined_call_operand.vmem [shape: bf16[128,384], index: 1, kind: input, shape index: {}]   ;;  %s7937_s2 = inlined_call_operand.vmem [shape: f32[1,384], index: 2, kind: input, shape index: {}]   ;;  %s7938_s3 = inlined_call_operand.vmem [shape: bf16[128,128], index: 3, kind: input, shape index: {}]   ;;  %s7939_s4 = inlined_call_operand.vmem [shape: f32[1,128], index: 4, kind: input, shape index: {}]   ;;  %s7940_s5 = inlined_call_operand.vmem [shape: f32[1,128], index: 5, kind: input, shape index: {}]   ;;  %s7941_s6 = inlined_call_operand.vmem [shape: f32[1,128], index: 6, kind: input, shape index: {}]   ;;  %s7942_s7 = inlined_call_operand.vmem [shape: bf16[128,512], index: 7, kind: input, shape index: {}]   ;;  %s7943_s8 = inlined_call_operand.vmem [shape: f32[1,512], index: 8, kind: input, shape index: {}]   ;;  %s7944_s9 = inlined_call_operand.vmem [shape: bf16[512,128], index: 9, kind: input, shape index: {}]   ;;  %s7945_s10 = inlined_call_operand.vmem [shape: f32[1,128], index: 10, kind: input, shape index: {}]   ;;  %s7946_s11 = inlined_call_operand.vmem [shape: f32[1,128], index: 11, kind: input, shape index: {}]   ;;  %s7947_s12 = inlined_call_operand.vmem [shape: f32[1,128], index: 12, kind: input, shape index: {}]   ;;  %s7948_s13 = inlined_call_operand.vmem [shape: f32[1,128], index: 13, kind: input, shape index: {}]   ;;  %s7949_s14 = inlined_call_operand.vmem [shape: f32[1,128], index: 14, kind: input, shape index: {}]   ;;  %s7950_s15 = inlined_call_operand.vmem [shape: bf16[2,128,128], index: 15, kind: output, shape index: {}]  }
   0x1 LB: > { %s4388_s19 = sadd.s32 4294967295, %s5536_s18   ;;  %p4392_p0 = scmp.ge.s32.totalorder %s5536_s18, 1  ;;  %s5536_s18 = sphi %s5620_s18, %s25_s18  }
   0x2   : > { %p437_p1 = scmp.lt.s32.totalorder %s5536_s18, 3 }
   0x4   : > { %p438_p2 = pnand %p4392_p0, %p437_p1 }
   0x6   : > { %441 = sbr.rel (%p438_p2) target bundleno = 3287 (0xcd7), region = 80 }
   0xd   : > { %p485_p3 = scmp.lt.s32.totalorder %s4388_s19, 1  ;;  %v5058_v16 = vld [vmem:[%s7936_s1 + $0x4] ss:$12 sps:$4 sm:$0xff]   ;;  %v5060_v17 = vld [vmem:[%s7936_s1] ss:$12 sps:$4 sm:$0xff]   ;;  %vm1154_vm0 = vcmask 523264  }
   0xe   : > { %v5061_v18 = vld [vmem:[%s7936_s1 + $0x1c] ss:$12 sps:$4 sm:$0xff]   ;;  %920 = vmatprep.subr.bf16.mxu0 %v5058_v16  ;;  %v5064_v58 = vld [vmem:[%s7936_s1 + $0x18] ss:$12 sps:$4 sm:$0xff]   ;;  %s5539_s26 = smov 64   ;;  %vm2079_vm1 = vcmask 1048064  }
   0xf   : > { %s8137_s19 = smov (!%p485_p3, %s4388_s19), 1  ;;  %v5063_v19 = vld [vmem:[%s7936_s1 + $0x8] ss:$12 sps:$4 sm:$0xff]   ;;  %921 = vmatpush1.bf16.msra.mxu0 %v5060_v17 }
  0x10   : > { %s4535_s20 = sshll.u32 %s8137_s19, 7  ;;  %4824 = vmatprep.subr.bf16.mxu1 %v5063_v19  ;;  %922 = vmatprep.subr.bf16.mxu0 %v5061_v18  ;;  %v5069_v18 = vld [vmem:[%s7936_s1 + $0x4c] ss:$12 sps:$4 sm:$0xff]   ;;  %s4536_s30 = sshll.u32 %s8137_s19, 6 }
  0x11   : > { %s489_s23 = scalar_lea.vmem %s7935_s0, %s4535_s20  ;;  %4825 = vmatpush3.bf16.msra.mxu1 %v5063_v19  ;;  %v5071_v19 = vld [vmem:[%s7936_s1 + $0x38] ss:$12 sps:$4 sm:$0xff]   ;;  %s7880_s17 = scalar_lea.vmem %s7950_s15, %s4536_s30 }
  0x12   : > { %v496_v0 = vld [vmem:[%s489_s23] sm:$0xff]  ;;  %v498_v1 = vld [vmem:[%s489_s23 + $0x10] sm:$0xff]  ;;  %v497_v2 = vld [vmem:[%s489_s23 + $0x8] sm:$0xff] }
  0x13   : > { %514 = vadd.xlane.f32.xlu0 %v496_v0  ;;  %518 = vadd.xlane.f32.xlu1 %v498_v1  ;;  %v499_v3 = vld [vmem:[%s489_s23 + $0x18] sm:$0xff]  ;;  %v500_v4 = vld [vmem:[%s489_s23 + $0x20] sm:$0xff]  ;;  %v501_v5 = vld [vmem:[%s489_s23 + $0x28] sm:$0xff] }
  0x14   : > { %v5634_v6 = vld [vmem:[%s489_s23 + $0x30] sm:$0xff]  ;;  %v5636_v7 = vld [vmem:[%s489_s23 + $0x38] sm:$0xff]  ;;  %v5638_v8 = vld [vmem:[%s489_s23 + $0x40] sm:$0xff]  ;;  %923 = vmatpush1.bf16.msra.mxu0 %v5064_v58 }
  0x15   : > { %v5640_v9 = vld [vmem:[%s489_s23 + $0x48] sm:$0xff]  ;;  %v5644_v10 = vld [vmem:[%s489_s23 + $0x50] sm:$0xff]  ;;  %v5646_v11 = vld [vmem:[%s489_s23 + $0x58] sm:$0xff] }
  0x16   : > { %v5650_v12 = vld [vmem:[%s489_s23 + $0x60] sm:$0xff]  ;;  %v5652_v13 = vld [vmem:[%s489_s23 + $0x68] sm:$0xff]  ;;  %v5656_v14 = vld [vmem:[%s489_s23 + $0x70] sm:$0xff] }
  0x17   : > { %516 = vadd.xlane.f32.xlu0 %v497_v2  ;;  %520 = vadd.xlane.f32.xlu1 %v499_v3  ;;  %v5658_v15 = vld [vmem:[%s489_s23 + $0x78] sm:$0xff] }
  0x1b   : > { %522 = vadd.xlane.f32.xlu0 %v500_v4  ;;  %524 = vadd.xlane.f32.xlu1 %v501_v5 }
  0x1f   : > { %526 = vadd.xlane.f32.xlu0 %v5634_v6  ;;  %528 = vadd.xlane.f32.xlu1 %v5636_v7 }
  0x23   : > { %530 = vadd.xlane.f32.xlu0 %v5638_v8  ;;  %532 = vadd.xlane.f32.xlu1 %v5640_v9 }
  0x27   : > { %534 = vadd.xlane.f32.xlu0 %v5644_v10  ;;  %536 = vadd.xlane.f32.xlu1 %v5646_v11 }
  0x2b   : > { %538 = vadd.xlane.f32.xlu0 %v5650_v12  ;;  %540 = vadd.xlane.f32.xlu1 %v5652_v13 }
  0x2f   : > { %542 = vadd.xlane.f32.xlu0 %v5656_v14  ;;  %544 = vadd.xlane.f32.xlu1 %v5658_v15 }
  0xa0   : > { %v515_v20 = vpop.xlane.xlu0 %514  ;;  %v519_v21 = vpop.xlane.xlu1 %518 }
  0xa1   : > { %v547_v22 = vmul.f32 0.0078125, %v515_v20  ;;  %v549_v23 = vmul.f32 0.0078125, %v519_v21 }
  0xa3   : > { %v5676_v24 = vsub.f32 %v496_v0, %v547_v22  ;;  %v5678_v25 = vsub.f32 %v498_v1, %v549_v23  ;;  %v5065_v0 = vld [vmem:[%s7936_s1 + $0x34] ss:$12 sps:$4 sm:$0xff]  }
  0xa4   : > { %v517_v26 = vpop.xlane.xlu0 %516  ;;  %v521_v27 = vpop.xlane.xlu1 %520  ;;  %v5067_v1 = vld [vmem:[%s7936_s1 + $0x20] ss:$12 sps:$4 sm:$0xff]   ;;  %924 = vmatprep.subr.bf16.mxu0 %v5065_v0  ;;  %v5072_v22 = vld [vmem:[%s7936_s1 + $0x48] ss:$12 sps:$4 sm:$0xff]  }
  0xa5   : > { %v548_v28 = vmul.f32 0.0078125, %v517_v26  ;;  %v579_v29 = vmul.f32 %v5676_v24, %v5676_v24  ;;  %v550_v30 = vmul.f32 0.0078125, %v521_v27  ;;  %v581_v31 = vmul.f32 %v5678_v25, %v5678_v25  ;;  %4826 = vmatprep.subr.bf16.mxu1 %v5067_v1 }
  0xa6   : > { %4827 = vmatpush3.bf16.msra.mxu1 %v5067_v1 }
  0xa7   : > { %595 = vadd.xlane.f32.xlu0 %v579_v29  ;;  %v5684_v32 = vsub.f32 %v497_v2, %v548_v28  ;;  %v5686_v33 = vsub.f32 %v499_v3, %v550_v30  ;;  %4828 = vmatprep.subr.bf16.mxu1 %v5071_v19  ;;  %v5073_v29 = vld [vmem:[%s7936_s1 + $0x64] ss:$12 sps:$4 sm:$0xff]  }
  0xa8   : > { %v523_v34 = vpop.xlane.xlu0 %522  ;;  %v525_v35 = vpop.xlane.xlu1 %524  ;;  %v5075_v30 = vld [vmem:[%s7936_s1 + $0x50] ss:$12 sps:$4 sm:$0xff]  }
  0xa9   : > { %v551_v36 = vmul.f32 0.0078125, %v523_v34  ;;  %v580_v37 = vmul.f32 %v5684_v32, %v5684_v32  ;;  %v552_v38 = vmul.f32 0.0078125, %v525_v35  ;;  %v582_v39 = vmul.f32 %v5686_v33, %v5686_v33  ;;  %v5079_v35 = vld [vmem:[%s7936_s1 + $0x68] ss:$12 sps:$4 sm:$0xff]  }
  0xaa   : > { %4829 = vmatpush3.bf16.msra.mxu1 %v5071_v19 }
  0xab   : > { %599 = vadd.xlane.f32.xlu0 %v581_v31  ;;  %597 = vadd.xlane.f32.xlu1 %v580_v37  ;;  %v5692_v40 = vsub.f32 %v500_v4, %v551_v36  ;;  %v5694_v41 = vsub.f32 %v501_v5, %v552_v38  ;;  %v5076_v31 = vld [vmem:[%s7936_s1 + $0x60] ss:$12 sps:$4 sm:$0xff]   ;;  %v5080_v36 = vld [vmem:[%s7936_s1 + $0x78] ss:$12 sps:$4 sm:$0xff]  }
  0xac   : > { %v527_v42 = vpop.xlane.xlu0 %526  ;;  %v529_v43 = vpop.xlane.xlu1 %528  ;;  %4830 = vmatprep.subr.bf16.mxu1 %v5075_v30  ;;  %v5081_v37 = vld [vmem:[%s7936_s1 + $0x94] ss:$12 sps:$4 sm:$0xff]  }
  0xad   : > { %v553_v44 = vmul.f32 0.0078125, %v527_v42  ;;  %v583_v45 = vmul.f32 %v5692_v40, %v5692_v40  ;;  %v554_v46 = vmul.f32 0.0078125, %v529_v43  ;;  %v584_v47 = vmul.f32 %v5694_v41, %v5694_v41  ;;  %v5083_v38 = vld [vmem:[%s7936_s1 + $0x80] ss:$12 sps:$4 sm:$0xff]   ;;  %v5087_v43 = vld [vmem:[%s7936_s1 + $0x98] ss:$12 sps:$4 sm:$0xff]  }
  0xae   : > { %4831 = vmatpush3.bf16.msra.mxu1 %v5075_v30  ;;  %v5085_v42 = vld [vmem:[%s7936_s1 + $0xac] ss:$12 sps:$4 sm:$0xff]  }
  0xaf   : > { %601 = vadd.xlane.f32.xlu1 %v582_v39  ;;  %603 = vadd.xlane.f32.xlu0 %v583_v45  ;;  %v5701_v48 = vsub.f32 %v5634_v6, %v553_v44  ;;  %v5704_v49 = vsub.f32 %v5636_v7, %v554_v46  ;;  %v5068_v7 = vld [vmem:[%s7936_s1 + $0x30] ss:$12 sps:$4 sm:$0xff]   ;;  %v5088_v44 = vld [vmem:[%s7936_s1 + $0xa8] ss:$12 sps:$4 sm:$0xff]   ;;  %v7954_v46 = vmov 0  }
  0xb0   : > { %v531_v50 = vpop.xlane.xlu0 %530  ;;  %v533_v51 = vpop.xlane.xlu1 %532  ;;  %925 = vmatpush1.bf16.msra.mxu0 %v5068_v7  ;;  %4832 = vmatprep.subr.bf16.mxu1 %v5079_v35  ;;  %v5084_v39 = vld [vmem:[%s7936_s1 + $0x90] ss:$12 sps:$4 sm:$0xff]  }
  0xb1   : > { %v555_v52 = vmul.f32 0.0078125, %v531_v50  ;;  %v585_v53 = vmul.f32 %v5701_v48, %v5701_v48  ;;  %v556_v54 = vmul.f32 0.0078125, %v533_v51  ;;  %v586_v55 = vmul.f32 %v5704_v49, %v5704_v49  ;;  %926 = vmatprep.subr.bf16.mxu0 %v5069_v18  ;;  %v5089_v45 = vld [vmem:[%s7936_s1 + $0xb0] ss:$12 sps:$4 sm:$0xff]   ;;  %952 = vmatprep.mubr.bf16.mxu0 %v7954_v46 }
  0xb2   : > { %4833 = vmatpush3.bf16.msra.mxu1 %v5079_v35 }
  0xb3   : > { %605 = vadd.xlane.f32.xlu1 %v584_v47  ;;  %607 = vadd.xlane.f32.xlu0 %v585_v53  ;;  %v5711_v56 = vsub.f32 %v5638_v8, %v555_v52  ;;  %v5714_v57 = vsub.f32 %v5640_v9, %v556_v54 }
  0xb4   : > { %v535_v59 = vpop.xlane.xlu0 %534  ;;  %v537_v60 = vpop.xlane.xlu1 %536  ;;  %927 = vmatpush1.bf16.msra.mxu0 %v5072_v22  ;;  %4834 = vmatprep.subr.bf16.mxu1 %v5083_v38  ;;  %v5815_v22 = vld [vmem:[%s7948_s13] ss:$0 sm:$0xff] }
  0xb5   : > { %v557_v61 = vmul.f32 0.0078125, %v535_v59  ;;  %v587_v62 = vmul.f32 %v5711_v56, %v5711_v56  ;;  %v558_v63 = vmul.f32 0.0078125, %v537_v60  ;;  %v588_v2 = vmul.f32 %v5714_v57, %v5714_v57  ;;  %928 = vmatprep.subr.bf16.mxu0 %v5073_v29 }
  0xb6   : > { %4835 = vmatpush3.bf16.msra.mxu1 %v5083_v38 }
  0xb7   : > { %609 = vadd.xlane.f32.xlu1 %v586_v55  ;;  %611 = vadd.xlane.f32.xlu0 %v587_v62  ;;  %v5730_v3 = vsub.f32 %v5644_v10, %v557_v61  ;;  %v5733_v4 = vsub.f32 %v5646_v11, %v558_v63 }
  0xb8   : > { %v539_v5 = vpop.xlane.xlu0 %538  ;;  %v541_v6 = vpop.xlane.xlu1 %540  ;;  %929 = vmatpush1.bf16.msra.mxu0 %v5076_v31  ;;  %4836 = vmatprep.subr.bf16.mxu1 %v5087_v43 }
  0xb9   : > { %v559_v8 = vmul.f32 0.0078125, %v539_v5  ;;  %v589_v9 = vmul.f32 %v5730_v3, %v5730_v3  ;;  %v560_v16 = vmul.f32 0.0078125, %v541_v6  ;;  %v590_v10 = vmul.f32 %v5733_v4, %v5733_v4 }
  0xba   : > { %4837 = vmatpush3.bf16.msra.mxu1 %v5087_v43 }
  0xbb   : > { %613 = vadd.xlane.f32.xlu1 %v588_v2  ;;  %615 = vadd.xlane.f32.xlu0 %v589_v9  ;;  %v5743_v11 = vsub.f32 %v5650_v12, %v559_v8  ;;  %v5746_v17 = vsub.f32 %v5652_v13, %v560_v16 }
  0xbc   : > { %v543_v20 = vpop.xlane.xlu0 %542  ;;  %v545_v21 = vpop.xlane.xlu1 %544  ;;  %4838 = vmatprep.subr.bf16.mxu1 %v5089_v45 }
  0xbd   : > { %v561_v23 = vmul.f32 0.0078125, %v543_v20  ;;  %v591_v12 = vmul.f32 %v5743_v11, %v5743_v11  ;;  %v562_v13 = vmul.f32 0.0078125, %v545_v21  ;;  %v592_v26 = vmul.f32 %v5746_v17, %v5746_v17 }
  0xbe   : > { %4839 = vmatpush3.bf16.msra.mxu1 %v5089_v45 }
  0xbf   : > { %617 = vadd.xlane.f32.xlu1 %v590_v10  ;;  %619 = vadd.xlane.f32.xlu0 %v591_v12  ;;  %v5762_v27 = vsub.f32 %v5656_v14, %v561_v23  ;;  %v5765_v28 = vsub.f32 %v5658_v15, %v562_v13  ;;  %v5077_v15 = vld [vmem:[%s7936_s1 + $0x7c] ss:$12 sps:$4 sm:$0xff]  }
  0xc0   : > { %930 = vmatprep.subr.bf16.mxu0 %v5077_v15  ;;  %v5822_v15 = vld [vmem:[%s7949_s14] ss:$0 sm:$0xff] }
  0xc1   : > { %v593_v34 = vmul.f32 %v5762_v27, %v5762_v27  ;;  %v594_v14 = vmul.f32 %v5765_v28, %v5765_v28  ;;  %931 = vmatpush1.bf16.msra.mxu0 %v5080_v36 }
  0xc2   : > { %932 = vmatprep.subr.bf16.mxu0 %v5081_v37 }
  0xc3   : > { %621 = vadd.xlane.f32.xlu1 %v592_v26  ;;  %623 = vadd.xlane.f32.xlu0 %v593_v34 }
  0xc5   : > { %933 = vmatpush1.bf16.msra.mxu0 %v5084_v39 }
  0xc6   : > { %934 = vmatprep.subr.bf16.mxu0 %v5085_v42 }
  0xc7   : > { %625 = vadd.xlane.f32.xlu1 %v594_v14 }
  0xc9   : > { %935 = vmatpush1.bf16.msra.mxu0 %v5088_v44 }
 0x134   : > { %v596_v47 = vpop.xlane.xlu0 %595 }
 0x135   : > { %v627_v50 = vmul.f32 0.0078125, %v596_v47 }
 0x137   : > { %v643_v51 = vadd.f32 1e-12, %v627_v50 }
 0x138   : > { %v598_v52 = vpop.xlane.xlu1 %597  ;;  %v600_v53 = vpop.xlane.xlu0 %599 }
 0x139   : > { %5178 = vrsqrt.f32 %v643_v51  ;;  %v628_v54 = vmul.f32 0.0078125, %v598_v52  ;;  %v629_v55 = vmul.f32 0.0078125, %v600_v53 }
 0x13b   : > { %v644_v58 = vadd.f32 1e-12, %v628_v54  ;;  %v645_v59 = vadd.f32 1e-12, %v629_v55 }
 0x13c   : > { %v602_v60 = vpop.xlane.xlu1 %601  ;;  %v604_v61 = vpop.xlane.xlu0 %603 }
 0x13d   : > { %5180 = vrsqrt.f32 %v644_v58  ;;  %v630_v62 = vmul.f32 0.0078125, %v602_v60  ;;  %v631_v63 = vmul.f32 0.0078125, %v604_v61 }
 0x13e   : > { %5182 = vrsqrt.f32 %v645_v59 }
 0x13f   : > { %v646_v0 = vadd.f32 1e-12, %v630_v62  ;;  %v647_v1 = vadd.f32 1e-12, %v631_v63 }
 0x140   : > { %v606_v2 = vpop.xlane.xlu1 %605  ;;  %v608_v5 = vpop.xlane.xlu0 %607 }
 0x141   : > { %5184 = vrsqrt.f32 %v646_v0  ;;  %v632_v6 = vmul.f32 0.0078125, %v606_v2  ;;  %v633_v7 = vmul.f32 0.0078125, %v608_v5 }
 0x142   : > { %5186 = vrsqrt.f32 %v647_v1 }
 0x143   : > { %v5179_v8 = vpop.eup %5178  ;;  %v648_v9 = vadd.f32 1e-12, %v632_v6  ;;  %v649_v16 = vadd.f32 1e-12, %v633_v7 }
 0x144   : > { %v610_v10 = vpop.xlane.xlu1 %609  ;;  %v612_v18 = vpop.xlane.xlu0 %611  ;;  %v675_v19 = vmul.f32 %v5179_v8, %v5676_v24 }
 0x145   : > { %5188 = vrsqrt.f32 %v648_v9  ;;  %v634_v20 = vmul.f32 0.0078125, %v610_v10  ;;  %v635_v21 = vmul.f32 0.0078125, %v612_v18 }
 0x146   : > { %5190 = vrsqrt.f32 %v649_v16  ;;  %v697_v34 = vmul.f32 %v5815_v22, %v675_v19 }
 0x147   : > { %v5181_v23 = vpop.eup %5180  ;;  %v650_v12 = vadd.f32 1e-12, %v634_v20  ;;  %v651_v13 = vadd.f32 1e-12, %v635_v21 }
 0x148   : > { %v5183_v26 = vpop.eup %5182  ;;  %v614_v29 = vpop.xlane.xlu1 %613  ;;  %v676_v31 = vmul.f32 %v5181_v23, %v5684_v32  ;;  %v5828_v45 = vadd.f32 %v5822_v15, %v697_v34 }
 0x149   : > { %v616_v30 = vpop.xlane.xlu0 %615  ;;  %5192 = vrsqrt.f32 %v650_v12  ;;  %v636_v24 = vmul.f32 0.0078125, %v614_v29  ;;  %v677_v35 = vmul.f32 %v5183_v26, %v5678_v25 }
 0x14a   : > { %v637_v14 = vmul.f32 0.0078125, %v616_v30  ;;  %5194 = vrsqrt.f32 %v651_v13  ;;  %v698_v36 = vmul.f32 %v5815_v22, %v676_v31 }
 0x14b   : > { %v5185_v37 = vpop.eup %5184  ;;  %v652_v38 = vadd.f32 1e-12, %v636_v24  ;;  %v699_v32 = vmul.f32 %v5815_v22, %v677_v35 }
 0x14c   : > { %v653_v39 = vadd.f32 1e-12, %v637_v14  ;;  %v5187_v42 = vpop.eup %5186  ;;  %v618_v43 = vpop.xlane.xlu1 %617  ;;  %v5831_v47 = vadd.f32 %v5822_v15, %v698_v36  ;;  %v678_v50 = vmul.f32 %v5185_v37, %v5686_v33 }
 0x14d   : > { %v620_v44 = vpop.xlane.xlu0 %619  ;;  %5196 = vrsqrt.f32 %v652_v38  ;;  %v638_v25 = vmul.f32 0.0078125, %v618_v43  ;;  %v679_v54 = vmul.f32 %v5187_v42, %v5692_v40  ;;  %v5839_v60 = vadd.f32 %v5822_v15, %v699_v32 }
 0x14e   : > { %v639_v51 = vmul.f32 0.0078125, %v620_v44  ;;  %5198 = vrsqrt.f32 %v653_v39  ;;  %v735_v52 = vpack.c.bf16 %v5831_v47, %v5828_v45  ;;  %v700_v53 = vmul.f32 %v5815_v22, %v678_v50 }
 0x14f   : > { %v5189_v55 = vpop.eup %5188  ;;  %v654_v58 = vadd.f32 1e-12, %v638_v25  ;;  %v701_v1 = vmul.f32 %v5815_v22, %v679_v54 }
 0x150   : > { %v655_v59 = vadd.f32 1e-12, %v639_v51  ;;  %v5191_v61 = vpop.eup %5190  ;;  %v622_v62 = vpop.xlane.xlu1 %621  ;;  %953 = vmatmul.mubr.bf16.vlgmr.msra.gmra.mrb[0].mxu0 %v735_v52  ;;  %4840 = vmatprep.mubr.bf16.mxu1 %v735_v52  ;;  %v5842_v63 = vadd.f32 %v5822_v15, %v700_v53  ;;  %v680_v0 = vmul.f32 %v5189_v55, %v5694_v41 }
 0x151   : > { %v624_v33 = vpop.xlane.xlu0 %623  ;;  %5200 = vrsqrt.f32 %v654_v58  ;;  %v640_v40 = vmul.f32 0.0078125, %v622_v62  ;;  %962 = vmatprep.mubr.bf16.mxu0 %v7954_v46  ;;  %v681_v5 = vmul.f32 %v5191_v61, %v5701_v48  ;;  %v5853_v19 = vadd.f32 %v5822_v15, %v701_v1 }
 0x152   : > { %v641_v2 = vmul.f32 0.0078125, %v624_v33  ;;  %5202 = vrsqrt.f32 %v655_v59  ;;  %v736_v6 = vpack.c.bf16 %v5842_v63, %v5839_v60  ;;  %v702_v7 = vmul.f32 %v5815_v22, %v680_v0 }
 0x153   : > { %v5193_v8 = vpop.eup %5192  ;;  %v656_v9 = vadd.f32 1e-12, %v640_v40  ;;  %v703_v41 = vmul.f32 %v5815_v22, %v681_v5  ;;  %v775_v40 = vld [vmem:[%s7937_s2] sm:$0x7] }
 0x154   : > { %v657_v16 = vadd.f32 1e-12, %v641_v2  ;;  %v5195_v10 = vpop.eup %5194  ;;  %v626_v18 = vpop.xlane.xlu1 %625  ;;  %4841 = vmatmul.mubr.bf16.vlgmr.msra.gmra.mrb[0].mxu1 %v736_v6  ;;  %v5856_v20 = vadd.f32 %v5822_v15, %v702_v7  ;;  %v682_v48 = vmul.f32 %v5193_v8, %v5704_v49 }
 0x155   : > { %5204 = vrsqrt.f32 %v656_v9  ;;  %v642_v21 = vmul.f32 0.0078125, %v626_v18  ;;  %v683_v23 = vmul.f32 %v5195_v10, %v5711_v56  ;;  %v5864_v30 = vadd.f32 %v5822_v15, %v703_v41 }
 0x156   : > { %5206 = vrsqrt.f32 %v657_v16  ;;  %v737_v12 = vpack.c.bf16 %v5856_v20, %v5853_v19  ;;  %v704_v13 = vmul.f32 %v5815_v22, %v682_v48 }
 0x157   : > { %v5197_v26 = vpop.eup %5196  ;;  %v658_v29 = vadd.f32 1e-12, %v642_v21  ;;  %v705_v56 = vmul.f32 %v5815_v22, %v683_v23 }
 0x158   : > { %v5199_v31 = vpop.eup %5198  ;;  %963 = vmatmul.mubr.bf16.gmra.mrb[4].mxu0 %v736_v6  ;;  %4844 = vmatprep.mubr.bf16.mxu1 %v737_v12  ;;  %v5867_v49 = vadd.f32 %v5822_v15, %v704_v13  ;;  %v684_v34 = vmul.f32 %v5197_v26, %v5714_v57 }
 0x159   : > { %5208 = vrsqrt.f32 %v658_v29  ;;  %972 = vmatprep.mubr.bf16.mxu0 %v7954_v46  ;;  %v685_v24 = vmul.f32 %v5199_v31, %v5730_v3  ;;  %v5878_v39 = vadd.f32 %v5822_v15, %v705_v56 }
 0x15a   : > { %v738_v14 = vpack.c.bf16 %v5867_v49, %v5864_v30  ;;  %v706_v35 = vmul.f32 %v5815_v22, %v684_v34 }
 0x15b   : > { %v5201_v36 = vpop.eup %5200  ;;  %v707_v37 = vmul.f32 %v5815_v22, %v685_v24 }
 0x15c   : > { %v5203_v38 = vpop.eup %5202  ;;  %4845 = vmatmul.mubr.bf16.gmra.mrb[4].mxu1 %v738_v14  ;;  %v5881_v57 = vadd.f32 %v5822_v15, %v706_v35  ;;  %v686_v32 = vmul.f32 %v5201_v36, %v5733_v4 }
 0x15d   : > { %v687_v3 = vmul.f32 %v5203_v38, %v5743_v11  ;;  %v5889_v50 = vadd.f32 %v5822_v15, %v707_v37 }
 0x15e   : > { %v739_v42 = vpack.c.bf16 %v5881_v57, %v5878_v39  ;;  %v708_v43 = vmul.f32 %v5815_v22, %v686_v32 }
 0x15f   : > { %v5205_v44 = vpop.eup %5204  ;;  %v709_v4 = vmul.f32 %v5815_v22, %v687_v3 }
 0x160   : > { %v5207_v25 = vpop.eup %5206  ;;  %973 = vmatmul.mubr.bf16.gmra.mrb[8].mxu0 %v737_v12  ;;  %4848 = vmatprep.mubr.bf16.mxu1 %v739_v42  ;;  %v5892_v51 = vadd.f32 %v5822_v15, %v708_v43  ;;  %v688_v52 = vmul.f32 %v5205_v44, %v5746_v17 }
 0x161   : > { %982 = vmatprep.mubr.bf16.mxu0 %v7954_v46  ;;  %v689_v11 = vmul.f32 %v5207_v25, %v5762_v27  ;;  %v5902_v58 = vadd.f32 %v5822_v15, %v709_v4 }
 0x162   : > { %8014 = vst [vmem:[#allocation3_spill] sm:$0xff] %v5892_v51  ;;  %v740_v53 = vpack.c.bf16 %v5892_v51, %v5889_v50  ;;  %v710_v54 = vmul.f32 %v5815_v22, %v688_v52 }
 0x163   : > { %v5209_v55 = vpop.eup %5208  ;;  %8015 = vst [vmem:[#allocation4_spill] sm:$0xff] %v5902_v58  ;;  %v711_v61 = vmul.f32 %v5815_v22, %v689_v11 }
 0x164   : > { %4849 = vmatmul.mubr.bf16.gmra.mrb[8].mxu1 %v740_v53  ;;  %v5905_v59 = vadd.f32 %v5822_v15, %v710_v54  ;;  %v690_v17 = vmul.f32 %v5209_v55, %v5765_v28 }
 0x165   : > { %v5913_v33 = vadd.f32 %v5822_v15, %v711_v61 }
 0x166   : > { %8016 = vst [vmem:[#allocation5_spill] sm:$0xff] %v5905_v59  ;;  %v741_v27 = vpack.c.bf16 %v5905_v59, %v5902_v58  ;;  %v712_v62 = vmul.f32 %v5815_v22, %v690_v17  ;;  %v777_v22 = vlaneseq }
 0x167   : > { %8017 = vst [vmem:[#allocation6_spill] sm:$0xff] %v5913_v33 }
 0x168   : > { %983 = vmatmul.mubr.bf16.gmra.mrb[12].mxu0 %v738_v14  ;;  %4852 = vmatprep.mubr.bf16.mxu1 %v741_v27  ;;  %v5916_v0 = vadd.f32 %v5822_v15, %v712_v62  ;;  %v5924_v1 = vshrl.u32 %v777_v22, 7 }
 0x169   : > { %992 = vmatprep.mubr.bf16.mxu0 %v7954_v46 }
 0x16a   : > { %8018 = vst [vmem:[#allocation7_spill] sm:$0xff] %v5916_v0  ;;  %v742_v28 = vpack.c.bf16 %v5916_v0, %v5913_v33  ;;  %8019 = vst [vmem:[#allocation8_spill] sm:$0xff] %v5924_v1  ;;  %v7953_v15 = vsub.s32 0, %v5924_v1  ;;  %v7951_v2 = vsub.s32 1, %v5924_v1  ;;  %v7952_v6 = vsub.s32 2, %v5924_v1 }
 0x16c   : > { %4853 = vmatmul.mubr.bf16.gmra.mrb[12].mxu1 %v742_v28  ;;  %v5933_v5 = vrot.slane %v775_v40, %v7953_v15  ;;  %v5938_v8 = vrot.slane %v775_v40, %v7951_v2  ;;  %v5944_v48 = vrot.slane %v775_v40, %v7952_v6 }
 0x170   : > { %993 = vmatmul.mubr.bf16.gmra.mrb[16].mxu0 %v739_v42 }
 0x171   : > { %1002 = vmatprep.mubr.bf16.mxu0 %v7954_v46 }
 0x178   : > { %1003 = vmatmul.mubr.bf16.gmra.mrb[20].mxu0 %v740_v53 }
 0x179   : > { %1012 = vmatprep.mubr.bf16.mxu0 %v7954_v46 }
 0x180   : > { %1013 = vmatmul.mubr.bf16.gmra.mrb[24].mxu0 %v741_v27 }
 0x181   : > { %1022 = vmatprep.mubr.bf16.mxu0 %v7954_v46 }
 0x188   : > { %1023 = vmatmul.mubr.bf16.gmra.mrb[28].mxu0 %v742_v28 }
 0x223   : > { %v954_v7 = vpop.f32.mrb[0].mxu0 }
 0x224   : > { %v956_v9 = vpop.f32.mrb[1].mxu0  ;;  %v955_v41 = vadd.f32 %v954_v7, %v5933_v5 }
 0x225   : > { %v958_v16 = vpop.f32.mrb[2].mxu0  ;;  %v957_v21 = vadd.f32 %v956_v9, %v5938_v8 }
 0x226   : > { %v959_v10 = vadd.f32 %v958_v16, %v5933_v5  ;;  %v960_v18 = vpop.f32.mrb[3].mxu0 }
 0x227   : > { %v961_v23 = vadd.f32 %v960_v18, %v5938_v8  ;;  %v4842_v12 = vpop.f32.mrb[0].mxu1 }
 0x228   : > { %v5948_v13 = vpack.c.bf16 %v959_v10, %v955_v41  ;;  %v1067_v26 = vpop.f32.mrb[1].mxu1  ;;  %v1076_v34 = vadd.f32 %v4842_v12, %v5944_v48 }
 0x229   : > { %v1138_v29 = vpack.c.bf16 %v961_v23, %v957_v21  ;;  %v4843_v31 = vpop.f32.mrb[2].mxu1  ;;  %v1068_v14 = vadd.f32 %v1067_v26, %v5944_v48 }
 0x22a   : > { %v1079_v56 = vadd.f32 %v4843_v31, %v5944_v48  ;;  %v1070_v24 = vpop.f32.mrb[3].mxu1  ;;  %4872 = vmatprep.mubr.msk.bf16.mxu0 %vm1154_vm0, %v5948_v13 }
 0x22b   : > { %v1071_v35 = vadd.f32 %v1070_v24, %v5944_v48  ;;  %1597 = vrot.lane.b32.xlu0 %v1138_v29, %s5539_s26  ;;  %v964_v36 = vpop.f32.mrb[4].mxu0  ;;  %5032 = vmatprep.subr.msk.bf16.mxu0 %vm1154_vm0, %v1138_v29  ;;  %v1180_v37 = vsel %vm1154_vm0, %v1138_v29, 0 }
 0x22c   : > { %v5959_v38 = vpack.c.bf16 %v1079_v56, %v1076_v34  ;;  %v965_v32 = vadd.f32 %v964_v36, %v5933_v5  ;;  %v966_v3 = vpop.f32.mrb[5].mxu0  ;;  %4857 = vmatpush3.bf16.xpose.msra.mxu0 %v1180_v37 }
 0x22d   : > { %v5962_v42 = vpack.c.bf16 %v1071_v35, %v1068_v14  ;;  %v968_v43 = vpop.f32.mrb[6].mxu0  ;;  %v967_v52 = vadd.f32 %v966_v3, %v5938_v8 }
 0x22e   : > { %v969_v44 = vadd.f32 %v968_v43, %v5933_v5  ;;  %v970_v25 = vpop.f32.mrb[7].mxu0 }
 0x22f   : > { %v971_v4 = vadd.f32 %v970_v25, %v5938_v8  ;;  %v4846_v11 = vpop.f32.mrb[4].mxu1  ;;  %4888 = vmatprep.subr.bf16.mxu1 %v5962_v42 }
 0x230   : > { %v5968_v53 = vpack.c.bf16 %v969_v44, %v965_v32  ;;  %v1083_v54 = vpop.f32.mrb[5].mxu1  ;;  %4889 = vmatpush3.bf16.msra.mxu1 %v5962_v42  ;;  %v1092_v61 = vadd.f32 %v4846_v11, %v5944_v48 }
 0x231   : > { %v1139_v55 = vpack.c.bf16 %v971_v4, %v967_v52  ;;  %v4847_v17 = vpop.f32.mrb[6].mxu1  ;;  %4890 = vmatprep.subr.bf16.mxu1 %v5959_v38  ;;  %v1084_v28 = vadd.f32 %v1083_v54, %v5944_v48 }
 0x232   : > { %v1095_v27 = vadd.f32 %v4847_v17, %v5944_v48  ;;  %v1086_v62 = vpop.f32.mrb[7].mxu1 }
 0x233   : > { %v1087_v22 = vadd.f32 %v1086_v62, %v5944_v48  ;;  %1599 = vrot.lane.b32.xlu1 %v1139_v55, %s5539_s26  ;;  %v974_v40 = vpop.f32.mrb[8].mxu0  ;;  %5033 = vmatprep.subr.msk.bf16.mxu0 %vm1154_vm0, %v1139_v55  ;;  %v1183_v7 = vsel %vm1154_vm0, %v1139_v55, 0 }
 0x234   : > { %v5979_v9 = vpack.c.bf16 %v1095_v27, %v1092_v61  ;;  %v975_v16 = vadd.f32 %v974_v40, %v5933_v5  ;;  %v976_v41 = vpop.f32.mrb[9].mxu0  ;;  %4859 = vmatpush3.bf16.xpose.msra.mxu0 %v1183_v7  ;;  %4891 = vmatpush3.bf16.msra.mxu1 %v5959_v38 }
 0x235   : > { %v5983_v10 = vpack.c.bf16 %v1087_v22, %v1084_v28  ;;  %v978_v18 = vpop.f32.mrb[10].mxu0  ;;  %v977_v12 = vadd.f32 %v976_v41, %v5938_v8 }
 0x236   : > { %v979_v21 = vadd.f32 %v978_v18, %v5933_v5  ;;  %v980_v23 = vpop.f32.mrb[11].mxu0 }
 0x237   : > { %v981_v26 = vadd.f32 %v980_v23, %v5938_v8  ;;  %v4850_v29 = vpop.f32.mrb[8].mxu1  ;;  %4892 = vmatprep.subr.bf16.mxu1 %v5983_v10 }
 0x238   : > { %v5989_v31 = vpack.c.bf16 %v979_v21, %v975_v16  ;;  %v1099_v34 = vpop.f32.mrb[9].mxu1  ;;  %4893 = vmatpush3.bf16.msra.mxu1 %v5983_v10  ;;  %v1108_v14 = vadd.f32 %v4850_v29, %v5944_v48 }
 0x239   : > { %v1140_v56 = vpack.c.bf16 %v981_v26, %v977_v12  ;;  %v4851_v24 = vpop.f32.mrb[10].mxu1  ;;  %4894 = vmatprep.subr.bf16.mxu1 %v5979_v9  ;;  %v1100_v37 = vadd.f32 %v1099_v34, %v5944_v48 }
 0x23a   : > { %v1111_v35 = vadd.f32 %v4851_v24, %v5944_v48  ;;  %v1102_v36 = vpop.f32.mrb[11].mxu1 }
 0x23b   : > { %v1103_v32 = vadd.f32 %v1102_v36, %v5944_v48  ;;  %1601 = vrot.lane.b32.xlu0 %v1140_v56, %s5539_s26  ;;  %v984_v3 = vpop.f32.mrb[12].mxu0  ;;  %5034 = vmatprep.subr.msk.bf16.mxu0 %vm1154_vm0, %v1140_v56  ;;  %v1186_v43 = vsel %vm1154_vm0, %v1140_v56, 0 }
 0x23c   : > { %v6000_v44 = vpack.c.bf16 %v1111_v35, %v1108_v14  ;;  %v985_v25 = vadd.f32 %v984_v3, %v5933_v5  ;;  %v986_v52 = vpop.f32.mrb[13].mxu0  ;;  %4861 = vmatpush3.bf16.xpose.msra.mxu0 %v1186_v43  ;;  %4895 = vmatpush3.bf16.msra.mxu1 %v5979_v9 }
 0x23d   : > { %v6004_v4 = vpack.c.bf16 %v1103_v32, %v1100_v37  ;;  %v988_v11 = vpop.f32.mrb[14].mxu0  ;;  %v987_v17 = vadd.f32 %v986_v52, %v5938_v8 }
 0x23e   : > { %v989_v54 = vadd.f32 %v988_v11, %v5933_v5  ;;  %v990_v55 = vpop.f32.mrb[15].mxu0 }
 0x23f   : > { %v991_v61 = vadd.f32 %v990_v55, %v5938_v8  ;;  %v4854_v27 = vpop.f32.mrb[12].mxu1  ;;  %4896 = vmatprep.subr.bf16.mxu1 %v6004_v4 }
 0x240   : > { %v6010_v62 = vpack.c.bf16 %v989_v54, %v985_v25  ;;  %v1115_v28 = vpop.f32.mrb[13].mxu1  ;;  %4897 = vmatpush3.bf16.msra.mxu1 %v6004_v4  ;;  %v1124_v7 = vadd.f32 %v4854_v27, %v5944_v48 }
 0x241   : > { %v6013_v22 = vpack.c.bf16 %v991_v61, %v987_v17  ;;  %v4855_v40 = vpop.f32.mrb[14].mxu1  ;;  %4898 = vmatprep.subr.bf16.mxu1 %v6000_v44  ;;  %v1116_v18 = vadd.f32 %v1115_v28, %v5944_v48 }
 0x242   : > { %v1127_v16 = vadd.f32 %v4855_v40, %v5944_v48  ;;  %v1118_v41 = vpop.f32.mrb[15].mxu1 }
 0x243   : > { %v1119_v21 = vadd.f32 %v1118_v41, %v5944_v48  ;;  %v994_v23 = vpop.f32.mrb[16].mxu0  ;;  %5035 = vmatprep.subr.msk.bf16.mxu0 %vm1154_vm0, %v6013_v22  ;;  %v1189_v12 = vsel %vm1154_vm0, %v6013_v22, 0 }
 0x244   : > { %v6024_v26 = vpack.c.bf16 %v1127_v16, %v1124_v7  ;;  %v995_v29 = vadd.f32 %v994_v23, %v5933_v5  ;;  %v996_v34 = vpop.f32.mrb[17].mxu0  ;;  %4863 = vmatpush3.bf16.xpose.msra.mxu0 %v1189_v12  ;;  %4899 = vmatpush3.bf16.msra.mxu1 %v6000_v44 }
 0x245   : > { %v6028_v56 = vpack.c.bf16 %v1119_v21, %v1116_v18  ;;  %v998_v24 = vpop.f32.mrb[18].mxu0  ;;  %v997_v35 = vadd.f32 %v996_v34, %v5938_v8 }
 0x246   : > { %v999_v48 = vadd.f32 %v998_v24, %v5933_v5  ;;  %v1000_v14 = vpop.f32.mrb[19].mxu0 }
 0x247   : > { %v1001_v36 = vadd.f32 %v1000_v14, %v5938_v8  ;;  %4900 = vmatprep.subr.bf16.mxu1 %v6028_v56 }
 0x248   : > { %v6034_v37 = vpack.c.bf16 %v999_v48, %v995_v29  ;;  %4901 = vmatpush3.bf16.msra.mxu1 %v6028_v56 }
 0x249   : > { %v6037_v32 = vpack.c.bf16 %v1001_v36, %v997_v35  ;;  %4902 = vmatprep.subr.bf16.mxu1 %v6024_v26 }
 0x24b   : > { %v1004_v3 = vpop.f32.mrb[20].mxu0  ;;  %5036 = vmatprep.subr.msk.bf16.mxu0 %vm1154_vm0, %v6037_v32  ;;  %v1192_v43 = vsel %vm1154_vm0, %v6037_v32, 0 }
 0x24c   : > { %v1005_v25 = vadd.f32 %v1004_v3, %v5933_v5  ;;  %v1006_v52 = vpop.f32.mrb[21].mxu0  ;;  %4865 = vmatpush3.bf16.xpose.msra.mxu0 %v1192_v43  ;;  %4903 = vmatpush3.bf16.msra.mxu1 %v6024_v26 }
 0x24d   : > { %v1008_v11 = vpop.f32.mrb[22].mxu0  ;;  %v1007_v17 = vadd.f32 %v1006_v52, %v5938_v8 }
 0x24e   : > { %v1009_v54 = vadd.f32 %v1008_v11, %v5933_v5  ;;  %v1010_v55 = vpop.f32.mrb[23].mxu0 }
 0x24f   : > { %v1011_v61 = vadd.f32 %v1010_v55, %v5938_v8 }
 0x250   : > { %v6049_v27 = vpack.c.bf16 %v1009_v54, %v1005_v25 }
 0x251   : > { %v6051_v28 = vpack.c.bf16 %v1011_v61, %v1007_v17 }
 0x253   : > { %v1014_v40 = vpop.f32.mrb[24].mxu0  ;;  %5037 = vmatprep.subr.msk.bf16.mxu0 %vm1154_vm0, %v6051_v28  ;;  %v1195_v7 = vsel %vm1154_vm0, %v6051_v28, 0 }
 0x254   : > { %v1015_v16 = vadd.f32 %v1014_v40, %v5933_v5  ;;  %v1016_v41 = vpop.f32.mrb[25].mxu0  ;;  %4867 = vmatpush3.bf16.xpose.msra.mxu0 %v1195_v7 }
 0x255   : > { %v1018_v18 = vpop.f32.mrb[26].mxu0  ;;  %v1017_v12 = vadd.f32 %v1016_v41, %v5938_v8 }
 0x256   : > { %v1019_v21 = vadd.f32 %v1018_v18, %v5933_v5  ;;  %v1020_v23 = vpop.f32.mrb[27].mxu0 }
 0x257   : > { %v1021_v29 = vadd.f32 %v1020_v23, %v5938_v8 }
 0x258   : > { %v6061_v34 = vpack.c.bf16 %v1019_v21, %v1015_v16 }
 0x259   : > { %v1144_v24 = vpack.c.bf16 %v1021_v29, %v1017_v12 }
 0x25b   : > { %v1024_v48 = vpop.f32.mrb[28].mxu0  ;;  %5038 = vmatprep.subr.msk.bf16.mxu0 %vm1154_vm0, %v1144_v24  ;;  %v1198_v14 = vsel %vm1154_vm0, %v1144_v24, 0 }
 0x25c   : > { %v1025_v35 = vadd.f32 %v1024_v48, %v5933_v5  ;;  %v1026_v36 = vpop.f32.mrb[29].mxu0  ;;  %4869 = vmatpush3.bf16.xpose.msra.mxu0 %v1198_v14 }
 0x25d   : > { %v1028_v3 = vpop.f32.mrb[30].mxu0  ;;  %v1027_v52 = vadd.f32 %v1026_v36, %v5938_v8 }
 0x25e   : > { %v1029_v43 = vadd.f32 %v1028_v3, %v5933_v5  ;;  %v1030_v25 = vpop.f32.mrb[31].mxu0 }
 0x25f   : > { %v1031_v11 = vadd.f32 %v1030_v25, %v5938_v8 }
 0x260   : > { %v1137_v54 = vpack.c.bf16 %v1029_v43, %v1025_v35 }
 0x261   : > { %v1145_v55 = vpack.c.bf16 %v1031_v11, %v1027_v52 }
 0x263   : > { %5039 = vmatprep.subr.msk.bf16.mxu0 %vm1154_vm0, %v1145_v55  ;;  %v1201_v17 = vsel %vm1154_vm0, %v1145_v55, 0 }
 0x264   : > { %4871 = vmatpush3.bf16.xpose.msra.mxu0 %v1201_v17 }
 0x26b   : > { %4873 = vmatmul.mubr.msk.bf16.vlgmr.msra.gmra.mrb[32].mxu0 %vm1154_vm0, %v5968_v53 }
 0x26c   : > { %4876 = vmatprep.mubr.msk.bf16.mxu0 %vm1154_vm0, %v5989_v31 }
 0x273   : > { %4877 = vmatmul.mubr.msk.bf16.gmra.mrb[36].mxu0 %vm1154_vm0, %v6010_v62 }
 0x274   : > { %4880 = vmatprep.mubr.msk.bf16.mxu0 %vm1154_vm0, %v6034_v37 }
 0x27b   : > { %4881 = vmatmul.mubr.msk.bf16.gmra.mrb[40].mxu0 %vm1154_vm0, %v6049_v27 }
 0x27c   : > { %4884 = vmatprep.mubr.msk.bf16.mxu0 %vm1154_vm0, %v6061_v34 }
 0x283   : > { %4885 = vmatmul.mubr.msk.bf16.gmra.mrb[44].mxu0 %vm1154_vm0, %v1137_v54 }
 0x29d   : > { %v6084_v5 = vpop.permute.xlu0 %1597 }
 0x29e   : > { %5040 = vmatprep.subr.msk.bf16.mxu1 %vm1154_vm0, %v6084_v5 }
 0x33e   : > { %v4874_v8 = vpop.f32.mrb[32].mxu0 }
 0x33f   : > { %1304 = vmax.xlane.f32.xlu0 %v4874_v8  ;;  %v1237_v61 = vpop.f32.mrb[33].mxu0 }
 0x340   : > { %v4875_v40 = vpop.f32.mrb[34].mxu0 }
 0x341   : > { %1306 = vmax.xlane.f32.xlu1 %v4875_v40  ;;  %v1240_v7 = vpop.f32.mrb[35].mxu0 }
 0x343   : > { %1300 = vmax.xlane.f32.xlu0 %v1237_v61 }
 0x345   : > { %1302 = vmax.xlane.f32.xlu1 %v1240_v7 }
 0x346   : > { %v6088_v16 = vpop.f32.mrb[36].mxu0 }
 0x347   : > { %v6090_v41 = vpop.f32.mrb[37].mxu0 }
 0x348   : > { %v6092_v18 = vpop.f32.mrb[38].mxu0 }
 0x349   : > { %v6094_v21 = vpop.f32.mrb[39].mxu0 }
 0x34e   : > { %v6096_v23 = vpop.f32.mrb[40].mxu0 }
 0x34f   : > { %v6098_v12 = vpop.f32.mrb[41].mxu0 }
 0x350   : > { %v6100_v29 = vpop.f32.mrb[42].mxu0 }
 0x351   : > { %v6102_v48 = vpop.f32.mrb[43].mxu0 }
 0x356   : > { %1603 = vrot.lane.b32.xlu1 %v6013_v22, %s5539_s26  ;;  %v6106_v14 = vpop.f32.mrb[44].mxu0 }
 0x357   : > { %v6108_v35 = vpop.f32.mrb[45].mxu0 }
 0x358   : > { %v6110_v36 = vpop.f32.mrb[46].mxu0 }
 0x359   : > { %1605 = vrot.lane.b32.xlu0 %v6037_v32, %s5539_s26  ;;  %v6114_v3 = vpop.f32.mrb[47].mxu0 }
 0x378   : > { %1312 = vmax.xlane.f32.xlu0 %v6088_v16 }
 0x37a   : > { %1308 = vmax.xlane.f32.xlu1 %v6090_v41 }
 0x37c   : > { %1316 = vmax.xlane.f32.xlu0 %v6098_v12 }
 0x37e   : > { %1314 = vmax.xlane.f32.xlu1 %v6092_v18 }
 0x380   : > { %1318 = vmax.xlane.f32.xlu0 %v6102_v48 }
 0x382   : > { %1310 = vmax.xlane.f32.xlu1 %v6094_v21 }
 0x384   : > { %1328 = vmax.xlane.f32.xlu0 %v6106_v14 }
 0x386   : > { %1320 = vmax.xlane.f32.xlu1 %v6096_v23 }
 0x38a   : > { %1322 = vmax.xlane.f32.xlu1 %v6100_v29 }
 0x38e   : > { %1324 = vmax.xlane.f32.xlu1 %v6108_v35 }
 0x392   : > { %1330 = vmax.xlane.f32.xlu1 %v6110_v36 }
 0x396   : > { %1326 = vmax.xlane.f32.xlu1 %v6114_v3 }
 0x39a   : > { %1609 = vrot.lane.b32.xlu0 %v1144_v24, %s5539_s26 }
 0x39e   : > { %1611 = vrot.lane.b32.xlu0 %v1145_v55, %s5539_s26 }
 0x3a2   : > { %1573 = vrot.lane.b32.xlu0 %v5948_v13, %s5539_s26  ;;  %v1602_v13 = vpop.permute.xlu0 %1601 }
 0x3a3   : > { %v1644_v17 = vsel %vm1154_vm0, %v1602_v13, 0 }
 0x3a6   : > { %1577 = vrot.lane.b32.xlu0 %v5989_v31, %s5539_s26 }
 0x3a7   : > { %1607 = vrot.lane.b32.xlu1 %v6051_v28, %s5539_s26 }
 0x3aa   : > { %1581 = vrot.lane.b32.xlu0 %v6034_v37, %s5539_s26 }
 0x3ab   : > { %1575 = vrot.lane.b32.xlu1 %v5968_v53, %s5539_s26  ;;  %v1600_v53 = vpop.permute.xlu1 %1599 }
 0x3ac   : > { %v1641_v55 = vsel %vm1154_vm0, %v1600_v53, 0 }
 0x3ae   : > { %1585 = vrot.lane.b32.xlu0 %v6061_v34, %s5539_s26 }
 0x3af   : > { %1579 = vrot.lane.b32.xlu1 %v6010_v62, %s5539_s26 }
 0x3b2   : > { %1886 = vrot.lane.b32.xlu0 %v5962_v42, %s5539_s26 }
 0x3b3   : > { %1583 = vrot.lane.b32.xlu1 %v6049_v27, %s5539_s26 }
 0x3b6   : > { %1890 = vrot.lane.b32.xlu0 %v5983_v10, %s5539_s26 }
 0x3b7   : > { %1587 = vrot.lane.b32.xlu1 %v1137_v54, %s5539_s26  ;;  %v1638_v54 = vsel %vm1154_vm0, %v6084_v5, 0 }
 0x3ba   : > { %1892 = vrot.lane.b32.xlu0 %v5979_v9, %s5539_s26 }
 0x3bb   : > { %1888 = vrot.lane.b32.xlu1 %v5959_v38, %s5539_s26 }
 0x3be   : > { %1894 = vrot.lane.b32.xlu0 %v6004_v4, %s5539_s26 }
 0x3cc   : > { %v1305_v42 = vpop.xlane.xlu0 %1304 }
 0x3cd   : > { %v1334_v22 = vsub.f32 %v4874_v8, %v1305_v42 }
 0x3ce   : > { %v1307_v31 = vpop.xlane.xlu1 %1306 }
 0x3cf   : > { %v1335_v62 = vsub.f32 %v4875_v40, %v1307_v31  ;;  %v1352_v24 = vmul.f32 1.442695, %v1334_v22 }
 0x3d0   : > { %v1301_v37 = vpop.xlane.xlu0 %1300 }
 0x3d1   : > { %v1354_v32 = vmul.f32 1.442695, %v1335_v62  ;;  %v1332_v10 = vsub.f32 %v1237_v61, %v1301_v37 }
 0x3d2   : > { %v1303_v27 = vpop.xlane.xlu1 %1302 }
 0x3d3   : > { %v1348_v28 = vmul.f32 1.442695, %v1332_v10  ;;  %v1333_v34 = vsub.f32 %v1240_v7, %v1303_v27  ;;  %5210 = vpow2.f32 %v1354_v32 }
 0x3d4   : > { %v1606_v40 = vpop.permute.xlu0 %1605 }
 0x3d5   : > { %v1350_v9 = vmul.f32 1.442695, %v1333_v34  ;;  %5212 = vpow2.f32 %v1348_v28  ;;  %v1650_v5 = vsel %vm1154_vm0, %v1606_v40, 0 }
 0x3d6   : > { %v1604_v8 = vpop.permute.xlu1 %1603 }
 0x3d7   : > { %5214 = vpow2.f32 %v1350_v9  ;;  %v1647_v61 = vsel %vm1154_vm0, %v1604_v8, 0 }
 0x3d8   : > { %5216 = vpow2.f32 %v1352_v24 }
 0x3dd   : > { %v6157_v38 = vpop.eup %5210 }
 0x3df   : > { %v6159_v4 = vpop.eup %5212 }
 0x3e1   : > { %v6161_v43 = vpop.eup %5214 }
 0x3e2   : > { %v6163_v25 = vpop.eup %5216  ;;  %v1412_v52 = vpack.c.bf16 %v6161_v43, %v6159_v4 }
 0x3e3   : > { %v1413_v11 = vpack.c.bf16 %v6157_v38, %v6163_v25 }
 0x3e4   : > { %4904 = vmatprep.mubr.bf16.mxu1 %v1412_v52 }
 0x3e5   : > { %4905 = vmatmul.mubr.bf16.vlgmr.msra.gmra.mrb[16].mxu1 %v1413_v11 }
 0x3e6   : > { %4921 = vmatpush3.bf16.xpose.msra.mxu1 %v1638_v54 }
 0x3e7   : > { %5041 = vmatprep.subr.msk.bf16.mxu1 %vm1154_vm0, %v1600_v53 }
 0x3ee   : > { %4923 = vmatpush3.bf16.xpose.msra.mxu1 %v1641_v55 }
 0x3ef   : > { %5042 = vmatprep.subr.msk.bf16.mxu1 %vm1154_vm0, %v1602_v13 }
 0x3f6   : > { %4925 = vmatpush3.bf16.xpose.msra.mxu1 %v1644_v17 }
 0x3f7   : > { %5043 = vmatprep.subr.msk.bf16.mxu1 %vm1154_vm0, %v1604_v8 }
 0x3fe   : > { %4927 = vmatpush3.bf16.xpose.msra.mxu1 %v1647_v61 }
 0x3ff   : > { %5044 = vmatprep.subr.msk.bf16.mxu1 %vm1154_vm0, %v1606_v40 }
 0x405   : > { %v1313_v7 = vpop.xlane.xlu0 %1312 }
 0x406   : > { %4929 = vmatpush3.bf16.xpose.msra.mxu1 %v1650_v5  ;;  %v1338_v22 = vsub.f32 %v6088_v16, %v1313_v7 }
 0x407   : > { %v1309_v53 = vpop.xlane.xlu1 %1308 }
 0x408   : > { %v1336_v42 = vsub.f32 %v6090_v41, %v1309_v53  ;;  %v1360_v52 = vmul.f32 1.442695, %v1338_v22 }
 0x409   : > { %v1317_v31 = vpop.xlane.xlu0 %1316 }
 0x40a   : > { %v1356_v37 = vmul.f32 1.442695, %v1336_v42  ;;  %v1340_v10 = vsub.f32 %v6098_v12, %v1317_v31 }
 0x40b   : > { %v1315_v62 = vpop.xlane.xlu1 %1314 }
 0x40c   : > { %v1339_v13 = vsub.f32 %v6092_v18, %v1315_v62  ;;  %5218 = vpow2.f32 %v1356_v37  ;;  %v1364_v11 = vmul.f32 1.442695, %v1340_v10 }
 0x40d   : > { %v1319_v32 = vpop.xlane.xlu0 %1318 }
 0x40e   : > { %v1362_v27 = vmul.f32 1.442695, %v1339_v13  ;;  %v1341_v28 = vsub.f32 %v6102_v48, %v1319_v32 }
 0x40f   : > { %v1311_v34 = vpop.xlane.xlu1 %1310 }
 0x410   : > { %v1366_v24 = vmul.f32 1.442695, %v1341_v28  ;;  %v1337_v9 = vsub.f32 %v6094_v21, %v1311_v34  ;;  %5220 = vpow2.f32 %v1362_v27 }
 0x411   : > { %v1329_v41 = vpop.xlane.xlu0 %1328 }
 0x412   : > { %v1358_v54 = vmul.f32 1.442695, %v1337_v9  ;;  %5222 = vpow2.f32 %v1366_v24  ;;  %v1346_v32 = vsub.f32 %v6106_v14, %v1329_v41 }
 0x413   : > { %v1321_v18 = vpop.xlane.xlu1 %1320 }
 0x414   : > { %5224 = vpow2.f32 %v1358_v54  ;;  %v1342_v16 = vsub.f32 %v6096_v23, %v1321_v18 }
 0x415   : > { %5226 = vpow2.f32 %v1360_v52  ;;  %v1610_v12 = vpop.permute.xlu0 %1609 }
 0x416   : > { %5228 = vpow2.f32 %v1364_v11  ;;  %v1368_v55 = vmul.f32 1.442695, %v1342_v16  ;;  %v6189_v61 = vpop.eup %5218 }
 0x417   : > { %v1323_v48 = vpop.xlane.xlu1 %1322 }
 0x418   : > { %v1343_v17 = vsub.f32 %v6100_v29, %v1323_v48  ;;  %5230 = vpow2.f32 %v1368_v55 }
 0x419   : > { %v6187_v8 = vpop.permute.xlu0 %1611 }
 0x41a   : > { %v1370_v21 = vmul.f32 1.442695, %v1343_v17  ;;  %v6191_v5 = vpop.eup %5220 }
 0x41b   : > { %v1325_v40 = vpop.xlane.xlu1 %1324 }
 0x41c   : > { %5232 = vpow2.f32 %v1370_v21  ;;  %v6193_v7 = vpop.eup %5222  ;;  %v1344_v42 = vsub.f32 %v6108_v35, %v1325_v40  ;;  %v1656_v21 = vsel %vm1154_vm0, %v1610_v12, 0 }
 0x41d   : > { %v1574_v23 = vpop.permute.xlu0 %1573 }
 0x41e   : > { %v6195_v53 = vpop.eup %5224  ;;  %v1372_v27 = vmul.f32 1.442695, %v1344_v42 }
 0x41f   : > { %v6198_v31 = vpop.eup %5226  ;;  %v1331_v29 = vpop.xlane.xlu1 %1330  ;;  %v1414_v62 = vpack.c.bf16 %v6195_v53, %v6189_v61 }
 0x420   : > { %v6202_v13 = vpop.eup %5228  ;;  %v1347_v22 = vsub.f32 %v6110_v36, %v1331_v29  ;;  %v1415_v37 = vpack.c.bf16 %v6191_v5, %v6198_v31  ;;  %v1376_v36 = vmul.f32 1.442695, %v1346_v32  ;;  %5234 = vpow2.f32 %v1372_v27 }
 0x421   : > { %4908 = vmatprep.mubr.bf16.mxu1 %v1414_v62  ;;  %v1578_v10 = vpop.permute.xlu0 %1577  ;;  %v1416_v35 = vpack.c.bf16 %v6193_v7, %v6202_v13  ;;  %v1659_v32 = vsel %vm1154_vm0, %v6187_v8, 0 }
 0x422   : > { %4909 = vmatmul.mubr.bf16.gmra.mrb[20].mxu1 %v1415_v37  ;;  %v1378_v28 = vmul.f32 1.442695, %v1347_v22  ;;  %v6211_v9 = vpop.eup %5230 }
 0x423   : > { %v1327_v34 = vpop.xlane.xlu1 %1326  ;;  %4912 = vmatprep.mubr.bf16.mxu1 %v1416_v35 }
 0x424   : > { %v1345_v24 = vsub.f32 %v6114_v3, %v1327_v34  ;;  %5236 = vpow2.f32 %v1378_v28 }
 0x425   : > { %v1582_v52 = vpop.permute.xlu0 %1581 }
 0x426   : > { %v6213_v11 = vpop.eup %5232  ;;  %v1374_v14 = vmul.f32 1.442695, %v1345_v24 }
 0x427   : > { %v1608_v41 = vpop.permute.xlu1 %1607  ;;  %v1417_v54 = vpack.c.bf16 %v6213_v11, %v6211_v9 }
 0x428   : > { %5238 = vpow2.f32 %v1374_v14  ;;  %5045 = vmatprep.subr.msk.bf16.mxu1 %vm1154_vm0, %v1608_v41  ;;  %v1653_v18 = vsel %vm1154_vm0, %v1608_v41, 0 }
 0x429   : > { %5240 = vpow2.f32 %v1376_v36  ;;  %4931 = vmatpush3.bf16.xpose.msra.mxu1 %v1653_v18  ;;  %v1586_v3 = vpop.permute.xlu0 %1585 }
 0x42a   : > { %4913 = vmatmul.mubr.bf16.gmra.mrb[24].mxu1 %v1417_v54  ;;  %5046 = vmatprep.subr.msk.bf16.mxu1 %vm1154_vm0, %v1610_v12  ;;  %v6220_v17 = vpop.eup %5234 }
 0x42b   : > { %v1576_v16 = vpop.permute.xlu1 %1575 }
 0x42d   : > { %v1887_v55 = vpop.permute.xlu0 %1886 }
 0x42e   : > { %4952 = vmatprep.subr.bf16.mxu0 %v1887_v55  ;;  %v6223_v40 = vpop.eup %5236 }
 0x42f   : > { %v1580_v48 = vpop.permute.xlu1 %1579  ;;  %4953 = vmatpush3.bf16.msra.mxu0 %v1887_v55 }
 0x431   : > { %4933 = vmatpush3.bf16.xpose.msra.mxu1 %v1656_v21  ;;  %v1891_v35 = vpop.permute.xlu0 %1890 }
 0x432   : > { %v6225_v42 = vpop.eup %5238  ;;  %5047 = vmatprep.subr.msk.bf16.mxu1 %vm1154_vm0, %v6187_v8 }
 0x433   : > { %v6229_v29 = vpop.eup %5240  ;;  %v1584_v62 = vpop.permute.xlu1 %1583  ;;  %v1418_v22 = vpack.c.bf16 %v6225_v42, %v6220_v17 }
 0x434   : > { %v1419_v37 = vpack.c.bf16 %v6223_v40, %v6229_v29 }
 0x435   : > { %4916 = vmatprep.mubr.bf16.mxu1 %v1418_v22  ;;  %v1893_v28 = vpop.permute.xlu0 %1892 }
 0x436   : > { %4917 = vmatmul.mubr.bf16.gmra.mrb[28].mxu1 %v1419_v37 }
 0x437   : > { %v1588_v12 = vpop.permute.xlu1 %1587  ;;  %4936 = vmatprep.mubr.msk.bf16.mxu1 %vm1154_vm0, %v1574_v23 }
 0x439   : > { %4935 = vmatpush3.bf16.xpose.msra.mxu1 %v1659_v32  ;;  %v1895_v34 = vpop.permute.xlu0 %1894 }
 0x43b   : > { %v1889_v27 = vpop.permute.xlu1 %1888 }
 0x43c   : > { %4954 = vmatprep.subr.bf16.mxu0 %v1889_v27 }
 0x43d   : > { %4955 = vmatpush3.bf16.msra.mxu0 %v1889_v27 }
 0x43e   : > { %4956 = vmatprep.subr.bf16.mxu0 %v1891_v35 }
 0x440   : > { %4937 = vmatmul.mubr.msk.bf16.vlgmr.msra.gmra.mrb[32].mxu1 %vm1154_vm0, %v1576_v16 }
 0x441   : > { %4940 = vmatprep.mubr.msk.bf16.mxu1 %vm1154_vm0, %v1578_v10  ;;  %4957 = vmatpush3.bf16.msra.mxu0 %v1891_v35 }
 0x442   : > { %4958 = vmatprep.subr.bf16.mxu0 %v1893_v28 }
 0x445   : > { %4959 = vmatpush3.bf16.msra.mxu0 %v1893_v28 }
 0x446   : > { %4960 = vmatprep.subr.bf16.mxu0 %v1895_v34 }
 0x448   : > { %4941 = vmatmul.mubr.msk.bf16.gmra.mrb[36].mxu1 %vm1154_vm0, %v1580_v48 }
 0x449   : > { %4944 = vmatprep.mubr.msk.bf16.mxu1 %vm1154_vm0, %v1582_v52  ;;  %4961 = vmatpush3.bf16.msra.mxu0 %v1895_v34 }
 0x450   : > { %4945 = vmatmul.mubr.msk.bf16.gmra.mrb[40].mxu1 %vm1154_vm0, %v1584_v62 }
 0x451   : > { %4948 = vmatprep.mubr.msk.bf16.mxu1 %vm1154_vm0, %v1586_v3 }
 0x458   : > { %4949 = vmatmul.mubr.msk.bf16.gmra.mrb[44].mxu1 %vm1154_vm0, %v1588_v12 }
 0x459   : > { %2756 = vmatprep.mubr.bf16.mxu1 %v7954_v46 }
 0x4b8   : > { %v6246_v8 = vpop.f32.mrb[16].mxu1 }
 0x4b9   : > { %v6248_v23 = vpop.f32.mrb[17].mxu1 }
 0x4ba   : > { %v6250_v10 = vpop.f32.mrb[18].mxu1 }
 0x4bb   : > { %v6252_v24 = vpop.f32.mrb[19].mxu1 }
 0x4f5   : > { %v6254_v36 = vpop.f32.mrb[20].mxu1 }
 0x4f6   : > { %v6256_v52 = vpop.f32.mrb[21].mxu1 }
 0x4f7   : > { %v6258_v14 = vpop.f32.mrb[22].mxu1 }
 0x4f8   : > { %v6260_v41 = vpop.f32.mrb[23].mxu1 }
 0x4fd   : > { %v6262_v54 = vpop.f32.mrb[24].mxu1 }
 0x4fe   : > { %v6264_v18 = vpop.f32.mrb[25].mxu1 }
 0x4ff   : > { %v6266_v3 = vpop.f32.mrb[26].mxu1 }
 0x500   : > { %v6268_v16 = vpop.f32.mrb[27].mxu1 }
 0x509   : > { %v6270_v55 = vpop.f32.mrb[28].mxu1 }
 0x50a   : > { %v6272_v48 = vpop.f32.mrb[29].mxu1 }
 0x50b   : > { %v6274_v21 = vpop.f32.mrb[30].mxu1 }
 0x50c   : > { %v6276_v62 = vpop.f32.mrb[31].mxu1 }
 0x513   : > { %v4938_v22 = vpop.f32.mrb[32].mxu1 }
 0x514   : > { %1762 = vmax.xlane.f32.xlu1 %v4938_v22  ;;  %v1695_v37 = vpop.f32.mrb[33].mxu1 }
 0x515   : > { %1758 = vmax.xlane.f32.xlu0 %v1695_v37  ;;  %v4939_v12 = vpop.f32.mrb[34].mxu1 }
 0x516   : > { %v1698_v32 = vpop.f32.mrb[35].mxu1 }
 0x518   : > { %1764 = vmax.xlane.f32.xlu1 %v4939_v12 }
 0x51b   : > { %v4942_v35 = vpop.f32.mrb[36].mxu1 }
 0x51c   : > { %1760 = vmax.xlane.f32.xlu1 %v1698_v32  ;;  %v6278_v27 = vpop.f32.mrb[37].mxu1 }
 0x51d   : > { %1766 = vmax.xlane.f32.xlu0 %v6278_v27  ;;  %v4943_v28 = vpop.f32.mrb[38].mxu1 }
 0x51e   : > { %v6281_v34 = vpop.f32.mrb[39].mxu1 }
 0x520   : > { %1770 = vmax.xlane.f32.xlu1 %v4942_v35 }
 0x523   : > { %v6283_v2 = vpop.f32.mrb[40].mxu1 }
 0x524   : > { %1772 = vmax.xlane.f32.xlu1 %v4943_v28  ;;  %v6285_v6 = vpop.f32.mrb[41].mxu1 }
 0x525   : > { %v6287_v15 = vpop.f32.mrb[42].mxu1 }
 0x526   : > { %v6289_v46 = vpop.f32.mrb[43].mxu1 }
 0x528   : > { %1768 = vmax.xlane.f32.xlu1 %v6281_v34 }
 0x52b   : > { %v6292_v1 = vpop.f32.mrb[44].mxu1 }
 0x52c   : > { %v6294_v0 = vpop.f32.mrb[45].mxu1 }
 0x52d   : > { %v6296_v33 = vpop.f32.mrb[46].mxu1 }
 0x52e   : > { %v6298_v59 = vpop.f32.mrb[47].mxu1 }
 0x533   : > { %1898 = vrot.lane.b32.xlu0 %v6028_v56, %s5539_s26 }
 0x537   : > { %1900 = vrot.lane.b32.xlu0 %v6024_v26, %s5539_s26 }
 0x539   : > { %1896 = vrot.lane.b32.xlu1 %v6000_v44, %s5539_s26 }
 0x556   : > { %1774 = vmax.xlane.f32.xlu0 %v6285_v6 }
 0x55a   : > { %1778 = vmax.xlane.f32.xlu0 %v6283_v2 }
 0x55d   : > { %1776 = vmax.xlane.f32.xlu1 %v6289_v46 }
 0x55e   : > { %1780 = vmax.xlane.f32.xlu0 %v6287_v15 }
 0x561   : > { %1784 = vmax.xlane.f32.xlu1 %v6298_v59 }
 0x562   : > { %1782 = vmax.xlane.f32.xlu0 %v6294_v0 }
 0x565   : > { %1788 = vmax.xlane.f32.xlu1 %v6296_v33 }
 0x566   : > { %1786 = vmax.xlane.f32.xlu0 %v6292_v1 }
 0x569   : > { %1382 = vadd.xlane.f32.xlu1 %v6161_v43 }
 0x56a   : > { %1380 = vadd.xlane.f32.xlu0 %v6159_v4 }
 0x56d   : > { %1386 = vadd.xlane.f32.xlu1 %v6157_v38 }
 0x56e   : > { %1384 = vadd.xlane.f32.xlu0 %v6163_v25 }
 0x571   : > { %1390 = vadd.xlane.f32.xlu1 %v6195_v53 }
 0x572   : > { %1388 = vadd.xlane.f32.xlu0 %v6189_v61 }
 0x575   : > { %1394 = vadd.xlane.f32.xlu1 %v6191_v5 }
 0x576   : > { %1392 = vadd.xlane.f32.xlu0 %v6198_v31 }
 0x579   : > { %1396 = vadd.xlane.f32.xlu1 %v6202_v13 }
 0x57a   : > { %1398 = vadd.xlane.f32.xlu0 %v6193_v7 }
 0x57d   : > { %1402 = vadd.xlane.f32.xlu1 %v6213_v11 }
 0x5a1   : > { %v1763_v44 = vpop.xlane.xlu1 %1762 }
 0x5a2   : > { %v1792_v26 = vsub.f32 %v4938_v22, %v1763_v44  ;;  %v1759_v56 = vpop.xlane.xlu0 %1758 }
 0x5a3   : > { %v1790_v38 = vsub.f32 %v1695_v37, %v1759_v56 }
 0x5a4   : > { %v1810_v4 = vmul.f32 1.442695, %v1792_v26 }
 0x5a5   : > { %v1806_v43 = vmul.f32 1.442695, %v1790_v38  ;;  %v1765_v25 = vpop.xlane.xlu1 %1764 }
 0x5a6   : > { %5242 = vpow2.f32 %v1810_v4  ;;  %v1793_v53 = vsub.f32 %v4939_v12, %v1765_v25 }
 0x5a7   : > { %5244 = vpow2.f32 %v1806_v43 }
 0x5a8   : > { %v1812_v61 = vmul.f32 1.442695, %v1793_v53 }
 0x5a9   : > { %v1761_v5 = vpop.xlane.xlu1 %1760 }
 0x5aa   : > { %5246 = vpow2.f32 %v1812_v61  ;;  %v1791_v31 = vsub.f32 %v1698_v32, %v1761_v5  ;;  %v1767_v7 = vpop.xlane.xlu0 %1766 }
 0x5ab   : > { %v1794_v22 = vsub.f32 %v6278_v27, %v1767_v7 }
 0x5ac   : > { %v1808_v58 = vmul.f32 1.442695, %v1791_v31 }
 0x5ad   : > { %v1771_v13 = vpop.xlane.xlu1 %1770  ;;  %v1814_v4 = vmul.f32 1.442695, %v1794_v22 }
 0x5ae   : > { %5248 = vpow2.f32 %v1808_v58  ;;  %v1796_v51 = vsub.f32 %v4942_v35, %v1771_v13  ;;  %v1899_v27 = vpop.permute.xlu0 %1898 }
 0x5b0   : > { %v5243_v11 = vpop.eup %5242  ;;  %v1818_v44 = vmul.f32 1.442695, %v1796_v51 }
 0x5b1   : > { %v1773_v37 = vpop.xlane.xlu1 %1772  ;;  %1842 = vadd.xlane.f32.xlu0 %v5243_v11  ;;  %v5245_v56 = vpop.eup %5244 }
 0x5b2   : > { %v1797_v26 = vsub.f32 %v4943_v28, %v1773_v37  ;;  %5250 = vpow2.f32 %v1818_v44 }
 0x5b4   : > { %v5247_v38 = vpop.eup %5246  ;;  %v1820_v12 = vmul.f32 1.442695, %v1797_v26 }
 0x5b5   : > { %v1769_v43 = vpop.xlane.xlu1 %1768  ;;  %1844 = vadd.xlane.f32.xlu1 %v5247_v38  ;;  %1838 = vadd.xlane.f32.xlu0 %v5245_v56  ;;  %v1871_v32 = vpack.c.bf16 %v5247_v38, %v5243_v11 }
 0x5b6   : > { %5252 = vpow2.f32 %v1820_v12  ;;  %v1795_v58 = vsub.f32 %v6281_v34, %v1769_v43  ;;  %v1901_v34 = vpop.permute.xlu0 %1900 }
 0x5b7   : > { %5254 = vpow2.f32 %v1814_v4 }
 0x5b8   : > { %v5249_v35 = vpop.eup %5248  ;;  %v1816_v25 = vmul.f32 1.442695, %v1795_v58 }
 0x5b9   : > { %v1897_v51 = vpop.permute.xlu1 %1896  ;;  %1840 = vadd.xlane.f32.xlu1 %v5249_v35  ;;  %1400 = vadd.xlane.f32.xlu0 %v6211_v9  ;;  %v1870_v28 = vpack.c.bf16 %v5249_v35, %v5245_v56 }
 0x5ba   : > { %5256 = vpow2.f32 %v1816_v25  ;;  %4962 = vmatprep.subr.bf16.mxu0 %v1897_v51 }
 0x5bb   : > { %4963 = vmatpush3.bf16.msra.mxu0 %v1897_v51  ;;  %4968 = vmatprep.mubr.bf16.mxu0 %v1870_v28 }
 0x5bc   : > { %4964 = vmatprep.subr.bf16.mxu0 %v1899_v27  ;;  %v5251_v53 = vpop.eup %5250 }
 0x5bd   : > { %1404 = vadd.xlane.f32.xlu1 %v6220_v17  ;;  %1406 = vadd.xlane.f32.xlu0 %v6225_v42 }
 0x5bf   : > { %4965 = vmatpush3.bf16.msra.mxu0 %v1899_v27 }
 0x5c0   : > { %v5253_v61 = vpop.eup %5252  ;;  %4966 = vmatprep.subr.bf16.mxu0 %v1901_v34 }
 0x5c1   : > { %1852 = vadd.xlane.f32.xlu1 %v5253_v61  ;;  %1850 = vadd.xlane.f32.xlu0 %v5251_v53  ;;  %v1873_v5 = vpack.c.bf16 %v5253_v61, %v5251_v53  ;;  %v5255_v31 = vpop.eup %5254 }
 0x5c3   : > { %4967 = vmatpush3.bf16.msra.mxu0 %v1901_v34 }
 0x5c4   : > { %v5257_v9 = vpop.eup %5256 }
 0x5c5   : > { %1848 = vadd.xlane.f32.xlu1 %v5257_v9  ;;  %1846 = vadd.xlane.f32.xlu0 %v5255_v31  ;;  %v1872_v13 = vpack.c.bf16 %v5257_v9, %v5255_v31 }
 0x5c6   : > { %4969 = vmatmul.mubr.bf16.vlgmr.msra.gmra.mrb[48].mxu0 %v1871_v32 }
 0x5c7   : > { %4972 = vmatprep.mubr.bf16.mxu0 %v1872_v13 }
 0x5ce   : > { %4973 = vmatmul.mubr.bf16.gmra.mrb[52].mxu0 %v1873_v5 }
 0x5e3   : > { %v1775_v17 = vpop.xlane.xlu0 %1774 }
 0x5e4   : > { %v1798_v42 = vsub.f32 %v6285_v6, %v1775_v17 }
 0x5e6   : > { %v1822_v22 = vmul.f32 1.442695, %v1798_v42 }
 0x5e7   : > { %v1779_v7 = vpop.xlane.xlu0 %1778 }
 0x5e8   : > { %v1800_v11 = vsub.f32 %v6283_v2, %v1779_v7 }
 0x5ea   : > { %v1826_v44 = vmul.f32 1.442695, %v1800_v11  ;;  %v1777_v37 = vpop.xlane.xlu1 %1776 }
 0x5eb   : > { %v1799_v26 = vsub.f32 %v6289_v46, %v1777_v37  ;;  %v1781_v56 = vpop.xlane.xlu0 %1780 }
 0x5ec   : > { %5258 = vpow2.f32 %v1826_v44  ;;  %v1801_v38 = vsub.f32 %v6287_v15, %v1781_v56 }
 0x5ed   : > { %v1824_v12 = vmul.f32 1.442695, %v1799_v26  ;;  %5260 = vpow2.f32 %v1822_v22 }
 0x5ee   : > { %v1828_v4 = vmul.f32 1.442695, %v1801_v38  ;;  %v1785_v43 = vpop.xlane.xlu1 %1784 }
 0x5ef   : > { %5262 = vpow2.f32 %v1824_v12  ;;  %v1803_v32 = vsub.f32 %v6298_v59, %v1785_v43  ;;  %v1783_v6 = vpop.xlane.xlu0 %1782 }
 0x5f0   : > { %5264 = vpow2.f32 %v1828_v4  ;;  %v1802_v2 = vsub.f32 %v6294_v0, %v1783_v6 }
 0x5f1   : > { %v1832_v58 = vmul.f32 1.442695, %v1803_v32 }
 0x5f2   : > { %v1830_v35 = vmul.f32 1.442695, %v1802_v2  ;;  %v1789_v25 = vpop.xlane.xlu1 %1788 }
 0x5f3   : > { %5266 = vpow2.f32 %v1832_v58  ;;  %v1805_v46 = vsub.f32 %v6296_v33, %v1789_v25  ;;  %v1787_v27 = vpop.xlane.xlu0 %1786 }
 0x5f4   : > { %5268 = vpow2.f32 %v1830_v35  ;;  %v1804_v15 = vsub.f32 %v6292_v1, %v1787_v27 }
 0x5f5   : > { %v1836_v51 = vmul.f32 1.442695, %v1805_v46 }
 0x5f6   : > { %v5259_v28 = vpop.eup %5258  ;;  %v1834_v53 = vmul.f32 1.442695, %v1804_v15  ;;  %v1383_v34 = vpop.xlane.xlu1 %1382 }
 0x5f7   : > { %5270 = vpow2.f32 %v1836_v51  ;;  %1858 = vadd.xlane.f32.xlu0 %v5259_v28  ;;  %v1381_v59 = vpop.xlane.xlu0 %1380  ;;  %v5261_v61 = vpop.eup %5260 }
 0x5f8   : > { %5272 = vpow2.f32 %v1834_v53 }
 0x5f9   : > { %v5263_v0 = vpop.eup %5262  ;;  %5274 = vrcp.f32 %v1383_v34 }
 0x5fa   : > { %v5265_v5 = vpop.eup %5264  ;;  %5276 = vrcp.f32 %v1381_v59  ;;  %v1387_v31 = vpop.xlane.xlu1 %1386  ;;  %v1874_v9 = vpack.c.bf16 %v5263_v0, %v5261_v61 }
 0x5fb   : > { %5278 = vrcp.f32 %v1387_v31  ;;  %1854 = vadd.xlane.f32.xlu0 %v5261_v61  ;;  %1860 = vadd.xlane.f32.xlu1 %v5265_v5  ;;  %v1385_v33 = vpop.xlane.xlu0 %1384  ;;  %v1875_v1 = vpack.c.bf16 %v5265_v5, %v5259_v28 }
 0x5fc   : > { %5280 = vrcp.f32 %v1385_v33  ;;  %4976 = vmatprep.mubr.bf16.mxu0 %v1874_v9 }
 0x5fd   : > { %v5267_v13 = vpop.eup %5266  ;;  %4977 = vmatmul.mubr.bf16.gmra.mrb[56].mxu0 %v1875_v1 }
 0x5fe   : > { %v5269_v17 = vpop.eup %5268  ;;  %v1391_v42 = vpop.xlane.xlu1 %1390 }
 0x5ff   : > { %5282 = vrcp.f32 %v1391_v42  ;;  %1856 = vadd.xlane.f32.xlu1 %v5263_v0  ;;  %v1389_v7 = vpop.xlane.xlu0 %1388  ;;  %v1876_v11 = vpack.c.bf16 %v5267_v13, %v5269_v17 }
 0x600   : > { %5284 = vrcp.f32 %v1389_v7 }
 0x601   : > { %v5271_v22 = vpop.eup %5270  ;;  %4980 = vmatprep.mubr.bf16.mxu0 %v1876_v11 }
 0x602   : > { %v5273_v44 = vpop.eup %5272  ;;  %v1395_v37 = vpop.xlane.xlu1 %1394 }
 0x603   : > { %v5275_v26 = vpop.eup %5274  ;;  %5286 = vrcp.f32 %v1395_v37  ;;  %1868 = vadd.xlane.f32.xlu1 %v5271_v22  ;;  %1866 = vadd.xlane.f32.xlu0 %v5273_v44  ;;  %v1393_v56 = vpop.xlane.xlu0 %1392  ;;  %v1877_v38 = vpack.c.bf16 %v5271_v22, %v5273_v44 }
 0x604   : > { %v5277_v12 = vpop.eup %5276  ;;  %5288 = vrcp.f32 %v1393_v56  ;;  %v1534_v4 = vmul.f32 %v5275_v26, %v6252_v24 }
 0x605   : > { %v5279_v43 = vpop.eup %5278  ;;  %4981 = vmatmul.mubr.bf16.gmra.mrb[60].mxu0 %v1877_v38  ;;  %v1533_v32 = vmul.f32 %v5277_v12, %v6248_v23  ;;  %v5090_v38 = vld [vmem:[%s7938_s3] sm:$0xff]   ;;  %v5095_v12 = vld [vmem:[%s7938_s3 + $0x28] sm:$0xff]  }
 0x606   : > { %v5281_v6 = vpop.eup %5280  ;;  %v1397_v2 = vpop.xlane.xlu1 %1396  ;;  %v1536_v58 = vmul.f32 %v5279_v43, %v6250_v10  ;;  %4984 = vmatprep.subr.bf16.mxu0 %v5090_v38 }
 0x607   : > { %5290 = vrcp.f32 %v1397_v2  ;;  %1864 = vadd.xlane.f32.xlu1 %v5267_v13  ;;  %1862 = vadd.xlane.f32.xlu0 %v5269_v17  ;;  %v1399_v35 = vpop.xlane.xlu0 %1398  ;;  %v1535_v25 = vmul.f32 %v5281_v6, %v6246_v8  ;;  %v1549_v46 = vpack.c.bf16 %v1534_v4, %v1533_v32  ;;  %v5096_v32 = vld [vmem:[%s7938_s3 + $0x30] sm:$0xff]   ;;  %v5097_v6 = vld [vmem:[%s7938_s3 + $0x38] sm:$0xff]  }
 0x608   : > { %5292 = vrcp.f32 %v1399_v35  ;;  %4985 = vmatpush3.bf16.msra.mxu0 %v5090_v38 }
 0x609   : > { %v5283_v27 = vpop.eup %5282  ;;  %v1550_v15 = vpack.c.bf16 %v1536_v58, %v1535_v25  ;;  %1557 = vst.msk [vmem:[#allocation2] sm:$0xff] %vm1154_vm0, %v1549_v46 }
 0x60a   : > { %v5285_v24 = vpop.eup %5284  ;;  %v1538_v51 = vmul.f32 %v5283_v27, %v6260_v41 }
 0x60b   : > { %1558 = vst.msk [vmem:[#allocation2 + $0x8] sm:$0xff] %vm1154_vm0, %v1550_v15  ;;  %v1537_v23 = vmul.f32 %v5285_v24, %v6256_v52  ;;  %v1403_v52 = vpop.xlane.xlu1 %1402 }
 0x60c   : > { %5294 = vrcp.f32 %v1403_v52 }
 0x60d   : > { %v5287_v10 = vpop.eup %5286  ;;  %v1551_v28 = vpack.c.bf16 %v1538_v51, %v1537_v23 }
 0x60e   : > { %v5289_v53 = vpop.eup %5288  ;;  %v1540_v34 = vmul.f32 %v5287_v10, %v6258_v14 }
 0x60f   : > { %v1539_v8 = vmul.f32 %v5289_v53, %v6254_v36  ;;  %1559 = vst.msk [vmem:[#allocation2 + $0x10] sm:$0xff] %vm1154_vm0, %v1551_v28 }
 0x611   : > { %v5291_v59 = vpop.eup %5290  ;;  %v1552_v61 = vpack.c.bf16 %v1540_v34, %v1539_v8 }
 0x612   : > { %v5293_v0 = vpop.eup %5292  ;;  %v1541_v5 = vmul.f32 %v5291_v59, %v6264_v18 }
 0x613   : > { %1560 = vst.msk [vmem:[#allocation2 + $0x18] sm:$0xff] %vm1154_vm0, %v1552_v61  ;;  %v1542_v41 = vmul.f32 %v5293_v0, %v6268_v16 }
 0x615   : > { %v1553_v31 = vpack.c.bf16 %v1542_v41, %v1541_v5 }
 0x616   : > { %v5295_v18 = vpop.eup %5294 }
 0x617   : > { %1561 = vst.msk [vmem:[#allocation2 + $0x20] sm:$0xff] %vm1154_vm0, %v1553_v31  ;;  %v1544_v16 = vmul.f32 %v5295_v18, %v6266_v3  ;;  %v5092_v3 = vld [vmem:[%s7938_s3 + $0x10] sm:$0xff]  }
 0x63e   : > { %v1843_v9 = vpop.xlane.xlu0 %1842 }
 0x642   : > { %v1845_v33 = vpop.xlane.xlu1 %1844  ;;  %v1839_v14 = vpop.xlane.xlu0 %1838 }
 0x646   : > { %v1841_v36 = vpop.xlane.xlu1 %1840  ;;  %v1401_v1 = vpop.xlane.xlu0 %1400 }
 0x647   : > { %5296 = vrcp.f32 %v1401_v1 }
 0x64a   : > { %v1405_v13 = vpop.xlane.xlu1 %1404  ;;  %v1407_v17 = vpop.xlane.xlu0 %1406 }
 0x64b   : > { %5298 = vrcp.f32 %v1405_v13 }
 0x64c   : > { %5300 = vrcp.f32 %v1407_v17 }
 0x64d   : > { %5302 = vrcp.f32 %v1843_v9 }
 0x64e   : > { %5304 = vrcp.f32 %v1839_v14  ;;  %v1853_v4 = vpop.xlane.xlu1 %1852  ;;  %v1851_v43 = vpop.xlane.xlu0 %1850 }
 0x64f   : > { %5306 = vrcp.f32 %v1845_v33 }
 0x650   : > { %5308 = vrcp.f32 %v1841_v36 }
 0x651   : > { %v5297_v42 = vpop.eup %5296  ;;  %5310 = vrcp.f32 %v1853_v4 }
 0x652   : > { %v1543_v7 = vmul.f32 %v5297_v42, %v6262_v54  ;;  %v5091_v54 = vld [vmem:[%s7938_s3 + $0x8] sm:$0xff]   ;;  %v1849_v2 = vpop.xlane.xlu1 %1848  ;;  %v1847_v58 = vpop.xlane.xlu0 %1846  ;;  %5312 = vrcp.f32 %v1851_v43 }
 0x653   : > { %4986 = vmatprep.subr.bf16.mxu0 %v5091_v54  ;;  %5314 = vrcp.f32 %v1849_v2 }
 0x654   : > { %v1554_v22 = vpack.c.bf16 %v1544_v16, %v1543_v7  ;;  %4987 = vmatpush3.bf16.msra.mxu0 %v5091_v54  ;;  %5316 = vrcp.f32 %v1847_v58 }
 0x655   : > { %v5299_v11 = vpop.eup %5298  ;;  %4988 = vmatprep.subr.bf16.mxu0 %v5092_v3 }
 0x656   : > { %v5301_v44 = vpop.eup %5300  ;;  %v1545_v37 = vmul.f32 %v5299_v11, %v6272_v48  ;;  %1562 = vst.msk [vmem:[#allocation2 + $0x28] sm:$0xff] %vm1154_vm0, %v1554_v22  ;;  %v5093_v48 = vld [vmem:[%s7938_s3 + $0x18] sm:$0xff]  }
 0x657   : > { %v1546_v26 = vmul.f32 %v5301_v44, %v6276_v62  ;;  %v5094_v62 = vld [vmem:[%s7938_s3 + $0x20] sm:$0xff]   ;;  %v5303_v35 = vpop.eup %5302 }
 0x658   : > { %4989 = vmatpush3.bf16.msra.mxu0 %v5092_v3  ;;  %v5305_v46 = vpop.eup %5304 }
 0x659   : > { %v1555_v56 = vpack.c.bf16 %v1546_v26, %v1545_v37  ;;  %4990 = vmatprep.subr.bf16.mxu0 %v5093_v48  ;;  %v5307_v24 = vpop.eup %5306 }
 0x65a   : > { %v5309_v10 = vpop.eup %5308 }
 0x65b   : > { %1563 = vst.msk [vmem:[#allocation2 + $0x30] sm:$0xff] %vm1154_vm0, %v1555_v56  ;;  %v5311_v61 = vpop.eup %5310 }
 0x65c   : > { %4991 = vmatpush3.bf16.msra.mxu0 %v5093_v48  ;;  %v5313_v5 = vpop.eup %5312 }
 0x65d   : > { %4992 = vmatprep.subr.bf16.mxu0 %v5094_v62  ;;  %v5315_v31 = vpop.eup %5314 }
 0x65e   : > { %v5317_v9 = vpop.eup %5316 }
 0x660   : > { %4993 = vmatpush3.bf16.msra.mxu0 %v5094_v62 }
 0x661   : > { %4994 = vmatprep.subr.bf16.mxu0 %v5095_v12 }
 0x664   : > { %4995 = vmatpush3.bf16.msra.mxu0 %v5095_v12 }
 0x665   : > { %4996 = vmatprep.subr.bf16.mxu0 %v5096_v32 }
 0x668   : > { %4997 = vmatpush3.bf16.msra.mxu0 %v5096_v32 }
 0x669   : > { %4998 = vmatprep.subr.bf16.mxu0 %v5097_v6 }
 0x66c   : > { %4999 = vmatpush3.bf16.msra.mxu0 %v5097_v6 }
 0x684   : > { %v1859_v7 = vpop.xlane.xlu0 %1858 }
 0x685   : > { %5318 = vrcp.f32 %v1859_v7 }
 0x688   : > { %v1861_v42 = vpop.xlane.xlu1 %1860  ;;  %v1855_v11 = vpop.xlane.xlu0 %1854 }
 0x689   : > { %5320 = vrcp.f32 %v1861_v42 }
 0x68a   : > { %5322 = vrcp.f32 %v1855_v11 }
 0x68c   : > { %v1857_v16 = vpop.xlane.xlu1 %1856 }
 0x68d   : > { %5324 = vrcp.f32 %v1857_v16 }
 0x68f   : > { %v5319_v56 = vpop.eup %5318 }
 0x690   : > { %v1869_v22 = vpop.xlane.xlu1 %1868  ;;  %v1867_v44 = vpop.xlane.xlu0 %1866 }
 0x691   : > { %5326 = vrcp.f32 %v1869_v22 }
 0x692   : > { %5328 = vrcp.f32 %v1867_v44 }
 0x693   : > { %v5321_v54 = vpop.eup %5320 }
 0x694   : > { %v1865_v37 = vpop.xlane.xlu1 %1864  ;;  %v1863_v26 = vpop.xlane.xlu0 %1862 }
 0x695   : > { %5330 = vrcp.f32 %v1865_v37  ;;  %v5323_v48 = vpop.eup %5322 }
 0x696   : > { %5332 = vrcp.f32 %v1863_v26 }
 0x697   : > { %v5325_v12 = vpop.eup %5324 }
 0x699   : > { %v4970_v25 = vpop.f32.mrb[48].mxu0 }
 0x69a   : > { %v2025_v27 = vmul.f32 %v5303_v35, %v4970_v25  ;;  %v1944_v15 = vpop.f32.mrb[49].mxu0 }
 0x69b   : > { %v2023_v51 = vmul.f32 %v5305_v46, %v1944_v15  ;;  %v4971_v23 = vpop.f32.mrb[50].mxu0  ;;  %v5327_v58 = vpop.eup %5326 }
 0x69c   : > { %v2026_v28 = vmul.f32 %v5307_v24, %v4971_v23  ;;  %v1947_v53 = vpop.f32.mrb[51].mxu0  ;;  %v5329_v25 = vpop.eup %5328 }
 0x69d   : > { %v2024_v34 = vmul.f32 %v5309_v10, %v1947_v53 }
 0x69e   : > { %v2040_v8 = vpack.c.bf16 %v2026_v28, %v2025_v27 }
 0x69f   : > { %v2039_v59 = vpack.c.bf16 %v2024_v34, %v2023_v51  ;;  %v5331_v27 = vpop.eup %5330 }
 0x6a0   : > { %2057 = vrot.lane.b32.xlu1 %v2040_v8, %s5539_s26  ;;  %v5333_v24 = vpop.eup %5332 }
 0x6a1   : > { %v4974_v0 = vpop.f32.mrb[52].mxu0  ;;  %2055 = vrot.lane.b32.xlu0 %v2039_v59, %s5539_s26 }
 0x6a2   : > { %v1960_v41 = vpop.f32.mrb[53].mxu0  ;;  %v2029_v33 = vmul.f32 %v5313_v5, %v4974_v0 }
 0x6a3   : > { %v4975_v52 = vpop.f32.mrb[54].mxu0  ;;  %v2027_v1 = vmul.f32 %v5317_v9, %v1960_v41 }
 0x6a4   : > { %v2030_v14 = vmul.f32 %v5311_v61, %v4975_v52  ;;  %v1963_v36 = vpop.f32.mrb[55].mxu0 }
 0x6a5   : > { %v2028_v13 = vmul.f32 %v5315_v31, %v1963_v36 }
 0x6a6   : > { %v2042_v17 = vpack.c.bf16 %v2030_v14, %v2029_v33 }
 0x6a7   : > { %v2041_v18 = vpack.c.bf16 %v2028_v13, %v2027_v1 }
 0x6a8   : > { %2061 = vrot.lane.b32.xlu1 %v2042_v17, %s5539_s26 }
 0x6a9   : > { %2059 = vrot.lane.b32.xlu0 %v2041_v18, %s5539_s26 }
 0x6c8   : > { %1408 = vadd.xlane.f32.xlu0 %v6229_v29 }
 0x6cc   : > { %1410 = vadd.xlane.f32.xlu1 %v6223_v40 }
 0x6d0   : > { %v4978_v38 = vpop.f32.mrb[56].mxu0 }
 0x6d1   : > { %v1976_v3 = vpop.f32.mrb[57].mxu0  ;;  %v2033_v4 = vmul.f32 %v5319_v56, %v4978_v38  ;;  %v8020_v56 = vmov 0  }
 0x6d2   : > { %v4979_v62 = vpop.f32.mrb[58].mxu0  ;;  %v2031_v29 = vmul.f32 %v5323_v48, %v1976_v3 }
 0x6d3   : > { %v2034_v43 = vmul.f32 %v5321_v54, %v4979_v62  ;;  %v1979_v32 = vpop.f32.mrb[59].mxu0 }
 0x6d4   : > { %v2032_v6 = vmul.f32 %v5325_v12, %v1979_v32 }
 0x6d5   : > { %v2044_v2 = vpack.c.bf16 %v2034_v43, %v2033_v4 }
 0x6d6   : > { %v2043_v40 = vpack.c.bf16 %v2032_v6, %v2031_v29 }
 0x6d8   : > { %v4982_v35 = vpop.f32.mrb[60].mxu0 }
 0x6d9   : > { %v1992_v46 = vpop.f32.mrb[61].mxu0  ;;  %v2037_v51 = vmul.f32 %v5329_v25, %v4982_v35 }
 0x6da   : > { %v4983_v15 = vpop.f32.mrb[62].mxu0  ;;  %v2035_v28 = vmul.f32 %v5333_v24, %v1992_v46 }
 0x6db   : > { %v2038_v23 = vmul.f32 %v5327_v58, %v4983_v15  ;;  %v1995_v10 = vpop.f32.mrb[63].mxu0 }
 0x6dc   : > { %v2036_v53 = vmul.f32 %v5331_v27, %v1995_v10 }
 0x6dd   : > { %v2046_v34 = vpack.c.bf16 %v2038_v23, %v2037_v51  ;;  %2065 = vrot.lane.b32.xlu1 %v2044_v2, %s5539_s26 }
 0x6de   : > { %v2045_v8 = vpack.c.bf16 %v2036_v53, %v2035_v28  ;;  %2063 = vrot.lane.b32.xlu0 %v2043_v40, %s5539_s26 }
 0x6e1   : > { %2067 = vrot.lane.b32.xlu1 %v2045_v8, %s5539_s26  ;;  %v8021_v8 = vld [vmem:[#allocation3_spill] sm:$0xff] }
 0x6e5   : > { %2069 = vrot.lane.b32.xlu1 %v2046_v34, %s5539_s26 }
 0x712   : > { %v2058_v59 = vpop.permute.xlu1 %2057 }
 0x713   : > { %2081 = vst.msk [vmem:[#allocation2 + $0x8] sm:$0xff] %vm2079_vm1, %v2058_v59  ;;  %v2056_v61 = vpop.permute.xlu0 %2055 }
 0x714   : > { %2080 = vst.msk [vmem:[#allocation2] sm:$0xff] %vm2079_vm1, %v2056_v61 }
 0x71a   : > { %v2062_v0 = vpop.permute.xlu1 %2061  ;;  %v2089_v31 = vld [vmem:[#allocation2 + $0x8] sm:$0xff] }
 0x71b   : > { %2083 = vst.msk [vmem:[#allocation2 + $0x18] sm:$0xff] %vm2079_vm1, %v2062_v0  ;;  %v2060_v5 = vpop.permute.xlu0 %2059  ;;  %v2088_v41 = vld [vmem:[#allocation2] sm:$0xff] }
 0x71c   : > { %2082 = vst.msk [vmem:[#allocation2 + $0x10] sm:$0xff] %vm2079_vm1, %v2060_v5  ;;  %5000 = vmatprep.mubr.bf16.mxu0 %v2088_v41 }
 0x71d   : > { %5001 = vmatmul.mubr.bf16.vlgmr.msra.gmra.mrb[64].mxu0 %v2089_v31  ;;  %v8022_v31 = vld [vmem:[#allocation4_spill] sm:$0xff] }
 0x722   : > { %v2091_v9 = vld [vmem:[#allocation2 + $0x18] sm:$0xff] }
 0x723   : > { %v2090_v52 = vld [vmem:[#allocation2 + $0x10] sm:$0xff] }
 0x724   : > { %5004 = vmatprep.mubr.bf16.mxu0 %v2090_v52 }
 0x725   : > { %5005 = vmatmul.mubr.bf16.gmra.mrb[68].mxu0 %v2091_v9 }
 0x755   : > { %v1409_v33 = vpop.xlane.xlu0 %1408 }
 0x756   : > { %5334 = vrcp.f32 %v1409_v33  ;;  %v8023_v33 = vld [vmem:[#allocation5_spill] sm:$0xff] }
 0x759   : > { %v1411_v14 = vpop.xlane.xlu1 %1410  ;;  %v2064_v36 = vpop.permute.xlu0 %2063 }
 0x75a   : > { %5336 = vrcp.f32 %v1411_v14  ;;  %2084 = vst.msk [vmem:[#allocation2 + $0x20] sm:$0xff] %vm2079_vm1, %v2064_v36  ;;  %v8024_v36 = vld [vmem:[#allocation6_spill] sm:$0xff] }
 0x75d   : > { %v2066_v1 = vpop.permute.xlu1 %2065 }
 0x75e   : > { %2085 = vst.msk [vmem:[#allocation2 + $0x28] sm:$0xff] %vm2079_vm1, %v2066_v1 }
 0x760   : > { %v5335_v18 = vpop.eup %5334 }
 0x761   : > { %v2068_v13 = vpop.permute.xlu1 %2067  ;;  %v2092_v17 = vld [vmem:[#allocation2 + $0x20] sm:$0xff]  ;;  %v1547_v16 = vmul.f32 %v5335_v18, %v6270_v55 }
 0x762   : > { %2086 = vst.msk [vmem:[#allocation2 + $0x30] sm:$0xff] %vm2079_vm1, %v2068_v13  ;;  %5008 = vmatprep.mubr.bf16.mxu0 %v2092_v17  ;;  %v8025_v13 = vld [vmem:[#allocation7_spill] sm:$0xff] }
 0x763   : > { %v5098_v18 = vld [vmem:[%s7942_s7] ss:$16 sps:$4 sm:$0xff]  }
 0x764   : > { %v5337_v42 = vpop.eup %5336 }
 0x765   : > { %v1548_v7 = vmul.f32 %v5337_v42, %v6274_v21  ;;  %v2093_v11 = vld [vmem:[#allocation2 + $0x28] sm:$0xff]  ;;  %v2070_v44 = vpop.permute.xlu1 %2069  ;;  %v4439_v21 = vld [vmem:[%s7939_s4] ss:$0 sm:$0xff]  ;;  %v5100_v42 = vld [vmem:[%s7942_s7 + $0x4] ss:$16 sps:$4 sm:$0xff]  }
 0x766   : > { %5009 = vmatmul.mubr.bf16.gmra.mrb[72].mxu0 %v2093_v11  ;;  %v5106_v11 = vld [vmem:[%s7942_s7 + $0x24] ss:$16 sps:$4 sm:$0xff]   ;;  %2724 = vmatprep.subr.bf16.mxu1 %v5100_v42 }
 0x767   : > { %v1556_v22 = vpack.c.bf16 %v1548_v7, %v1547_v16  ;;  %v5101_v7 = vld [vmem:[%s7942_s7 + $0x8] ss:$16 sps:$4 sm:$0xff]   ;;  %v5103_v16 = vld [vmem:[%s7942_s7 + $0xc] ss:$16 sps:$4 sm:$0xff]   ;;  %2725 = vmatpush1.bf16.msra.mxu1 %v5098_v18  ;;  %v5136_v42 = vld [vmem:[%s7942_s7 + $0xc4] ss:$16 sps:$4 sm:$0xff]  }
 0x768   : > { %2837 = vmatprep.subr.bf16.mxu0 %v5103_v16  ;;  %2726 = vmatprep.subr.bf16.mxu1 %v5106_v11  ;;  %v5131_v18 = vld [vmem:[%s7942_s7 + $0xa8] ss:$16 sps:$4 sm:$0xff]   ;;  %v5134_v16 = vld [vmem:[%s7942_s7 + $0xc0] ss:$16 sps:$4 sm:$0xff]  }
 0x769   : > { %1564 = vst.msk [vmem:[#allocation2 + $0x38] sm:$0xff] %vm1154_vm0, %v1556_v22  ;;  %v2094_v37 = vld [vmem:[#allocation2 + $0x30] sm:$0xff]  ;;  %v5109_v22 = vld [vmem:[%s7942_s7 + $0x2c] ss:$16 sps:$4 sm:$0xff]   ;;  %2838 = vmatpush1.bf16.msra.mxu0 %v5101_v7  ;;  %v5137_v11 = vld [vmem:[%s7942_s7 + $0xc8] ss:$16 sps:$4 sm:$0xff]  }
 0x76a   : > { %2087 = vst.msk [vmem:[#allocation2 + $0x38] sm:$0xff] %vm2079_vm1, %v2070_v44  ;;  %5012 = vmatprep.mubr.bf16.mxu0 %v2094_v37  ;;  %v5104_v44 = vld [vmem:[%s7942_s7 + $0x20] ss:$16 sps:$4 sm:$0xff]   ;;  %v5107_v37 = vld [vmem:[%s7942_s7 + $0x28] ss:$16 sps:$4 sm:$0xff]   ;;  %2839 = vmatprep.subr.bf16.mxu0 %v5109_v22 }
 0x76b   : > { %2727 = vmatpush1.bf16.msra.mxu1 %v5104_v44  ;;  %v5139_v7 = vld [vmem:[%s7942_s7 + $0xcc] ss:$16 sps:$4 sm:$0xff]   ;;  %v5140_v22 = vld [vmem:[%s7942_s7 + $0xe0] ss:$16 sps:$4 sm:$0xff]   ;;  %v5142_v44 = vld [vmem:[%s7942_s7 + $0xe4] ss:$16 sps:$4 sm:$0xff]  }
 0x76d   : > { %2840 = vmatpush1.bf16.msra.mxu0 %v5107_v37  ;;  %v5143_v37 = vld [vmem:[%s7942_s7 + $0xe8] ss:$16 sps:$4 sm:$0xff]  }
 0x771   : > { %v2095_v26 = vld [vmem:[#allocation2 + $0x38] sm:$0xff] }
 0x772   : > { %5013 = vmatmul.mubr.bf16.gmra.mrb[76].mxu0 %v2095_v26 }
 0x773   : > { %2869 = vmatprep.mubr.bf16.mxu0 %v8020_v56 }
 0x7f0   : > { %v5002_v38 = vpop.f32.mrb[64].mxu0 }
 0x7f1   : > { %v2201_v55 = vpop.f32.mrb[65].mxu0  ;;  %v2210_v62 = vadd.f32 %v5002_v38, %v4439_v21 }
 0x7f2   : > { %v2202_v54 = vadd.f32 %v4439_v21, %v2201_v55  ;;  %v5003_v3 = vpop.f32.mrb[66].mxu0 }
 0x7f3   : > { %v2204_v48 = vpop.f32.mrb[67].mxu0  ;;  %v6416_v32 = vadd.f32 %v2210_v62, %v5839_v60  ;;  %v2213_v29 = vadd.f32 %v5003_v3, %v4439_v21 }
 0x7f4   : > { %v6409_v12 = vadd.f32 %v2202_v54, %v5828_v45  ;;  %v2205_v4 = vadd.f32 %v4439_v21, %v2204_v48 }
 0x7f5   : > { %v6421_v45 = vadd.f32 %v2213_v29, %v5842_v63 }
 0x7f6   : > { %v6412_v43 = vadd.f32 %v2205_v4, %v5831_v47  ;;  %2282 = vadd.xlane.f32.xlu0 %v6409_v12 }
 0x7f8   : > { %2284 = vadd.xlane.f32.xlu1 %v6412_v43  ;;  %v5006_v6 = vpop.f32.mrb[68].mxu0 }
 0x7f9   : > { %v2217_v2 = vpop.f32.mrb[69].mxu0  ;;  %v2226_v60 = vadd.f32 %v5006_v6, %v4439_v21 }
 0x7fa   : > { %2286 = vadd.xlane.f32.xlu0 %v6416_v32  ;;  %v5007_v40 = vpop.f32.mrb[70].mxu0  ;;  %v2218_v35 = vadd.f32 %v4439_v21, %v2217_v2 }
 0x7fb   : > { %v2220_v58 = vpop.f32.mrb[71].mxu0  ;;  %v2229_v25 = vadd.f32 %v5007_v40, %v4439_v21  ;;  %v6436_v63 = vadd.f32 %v2226_v60, %v5864_v30 }
 0x7fc   : > { %v2221_v47 = vadd.f32 %v4439_v21, %v2220_v58  ;;  %v6428_v27 = vadd.f32 %v2218_v35, %v5853_v19 }
 0x7fd   : > { %v6432_v15 = vadd.f32 %v2229_v25, %v5867_v49 }
 0x7fe   : > { %v6424_v46 = vadd.f32 %v2221_v47, %v5856_v20  ;;  %2288 = vadd.xlane.f32.xlu0 %v6421_v45 }
 0x800   : > { %2292 = vadd.xlane.f32.xlu1 %v6424_v46 }
 0x802   : > { %2290 = vadd.xlane.f32.xlu0 %v6428_v27 }
 0x804   : > { %2296 = vadd.xlane.f32.xlu1 %v6432_v15 }
 0x806   : > { %2294 = vadd.xlane.f32.xlu0 %v6436_v63 }
 0x839   : > { %v5010_v20 = vpop.f32.mrb[72].mxu0 }
 0x83a   : > { %v2233_v24 = vpop.f32.mrb[73].mxu0  ;;  %v2242_v10 = vadd.f32 %v5010_v20, %v4439_v21 }
 0x83b   : > { %v2234_v51 = vadd.f32 %v4439_v21, %v2233_v24  ;;  %v5011_v23 = vpop.f32.mrb[74].mxu0 }
 0x83c   : > { %v2236_v19 = vpop.f32.mrb[75].mxu0  ;;  %v2245_v53 = vadd.f32 %v5011_v23, %v4439_v21  ;;  %v6448_v30 = vadd.f32 %v2242_v10, %v5889_v50 }
 0x83d   : > { %v6441_v28 = vadd.f32 %v2234_v51, %v5878_v39  ;;  %v2237_v49 = vadd.f32 %v4439_v21, %v2236_v19 }
 0x83e   : > { %v6452_v59 = vadd.f32 %v2245_v53, %v8021_v8  ;;  %v5115_v8 = vld [vmem:[%s7942_s7 + $0x4c] ss:$16 sps:$4 sm:$0xff]  }
 0x83f   : > { %v6444_v34 = vadd.f32 %v2237_v49, %v5881_v57  ;;  %2298 = vadd.xlane.f32.xlu0 %v6441_v28  ;;  %2841 = vmatprep.subr.bf16.mxu0 %v5115_v8 }
 0x841   : > { %2300 = vadd.xlane.f32.xlu1 %v6444_v34 }
 0x843   : > { %2302 = vadd.xlane.f32.xlu0 %v6448_v30 }
 0x845   : > { %v5014_v61 = vpop.f32.mrb[76].mxu0  ;;  %2304 = vadd.xlane.f32.xlu1 %v6452_v59 }
 0x846   : > { %v2249_v39 = vpop.f32.mrb[77].mxu0  ;;  %v2258_v41 = vadd.f32 %v5014_v61, %v4439_v21  ;;  %v5113_v61 = vld [vmem:[%s7942_s7 + $0x48] ss:$16 sps:$4 sm:$0xff]  }
 0x847   : > { %v2250_v0 = vadd.f32 %v4439_v21, %v2249_v39  ;;  %v5015_v5 = vpop.f32.mrb[78].mxu0  ;;  %2842 = vmatpush1.bf16.msra.mxu0 %v5113_v61  ;;  %v5118_v39 = vld [vmem:[%s7942_s7 + $0x64] ss:$16 sps:$4 sm:$0xff]  }
 0x848   : > { %v2252_v57 = vpop.f32.mrb[79].mxu0  ;;  %v2261_v9 = vadd.f32 %v5015_v5, %v4439_v21  ;;  %v6464_v1 = vadd.f32 %v2258_v41, %v8024_v36  ;;  %v5116_v5 = vld [vmem:[%s7942_s7 + $0x60] ss:$16 sps:$4 sm:$0xff]   ;;  %v5124_v41 = vld [vmem:[%s7942_s7 + $0x84] ss:$16 sps:$4 sm:$0xff]  }
 0x849   : > { %v6457_v52 = vadd.f32 %v2250_v0, %v8022_v31  ;;  %v2253_v50 = vadd.f32 %v4439_v21, %v2252_v57  ;;  %v5121_v0 = vld [vmem:[%s7942_s7 + $0x6c] ss:$16 sps:$4 sm:$0xff]   ;;  %v5119_v57 = vld [vmem:[%s7942_s7 + $0x68] ss:$16 sps:$4 sm:$0xff]  }
 0x84a   : > { %v6468_v17 = vadd.f32 %v2261_v9, %v8025_v13  ;;  %2843 = vmatprep.subr.bf16.mxu0 %v5121_v0  ;;  %v5127_v31 = vld [vmem:[%s7942_s7 + $0x8c] ss:$16 sps:$4 sm:$0xff]   ;;  %v5125_v9 = vld [vmem:[%s7942_s7 + $0x88] ss:$16 sps:$4 sm:$0xff]   ;;  %v5128_v13 = vld [vmem:[%s7942_s7 + $0xa0] ss:$16 sps:$4 sm:$0xff]  }
 0x84b   : > { %v6460_v14 = vadd.f32 %v2253_v50, %v8023_v33  ;;  %2306 = vadd.xlane.f32.xlu0 %v6457_v52  ;;  %2844 = vmatpush1.bf16.msra.mxu0 %v5119_v57  ;;  %v5122_v50 = vld [vmem:[%s7942_s7 + $0x80] ss:$16 sps:$4 sm:$0xff]   ;;  %v5130_v33 = vld [vmem:[%s7942_s7 + $0xa4] ss:$16 sps:$4 sm:$0xff]   ;;  %v5133_v36 = vld [vmem:[%s7942_s7 + $0xac] ss:$16 sps:$4 sm:$0xff]  }
 0x84c   : > { %2845 = vmatprep.subr.bf16.mxu0 %v5127_v31 }
 0x84d   : > { %2308 = vadd.xlane.f32.xlu1 %v6460_v14 }
 0x84f   : > { %2310 = vadd.xlane.f32.xlu0 %v6464_v1  ;;  %2846 = vmatpush1.bf16.msra.mxu0 %v5125_v9 }
 0x850   : > { %2847 = vmatprep.subr.bf16.mxu0 %v5133_v36 }
 0x851   : > { %2312 = vadd.xlane.f32.xlu1 %v6468_v17 }
 0x853   : > { %2848 = vmatpush1.bf16.msra.mxu0 %v5131_v18 }
 0x854   : > { %2849 = vmatprep.subr.bf16.mxu0 %v5139_v7 }
 0x857   : > { %2850 = vmatpush1.bf16.msra.mxu0 %v5137_v11 }
 0x883   : > { %v2283_v26 = vpop.xlane.xlu0 %2282 }
 0x884   : > { %v2314_v21 = vmul.f32 0.0078125, %v2283_v26  ;;  %v5145_v26 = vld [vmem:[%s7942_s7 + $0xec] ss:$16 sps:$4 sm:$0xff]  }
 0x885   : > { %v2285_v38 = vpop.xlane.xlu1 %2284  ;;  %2851 = vmatprep.subr.bf16.mxu0 %v5145_v26 }
 0x886   : > { %v6497_v55 = vsub.f32 %v6409_v12, %v2314_v21  ;;  %v2315_v54 = vmul.f32 0.0078125, %v2285_v38  ;;  %2852 = vmatpush1.bf16.msra.mxu0 %v5143_v37 }
 0x887   : > { %v2287_v3 = vpop.xlane.xlu0 %2286 }
 0x888   : > { %v6500_v48 = vsub.f32 %v6412_v43, %v2315_v54  ;;  %v2316_v62 = vmul.f32 0.0078125, %v2287_v3  ;;  %v2346_v4 = vmul.f32 %v6497_v55, %v6497_v55 }
 0x88a   : > { %v6505_v29 = vsub.f32 %v6416_v32, %v2316_v62  ;;  %2362 = vadd.xlane.f32.xlu0 %v2346_v4  ;;  %v2347_v6 = vmul.f32 %v6500_v48, %v6500_v48 }
 0x88b   : > { %v2289_v2 = vpop.xlane.xlu0 %2288 }
 0x88c   : > { %v2317_v40 = vmul.f32 0.0078125, %v2289_v2  ;;  %2364 = vadd.xlane.f32.xlu1 %v2347_v6  ;;  %v2348_v12 = vmul.f32 %v6505_v29, %v6505_v29 }
 0x88d   : > { %v2293_v58 = vpop.xlane.xlu1 %2292 }
 0x88e   : > { %v6512_v43 = vsub.f32 %v6421_v45, %v2317_v40  ;;  %v2319_v35 = vmul.f32 0.0078125, %v2293_v58  ;;  %2366 = vadd.xlane.f32.xlu0 %v2348_v12 }
 0x88f   : > { %v2291_v47 = vpop.xlane.xlu0 %2290 }
 0x890   : > { %v6515_v32 = vsub.f32 %v6424_v46, %v2319_v35  ;;  %v2318_v25 = vmul.f32 0.0078125, %v2291_v47  ;;  %v2349_v60 = vmul.f32 %v6512_v43, %v6512_v43 }
 0x891   : > { %v2297_v20 = vpop.xlane.xlu1 %2296 }
 0x892   : > { %v6520_v24 = vsub.f32 %v6428_v27, %v2318_v25  ;;  %v2321_v51 = vmul.f32 0.0078125, %v2297_v20  ;;  %2368 = vadd.xlane.f32.xlu1 %v2349_v60  ;;  %v2351_v10 = vmul.f32 %v6515_v32, %v6515_v32 }
 0x893   : > { %v2295_v23 = vpop.xlane.xlu0 %2294 }
 0x894   : > { %v6523_v45 = vsub.f32 %v6432_v15, %v2321_v51  ;;  %v2320_v19 = vmul.f32 0.0078125, %v2295_v23  ;;  %v2350_v46 = vmul.f32 %v6520_v24, %v6520_v24  ;;  %v5112_v15 = vld [vmem:[%s7942_s7 + $0x44] ss:$16 sps:$4 sm:$0xff]  }
 0x895   : > { %2728 = vmatprep.subr.bf16.mxu1 %v5112_v15 }
 0x896   : > { %v6530_v49 = vsub.f32 %v6436_v63, %v2320_v19  ;;  %2372 = vadd.xlane.f32.xlu1 %v2351_v10  ;;  %2370 = vadd.xlane.f32.xlu0 %v2350_v46  ;;  %v2353_v27 = vmul.f32 %v6523_v45, %v6523_v45  ;;  %v5110_v63 = vld [vmem:[%s7942_s7 + $0x40] ss:$16 sps:$4 sm:$0xff]  }
 0x897   : > { %2729 = vmatpush1.bf16.msra.mxu1 %v5110_v63 }
 0x898   : > { %v2352_v53 = vmul.f32 %v6530_v49, %v6530_v49  ;;  %2730 = vmatprep.subr.bf16.mxu1 %v5118_v39 }
 0x89a   : > { %2376 = vadd.xlane.f32.xlu1 %v2353_v27  ;;  %2374 = vadd.xlane.f32.xlu0 %v2352_v53 }
 0x89b   : > { %2731 = vmatpush1.bf16.msra.mxu1 %v5116_v5 }
 0x89c   : > { %2732 = vmatprep.subr.bf16.mxu1 %v5124_v41 }
 0x89f   : > { %2733 = vmatpush1.bf16.msra.mxu1 %v5122_v50 }
 0x8a0   : > { %2734 = vmatprep.subr.bf16.mxu1 %v5130_v33 }
 0x8a3   : > { %2735 = vmatpush1.bf16.msra.mxu1 %v5128_v13 }
 0x8a4   : > { %2736 = vmatprep.subr.bf16.mxu1 %v5136_v42 }
 0x8a7   : > { %2737 = vmatpush1.bf16.msra.mxu1 %v5134_v16  ;;  %v6651_v16 = vld [vmem:[%s7940_s5] ss:$0 sm:$0xff] }
 0x8a8   : > { %2738 = vmatprep.subr.bf16.mxu1 %v5142_v44 }
 0x8ab   : > { %2739 = vmatpush1.bf16.msra.mxu1 %v5140_v22 }
 0x8cc   : > { %v2299_v21 = vpop.xlane.xlu0 %2298 }
 0x8cd   : > { %v2322_v38 = vmul.f32 0.0078125, %v2299_v21 }
 0x8ce   : > { %v2301_v54 = vpop.xlane.xlu1 %2300 }
 0x8cf   : > { %v6609_v3 = vsub.f32 %v6441_v28, %v2322_v38  ;;  %v2323_v62 = vmul.f32 0.0078125, %v2301_v54 }
 0x8d0   : > { %v2303_v4 = vpop.xlane.xlu0 %2302 }
 0x8d1   : > { %v6612_v6 = vsub.f32 %v6444_v34, %v2323_v62  ;;  %v2324_v2 = vmul.f32 0.0078125, %v2303_v4  ;;  %v2354_v40 = vmul.f32 %v6609_v3, %v6609_v3 }
 0x8d2   : > { %v2305_v12 = vpop.xlane.xlu1 %2304 }
 0x8d3   : > { %v6617_v58 = vsub.f32 %v6448_v30, %v2324_v2  ;;  %v2325_v35 = vmul.f32 0.0078125, %v2305_v12  ;;  %2378 = vadd.xlane.f32.xlu0 %v2354_v40  ;;  %v2355_v47 = vmul.f32 %v6612_v6, %v6612_v6 }
 0x8d5   : > { %v6622_v28 = vsub.f32 %v6452_v59, %v2325_v35  ;;  %2380 = vadd.xlane.f32.xlu1 %v2355_v47  ;;  %v2356_v34 = vmul.f32 %v6617_v58, %v6617_v58  ;;  %v6659_v35 = vld [vmem:[%s7941_s6] ss:$0 sm:$0xff] }
 0x8d7   : > { %2382 = vadd.xlane.f32.xlu0 %v2356_v34  ;;  %v2357_v25 = vmul.f32 %v6622_v28, %v6622_v28 }
 0x8d8   : > { %v2307_v60 = vpop.xlane.xlu0 %2306 }
 0x8d9   : > { %v2326_v20 = vmul.f32 0.0078125, %v2307_v60  ;;  %2384 = vadd.xlane.f32.xlu1 %v2357_v25 }
 0x8da   : > { %v2309_v30 = vpop.xlane.xlu1 %2308 }
 0x8db   : > { %v6629_v51 = vsub.f32 %v6457_v52, %v2326_v20  ;;  %v2327_v23 = vmul.f32 0.0078125, %v2309_v30 }
 0x8dc   : > { %v2311_v19 = vpop.xlane.xlu0 %2310 }
 0x8dd   : > { %v6632_v59 = vsub.f32 %v6460_v14, %v2327_v23  ;;  %v2328_v10 = vmul.f32 0.0078125, %v2311_v19  ;;  %v2358_v46 = vmul.f32 %v6629_v51, %v6629_v51 }
 0x8de   : > { %v2313_v27 = vpop.xlane.xlu1 %2312 }
 0x8df   : > { %v6637_v53 = vsub.f32 %v6464_v1, %v2328_v10  ;;  %v2329_v15 = vmul.f32 0.0078125, %v2313_v27  ;;  %2386 = vadd.xlane.f32.xlu0 %v2358_v46  ;;  %v2359_v8 = vmul.f32 %v6632_v59, %v6632_v59 }
 0x8e1   : > { %v6642_v52 = vsub.f32 %v6468_v17, %v2329_v15  ;;  %2388 = vadd.xlane.f32.xlu1 %v2359_v8  ;;  %v2360_v14 = vmul.f32 %v6637_v53, %v6637_v53 }
 0x8e3   : > { %2390 = vadd.xlane.f32.xlu0 %v2360_v14  ;;  %v2361_v63 = vmul.f32 %v6642_v52, %v6642_v52 }
 0x8e5   : > { %2392 = vadd.xlane.f32.xlu1 %v2361_v63 }
 0x917   : > { %v2363_v61 = vpop.xlane.xlu0 %2362 }
 0x918   : > { %v2394_v1 = vmul.f32 0.0078125, %v2363_v61 }
 0x919   : > { %v2365_v39 = vpop.xlane.xlu1 %2364 }
 0x91a   : > { %v2410_v0 = vadd.f32 1e-12, %v2394_v1  ;;  %v2395_v5 = vmul.f32 0.0078125, %v2365_v39 }
 0x91b   : > { %v2367_v57 = vpop.xlane.xlu0 %2366 }
 0x91c   : > { %5338 = vrsqrt.f32 %v2410_v0  ;;  %v2411_v41 = vadd.f32 1e-12, %v2395_v5  ;;  %v2396_v31 = vmul.f32 0.0078125, %v2367_v57 }
 0x91e   : > { %5340 = vrsqrt.f32 %v2411_v41  ;;  %v2412_v17 = vadd.f32 1e-12, %v2396_v31 }
 0x91f   : > { %v2369_v50 = vpop.xlane.xlu1 %2368 }
 0x920   : > { %5342 = vrsqrt.f32 %v2412_v17  ;;  %v2397_v9 = vmul.f32 0.0078125, %v2369_v50 }
 0x922   : > { %v2413_v33 = vadd.f32 1e-12, %v2397_v9 }
 0x923   : > { %v2373_v36 = vpop.xlane.xlu1 %2372  ;;  %v2371_v13 = vpop.xlane.xlu0 %2370 }
 0x924   : > { %5344 = vrsqrt.f32 %v2413_v33  ;;  %v2399_v18 = vmul.f32 0.0078125, %v2373_v36  ;;  %v2398_v42 = vmul.f32 0.0078125, %v2371_v13 }
 0x926   : > { %v5339_v7 = vpop.eup %5338  ;;  %v2415_v11 = vadd.f32 1e-12, %v2399_v18  ;;  %v2414_v22 = vadd.f32 1e-12, %v2398_v42 }
 0x927   : > { %v2442_v44 = vmul.f32 %v5339_v7, %v6497_v55  ;;  %v2377_v37 = vpop.xlane.xlu1 %2376  ;;  %v2375_v26 = vpop.xlane.xlu0 %2374 }
 0x928   : > { %v5341_v21 = vpop.eup %5340  ;;  %5346 = vrsqrt.f32 %v2415_v11  ;;  %v2401_v38 = vmul.f32 0.0078125, %v2377_v37  ;;  %v2400_v54 = vmul.f32 0.0078125, %v2375_v26 }
 0x929   : > { %v2464_v62 = vmul.f32 %v6651_v16, %v2442_v44  ;;  %v2443_v4 = vmul.f32 %v5341_v21, %v6500_v48  ;;  %5348 = vrsqrt.f32 %v2414_v22 }
 0x92a   : > { %v5343_v2 = vpop.eup %5342  ;;  %v2417_v40 = vadd.f32 1e-12, %v2401_v38  ;;  %v2416_v12 = vadd.f32 1e-12, %v2400_v54 }
 0x92b   : > { %v2465_v55 = vmul.f32 %v6651_v16, %v2443_v4  ;;  %v6663_v47 = vadd.f32 %v6659_v35, %v2464_v62  ;;  %v2444_v48 = vmul.f32 %v5343_v2, %v6505_v29 }
 0x92c   : > { %5350 = vrsqrt.f32 %v2417_v40 }
 0x92d   : > { %8026 = vst [vmem:[#allocation3_spill] sm:$0xff] %v6663_v47  ;;  %v6666_v34 = vadd.f32 %v6659_v35, %v2465_v55  ;;  %5352 = vrsqrt.f32 %v2416_v12  ;;  %v2466_v30 = vmul.f32 %v6651_v16, %v2444_v48 }
 0x92e   : > { %v5345_v25 = vpop.eup %5344 }
 0x92f   : > { %8027 = vst [vmem:[#allocation4_spill] sm:$0xff] %v6666_v34  ;;  %v2502_v60 = vpack.c.bf16 %v6666_v34, %v6663_v47  ;;  %v2445_v20 = vmul.f32 %v5345_v25, %v6512_v43  ;;  %v6682_v43 = vadd.f32 %v6659_v35, %v2466_v30 }
 0x931   : > { %2757 = vmatmul.mubr.bf16.vlgmr.msra.gmra.mrb[48].mxu1 %v2502_v60  ;;  %2870 = vmatmul.mubr.bf16.vlgmr.msra.gmra.mrb[80].mxu0 %v2502_v60  ;;  %v2467_v23 = vmul.f32 %v6651_v16, %v2445_v20  ;;  %8029 = vst [vmem:[#allocation6_spill] sm:$0xff] %v6682_v43 }
 0x932   : > { %v5347_v19 = vpop.eup %5346  ;;  %2766 = vmatprep.mubr.bf16.mxu1 %v8020_v56  ;;  %2879 = vmatprep.mubr.bf16.mxu0 %v8020_v56 }
 0x933   : > { %v5349_v10 = vpop.eup %5348  ;;  %v6677_v29 = vadd.f32 %v6659_v35, %v2467_v23  ;;  %v2447_v46 = vmul.f32 %v5347_v19, %v6515_v32 }
 0x934   : > { %v2446_v27 = vmul.f32 %v5349_v10, %v6520_v24 }
 0x935   : > { %8028 = vst [vmem:[#allocation5_spill] sm:$0xff] %v6677_v29  ;;  %v2503_v8 = vpack.c.bf16 %v6677_v29, %v6682_v43  ;;  %v2469_v63 = vmul.f32 %v6651_v16, %v2447_v46 }
 0x936   : > { %v5351_v15 = vpop.eup %5350  ;;  %v2468_v14 = vmul.f32 %v6651_v16, %v2446_v27 }
 0x937   : > { %v5353_v61 = vpop.eup %5352  ;;  %v6694_v24 = vadd.f32 %v6659_v35, %v2469_v63  ;;  %v2449_v39 = vmul.f32 %v5351_v15, %v6523_v45 }
 0x938   : > { %v6691_v32 = vadd.f32 %v6659_v35, %v2468_v14  ;;  %v2448_v1 = vmul.f32 %v5353_v61, %v6530_v49 }
 0x939   : > { %2767 = vmatmul.mubr.bf16.gmra.mrb[52].mxu1 %v2503_v8  ;;  %2880 = vmatmul.mubr.bf16.gmra.mrb[84].mxu0 %v2503_v8  ;;  %8031 = vst [vmem:[#allocation9_spill] sm:$0xff] %v6694_v24  ;;  %v2471_v57 = vmul.f32 %v6651_v16, %v2449_v39 }
 0x93a   : > { %2776 = vmatprep.mubr.bf16.mxu1 %v8020_v56  ;;  %2889 = vmatprep.mubr.bf16.mxu0 %v8020_v56  ;;  %8030 = vst [vmem:[#allocation7_spill] sm:$0xff] %v6691_v32  ;;  %v2504_v0 = vpack.c.bf16 %v6694_v24, %v6691_v32  ;;  %v2470_v5 = vmul.f32 %v6651_v16, %v2448_v1 }
 0x93b   : > { %v6708_v49 = vadd.f32 %v6659_v35, %v2471_v57 }
 0x93c   : > { %v6705_v41 = vadd.f32 %v6659_v35, %v2470_v5 }
 0x93d   : > { %8033 = vst [vmem:[#allocation11_spill] sm:$0xff] %v6708_v49 }
 0x93e   : > { %8032 = vst [vmem:[#allocation10_spill] sm:$0xff] %v6705_v41  ;;  %v2505_v45 = vpack.c.bf16 %v6708_v49, %v6705_v41 }
 0x941   : > { %2777 = vmatmul.mubr.bf16.gmra.mrb[56].mxu1 %v2504_v0  ;;  %2890 = vmatmul.mubr.bf16.gmra.mrb[88].mxu0 %v2504_v0 }
 0x942   : > { %2786 = vmatprep.mubr.bf16.mxu1 %v8020_v56  ;;  %2899 = vmatprep.mubr.bf16.mxu0 %v8020_v56 }
 0x949   : > { %2787 = vmatmul.mubr.bf16.gmra.mrb[60].mxu1 %v2505_v45  ;;  %2900 = vmatmul.mubr.bf16.gmra.mrb[92].mxu0 %v2505_v45 }
 0x94a   : > { %2796 = vmatprep.mubr.bf16.mxu1 %v8020_v56  ;;  %2909 = vmatprep.mubr.bf16.mxu0 %v8020_v56 }
 0x960   : > { %v2379_v31 = vpop.xlane.xlu0 %2378 }
 0x961   : > { %v2402_v17 = vmul.f32 0.0078125, %v2379_v31 }
 0x962   : > { %v2381_v50 = vpop.xlane.xlu1 %2380 }
 0x963   : > { %v2418_v9 = vadd.f32 1e-12, %v2402_v17  ;;  %v2403_v33 = vmul.f32 0.0078125, %v2381_v50 }
 0x964   : > { %v2383_v36 = vpop.xlane.xlu0 %2382 }
 0x965   : > { %5354 = vrsqrt.f32 %v2418_v9  ;;  %v2419_v13 = vadd.f32 1e-12, %v2403_v33  ;;  %v2404_v18 = vmul.f32 0.0078125, %v2383_v36  ;;  %v5146_v9 = vld [vmem:[%s7944_s9 + $0x40] sm:$0xff]  }
 0x966   : > { %v2385_v42 = vpop.xlane.xlu1 %2384  ;;  %v6760_v33 = vld [vmem:[%s7944_s9 + $0xc0] sm:$0xff]   ;;  %4696 = vmatprep.subr.bf16.mxu1 %v5146_v9 }
 0x967   : > { %5356 = vrsqrt.f32 %v2419_v13  ;;  %v2420_v7 = vadd.f32 1e-12, %v2404_v18  ;;  %v2405_v11 = vmul.f32 0.0078125, %v2385_v42  ;;  %4760 = vmatprep.subr.bf16.mxu0 %v6760_v33  ;;  %v5150_v42 = vld [vmem:[%s7944_s9 + $0x48] sm:$0xff]  }
 0x969   : > { %5358 = vrsqrt.f32 %v2420_v7  ;;  %v2421_v22 = vadd.f32 1e-12, %v2405_v11  ;;  %v6783_v7 = vld [vmem:[%s7944_s9 + $0xc8] sm:$0xff]  }
 0x96a   : > { %8041 = vst [vmem:[#allocation19_spill] sm:$0xff] %v6783_v7 }
 0x96b   : > { %5360 = vrsqrt.f32 %v2421_v22 }
 0x96c   : > { %v2387_v44 = vpop.xlane.xlu0 %2386 }
 0x96d   : > { %v2406_v37 = vmul.f32 0.0078125, %v2387_v44 }
 0x96e   : > { %v2389_v26 = vpop.xlane.xlu1 %2388 }
 0x96f   : > { %v5355_v21 = vpop.eup %5354  ;;  %v2422_v38 = vadd.f32 1e-12, %v2406_v37  ;;  %v2407_v54 = vmul.f32 0.0078125, %v2389_v26  ;;  %v5154_v37 = vld [vmem:[%s7944_s9 + $0x50] sm:$0xff]  }
 0x970   : > { %v2391_v62 = vpop.xlane.xlu0 %2390  ;;  %v2450_v4 = vmul.f32 %v5355_v21, %v6609_v3  ;;  %v6810_v26 = vld [vmem:[%s7944_s9 + $0xd0] sm:$0xff]  }
 0x971   : > { %v5357_v2 = vpop.eup %5356  ;;  %5362 = vrsqrt.f32 %v2422_v38  ;;  %v2423_v40 = vadd.f32 1e-12, %v2407_v54  ;;  %v2408_v12 = vmul.f32 0.0078125, %v2391_v62  ;;  %8045 = vst [vmem:[#allocation23_spill] sm:$0xff] %v6810_v26  ;;  %v6819_v21 = vld [vmem:[%s7944_s9 + $0x90] sm:$0xff]   ;;  %v5158_v38 = vld [vmem:[%s7944_s9 + $0x58] sm:$0xff]  }
 0x972   : > { %v2393_v55 = vpop.xlane.xlu1 %2392  ;;  %v2451_v48 = vmul.f32 %v5357_v2, %v6612_v6  ;;  %v2472_v25 = vmul.f32 %v6651_v16, %v2450_v4  ;;  %8046 = vst [vmem:[#allocation24_spill] sm:$0xff] %v6819_v21  ;;  %v6828_v54 = vld [vmem:[%s7944_s9 + $0xd8] sm:$0xff]   ;;  %v5162_v2 = vld [vmem:[%s7944_s9 + $0x60] sm:$0xff]  }
 0x973   : > { %v5359_v60 = vpop.eup %5358  ;;  %5364 = vrsqrt.f32 %v2423_v40  ;;  %v2409_v20 = vmul.f32 0.0078125, %v2393_v55  ;;  %v2424_v19 = vadd.f32 1e-12, %v2408_v12  ;;  %8047 = vst [vmem:[#allocation25_spill] sm:$0xff] %v6828_v54  ;;  %v5160_v62 = vld [vmem:[%s7944_s9 + $0x18] sm:$0xff]   ;;  %v6846_v40 = vld [vmem:[%s7944_s9 + $0xe0] sm:$0xff]  }
 0x974   : > { %v2473_v30 = vmul.f32 %v6651_v16, %v2451_v48  ;;  %v6719_v46 = vadd.f32 %v6659_v35, %v2472_v25  ;;  %v2452_v27 = vmul.f32 %v5359_v60, %v6617_v58  ;;  %v6836_v4 = vld [vmem:[%s7944_s9 + $0x98] sm:$0xff]   ;;  %8049 = vst [vmem:[#allocation27_spill] sm:$0xff] %v6846_v40  ;;  %v5164_v12 = vld [vmem:[%s7944_s9 + $0x20] sm:$0xff]   ;;  %v5166_v48 = vld [vmem:[%s7944_s9 + $0x68] sm:$0xff]  }
 0x975   : > { %v5361_v23 = vpop.eup %5360  ;;  %v2425_v10 = vadd.f32 1e-12, %v2409_v20  ;;  %8048 = vst [vmem:[#allocation26_spill] sm:$0xff] %v6836_v4  ;;  %v6854_v55 = vld [vmem:[%s7944_s9 + $0xa0] sm:$0xff]   ;;  %v6864_v25 = vld [vmem:[%s7944_s9 + $0xe8] sm:$0xff]  }
 0x976   : > { %8034 = vst [vmem:[#allocation12_spill] sm:$0xff] %v6719_v46  ;;  %v6722_v3 = vadd.f32 %v6659_v35, %v2473_v30  ;;  %v2453_v6 = vmul.f32 %v5361_v23, %v6622_v28  ;;  %v2474_v14 = vmul.f32 %v6651_v16, %v2452_v27  ;;  %8050 = vst [vmem:[#allocation28_spill] sm:$0xff] %v6854_v55  ;;  %v5168_v60 = vld [vmem:[%s7944_s9 + $0x28] sm:$0xff]   ;;  %v5170_v30 = vld [vmem:[%s7944_s9 + $0x70] sm:$0xff]  }
 0x977   : > { %5366 = vrsqrt.f32 %v2425_v10  ;;  %8051 = vst [vmem:[#allocation29_spill] sm:$0xff] %v6864_v25  ;;  %v6872_v20 = vld [vmem:[%s7944_s9 + $0xa8] sm:$0xff]   ;;  %v6882_v23 = vld [vmem:[%s7944_s9 + $0xf0] sm:$0xff]   ;;  %v5174_v27 = vld [vmem:[%s7944_s9 + $0x78] sm:$0xff]  }
 0x978   : > { %8035 = vst [vmem:[#allocation13_spill] sm:$0xff] %v6722_v3  ;;  %v2506_v15 = vpack.c.bf16 %v6722_v3, %v6719_v46  ;;  %v2475_v8 = vmul.f32 %v6651_v16, %v2453_v6  ;;  %5368 = vrsqrt.f32 %v2424_v19  ;;  %v6736_v61 = vadd.f32 %v6659_v35, %v2474_v14  ;;  %8052 = vst [vmem:[#allocation30_spill] sm:$0xff] %v6872_v20  ;;  %v5172_v19 = vld [vmem:[%s7944_s9 + $0x30] sm:$0xff]   ;;  %v6900_v6 = vld [vmem:[%s7944_s9 + $0xf8] sm:$0xff]  }
 0x979   : > { %8053 = vst [vmem:[#allocation31_spill] sm:$0xff] %v6882_v23  ;;  %v6890_v10 = vld [vmem:[%s7944_s9 + $0xb0] sm:$0xff]   ;;  %8055 = vst [vmem:[#allocation33_spill] sm:$0xff] %v6900_v6  ;;  %v2542_v14 = vld [vmem:[%s7943_s8] sm:$0xf] }
 0x97a   : > { %2797 = vmatmul.mubr.bf16.gmra.mrb[64].mxu1 %v2506_v15  ;;  %2910 = vmatmul.mubr.bf16.gmra.mrb[96].mxu0 %v2506_v15  ;;  %v6733_v58 = vadd.f32 %v6659_v35, %v2475_v8  ;;  %8037 = vst [vmem:[#allocation15_spill] sm:$0xff] %v6736_v61  ;;  %8054 = vst [vmem:[#allocation32_spill] sm:$0xff] %v6890_v10  ;;  %v5176_v15 = vld [vmem:[%s7944_s9 + $0x38] sm:$0xff]  }
 0x97b   : > { %v5363_v63 = vpop.eup %5362  ;;  %2806 = vmatprep.mubr.bf16.mxu1 %v8020_v56  ;;  %2919 = vmatprep.mubr.bf16.mxu0 %v8020_v56  ;;  %v6908_v8 = vld [vmem:[%s7944_s9 + $0xb8] sm:$0xff]  }
 0x97c   : > { %8036 = vst [vmem:[#allocation14_spill] sm:$0xff] %v6733_v58  ;;  %v2454_v1 = vmul.f32 %v5363_v63, %v6629_v51  ;;  %v2507_v0 = vpack.c.bf16 %v6733_v58, %v6736_v61  ;;  %8056 = vst [vmem:[#allocation34_spill] sm:$0xff] %v6908_v8  ;;  %v8057_v63 = vld [vmem:[#allocation8_spill] sm:$0xff] }
 0x97d   : > { %v5365_v28 = vpop.eup %5364 }
 0x97e   : > { %v2455_v39 = vmul.f32 %v5365_v28, %v6632_v59  ;;  %v2476_v45 = vmul.f32 %v6651_v16, %v2454_v1  ;;  %v2558_v28 = vsub.s32 3, %v8057_v63  ;;  %v8058_v1 = vsub.s32 0, %v8057_v63 }
 0x980   : > { %v2477_v5 = vmul.f32 %v6651_v16, %v2455_v39  ;;  %v6751_v59 = vadd.f32 %v6659_v35, %v2476_v45  ;;  %v6919_v39 = vrot.slane %v2542_v14, %v8058_v1 }
 0x981   : > { %v5367_v57 = vpop.eup %5366 }
 0x982   : > { %2807 = vmatmul.mubr.bf16.gmra.mrb[68].mxu1 %v2507_v0  ;;  %2920 = vmatmul.mubr.bf16.gmra.mrb[100].mxu0 %v2507_v0  ;;  %v5369_v31 = vpop.eup %5368  ;;  %v6747_v17 = vadd.f32 %v6659_v35, %v2477_v5  ;;  %v2457_v51 = vmul.f32 %v5367_v57, %v6642_v52  ;;  %8039 = vst [vmem:[#allocation17_spill] sm:$0xff] %v6751_v59  ;;  %v6772_v52 = vld [vmem:[%s7944_s9 + $0x80] sm:$0xff]   ;;  %8059 = vst [vmem:[#allocation8_spill] sm:$0xff] %v6919_v39  ;;  %v8060_v0 = vsub.s32 2, %v8057_v63 }
 0x983   : > { %2816 = vmatprep.mubr.bf16.mxu1 %v8020_v56  ;;  %2929 = vmatprep.mubr.bf16.mxu0 %v8020_v56  ;;  %v2456_v50 = vmul.f32 %v5369_v31, %v6637_v53  ;;  %v5148_v53 = vld [vmem:[%s7944_s9] sm:$0xff]   ;;  %8040 = vst [vmem:[#allocation18_spill] sm:$0xff] %v6772_v52  ;;  %v8062_v57 = vsub.s32 1, %v8057_v63  ;;  %v6929_v31 = vrot.slane %v2542_v14, %v2558_v28 }
 0x984   : > { %8038 = vst [vmem:[#allocation16_spill] sm:$0xff] %v6747_v17  ;;  %v2508_v36 = vpack.c.bf16 %v6747_v17, %v6751_v59  ;;  %v2479_v13 = vmul.f32 %v6651_v16, %v2457_v51  ;;  %4697 = vmatpush3.bf16.msra.mxu1 %v5148_v53  ;;  %4761 = vmatpush3.bf16.msra.mxu0 %v6772_v52 }
 0x985   : > { %v2478_v18 = vmul.f32 %v6651_v16, %v2456_v50  ;;  %v5152_v16 = vld [vmem:[%s7944_s9 + $0x8] sm:$0xff]   ;;  %4698 = vmatprep.subr.bf16.mxu1 %v5150_v42  ;;  %4762 = vmatprep.subr.bf16.mxu0 %v6783_v7  ;;  %v6923_v5 = vrot.slane %v2542_v14, %v8060_v0  ;;  %v6927_v45 = vrot.slane %v2542_v14, %v8062_v57 }
 0x986   : > { %v6786_v11 = vadd.f32 %v6659_v35, %v2479_v13  ;;  %8064 = vst [vmem:[#allocation37_spill] sm:$0xff] %v6929_v31 }
 0x987   : > { %v6799_v22 = vadd.f32 %v6659_v35, %v2478_v18  ;;  %v5156_v35 = vld [vmem:[%s7944_s9 + $0x10] sm:$0xff]   ;;  %8061 = vst [vmem:[#allocation35_spill] sm:$0xff] %v6923_v5  ;;  %8063 = vst [vmem:[#allocation36_spill] sm:$0xff] %v6927_v45 }
 0x988   : > { %8042 = vst [vmem:[#allocation20_spill] sm:$0xff] %v6786_v11  ;;  %4699 = vmatpush3.bf16.msra.mxu1 %v5152_v16 }
 0x989   : > { %8044 = vst [vmem:[#allocation22_spill] sm:$0xff] %v6799_v22  ;;  %v2509_v44 = vpack.c.bf16 %v6786_v11, %v6799_v22  ;;  %4700 = vmatprep.subr.bf16.mxu1 %v5154_v37 }
 0x98a   : > { %2817 = vmatmul.mubr.bf16.gmra.mrb[72].mxu1 %v2508_v36  ;;  %2930 = vmatmul.mubr.bf16.gmra.mrb[104].mxu0 %v2508_v36 }
 0x98b   : > { %2826 = vmatprep.mubr.bf16.mxu1 %v8020_v56  ;;  %2939 = vmatprep.mubr.bf16.mxu0 %v8020_v56  ;;  %v6795_v56 = vld [vmem:[%s7944_s9 + $0x88] sm:$0xff]  }
 0x98c   : > { %8043 = vst [vmem:[#allocation21_spill] sm:$0xff] %v6795_v56  ;;  %4763 = vmatpush3.bf16.msra.mxu0 %v6795_v56  ;;  %4701 = vmatpush3.bf16.msra.mxu1 %v5156_v35 }
 0x98d   : > { %4764 = vmatprep.subr.bf16.mxu0 %v6810_v26  ;;  %4702 = vmatprep.subr.bf16.mxu1 %v5158_v38 }
 0x990   : > { %4765 = vmatpush3.bf16.msra.mxu0 %v6819_v21  ;;  %4703 = vmatpush3.bf16.msra.mxu1 %v5160_v62 }
 0x991   : > { %4766 = vmatprep.subr.bf16.mxu0 %v6828_v54  ;;  %4704 = vmatprep.subr.bf16.mxu1 %v5162_v2 }
 0x992   : > { %2827 = vmatmul.mubr.bf16.gmra.mrb[76].mxu1 %v2509_v44  ;;  %2940 = vmatmul.mubr.bf16.gmra.mrb[108].mxu0 %v2509_v44 }
 0x994   : > { %4767 = vmatpush3.bf16.msra.mxu0 %v6836_v4  ;;  %4705 = vmatpush3.bf16.msra.mxu1 %v5164_v12 }
 0x995   : > { %4768 = vmatprep.subr.bf16.mxu0 %v6846_v40  ;;  %4706 = vmatprep.subr.bf16.mxu1 %v5166_v48 }
 0x998   : > { %4769 = vmatpush3.bf16.msra.mxu0 %v6854_v55  ;;  %4707 = vmatpush3.bf16.msra.mxu1 %v5168_v60 }
 0x999   : > { %4770 = vmatprep.subr.bf16.mxu0 %v6864_v25  ;;  %4708 = vmatprep.subr.bf16.mxu1 %v5170_v30 }
 0x99c   : > { %4771 = vmatpush3.bf16.msra.mxu0 %v6872_v20  ;;  %4709 = vmatpush3.bf16.msra.mxu1 %v5172_v19 }
 0x99d   : > { %4772 = vmatprep.subr.bf16.mxu0 %v6882_v23  ;;  %4710 = vmatprep.subr.bf16.mxu1 %v5174_v27 }
 0x9a0   : > { %4773 = vmatpush3.bf16.msra.mxu0 %v6890_v10  ;;  %4711 = vmatpush3.bf16.msra.mxu1 %v5176_v15 }
 0x9a1   : > { %4774 = vmatprep.subr.bf16.mxu0 %v6900_v6  ;;  %5016 = vmatprep.subr.bf16.mxu1 %v6760_v33 }
 0x9a4   : > { %4775 = vmatpush3.bf16.msra.mxu0 %v6908_v8 }
 0xa04   : > { %v2758_v51 = vpop.f32.mrb[48].mxu1  ;;  %v2871_v50 = vpop.f32.mrb[80].mxu0 }
 0xa05   : > { %v2759_v9 = vadd.f32 %v2758_v51, %v6919_v39  ;;  %v2872_v33 = vadd.f32 %v2871_v50, %v6923_v5  ;;  %v2760_v36 = vpop.f32.mrb[49].mxu1  ;;  %v2873_v13 = vpop.f32.mrb[81].mxu0 }
 0xa06   : > { %v6934_v53 = vadd.f32 %v2760_v36, %v6927_v45  ;;  %v6937_v18 = vadd.f32 %v2873_v13, %v6929_v31  ;;  %v2762_v42 = vpop.f32.mrb[50].mxu1  ;;  %v2875_v16 = vpop.f32.mrb[82].mxu0 }
 0xa07   : > { %v3014_v44 = vmul.f32 0.044715, %v2759_v9  ;;  %v3016_v37 = vmul.f32 0.044715, %v2872_v33  ;;  %v2763_v38 = vadd.f32 %v2762_v42, %v6919_v39  ;;  %v2876_v62 = vadd.f32 %v2875_v16, %v6923_v5  ;;  %v2764_v2 = vpop.f32.mrb[51].mxu1  ;;  %v2877_v12 = vpop.f32.mrb[83].mxu0 }
 0xa08   : > { %v3015_v35 = vmul.f32 0.044715, %v6934_v53  ;;  %v3017_v30 = vmul.f32 0.044715, %v6937_v18  ;;  %v6944_v19 = vadd.f32 %v2764_v2, %v6927_v45  ;;  %v6947_v28 = vadd.f32 %v2877_v12, %v6929_v31 }
 0xa09   : > { %v3078_v48 = vmul.f32 %v3014_v44, %v2759_v9  ;;  %v3080_v60 = vmul.f32 %v3016_v37, %v2872_v33  ;;  %v3018_v27 = vmul.f32 0.044715, %v2763_v38  ;;  %v3020_v63 = vmul.f32 0.044715, %v2876_v62 }
 0xa0a   : > { %v3079_v1 = vmul.f32 %v3015_v35, %v6934_v53  ;;  %v3081_v36 = vmul.f32 %v3017_v30, %v6937_v18  ;;  %v3019_v42 = vmul.f32 0.044715, %v6944_v19 }
 0xa0b   : > { %v3142_v15 = vmul.f32 %v3078_v48, %v2759_v9  ;;  %v3144_v14 = vmul.f32 %v3080_v60, %v2872_v33  ;;  %v3082_v0 = vmul.f32 %v3018_v27, %v2763_v38  ;;  %v3084_v13 = vmul.f32 %v3020_v63, %v2876_v62 }
 0xa0c   : > { %v2768_v57 = vpop.f32.mrb[52].mxu1  ;;  %v2881_v51 = vpop.f32.mrb[84].mxu0  ;;  %v6958_v27 = vmul.f32 0.5, %v2759_v9  ;;  %v3021_v63 = vmul.f32 0.044715, %v6947_v28  ;;  %v6976_v61 = vmul.f32 %v3081_v36, %v6937_v18 }
 0xa0d   : > { %v3206_v50 = vadd.f32 %v3142_v15, %v2759_v9  ;;  %v2770_v16 = vpop.f32.mrb[53].mxu1  ;;  %v2883_v44 = vpop.f32.mrb[85].mxu0  ;;  %v3208_v37 = vadd.f32 %v3144_v14, %v2872_v33  ;;  %v3146_v2 = vmul.f32 %v3082_v0, %v2763_v38  ;;  %v6953_v48 = vadd.f32 %v2768_v57, %v6919_v39 }
 0xa0e   : > { %v6956_v12 = vadd.f32 %v2881_v51, %v6923_v5  ;;  %v2772_v35 = vpop.f32.mrb[54].mxu1  ;;  %v2885_v60 = vpop.f32.mrb[86].mxu0  ;;  %v6960_v15 = vmul.f32 0.5, %v2872_v33  ;;  %v3148_v30 = vmul.f32 %v3084_v13, %v2876_v62  ;;  %v6963_v14 = vmul.f32 0.5, %v2763_v38 }
 0xa0f   : > { %v2774_v11 = vpop.f32.mrb[55].mxu1  ;;  %v2887_v22 = vpop.f32.mrb[87].mxu0  ;;  %v3270_v17 = vmul.f32 0.7978846, %v3206_v50  ;;  %v3210_v0 = vadd.f32 %v3146_v2, %v2763_v38  ;;  %v6965_v57 = vmul.f32 0.5, %v2876_v62  ;;  %v6970_v9 = vadd.f32 %v2770_v16, %v6927_v45 }
 0xa10   : > { %8065 = vst [vmem:[#allocation38_spill] sm:$0xff] %v6956_v12  ;;  %v3212_v59 = vadd.f32 %v3148_v30, %v2876_v62  ;;  %v3022_v51 = vmul.f32 0.044715, %v6953_v48  ;;  %v3024_v58 = vmul.f32 0.044715, %v6956_v12  ;;  %v6973_v13 = vmul.f32 %v3079_v1, %v6934_v53 }
 0xa11   : > { %v3272_v33 = vmul.f32 0.7978846, %v3208_v37  ;;  %v3083_v50 = vmul.f32 %v3019_v42, %v6944_v19  ;;  %v3085_v38 = vmul.f32 %v3021_v63, %v6947_v28  ;;  %v3023_v62 = vmul.f32 0.044715, %v6970_v9 }
 0xa12   : > { %v6982_v2 = vadd.f32 %v2883_v44, %v6929_v31  ;;  %v6985_v30 = vadd.f32 %v2772_v35, %v6919_v39  ;;  %5370 = vtanh.f32 %v3270_v17  ;;  %v3274_v16 = vmul.f32 0.7978846, %v3210_v0 }
 0xa13   : > { %v3276_v37 = vmul.f32 0.7978846, %v3212_v59  ;;  %v6988_v1 = vadd.f32 %v2885_v60, %v6923_v5  ;;  %v3086_v42 = vmul.f32 %v3022_v51, %v6953_v48  ;;  %v3088_v63 = vmul.f32 %v3024_v58, %v6956_v12 }
 0xa14   : > { %8066 = vst [vmem:[#allocation39_spill] sm:$0xff] %v6985_v30  ;;  %v2778_v36 = vpop.f32.mrb[56].mxu1  ;;  %v2891_v3 = vpop.f32.mrb[88].mxu0  ;;  %v3025_v46 = vmul.f32 0.044715, %v6982_v2  ;;  %v3087_v35 = vmul.f32 %v3023_v62, %v6970_v9  ;;  %v6997_v59 = vadd.f32 %v2774_v11, %v6927_v45  ;;  %v7000_v60 = vadd.f32 %v2887_v22, %v6929_v31 }
 0xa15   : > { %8067 = vst [vmem:[#allocation40_spill] sm:$0xff] %v6988_v1  ;;  %v3026_v44 = vmul.f32 0.044715, %v6985_v30  ;;  %v2780_v49 = vpop.f32.mrb[57].mxu1  ;;  %v2893_v41 = vpop.f32.mrb[89].mxu0  ;;  %5372 = vtanh.f32 %v3272_v33  ;;  %v7003_v58 = vmul.f32 %v3083_v50, %v6944_v19  ;;  %v7006_v24 = vadd.f32 %v2778_v36, %v6919_v39 }
 0xa16   : > { %v3028_v17 = vmul.f32 0.044715, %v6988_v1  ;;  %v2782_v0 = vpop.f32.mrb[58].mxu1  ;;  %v2895_v51 = vpop.f32.mrb[90].mxu0  ;;  %v7009_v32 = vadd.f32 %v2891_v3, %v6923_v5  ;;  %5374 = vtanh.f32 %v3274_v16  ;;  %v7012_v11 = vmul.f32 %v3085_v38, %v6947_v28 }
 0xa17   : > { %v2784_v62 = vpop.f32.mrb[59].mxu1  ;;  %v2897_v29 = vpop.f32.mrb[91].mxu0  ;;  %v3089_v22 = vmul.f32 %v3025_v46, %v6982_v2  ;;  %v3027_v43 = vmul.f32 0.044715, %v6997_v59  ;;  %v7017_v33 = vmul.f32 %v3086_v42, %v6953_v48  ;;  %v3090_v50 = vmul.f32 %v3026_v44, %v6985_v30 }
 0xa18   : > { %v3029_v36 = vmul.f32 0.044715, %v7000_v60  ;;  %v7022_v3 = vadd.f32 %v2780_v49, %v6927_v45  ;;  %5376 = vtanh.f32 %v3276_v37  ;;  %v7025_v16 = vmul.f32 %v3088_v63, %v6956_v12 }
 0xa19   : > { %8068 = vst [vmem:[#allocation41_spill] sm:$0xff] %v7017_v33  ;;  %v7028_v38 = vmul.f32 %v3087_v35, %v6970_v9  ;;  %v3092_v46 = vmul.f32 %v3028_v17, %v6988_v1  ;;  %v3030_v34 = vmul.f32 0.044715, %v7006_v24  ;;  %v3032_v42 = vmul.f32 0.044715, %v7009_v32 }
 0xa1a   : > { %8069 = vst [vmem:[#allocation42_spill] sm:$0xff] %v7025_v16  ;;  %v7034_v44 = vadd.f32 %v2893_v41, %v6929_v31  ;;  %v7037_v47 = vadd.f32 %v2782_v0, %v6919_v39  ;;  %v7040_v49 = vmul.f32 %v3089_v22, %v6982_v2  ;;  %v3091_v37 = vmul.f32 %v3027_v43, %v6997_v59 }
 0xa1b   : > { %v3031_v63 = vmul.f32 0.044715, %v7022_v3  ;;  %v7045_v35 = vadd.f32 %v2895_v51, %v6923_v5  ;;  %v7048_v6 = vmul.f32 %v3090_v50, %v6985_v30  ;;  %v3093_v41 = vmul.f32 %v3029_v36, %v7000_v60 }
 0xa1c   : > { %v2788_v17 = vpop.f32.mrb[60].mxu1  ;;  %v2901_v8 = vpop.f32.mrb[92].mxu0  ;;  %v3033_v0 = vmul.f32 0.044715, %v7034_v44  ;;  %v3034_v10 = vmul.f32 0.044715, %v7037_v47  ;;  %v7057_v51 = vadd.f32 %v2784_v62, %v6927_v45  ;;  %v7060_v25 = vadd.f32 %v2897_v29, %v6929_v31 }
 0xa1d   : > { %8070 = vst [vmem:[#allocation43_spill] sm:$0xff] %v7048_v6  ;;  %v2790_v22 = vpop.f32.mrb[61].mxu1  ;;  %v2903_v23 = vpop.f32.mrb[93].mxu0  ;;  %v3036_v43 = vmul.f32 0.044715, %v7045_v35  ;;  %v7063_v50 = vadd.f32 %v2788_v17, %v6919_v39  ;;  %v7066_v40 = vmul.f32 %v3092_v46, %v6988_v1  ;;  %v3094_v4 = vmul.f32 %v3030_v34, %v7006_v24 }
 0xa1e   : > { %v7053_v20 = vpop.eup %5370  ;;  %v2792_v36 = vpop.f32.mrb[62].mxu1  ;;  %v3096_v54 = vmul.f32 %v3032_v42, %v7009_v32  ;;  %v7071_v21 = vadd.f32 %v2901_v8, %v6923_v5  ;;  %v7074_v29 = vmul.f32 %v3091_v37, %v6997_v59  ;;  %v3035_v17 = vmul.f32 0.044715, %v7057_v51 }
 0xa1f   : > { %v2905_v55 = vpop.f32.mrb[94].mxu0  ;;  %8071 = vst [vmem:[#allocation44_spill] sm:$0xff] %v7066_v40  ;;  %v2794_v62 = vpop.f32.mrb[63].mxu1  ;;  %v3037_v56 = vmul.f32 0.044715, %v7060_v25  ;;  %v7080_v52 = vmul.f32 %v3093_v41, %v7000_v60  ;;  %v3095_v34 = vmul.f32 %v3031_v63, %v7022_v3  ;;  %v7085_v42 = vadd.f32 %v2790_v22, %v6927_v45 }
 0xa20   : > { %8072 = vst [vmem:[#allocation45_spill] sm:$0xff] %v7071_v21  ;;  %v2907_v26 = vpop.f32.mrb[95].mxu0  ;;  %v3038_v7 = vmul.f32 0.044715, %v7063_v50  ;;  %v5373_v46 = vpop.eup %5372  ;;  %v3040_v8 = vmul.f32 0.044715, %v7071_v21  ;;  %v3097_v37 = vmul.f32 %v3033_v0, %v7034_v44  ;;  %v3098_v1 = vmul.f32 %v3034_v10, %v7037_v47 }
 0xa21   : > { %v5375_v40 = vpop.eup %5374  ;;  %v3100_v16 = vmul.f32 %v3036_v43, %v7045_v35  ;;  %v3099_v12 = vmul.f32 %v3035_v17, %v7057_v51  ;;  %v3101_v6 = vmul.f32 %v3037_v56, %v7060_v25  ;;  %v3039_v41 = vmul.f32 0.044715, %v7085_v42 }
 0xa22   : > { %v7094_v63 = vadd.f32 %v2903_v23, %v6929_v31  ;;  %v7097_v30 = vadd.f32 %v2792_v36, %v6919_v39  ;;  %v5377_v22 = vpop.eup %5376  ;;  %v7100_v33 = vmul.f32 %v3094_v4, %v7006_v24  ;;  %v7103_v10 = vmul.f32 %v3096_v54, %v7009_v32 }
 0xa23   : > { %v3102_v0 = vmul.f32 %v3038_v7, %v7063_v50  ;;  %v7107_v43 = vadd.f32 %v2905_v55, %v6923_v5  ;;  %v7110_v56 = vmul.f32 %v3095_v34, %v7022_v3  ;;  %v3104_v23 = vmul.f32 %v3040_v8, %v7071_v21 }
 0xa24   : > { %v3103_v36 = vmul.f32 %v3039_v41, %v7085_v42  ;;  %v3041_v17 = vmul.f32 0.044715, %v7094_v63  ;;  %v7116_v4 = vmul.f32 %v3097_v37, %v7034_v44  ;;  %v7119_v54 = vmul.f32 %v3098_v1, %v7037_v47 }
 0xa25   : > { %v3042_v7 = vmul.f32 0.044715, %v7097_v30  ;;  %v3044_v55 = vmul.f32 0.044715, %v7107_v43  ;;  %v7124_v5 = vmul.f32 %v3100_v16, %v7045_v35  ;;  %v7127_v34 = vmul.f32 %v3099_v12, %v7057_v51 }
 0xa26   : > { %v7130_v8 = vmul.f32 %v3101_v6, %v7060_v25  ;;  %v7133_v41 = vadd.f32 %v2794_v62, %v6927_v45  ;;  %v7136_v37 = vmul.f32 %v3102_v0, %v7063_v50  ;;  %v3105_v1 = vmul.f32 %v3041_v17, %v7094_v63 }
 0xa27   : > { %v7140_v39 = vadd.f32 %v2907_v26, %v6929_v31  ;;  %v3207_v16 = vadd.f32 %v6973_v13, %v6934_v53  ;;  %v7145_v12 = vmul.f32 %v3104_v23, %v7071_v21  ;;  %v7148_v6 = vmul.f32 %v3103_v36, %v7085_v42 }
 0xa28   : > { %v7151_v62 = vmul.f32 0.5, %v6934_v53  ;;  %v3211_v0 = vadd.f32 %v7003_v58, %v6944_v19  ;;  %v3106_v17 = vmul.f32 %v3042_v7, %v7097_v30  ;;  %v3108_v26 = vmul.f32 %v3044_v55, %v7107_v43 }
 0xa29   : > { %8073 = vst [vmem:[#allocation46_spill] sm:$0xff] %v7145_v12  ;;  %v7158_v31 = vmul.f32 0.5, %v6944_v19  ;;  %v3271_v13 = vmul.f32 0.7978846, %v3207_v16  ;;  %v3043_v23 = vmul.f32 0.044715, %v7133_v41  ;;  %v3209_v36 = vadd.f32 %v6976_v61, %v6937_v18 }
 0xa2a   : > { %v3275_v45 = vmul.f32 0.7978846, %v3211_v0  ;;  %v3213_v53 = vadd.f32 %v7012_v11, %v6947_v28  ;;  %v7166_v12 = vmul.f32 %v3105_v1, %v7094_v63  ;;  %v3045_v58 = vmul.f32 0.044715, %v7140_v39 }
 0xa2b   : > { %5378 = vtanh.f32 %v3271_v13  ;;  %v3398_v7 = vadd.f32 1.0, %v7053_v20  ;;  %v3273_v19 = vmul.f32 0.7978846, %v3209_v36  ;;  %v3402_v16 = vadd.f32 1.0, %v5375_v40 }
 0xa2c   : > { %5380 = vtanh.f32 %v3275_v45  ;;  %v3277_v55 = vmul.f32 0.7978846, %v3213_v53  ;;  %v7171_v0 = vmul.f32 %v3106_v17, %v7097_v30  ;;  %v7174_v61 = vmul.f32 0.5, %v6937_v18 }
 0xa2d   : > { %v3400_v21 = vadd.f32 1.0, %v5373_v46  ;;  %v3404_v11 = vadd.f32 1.0, %v5377_v22  ;;  %5382 = vtanh.f32 %v3273_v19  ;;  %v7177_v1 = vmul.f32 %v3398_v7, %v6958_v27  ;;  %v8075_v7 = vld [vmem:[#allocation39_spill] sm:$0xff] }
 0xa2e   : > { %v7180_v13 = vmul.f32 %v3402_v16, %v6963_v14  ;;  %v3215_v20 = vadd.f32 %v7028_v38, %v6970_v9  ;;  %5384 = vtanh.f32 %v3277_v55  ;;  %v3219_v18 = vadd.f32 %v7074_v29, %v6997_v59  ;;  %v8076_v19 = vld [vmem:[#allocation43_spill] sm:$0xff]  ;;  %v8077_v16 = vld [vmem:[#allocation38_spill] sm:$0xff] }
 0xa2f   : > { %v7185_v40 = vmul.f32 %v3400_v21, %v6960_v15  ;;  %v7188_v45 = vmul.f32 %v3404_v11, %v6965_v57  ;;  %v3107_v46 = vmul.f32 %v3043_v23, %v7133_v41  ;;  %v3109_v27 = vmul.f32 %v3045_v58, %v7140_v39  ;;  %v8074_v23 = vld [vmem:[#allocation41_spill] sm:$0xff]  ;;  %v8078_v11 = vld [vmem:[#allocation42_spill] sm:$0xff] }
 0xa30   : > { %v3526_v14 = vpack.c.bf16 %v7180_v13, %v7177_v1  ;;  %v3279_v22 = vmul.f32 0.7978846, %v3215_v20  ;;  %v3283_v17 = vmul.f32 0.7978846, %v3219_v18  ;;  %v3217_v21 = vadd.f32 %v7040_v49, %v6982_v2  ;;  %v8079_v18 = vld [vmem:[#allocation40_spill] sm:$0xff] }
 0xa31   : > { %v3528_v38 = vpack.c.bf16 %v7188_v45, %v7185_v40  ;;  %v3221_v15 = vadd.f32 %v7080_v52, %v7000_v60  ;;  %v7203_v57 = vmul.f32 %v3108_v26, %v7107_v43  ;;  %v2957_v29 = vmul.f32 0.5, %v6947_v28  ;;  %v8083_v45 = vld [vmem:[#allocation21_spill] sm:$0xff] }
 0xa32   : > { %5386 = vtanh.f32 %v3279_v22  ;;  %v3214_v36 = vadd.f32 %v8074_v23, %v6953_v48  ;;  %v3281_v53 = vmul.f32 0.7978846, %v3217_v21  ;;  %v3218_v55 = vadd.f32 %v8076_v19, %v8075_v7  ;;  %v8080_v22 = vld [vmem:[#allocation44_spill] sm:$0xff] }
 0xa33   : > { %5388 = vtanh.f32 %v3283_v17  ;;  %v3285_v58 = vmul.f32 0.7978846, %v3221_v15  ;;  %v7211_v49 = vmul.f32 %v3107_v46, %v7133_v41  ;;  %v7214_v52 = vmul.f32 %v3109_v27, %v7140_v39 }
 0xa34   : > { %v3278_v26 = vmul.f32 0.7978846, %v3214_v36  ;;  %v3216_v28 = vadd.f32 %v8078_v11, %v8077_v16  ;;  %v2959_v13 = vmul.f32 0.5, %v6970_v9  ;;  %5390 = vtanh.f32 %v3281_v53 }
 0xa35   : > { %v5379_v1 = vpop.eup %5378  ;;  %v3282_v20 = vmul.f32 0.7978846, %v3218_v55  ;;  %v3220_v17 = vadd.f32 %v8080_v22, %v8079_v18  ;;  %v2963_v46 = vmul.f32 0.5, %v6997_v59  ;;  %5392 = vtanh.f32 %v3285_v58 }
 0xa36   : > { %v5381_v21 = vpop.eup %5380  ;;  %v3399_v15 = vadd.f32 1.0, %v5379_v1  ;;  %v3280_v23 = vmul.f32 0.7978846, %v3216_v28  ;;  %5394 = vtanh.f32 %v3278_v26  ;;  %v3223_v19 = vadd.f32 %v7110_v56, %v7022_v3 }
 0xa37   : > { %v3403_v27 = vadd.f32 1.0, %v5381_v21  ;;  %v3284_v36 = vmul.f32 0.7978846, %v3220_v17  ;;  %v5383_v11 = vpop.eup %5382  ;;  %v2961_v53 = vmul.f32 0.5, %v6982_v2  ;;  %5396 = vtanh.f32 %v3282_v20 }
 0xa38   : > { %v3463_v9 = vmul.f32 %v3399_v15, %v7151_v62  ;;  %v3227_v55 = vadd.f32 %v7127_v34, %v7057_v51  ;;  %v5385_v1 = vpop.eup %5384  ;;  %v3401_v58 = vadd.f32 1.0, %v5383_v11  ;;  %5398 = vtanh.f32 %v3280_v23 }
 0xa39   : > { %v3467_v59 = vmul.f32 %v3403_v27, %v7158_v31  ;;  %v3287_v28 = vmul.f32 0.7978846, %v3223_v19  ;;  %v3405_v26 = vadd.f32 1.0, %v5385_v1  ;;  %v2965_v22 = vmul.f32 0.5, %v7000_v60 }
 0xa3a   : > { %5400 = vtanh.f32 %v3284_v36  ;;  %v3291_v56 = vmul.f32 0.7978846, %v3227_v55  ;;  %v2958_v62 = vmul.f32 0.5, %v6953_v48  ;;  %v3225_v2 = vadd.f32 %v7116_v4, %v7034_v44  ;;  %v8081_v55 = vld [vmem:[#allocation18_spill] sm:$0xff] }
 0xa3b   : > { %v3527_v17 = vpack.c.bf16 %v3467_v59, %v3463_v9  ;;  %5402 = vtanh.f32 %v3287_v28  ;;  %v3465_v34 = vmul.f32 %v3401_v58, %v7174_v61  ;;  %v3469_v21 = vmul.f32 %v3405_v26, %v2957_v29 }
 0xa3c   : > { %v5387_v20 = vpop.eup %5386  ;;  %5404 = vtanh.f32 %v3291_v56  ;;  %v3229_v31 = vadd.f32 %v7130_v8, %v7060_v25  ;;  %v2962_v23 = vmul.f32 0.5, %v8075_v7  ;;  %v3289_v27 = vmul.f32 0.7978846, %v3225_v2 }
 0xa3d   : > { %v5389_v15 = vpop.eup %5388  ;;  %3853 = vmatprep.mubr.bf16.mxu1 %v3527_v17  ;;  %v3407_v60 = vadd.f32 1.0, %v5387_v20  ;;  %v3222_v48 = vadd.f32 %v7100_v33, %v7006_v24  ;;  %v3529_v36 = vpack.c.bf16 %v3469_v21, %v3465_v34  ;;  %v3226_v61 = vadd.f32 %v7119_v54, %v7037_v47 }
 0xa3e   : > { %3854 = vmatmul.mubr.bf16.vlgmr.msra.gmra.mrb[80].mxu1 %v3526_v14  ;;  %v3411_v4 = vadd.f32 1.0, %v5389_v15  ;;  %v3293_v19 = vmul.f32 0.7978846, %v3229_v31  ;;  %v5391_v29 = vpop.eup %5390  ;;  %v2960_v8 = vmul.f32 0.5, %v8077_v16  ;;  %5406 = vtanh.f32 %v3289_v27  ;;  %v8082_v14 = vld [vmem:[#allocation19_spill] sm:$0xff] }
 0xa3f   : > { %v3471_v11 = vmul.f32 %v3407_v60, %v2959_v13  ;;  %v3286_v9 = vmul.f32 0.7978846, %v3222_v48  ;;  %5024 = vmatpush3.bf16.msra.mxu1 %v8081_v55  ;;  %v5393_v7 = vpop.eup %5392  ;;  %3950 = vmatprep.mubr.bf16.mxu0 %v3529_v36  ;;  %v3409_v59 = vadd.f32 1.0, %v5391_v29  ;;  %v3290_v33 = vmul.f32 0.7978846, %v3226_v61 }
 0xa40   : > { %v3475_v1 = vmul.f32 %v3411_v4, %v2963_v46  ;;  %5408 = vtanh.f32 %v3293_v19  ;;  %5017 = vmatprep.subr.bf16.mxu1 %v8082_v14  ;;  %v5395_v58 = vpop.eup %5394  ;;  %3951 = vmatmul.mubr.bf16.vlgmr.msra.gmra.mrb[112].mxu0 %v3528_v38  ;;  %v3413_v54 = vadd.f32 1.0, %v5393_v7  ;;  %v2964_v16 = vmul.f32 0.5, %v8079_v18 }
 0xa41   : > { %5410 = vtanh.f32 %v3286_v9  ;;  %v3224_v13 = vadd.f32 %v7103_v10, %v7009_v32  ;;  %v5397_v28 = vpop.eup %5396  ;;  %v3473_v46 = vmul.f32 %v3409_v59, %v2961_v53  ;;  %v3406_v56 = vadd.f32 1.0, %v5395_v58  ;;  %v8084_v53 = vld [vmem:[#allocation23_spill] sm:$0xff]  ;;  %v8086_v9 = vld [vmem:[#allocation25_spill] sm:$0xff] }
 0xa42   : > { %v3531_v26 = vpack.c.bf16 %v3475_v1, %v3471_v11  ;;  %5412 = vtanh.f32 %v3290_v33  ;;  %v5399_v17 = vpop.eup %5398  ;;  %v3477_v2 = vmul.f32 %v3413_v54, %v2965_v22  ;;  %v3410_v20 = vadd.f32 1.0, %v5397_v28  ;;  %v8087_v28 = vld [vmem:[#allocation26_spill] sm:$0xff] }
 0xa43   : > { %v3228_v34 = vadd.f32 %v7124_v5, %v7045_v35  ;;  %v3288_v40 = vmul.f32 0.7978846, %v3224_v13  ;;  %5025 = vmatpush3.bf16.msra.mxu1 %v8083_v45  ;;  %v3470_v18 = vmul.f32 %v3406_v56, %v2958_v62  ;;  %v3408_v21 = vadd.f32 1.0, %v5399_v17 }
 0xa44   : > { %v5401_v38 = vpop.eup %5400  ;;  %3861 = vmatprep.mubr.bf16.mxu1 %v3531_v26  ;;  %v2967_v10 = vmul.f32 0.5, %v7022_v3  ;;  %v2971_v31 = vmul.f32 0.5, %v7057_v51  ;;  %5018 = vmatprep.subr.bf16.mxu1 %v8084_v53  ;;  %v3533_v60 = vpack.c.bf16 %v3477_v2, %v3473_v46  ;;  %v3474_v22 = vmul.f32 %v3410_v20, %v2962_v23  ;;  %v8085_v51 = vld [vmem:[#allocation24_spill] sm:$0xff]  ;;  %v8088_v20 = vld [vmem:[#allocation27_spill] sm:$0xff] }
 0xa45   : > { %v5403_v15 = vpop.eup %5402  ;;  %v3412_v27 = vadd.f32 1.0, %v5401_v38  ;;  %v3292_v48 = vmul.f32 0.7978846, %v3228_v34  ;;  %v3472_v5 = vmul.f32 %v3408_v21, %v2960_v8  ;;  %5414 = vtanh.f32 %v3288_v40 }
 0xa46   : > { %v5405_v36 = vpop.eup %5404  ;;  %v3415_v4 = vadd.f32 1.0, %v5403_v15  ;;  %v3231_v19 = vadd.f32 %v7148_v6, %v7085_v42  ;;  %3958 = vmatprep.mubr.bf16.mxu0 %v3533_v60  ;;  %v3530_v62 = vpack.c.bf16 %v3474_v22, %v3470_v18  ;;  %v2969_v29 = vmul.f32 0.5, %v7034_v44 }
 0xa47   : > { %v3476_v61 = vmul.f32 %v3412_v27, %v2964_v16  ;;  %v3419_v3 = vadd.f32 1.0, %v5405_v36  ;;  %5416 = vtanh.f32 %v3292_v48  ;;  %5026 = vmatpush3.bf16.msra.mxu1 %v8085_v51  ;;  %v2973_v23 = vmul.f32 0.5, %v7060_v25  ;;  %v8093_v51 = vld [vmem:[#allocation8_spill] sm:$0xff] }
 0xa48   : > { %v3235_v11 = vadd.f32 %v7211_v49, %v7133_v41  ;;  %v3295_v8 = vmul.f32 0.7978846, %v3231_v19  ;;  %5019 = vmatprep.subr.bf16.mxu1 %v8086_v9  ;;  %v5407_v55 = vpop.eup %5406  ;;  %3862 = vmatmul.mubr.bf16.gmra.mrb[84].mxu1 %v3530_v62  ;;  %v3479_v7 = vmul.f32 %v3415_v4, %v2967_v10  ;;  %v3233_v59 = vadd.f32 %v7166_v12, %v7094_v63  ;;  %v8092_v62 = vld [vmem:[#allocation29_spill] sm:$0xff] }
 0xa49   : > { %v3532_v6 = vpack.c.bf16 %v3476_v61, %v3472_v5  ;;  %v3483_v1 = vmul.f32 %v3419_v3, %v2971_v31  ;;  %v3417_v14 = vadd.f32 1.0, %v5407_v55  ;;  %v3237_v25 = vadd.f32 %v7214_v52, %v7140_v39  ;;  %v8090_v5 = vld [vmem:[#allocation45_spill] sm:$0xff] }
 0xa4a   : > { %v5409_v33 = vpop.eup %5408  ;;  %v3299_v58 = vmul.f32 0.7978846, %v3235_v11  ;;  %5418 = vtanh.f32 %v3295_v8  ;;  %v2966_v16 = vmul.f32 0.5, %v7006_v24  ;;  %v3297_v13 = vmul.f32 0.7978846, %v3233_v59 }
 0xa4b   : > { %v5411_v44 = vpop.eup %5410  ;;  %3959 = vmatmul.mubr.bf16.gmra.mrb[116].mxu0 %v3532_v6  ;;  %v3535_v49 = vpack.c.bf16 %v3483_v1, %v3479_v7  ;;  %v3421_v54 = vadd.f32 1.0, %v5409_v33  ;;  %5027 = vmatpush3.bf16.msra.mxu1 %v8087_v28  ;;  %v2970_v46 = vmul.f32 0.5, %v7037_v47  ;;  %v3301_v56 = vmul.f32 0.7978846, %v3237_v25  ;;  %v8097_v28 = vld [vmem:[#allocation31_spill] sm:$0xff] }
 0xa4c   : > { %v5413_v26 = vpop.eup %5412  ;;  %v3414_v12 = vadd.f32 1.0, %v5411_v44  ;;  %5420 = vtanh.f32 %v3299_v58  ;;  %5020 = vmatprep.subr.bf16.mxu1 %v8088_v20  ;;  %v3481_v52 = vmul.f32 %v3417_v14, %v2969_v29  ;;  %v2968_v38 = vmul.f32 0.5, %v7009_v32  ;;  %v8089_v32 = vld [vmem:[#allocation28_spill] sm:$0xff] }
 0xa4d   : > { %v2798_v17 = vpop.f32.mrb[64].mxu1  ;;  %v2911_v2 = vpop.f32.mrb[96].mxu0  ;;  %3869 = vmatprep.mubr.bf16.mxu1 %v3535_v49  ;;  %v3485_v34 = vmul.f32 %v3421_v54, %v2973_v23  ;;  %v3418_v40 = vadd.f32 1.0, %v5413_v26  ;;  %5422 = vtanh.f32 %v3297_v13  ;;  %v3230_v47 = vadd.f32 %v7136_v37, %v7063_v50  ;;  %v8094_v23 = vld [vmem:[#allocation35_spill] sm:$0xff]  ;;  %v8095_v14 = vld [vmem:[#allocation36_spill] sm:$0xff]  ;;  %v8096_v49 = vld [vmem:[#allocation30_spill] sm:$0xff] }
 0xa4e   : > { %v2800_v45 = vpop.f32.mrb[65].mxu1  ;;  %v2913_v24 = vpop.f32.mrb[97].mxu0  ;;  %5424 = vtanh.f32 %v3301_v56  ;;  %v3234_v18 = vadd.f32 %v7171_v0, %v7097_v30  ;;  %v3478_v53 = vmul.f32 %v3414_v12, %v2966_v16  ;;  %v2972_v60 = vmul.f32 0.5, %v7045_v35  ;;  %v8091_v0 = vld [vmem:[#allocation46_spill] sm:$0xff] }
 0xa4f   : > { %v7277_v21 = vpop.f32.mrb[66].mxu1  ;;  %v7279_v10 = vpop.f32.mrb[98].mxu0  ;;  %v3537_v31 = vpack.c.bf16 %v3485_v34, %v3481_v52  ;;  %v3482_v15 = vmul.f32 %v3418_v40, %v2970_v46  ;;  %5028 = vmatpush3.bf16.msra.mxu1 %v8089_v32  ;;  %v3294_v37 = vmul.f32 0.7978846, %v3230_v47  ;;  %v3232_v4 = vadd.f32 %v8091_v0, %v8090_v5 }
 0xa50   : > { %v7282_v22 = vpop.f32.mrb[67].mxu1  ;;  %v7284_v27 = vpop.f32.mrb[99].mxu0  ;;  %v3298_v36 = vmul.f32 0.7978846, %v3234_v18  ;;  %v3236_v19 = vadd.f32 %v7203_v57, %v7107_v43  ;;  %5021 = vmatprep.subr.bf16.mxu1 %v8092_v62  ;;  %v7293_v29 = vadd.f32 %v2798_v17, %v8093_v51  ;;  %v7296_v11 = vadd.f32 %v2911_v2, %v8094_v23  ;;  %v8098_v17 = vld [vmem:[#allocation37_spill] sm:$0xff] }
 0xa51   : > { %v5415_v48 = vpop.eup %5414  ;;  %3966 = vmatprep.mubr.bf16.mxu0 %v3537_v31  ;;  %v3534_v35 = vpack.c.bf16 %v3482_v15, %v3478_v53  ;;  %5426 = vtanh.f32 %v3294_v37  ;;  %v3296_v9 = vmul.f32 0.7978846, %v3232_v4  ;;  %v2975_v57 = vmul.f32 0.5, %v7085_v42  ;;  %v8099_v53 = vld [vmem:[#allocation32_spill] sm:$0xff] }
 0xa52   : > { %v5417_v61 = vpop.eup %5416  ;;  %v3416_v3 = vadd.f32 1.0, %v5415_v48  ;;  %v3300_v55 = vmul.f32 0.7978846, %v3236_v19  ;;  %v2979_v7 = vmul.f32 0.5, %v7133_v41  ;;  %5428 = vtanh.f32 %v3298_v36  ;;  %v8100_v48 = vld [vmem:[#allocation33_spill] sm:$0xff] }
 0xa53   : > { %v3420_v8 = vadd.f32 1.0, %v5417_v61  ;;  %3870 = vmatmul.mubr.bf16.gmra.mrb[88].mxu1 %v3534_v35  ;;  %5430 = vtanh.f32 %v3296_v9  ;;  %v3046_v33 = vmul.f32 0.044715, %v7293_v29  ;;  %v7302_v58 = vadd.f32 %v2800_v45, %v8095_v14  ;;  %v8101_v9 = vld [vmem:[#allocation34_spill] sm:$0xff] }
 0xa54   : > { %v3480_v6 = vmul.f32 %v3416_v3, %v2968_v38  ;;  %v5419_v1 = vpop.eup %5418  ;;  %5029 = vmatpush3.bf16.msra.mxu1 %v8096_v49  ;;  %v2977_v16 = vmul.f32 0.5, %v7094_v63  ;;  %v2981_v42 = vmul.f32 0.5, %v7140_v39  ;;  %5432 = vtanh.f32 %v3300_v55 }
 0xa55   : > { %v3484_v59 = vmul.f32 %v3420_v8, %v2972_v60  ;;  %v2808_v25 = vpop.f32.mrb[68].mxu1  ;;  %v2921_v44 = vpop.f32.mrb[100].mxu0  ;;  %v3423_v54 = vadd.f32 1.0, %v5419_v1  ;;  %5022 = vmatprep.subr.bf16.mxu1 %v8097_v28  ;;  %v2974_v12 = vmul.f32 0.5, %v7063_v50  ;;  %v3048_v56 = vmul.f32 0.044715, %v7296_v11 }
 0xa56   : > { %v2810_v41 = vpop.f32.mrb[69].mxu1  ;;  %v7307_v13 = vpop.f32.mrb[101].mxu0  ;;  %v7313_v2 = vadd.f32 %v2913_v24, %v8098_v17  ;;  %v2978_v34 = vmul.f32 0.5, %v7097_v30  ;;  %v3047_v40 = vmul.f32 0.044715, %v7302_v58  ;;  %v2976_v24 = vmul.f32 0.5, %v8090_v5 }
 0xa57   : > { %v5421_v26 = vpop.eup %5420  ;;  %v3536_v46 = vpack.c.bf16 %v3484_v59, %v3480_v6  ;;  %v7315_v20 = vpop.f32.mrb[70].mxu1  ;;  %v3110_v18 = vmul.f32 %v3046_v33, %v7293_v29  ;;  %v7329_v31 = vadd.f32 %v7277_v21, %v8093_v51  ;;  %v3487_v30 = vmul.f32 %v3423_v54, %v2975_v57 }
 0xa58   : > { %v7317_v63 = vpop.f32.mrb[102].mxu0  ;;  %v5423_v39 = vpop.eup %5422  ;;  %v3427_v52 = vadd.f32 1.0, %v5421_v26  ;;  %5030 = vmatpush3.bf16.msra.mxu1 %v8099_v53  ;;  %v7334_v32 = vadd.f32 %v7279_v10, %v8094_v23  ;;  %v2980_v37 = vmul.f32 0.5, %v7107_v43  ;;  %v3112_v36 = vmul.f32 %v3048_v56, %v7296_v11 }
 0xa59   : > { %v7321_v45 = vpop.f32.mrb[71].mxu1  ;;  %v7323_v38 = vpop.f32.mrb[103].mxu0  ;;  %3967 = vmatmul.mubr.bf16.gmra.mrb[120].mxu0 %v3536_v46  ;;  %v3425_v47 = vadd.f32 1.0, %v5423_v39  ;;  %5023 = vmatprep.subr.bf16.mxu1 %v8100_v48  ;;  %v3049_v5 = vmul.f32 0.044715, %v7313_v2  ;;  %v7342_v21 = vadd.f32 %v7282_v22, %v8095_v14  ;;  %v3111_v62 = vmul.f32 %v3047_v40, %v7302_v58 }
 0xa5a   : > { %v5425_v50 = vpop.eup %5424  ;;  %v3491_v15 = vmul.f32 %v3427_v52, %v2979_v7  ;;  %v7346_v10 = vmul.f32 %v3110_v18, %v7293_v29  ;;  %v3050_v35 = vmul.f32 0.044715, %v7329_v31  ;;  %v3052_v43 = vmul.f32 0.044715, %v7334_v32 }
 0xa5b   : > { %v3429_v60 = vadd.f32 1.0, %v5425_v50  ;;  %v3489_v4 = vmul.f32 %v3425_v47, %v2977_v16  ;;  %v5427_v61 = vpop.eup %5426  ;;  %v7352_v3 = vadd.f32 %v7284_v27, %v8098_v17  ;;  %v7356_v7 = vadd.f32 %v2808_v25, %v8093_v51 }
 0xa5c   : > { %v3539_v0 = vpack.c.bf16 %v3491_v15, %v3487_v30  ;;  %5031 = vmatpush3.bf16.msra.mxu1 %v8101_v9  ;;  %v5429_v55 = vpop.eup %5428  ;;  %v3422_v57 = vadd.f32 1.0, %v5427_v61  ;;  %v7359_v1 = vadd.f32 %v2921_v44, %v8094_v23  ;;  %v7364_v54 = vmul.f32 %v3112_v36, %v7296_v11 }
 0xa5d   : > { %v3493_v19 = vmul.f32 %v3429_v60, %v2981_v42  ;;  %v2818_v8 = vpop.f32.mrb[72].mxu1  ;;  %v2931_v22 = vpop.f32.mrb[104].mxu0  ;;  %v3426_v27 = vadd.f32 1.0, %v5429_v55  ;;  %v3051_v16 = vmul.f32 0.044715, %v7342_v21  ;;  %v7368_v42 = vadd.f32 %v2810_v41, %v8095_v14 }
 0xa5e   : > { %3877 = vmatprep.mubr.bf16.mxu1 %v3539_v0  ;;  %8102 = vst [vmem:[#allocation41_spill] sm:$0xff] %v7359_v1  ;;  %v2820_v59 = vpop.f32.mrb[73].mxu1  ;;  %v7361_v33 = vpop.f32.mrb[105].mxu0  ;;  %v7373_v44 = vmul.f32 %v3111_v62, %v7302_v58  ;;  %v3113_v46 = vmul.f32 %v3049_v5, %v7313_v2  ;;  %v3053_v56 = vmul.f32 0.044715, %v7352_v3  ;;  %v3486_v40 = vmul.f32 %v3422_v57, %v2974_v12 }
 0xa5f   : > { %v3541_v6 = vpack.c.bf16 %v3493_v19, %v3489_v4  ;;  %v5431_v49 = vpop.eup %5430  ;;  %v7370_v28 = vpop.f32.mrb[74].mxu1  ;;  %v3490_v50 = vmul.f32 %v3426_v27, %v2978_v34  ;;  %v3114_v41 = vmul.f32 %v3050_v35, %v7329_v31  ;;  %v3116_v53 = vmul.f32 %v3052_v43, %v7334_v32 }
 0xa60   : > { %v5433_v25 = vpop.eup %5432  ;;  %v3424_v26 = vadd.f32 1.0, %v5431_v49  ;;  %v2935_v39 = vpop.f32.mrb[106].mxu0  ;;  %v3054_v30 = vmul.f32 0.044715, %v7356_v7  ;;  %v3056_v15 = vmul.f32 0.044715, %v7359_v1  ;;  %v7383_v60 = vadd.f32 %v7307_v13, %v8098_v17 }
 0xa61   : > { %3974 = vmatprep.mubr.bf16.mxu0 %v3541_v6  ;;  %v2824_v52 = vpop.f32.mrb[75].mxu1  ;;  %v3428_v47 = vadd.f32 1.0, %v5433_v25  ;;  %v2937_v18 = vpop.f32.mrb[107].mxu0  ;;  %v3538_v48 = vpack.c.bf16 %v3490_v50, %v3486_v40  ;;  %v3055_v12 = vmul.f32 0.044715, %v7368_v42  ;;  %v3115_v34 = vmul.f32 %v3051_v16, %v7342_v21 }
 0xa62   : > { %v3488_v36 = vmul.f32 %v3424_v26, %v2976_v24  ;;  %v3117_v0 = vmul.f32 %v3053_v56, %v7352_v3  ;;  %v3057_v4 = vmul.f32 0.044715, %v7383_v60  ;;  %v7391_v19 = vadd.f32 %v7315_v20, %v8093_v51 }
 0xa63   : > { %v3492_v5 = vmul.f32 %v3428_v47, %v2980_v37  ;;  %3878 = vmatmul.mubr.bf16.gmra.mrb[92].mxu1 %v3538_v48  ;;  %v7395_v13 = vadd.f32 %v7317_v63, %v8094_v23  ;;  %v7399_v24 = vadd.f32 %v7321_v45, %v8095_v14  ;;  %v7403_v37 = vadd.f32 %v7323_v38, %v8098_v17 }
 0xa64   : > { %v7406_v43 = vmul.f32 %v3113_v46, %v7313_v2  ;;  %v7409_v20 = vmul.f32 %v3114_v41, %v7329_v31  ;;  %v3118_v9 = vmul.f32 %v3054_v30, %v7356_v7  ;;  %v3120_v63 = vmul.f32 %v3056_v15, %v7359_v1 }
 0xa65   : > { %v3540_v62 = vpack.c.bf16 %v3492_v5, %v3488_v36  ;;  %v2828_v61 = vpop.f32.mrb[76].mxu1  ;;  %v2941_v35 = vpop.f32.mrb[108].mxu0  ;;  %v3119_v45 = vmul.f32 %v3055_v12, %v7368_v42  ;;  %v3121_v38 = vmul.f32 %v3057_v4, %v7383_v60  ;;  %v3058_v57 = vmul.f32 0.044715, %v7391_v19 }
 0xa66   : > { %v2830_v55 = vpop.f32.mrb[77].mxu1  ;;  %v2943_v6 = vpop.f32.mrb[109].mxu0  ;;  %v7417_v49 = vadd.f32 %v2818_v8, %v8093_v51  ;;  %v7420_v27 = vmul.f32 %v3116_v53, %v7334_v32  ;;  %v3060_v16 = vmul.f32 0.044715, %v7395_v13  ;;  %v2932_v25 = vadd.f32 %v2931_v22, %v8094_v23 }
 0xa67   : > { %3975 = vmatmul.mubr.bf16.gmra.mrb[124].mxu0 %v3540_v62  ;;  %v7425_v26 = vadd.f32 %v2820_v59, %v8095_v14  ;;  %v2832_v46 = vpop.f32.mrb[78].mxu1  ;;  %v2945_v56 = vpop.f32.mrb[110].mxu0  ;;  %v7428_v40 = vmul.f32 %v3115_v34, %v7342_v21  ;;  %v7431_v50 = vmul.f32 %v3117_v0, %v7352_v3  ;;  %v3059_v8 = vmul.f32 0.044715, %v7399_v24 }
 0xa68   : > { %8103 = vst [vmem:[#allocation39_spill] sm:$0xff] %v7417_v49  ;;  %v3061_v47 = vmul.f32 0.044715, %v7403_v37  ;;  %v2834_v41 = vpop.f32.mrb[79].mxu1  ;;  %v2947_v53 = vpop.f32.mrb[111].mxu0  ;;  %v7436_v30 = vmul.f32 %v3118_v9, %v7356_v7  ;;  %v7441_v48 = vmul.f32 %v3120_v63, %v7359_v1  ;;  %v7444_v36 = vmul.f32 %v3119_v45, %v7368_v42 }
 0xa69   : > { %v3062_v22 = vmul.f32 0.044715, %v7417_v49  ;;  %v3064_v59 = vmul.f32 0.044715, %v2932_v25  ;;  %v3063_v15 = vmul.f32 0.044715, %v7425_v26  ;;  %v7447_v5 = vmul.f32 %v3121_v38, %v7383_v60 }
 0xa6a   : > { %8104 = vst [vmem:[#allocation43_spill] sm:$0xff] %v7441_v48  ;;  %v3122_v12 = vmul.f32 %v3058_v57, %v7391_v19  ;;  %v3124_v34 = vmul.f32 %v3060_v16, %v7395_v13  ;;  %v7453_v4 = vadd.f32 %v7361_v33, %v8098_v17  ;;  %v7457_v62 = vadd.f32 %v7370_v28, %v8093_v51 }
 0xa6b   : > { %v3128_v0 = vmul.f32 %v3064_v59, %v2932_v25  ;;  %v3123_v9 = vmul.f32 %v3059_v8, %v7399_v24  ;;  %v2936_v63 = vadd.f32 %v2935_v39, %v8094_v23  ;;  %v7462_v45 = vadd.f32 %v2824_v52, %v8095_v14 }
 0xa6c   : > { %v7465_v38 = vadd.f32 %v2937_v18, %v8098_v17  ;;  %v3125_v57 = vmul.f32 %v3061_v47, %v7403_v37  ;;  %v3126_v16 = vmul.f32 %v3062_v22, %v7417_v49  ;;  %v3127_v59 = vmul.f32 %v3063_v15, %v7425_v26 }
 0xa6d   : > { %v3192_v33 = vmul.f32 %v3128_v0, %v2932_v25  ;;  %v7471_v28 = vmul.f32 %v3122_v12, %v7391_v19  ;;  %v3065_v8 = vmul.f32 0.044715, %v7453_v4  ;;  %v3068_v48 = vmul.f32 0.044715, %v2936_v63 }
 0xa6e   : > { %v7475_v39 = vadd.f32 %v2828_v61, %v8093_v51  ;;  %v7478_v52 = vmul.f32 %v3124_v34, %v7395_v13  ;;  %v7480_v18 = vmul.f32 0.5, %v2932_v25  ;;  %v3066_v47 = vmul.f32 0.044715, %v7457_v62 }
 0xa6f   : > { %8105 = vst [vmem:[#allocation38_spill] sm:$0xff] %v7471_v28  ;;  %v3067_v22 = vmul.f32 0.044715, %v7462_v45  ;;  %v3256_v0 = vadd.f32 %v3192_v33, %v2932_v25  ;;  %v3132_v15 = vmul.f32 %v3068_v48, %v2936_v63  ;;  %v3069_v12 = vmul.f32 0.044715, %v7465_v38 }
 0xa70   : > { %8106 = vst [vmem:[#allocation42_spill] sm:$0xff] %v7478_v52  ;;  %8107 = vst [vmem:[#allocation40_spill] sm:$0xff] %v7480_v18  ;;  %v7486_v1 = vadd.f32 %v2941_v35, %v8094_v23  ;;  %v7489_v28 = vmul.f32 %v3123_v9, %v7399_v24  ;;  %v7492_v61 = vmul.f32 %v3125_v57, %v7403_v37  ;;  %v3070_v33 = vmul.f32 0.044715, %v7475_v39 }
 0xa71   : > { %v7495_v34 = vmul.f32 %v3126_v16, %v7417_v49  ;;  %v7498_v18 = vmul.f32 %v3127_v59, %v7425_v26  ;;  %v3129_v25 = vmul.f32 %v3065_v8, %v7453_v4  ;;  %v3196_v48 = vmul.f32 %v3132_v15, %v2936_v63 }
 0xa72   : > { %v3072_v35 = vmul.f32 0.044715, %v7486_v1  ;;  %v3130_v52 = vmul.f32 %v3066_v47, %v7457_v62  ;;  %v3131_v9 = vmul.f32 %v3067_v22, %v7462_v45  ;;  %v7506_v57 = vadd.f32 %v2830_v55, %v8095_v14 }
 0xa73   : > { %8108 = vst [vmem:[#allocation44_spill] sm:$0xff] %v7495_v34  ;;  %8109 = vst [vmem:[#allocation18_spill] sm:$0xff] %v7498_v18  ;;  %v7509_v16 = vadd.f32 %v2943_v6, %v8098_v17  ;;  %v3320_v34 = vmul.f32 0.7978846, %v3256_v0  ;;  %v3260_v59 = vadd.f32 %v3196_v48, %v2936_v63  ;;  %v3133_v49 = vmul.f32 %v3069_v12, %v7465_v38 }
 0xa74   : > { %v7513_v8 = vadd.f32 %v2832_v46, %v8093_v51  ;;  %v3071_v15 = vmul.f32 0.044715, %v7506_v57  ;;  %v7518_v47 = vadd.f32 %v2945_v56, %v8094_v23  ;;  %v7521_v55 = vadd.f32 %v2834_v41, %v8095_v14 }
 0xa75   : > { %v3073_v18 = vmul.f32 0.044715, %v7509_v16  ;;  %v3324_v22 = vmul.f32 0.7978846, %v3260_v59  ;;  %v3134_v6 = vmul.f32 %v3070_v33, %v7475_v39  ;;  %v3136_v0 = vmul.f32 %v3072_v35, %v7486_v1 }
 0xa76   : > { %v3074_v12 = vmul.f32 0.044715, %v7513_v8  ;;  %v7527_v51 = vmul.f32 %v3129_v25, %v7453_v4  ;;  %v7529_v46 = vmul.f32 0.5, %v2936_v63  ;;  %v3075_v48 = vmul.f32 0.044715, %v7521_v55 }
 0xa77   : > { %v7533_v23 = vadd.f32 %v2947_v53, %v8098_v17  ;;  %v7536_v14 = vmul.f32 %v3130_v52, %v7457_v62  ;;  %v7539_v56 = vmul.f32 %v3131_v9, %v7462_v45  ;;  %v3135_v41 = vmul.f32 %v3071_v15, %v7506_v57 }
 0xa78   : > { %v3137_v33 = vmul.f32 %v3073_v18, %v7509_v16  ;;  %5434 = vtanh.f32 %v3320_v34  ;;  %v7544_v25 = vmul.f32 %v3133_v49, %v7465_v38  ;;  %v3138_v63 = vmul.f32 %v3074_v12, %v7513_v8 }
 0xa79   : > { %v3076_v35 = vmul.f32 0.044715, %v7518_v47  ;;  %5436 = vtanh.f32 %v3324_v22  ;;  %v7549_v17 = vmul.f32 %v3134_v6, %v7475_v39  ;;  %v7552_v53 = vmul.f32 %v3136_v0, %v7486_v1 }
 0xa7a   : > { %v3239_v52 = vadd.f32 %v7373_v44, %v7302_v58  ;;  %v3139_v18 = vmul.f32 %v3075_v48, %v7521_v55  ;;  %v7558_v34 = vmul.f32 0.044715, %v7533_v23  ;;  %v7561_v49 = vmul.f32 0.5, %v7302_v58 }
 0xa7b   : > { %8110 = vst [vmem:[#allocation19_spill] sm:$0xff] %v7552_v53  ;;  %v3243_v9 = vadd.f32 %v7428_v40, %v7342_v21  ;;  %v7566_v59 = vmul.f32 %v3135_v41, %v7506_v57  ;;  %v7569_v15 = vmul.f32 %v3137_v33, %v7509_v16  ;;  %v3241_v44 = vadd.f32 %v7406_v43, %v7313_v2 }
 0xa7c   : > { %v3303_v22 = vmul.f32 0.7978846, %v3239_v52  ;;  %v7574_v6 = vmul.f32 %v3138_v63, %v7513_v8  ;;  %v7577_v0 = vmul.f32 %v3076_v35, %v7518_v47  ;;  %v3245_v40 = vadd.f32 %v7431_v50, %v7352_v3 }
 0xa7d   : > { %v3307_v58 = vmul.f32 0.7978846, %v3243_v9  ;;  %v3305_v12 = vmul.f32 0.7978846, %v3241_v44  ;;  %v3238_v48 = vadd.f32 %v7346_v10, %v7293_v29  ;;  %v3242_v41 = vadd.f32 %v7409_v20, %v7329_v31 }
 0xa7e   : > { %5438 = vtanh.f32 %v3303_v22  ;;  %v7586_v43 = vmul.f32 %v3139_v18, %v7521_v55  ;;  %v2987_v33 = vmul.f32 0.5, %v7342_v21  ;;  %v3309_v63 = vmul.f32 0.7978846, %v3245_v40 }
 0xa7f   : > { %5440 = vtanh.f32 %v3307_v58  ;;  %v3302_v35 = vmul.f32 0.7978846, %v3238_v48  ;;  %v3306_v52 = vmul.f32 0.7978846, %v3242_v41  ;;  %v3240_v50 = vadd.f32 %v7364_v54, %v7296_v11  ;;  %v8111_v41 = vld [vmem:[#allocation38_spill] sm:$0xff] }
 0xa80   : > { %5442 = vtanh.f32 %v3305_v12  ;;  %v2985_v9 = vmul.f32 0.5, %v7313_v2  ;;  %v2989_v10 = vmul.f32 0.5, %v7352_v3  ;;  %v3244_v20 = vadd.f32 %v7420_v27, %v7334_v32 }
 0xa81   : > { %5444 = vtanh.f32 %v3309_v63  ;;  %v3304_v18 = vmul.f32 0.7978846, %v3240_v50  ;;  %v3247_v21 = vadd.f32 %v7444_v36, %v7368_v42  ;;  %v3251_v22 = vadd.f32 %v7489_v28, %v7399_v24 }
 0xa82   : > { %5446 = vtanh.f32 %v3302_v35  ;;  %v7599_v44 = vpop.eup %5434  ;;  %v2982_v54 = vmul.f32 0.5, %v7293_v29  ;;  %v7603_v2 = vmul.f32 0.5, %v7329_v31  ;;  %v3308_v3 = vmul.f32 0.7978846, %v3244_v20  ;;  %v8113_v20 = vld [vmem:[#allocation43_spill] sm:$0xff] }
 0xa83   : > { %5448 = vtanh.f32 %v3306_v52  ;;  %v7605_v58 = vpop.eup %5436  ;;  %v3311_v27 = vmul.f32 0.7978846, %v3247_v21  ;;  %v3315_v40 = vmul.f32 0.7978846, %v3251_v22  ;;  %v3249_v36 = vadd.f32 %v7447_v5, %v7383_v60 }
 0xa84   : > { %5450 = vtanh.f32 %v3304_v18  ;;  %v2984_v12 = vmul.f32 0.5, %v7296_v11  ;;  %v7611_v28 = vmul.f32 0.5, %v7334_v32  ;;  %v3253_v29 = vadd.f32 %v7492_v61, %v7403_v37  ;;  %v8112_v61 = vld [vmem:[#allocation41_spill] sm:$0xff] }
 0xa85   : > { %5452 = vtanh.f32 %v3308_v3  ;;  %v3313_v31 = vmul.f32 0.7978846, %v3249_v36  ;;  %v3246_v48 = vadd.f32 %v7436_v30, %v7356_v7  ;;  %v3250_v63 = vadd.f32 %v8111_v41, %v7391_v19  ;;  %v8114_v3 = vld [vmem:[#allocation42_spill] sm:$0xff] }
 0xa86   : > { %5454 = vtanh.f32 %v3311_v27  ;;  %v2991_v35 = vmul.f32 0.5, %v7368_v42  ;;  %v7621_v5 = vmul.f32 0.5, %v7399_v24  ;;  %v3317_v11 = vmul.f32 0.7978846, %v3253_v29 }
 0xa87   : > { %5456 = vtanh.f32 %v3315_v40  ;;  %v3310_v52 = vmul.f32 0.7978846, %v3246_v48  ;;  %v3314_v50 = vmul.f32 0.7978846, %v3250_v63  ;;  %v3248_v18 = vadd.f32 %v8113_v20, %v8112_v61 }
 0xa88   : > { %v5439_v32 = vpop.eup %5438  ;;  %5458 = vtanh.f32 %v3313_v31  ;;  %v2993_v30 = vmul.f32 0.5, %v7383_v60  ;;  %v3252_v42 = vadd.f32 %v8114_v3, %v7395_v13  ;;  %v7629_v40 = vmul.f32 0.5, %v7403_v37 }
 0xa89   : > { %v5441_v21 = vpop.eup %5440  ;;  %v3431_v22 = vadd.f32 1.0, %v5439_v32  ;;  %5460 = vtanh.f32 %v3317_v11  ;;  %v3312_v36 = vmul.f32 0.7978846, %v3248_v18  ;;  %v8115_v11 = vld [vmem:[#allocation18_spill] sm:$0xff]  ;;  %v3259_v37 = vadd.f32 %v7539_v56, %v7462_v45 }
 0xa8a   : > { %v5443_v27 = vpop.eup %5442  ;;  %v3435_v24 = vadd.f32 1.0, %v5441_v21  ;;  %5462 = vtanh.f32 %v3310_v52  ;;  %v3316_v41 = vmul.f32 0.7978846, %v3252_v42  ;;  %v3255_v20 = vadd.f32 %v8115_v11, %v7425_v26 }
 0xa8b   : > { %v5445_v29 = vpop.eup %5444  ;;  %v3495_v31 = vmul.f32 %v3431_v22, %v7561_v49  ;;  %v3433_v48 = vadd.f32 1.0, %v5443_v27  ;;  %5464 = vtanh.f32 %v3314_v50 }
 0xa8c   : > { %v5447_v63 = vpop.eup %5446  ;;  %v3499_v32 = vmul.f32 %v3435_v24, %v2987_v33  ;;  %v3437_v60 = vadd.f32 1.0, %v5445_v29  ;;  %5466 = vtanh.f32 %v3312_v36  ;;  %v3319_v50 = vmul.f32 0.7978846, %v3255_v20 }
 0xa8d   : > { %v5449_v3 = vpop.eup %5448  ;;  %v3497_v21 = vmul.f32 %v3433_v48, %v2985_v9  ;;  %v3430_v53 = vadd.f32 1.0, %v5447_v63  ;;  %5468 = vtanh.f32 %v3316_v41  ;;  %v2990_v24 = vmul.f32 0.5, %v7356_v7 }
 0xa8e   : > { %v5451_v52 = vpop.eup %5450  ;;  %v3543_v18 = vpack.c.bf16 %v3499_v32, %v3495_v31  ;;  %v3501_v49 = vmul.f32 %v3437_v60, %v2989_v10  ;;  %v3434_v22 = vadd.f32 1.0, %v5449_v3  ;;  %v3323_v36 = vmul.f32 0.7978846, %v3259_v37  ;;  %v8116_v32 = vld [vmem:[#allocation39_spill] sm:$0xff]  ;;  %v8117_v60 = vld [vmem:[#allocation44_spill] sm:$0xff] }
 0xa8f   : > { %v5453_v42 = vpop.eup %5452  ;;  %v3494_v27 = vmul.f32 %v3430_v53, %v2982_v54  ;;  %v3432_v33 = vadd.f32 1.0, %v5451_v52  ;;  %5470 = vtanh.f32 %v3319_v50  ;;  %v2994_v10 = vmul.f32 0.5, %v7391_v19 }
 0xa90   : > { %v5455_v29 = vpop.eup %5454  ;;  %3885 = vmatprep.mubr.bf16.mxu1 %v3543_v18  ;;  %v3545_v11 = vpack.c.bf16 %v3501_v49, %v3497_v21  ;;  %v3498_v9 = vmul.f32 %v3434_v22, %v7603_v2  ;;  %v3436_v48 = vadd.f32 1.0, %v5453_v42  ;;  %5472 = vtanh.f32 %v3323_v36 }
 0xa91   : > { %v5457_v41 = vpop.eup %5456  ;;  %v3496_v56 = vmul.f32 %v3432_v33, %v2984_v12  ;;  %v3439_v63 = vadd.f32 1.0, %v5455_v29  ;;  %v3254_v20 = vadd.f32 %v8117_v60, %v8116_v32  ;;  %v2992_v37 = vmul.f32 0.5, %v8112_v61 }
 0xa92   : > { %v5459_v31 = vpop.eup %5458  ;;  %3982 = vmatprep.mubr.bf16.mxu0 %v3545_v11  ;;  %v3542_v53 = vpack.c.bf16 %v3498_v9, %v3494_v27  ;;  %v3500_v54 = vmul.f32 %v3436_v48, %v7611_v28  ;;  %v3443_v7 = vadd.f32 1.0, %v5457_v41  ;;  %v3258_v12 = vadd.f32 %v7536_v14, %v7457_v62 }
 0xa93   : > { %v5461_v3 = vpop.eup %5460  ;;  %v3503_v21 = vmul.f32 %v3439_v63, %v2991_v35  ;;  %v3441_v2 = vadd.f32 1.0, %v5459_v31  ;;  %v3318_v22 = vmul.f32 0.7978846, %v3254_v20  ;;  %v2996_v27 = vmul.f32 0.5, %v7395_v13 }
 0xa94   : > { %v5463_v52 = vpop.eup %5462  ;;  %3886 = vmatmul.mubr.bf16.gmra.mrb[96].mxu1 %v3542_v53  ;;  %v3544_v19 = vpack.c.bf16 %v3500_v54, %v3496_v56  ;;  %v3507_v18 = vmul.f32 %v3443_v7, %v7621_v5  ;;  %v3445_v49 = vadd.f32 1.0, %v5461_v3  ;;  %v3322_v33 = vmul.f32 0.7978846, %v3258_v12 }
 0xa95   : > { %v5465_v28 = vpop.eup %5464  ;;  %v3505_v50 = vmul.f32 %v3441_v2, %v2993_v30  ;;  %v3438_v42 = vadd.f32 1.0, %v5463_v52  ;;  %5474 = vtanh.f32 %v3318_v22  ;;  %v3263_v5 = vadd.f32 %v7566_v59, %v7506_v57 }
 0xa96   : > { %v5467_v35 = vpop.eup %5466  ;;  %3983 = vmatmul.mubr.bf16.gmra.mrb[128].mxu0 %v3544_v19  ;;  %v3547_v36 = vpack.c.bf16 %v3507_v18, %v3503_v21  ;;  %v3509_v61 = vmul.f32 %v3445_v49, %v7629_v40  ;;  %v3442_v29 = vadd.f32 1.0, %v5465_v28  ;;  %5476 = vtanh.f32 %v3322_v33 }
 0xa97   : > { %v5469_v14 = vpop.eup %5468  ;;  %v3502_v11 = vmul.f32 %v3438_v42, %v2990_v24  ;;  %v3440_v9 = vadd.f32 1.0, %v5467_v35  ;;  %v3267_v13 = vadd.f32 %v7586_v43, %v7521_v55  ;;  %v3141_v56 = vmul.f32 %v7558_v34, %v7533_v23 }
 0xa98   : > { %3893 = vmatprep.mubr.bf16.mxu1 %v3547_v36  ;;  %v3549_v30 = vpack.c.bf16 %v3509_v61, %v3505_v50  ;;  %v3506_v48 = vmul.f32 %v3442_v29, %v2994_v10  ;;  %v3444_v41 = vadd.f32 1.0, %v5469_v14  ;;  %v2999_v63 = vmul.f32 0.5, %v7425_v26  ;;  %v8118_v50 = vld [vmem:[#allocation40_spill] sm:$0xff] }
 0xa99   : > { %v3504_v40 = vmul.f32 %v3440_v9, %v2992_v37  ;;  %v3327_v31 = vmul.f32 0.7978846, %v3263_v5  ;;  %v5471_v24 = vpop.eup %5470  ;;  %v3331_v7 = vmul.f32 0.7978846, %v3267_v13  ;;  %v3262_v59 = vadd.f32 %v7549_v17, %v7475_v39 }
 0xa9a   : > { %3990 = vmatprep.mubr.bf16.mxu0 %v3549_v30  ;;  %v3546_v53 = vpack.c.bf16 %v3506_v48, %v3502_v11  ;;  %v3508_v54 = vmul.f32 %v3444_v41, %v2996_v27  ;;  %v5473_v10 = vpop.eup %5472  ;;  %v3003_v60 = vmul.f32 0.5, %v7462_v45  ;;  %v3447_v20 = vadd.f32 1.0, %v5471_v24 }
 0xa9b   : > { %5478 = vtanh.f32 %v3327_v31  ;;  %v3266_v34 = vadd.f32 %v7574_v6, %v7513_v8  ;;  %v3451_v26 = vadd.f32 1.0, %v5473_v10  ;;  %v3326_v3 = vmul.f32 0.7978846, %v3262_v59 }
 0xa9c   : > { %3894 = vmatmul.mubr.bf16.gmra.mrb[100].mxu1 %v3546_v53  ;;  %v3548_v43 = vpack.c.bf16 %v3508_v54, %v3504_v40  ;;  %5480 = vtanh.f32 %v3331_v7  ;;  %v3205_v21 = vmul.f32 %v3141_v56, %v7533_v23  ;;  %v3511_v2 = vmul.f32 %v3447_v20, %v2999_v63 }
 0xa9d   : > { %v3330_v37 = vmul.f32 0.7978846, %v3266_v34  ;;  %v3257_v17 = vadd.f32 %v7527_v51, %v7453_v4  ;;  %v3515_v12 = vmul.f32 %v3451_v26, %v3003_v60  ;;  %5482 = vtanh.f32 %v3326_v3 }
 0xa9e   : > { %3991 = vmatmul.mubr.bf16.gmra.mrb[132].mxu0 %v3548_v43  ;;  %v3261_v45 = vadd.f32 %v7544_v25, %v7465_v38  ;;  %v3448_v6 = vadd.f32 1.0, %v7599_v44  ;;  %v3204_v52 = vmul.f32 %v7577_v0, %v7518_v47  ;;  %v3452_v18 = vadd.f32 1.0, %v7605_v58 }
 0xa9f   : > { %5484 = vtanh.f32 %v3330_v37  ;;  %v3321_v19 = vmul.f32 0.7978846, %v3257_v17  ;;  %v5475_v49 = vpop.eup %5474  ;;  %v3551_v22 = vpack.c.bf16 %v3515_v12, %v3511_v2  ;;  %v2998_v28 = vmul.f32 0.5, %v8116_v32 }
 0xaa0   : > { %v3325_v51 = vmul.f32 0.7978846, %v3261_v45  ;;  %v7671_v42 = vmul.f32 %v3448_v6, %v8118_v50  ;;  %v5477_v27 = vpop.eup %5476  ;;  %v3446_v33 = vadd.f32 1.0, %v5475_v49  ;;  %v7674_v25 = vmul.f32 %v3452_v18, %v7529_v46  ;;  %v8119_v46 = vld [vmem:[#allocation19_spill] sm:$0xff] }
 0xaa1   : > { %5486 = vtanh.f32 %v3321_v19  ;;  %v3265_v0 = vadd.f32 %v7569_v15, %v7509_v16  ;;  %3901 = vmatprep.mubr.bf16.mxu1 %v3551_v22  ;;  %v3002_v44 = vmul.f32 0.5, %v7457_v62  ;;  %v3450_v58 = vadd.f32 1.0, %v5477_v27 }
 0xaa2   : > { %5488 = vtanh.f32 %v3325_v51  ;;  %v3269_v32 = vadd.f32 %v3205_v21, %v7533_v23  ;;  %v3510_v35 = vmul.f32 %v3446_v33, %v2998_v28  ;;  %v3552_v36 = vpack.c.bf16 %v7674_v25, %v7671_v42 }
 0xaa3   : > { %v3329_v61 = vmul.f32 0.7978846, %v3265_v0  ;;  %v3514_v29 = vmul.f32 %v3450_v58, %v3002_v44  ;;  %v3264_v11 = vadd.f32 %v8119_v46, %v7486_v1  ;;  %v3268_v9 = vadd.f32 %v3204_v52, %v7518_v47 }
 0xaa4   : > { %v3333_v14 = vmul.f32 0.7978846, %v3269_v32  ;;  %v3007_v41 = vmul.f32 0.5, %v7506_v57  ;;  %v3011_v13 = vmul.f32 0.5, %v7521_v55  ;;  %v3006_v7 = vmul.f32 0.5, %v7475_v39 }
 0xaa5   : > { %v5479_v15 = vpop.eup %5478  ;;  %5490 = vtanh.f32 %v3329_v61  ;;  %v3550_v62 = vpack.c.bf16 %v3514_v29, %v3510_v35  ;;  %v3328_v48 = vmul.f32 0.7978846, %v3264_v11  ;;  %v3332_v40 = vmul.f32 0.7978846, %v3268_v9 }
 0xaa6   : > { %v5481_v5 = vpop.eup %5480  ;;  %v3455_v30 = vadd.f32 1.0, %v5479_v15  ;;  %5492 = vtanh.f32 %v3333_v14  ;;  %v3010_v59 = vmul.f32 0.5, %v7513_v8  ;;  %v3001_v26 = vmul.f32 0.5, %v7453_v4 }
 0xaa7   : > { %v3459_v56 = vadd.f32 1.0, %v5481_v5  ;;  %v5483_v63 = vpop.eup %5482  ;;  %3902 = vmatmul.mubr.bf16.gmra.mrb[104].mxu1 %v3550_v62  ;;  %5494 = vtanh.f32 %v3328_v48  ;;  %v3005_v3 = vmul.f32 0.5, %v7465_v38  ;;  %v3009_v6 = vmul.f32 0.5, %v7509_v16  ;;  %v8120_v5 = vld [vmem:[#allocation3_spill] sm:$0xff]  ;;  %v8121_v48 = vld [vmem:[#allocation4_spill] sm:$0xff] }
 0xaa8   : > { %v3519_v24 = vmul.f32 %v3455_v30, %v3007_v41  ;;  %v3454_v54 = vadd.f32 1.0, %v5483_v63  ;;  %5496 = vtanh.f32 %v3332_v40  ;;  %v3013_v52 = vmul.f32 0.5, %v7533_v23  ;;  %v7698_v23 = vld [vmem:[%s7945_s10] ss:$0 sm:$0xff] }
 0xaa9   : > { %v5485_v31 = vpop.eup %5484  ;;  %v3523_v53 = vmul.f32 %v3459_v56, %v3011_v13  ;;  %v3008_v28 = vmul.f32 0.5, %v7486_v1  ;;  %v3012_v51 = vmul.f32 0.5, %v7518_v47 }
 0xaaa   : > { %v3458_v10 = vadd.f32 1.0, %v5485_v31  ;;  %v3518_v34 = vmul.f32 %v3454_v54, %v3006_v7 }
 0xaab   : > { %v5487_v60 = vpop.eup %5486  ;;  %v3555_v20 = vpack.c.bf16 %v3523_v53, %v3519_v24 }
 0xaac   : > { %v5489_v57 = vpop.eup %5488  ;;  %v3522_v55 = vmul.f32 %v3458_v10, %v3010_v59  ;;  %v3449_v43 = vadd.f32 1.0, %v5487_v60 }
 0xaad   : > { %3909 = vmatprep.mubr.bf16.mxu1 %v3555_v20  ;;  %v3453_v21 = vadd.f32 1.0, %v5489_v57 }
 0xaae   : > { %v3554_v2 = vpack.c.bf16 %v3522_v55, %v3518_v34  ;;  %v3513_v17 = vmul.f32 %v3449_v43, %v3001_v26  ;;  %v8122_v55 = vld [vmem:[#allocation6_spill] sm:$0xff] }
 0xaaf   : > { %v5491_v37 = vpop.eup %5490  ;;  %v3517_v12 = vmul.f32 %v3453_v21, %v3005_v3  ;;  %v8123_v3 = vld [vmem:[#allocation5_spill] sm:$0xff] }
 0xab0   : > { %v5493_v39 = vpop.eup %5492  ;;  %3910 = vmatmul.mubr.bf16.gmra.mrb[108].mxu1 %v3554_v2  ;;  %v3457_v8 = vadd.f32 1.0, %v5491_v37 }
 0xab1   : > { %v3553_v45 = vpack.c.bf16 %v3517_v12, %v3513_v17  ;;  %v3461_v19 = vadd.f32 1.0, %v5493_v39  ;;  %v5495_v18 = vpop.eup %5494 }
 0xab2   : > { %v5497_v49 = vpop.eup %5496  ;;  %v3521_v4 = vmul.f32 %v3457_v8, %v3009_v6  ;;  %v3456_v38 = vadd.f32 1.0, %v5495_v18 }
 0xab3   : > { %3998 = vmatprep.mubr.bf16.mxu1 %v3553_v45  ;;  %v3525_v22 = vmul.f32 %v3461_v19, %v3013_v52  ;;  %v3460_v50 = vadd.f32 1.0, %v5497_v49 }
 0xab4   : > { %v3520_v27 = vmul.f32 %v3456_v38, %v3008_v28  ;;  %v8124_v28 = vld [vmem:[#allocation7_spill] sm:$0xff] }
 0xab5   : > { %v3557_v42 = vpack.c.bf16 %v3525_v22, %v3521_v4  ;;  %v3524_v33 = vmul.f32 %v3460_v50, %v3012_v51  ;;  %v8125_v50 = vld [vmem:[#allocation9_spill] sm:$0xff] }
 0xab7   : > { %v3556_v25 = vpack.c.bf16 %v3524_v33, %v3520_v27 }
 0xab8   : > { %3999 = vmatmul.mubr.bf16.vlgmr.msra.gmra.mrb[112].mxu1 %v3552_v36 }
 0xab9   : > { %4006 = vmatprep.mubr.bf16.mxu1 %v3557_v42 }
 0xac0   : > { %4007 = vmatmul.mubr.bf16.gmra.mrb[116].mxu1 %v3556_v25 }
 0xb11   : > { %v4712_v16 = vpop.f32.mrb[80].mxu1 }
 0xb12   : > { %v4713_v0 = vpop.f32.mrb[81].mxu1 }
 0xb13   : > { %v4714_v44 = vadd.f32 %v4713_v0, %v4712_v16  ;;  %v4715_v58 = vpop.f32.mrb[82].mxu1  ;;  %v4776_v1 = vpop.f32.mrb[112].mxu0 }
 0xb14   : > { %v4716_v32 = vpop.f32.mrb[83].mxu1  ;;  %v4777_v35 = vpop.f32.mrb[113].mxu0 }
 0xb15   : > { %v3856_v47 = vadd.f32 %v4714_v44, %v7698_v23  ;;  %v4717_v61 = vadd.f32 %v4716_v32, %v4715_v58  ;;  %v4778_v29 = vadd.f32 %v4777_v35, %v4776_v1  ;;  %v4779_v36 = vpop.f32.mrb[114].mxu0 }
 0xb16   : > { %v4780_v46 = vpop.f32.mrb[115].mxu0 }
 0xb17   : > { %v3859_v14 = vadd.f32 %v4717_v61, %v7698_v23  ;;  %v3953_v11 = vadd.f32 %v4778_v29, %v3856_v47  ;;  %v4781_v9 = vadd.f32 %v4780_v46, %v4779_v36 }
 0xb19   : > { %v3956_v15 = vadd.f32 %v4781_v9, %v3859_v14  ;;  %v7703_v62 = vadd.f32 %v3953_v11, %v8120_v5  ;;  %v8126_v11 = vld [vmem:[#allocation10_spill] sm:$0xff] }
 0xb1b   : > { %v4718_v30 = vpop.f32.mrb[84].mxu1  ;;  %4033 = vadd.xlane.f32.xlu0 %v7703_v62  ;;  %v7707_v41 = vadd.f32 %v3956_v15, %v8121_v48  ;;  %v8127_v15 = vld [vmem:[#allocation11_spill] sm:$0xff] }
 0xb1c   : > { %v4719_v13 = vpop.f32.mrb[85].mxu1 }
 0xb1d   : > { %v4720_v40 = vadd.f32 %v4719_v13, %v4718_v30  ;;  %v4721_v63 = vpop.f32.mrb[86].mxu1  ;;  %4035 = vadd.xlane.f32.xlu1 %v7707_v41 }
 0xb1e   : > { %v4782_v56 = vpop.f32.mrb[116].mxu0  ;;  %v4722_v24 = vpop.f32.mrb[87].mxu1 }
 0xb1f   : > { %v4783_v31 = vpop.f32.mrb[117].mxu0  ;;  %v3864_v53 = vadd.f32 %v4720_v40, %v7698_v23  ;;  %v4723_v59 = vadd.f32 %v4722_v24, %v4721_v63 }
 0xb20   : > { %v4784_v54 = vadd.f32 %v4783_v31, %v4782_v56  ;;  %v4785_v7 = vpop.f32.mrb[118].mxu0 }
 0xb21   : > { %v4786_v10 = vpop.f32.mrb[119].mxu0  ;;  %v3867_v20 = vadd.f32 %v4723_v59, %v7698_v23 }
 0xb22   : > { %v3961_v60 = vadd.f32 %v4784_v54, %v3864_v53  ;;  %v4787_v57 = vadd.f32 %v4786_v10, %v4785_v7 }
 0xb24   : > { %v3964_v34 = vadd.f32 %v4787_v57, %v3867_v20  ;;  %v7713_v43 = vadd.f32 %v3961_v60, %v8122_v55  ;;  %v8128_v55 = vld [vmem:[#allocation12_spill] sm:$0xff] }
 0xb26   : > { %v4724_v26 = vpop.f32.mrb[88].mxu1  ;;  %4037 = vadd.xlane.f32.xlu0 %v7713_v43  ;;  %v7717_v21 = vadd.f32 %v3964_v34, %v8123_v3 }
 0xb27   : > { %v4725_v2 = vpop.f32.mrb[89].mxu1 }
 0xb28   : > { %v4726_v37 = vadd.f32 %v4725_v2, %v4724_v26  ;;  %v4727_v17 = vpop.f32.mrb[90].mxu1  ;;  %4039 = vadd.xlane.f32.xlu1 %v7717_v21 }
 0xb29   : > { %v4728_v12 = vpop.f32.mrb[91].mxu1 }
 0xb2a   : > { %v4729_v39 = vadd.f32 %v4728_v12, %v4727_v17  ;;  %v3872_v45 = vadd.f32 %v4726_v37, %v7698_v23  ;;  %v8129_v12 = vld [vmem:[#allocation13_spill] sm:$0xff] }
 0xb2c   : > { %v4788_v8 = vpop.f32.mrb[120].mxu0  ;;  %v3875_v18 = vadd.f32 %v4729_v39, %v7698_v23 }
 0xb2d   : > { %v4789_v6 = vpop.f32.mrb[121].mxu0 }
 0xb2e   : > { %v4790_v52 = vadd.f32 %v4789_v6, %v4788_v8  ;;  %v4791_v19 = vpop.f32.mrb[122].mxu0 }
 0xb2f   : > { %v4792_v49 = vpop.f32.mrb[123].mxu0 }
 0xb30   : > { %v3969_v4 = vadd.f32 %v4790_v52, %v3872_v45  ;;  %v4793_v22 = vadd.f32 %v4792_v49, %v4791_v19 }
 0xb32   : > { %v3972_v38 = vadd.f32 %v4793_v22, %v3875_v18  ;;  %v7723_v51 = vadd.f32 %v3969_v4, %v8124_v28 }
 0xb34   : > { %4041 = vadd.xlane.f32.xlu0 %v7723_v51  ;;  %v7727_v42 = vadd.f32 %v3972_v38, %v8125_v50  ;;  %v8130_v50 = vld [vmem:[#allocation15_spill] sm:$0xff] }
 0xb36   : > { %4043 = vadd.xlane.f32.xlu1 %v7727_v42  ;;  %v4730_v27 = vpop.f32.mrb[92].mxu1 }
 0xb37   : > { %v4731_v33 = vpop.f32.mrb[93].mxu1 }
 0xb38   : > { %v4732_v16 = vadd.f32 %v4731_v33, %v4730_v27  ;;  %v4733_v0 = vpop.f32.mrb[94].mxu1  ;;  %v8131_v33 = vld [vmem:[#allocation14_spill] sm:$0xff] }
 0xb39   : > { %v4734_v58 = vpop.f32.mrb[95].mxu1 }
 0xb3a   : > { %v4794_v25 = vpop.f32.mrb[124].mxu0  ;;  %v3880_v1 = vadd.f32 %v4732_v16, %v7698_v23  ;;  %v4735_v35 = vadd.f32 %v4734_v58, %v4733_v0 }
 0xb3b   : > { %v4795_v44 = vpop.f32.mrb[125].mxu0 }
 0xb3c   : > { %v4796_v32 = vadd.f32 %v4795_v44, %v4794_v25  ;;  %v4797_v47 = vpop.f32.mrb[126].mxu0  ;;  %v3883_v36 = vadd.f32 %v4735_v35, %v7698_v23 }
 0xb3d   : > { %v4798_v61 = vpop.f32.mrb[127].mxu0 }
 0xb3e   : > { %v3977_v29 = vadd.f32 %v4796_v32, %v3880_v1  ;;  %v4799_v14 = vadd.f32 %v4798_v61, %v4797_v47 }
 0xb40   : > { %v3980_v46 = vadd.f32 %v4799_v14, %v3883_v36  ;;  %v7733_v9 = vadd.f32 %v3977_v29, %v8126_v11 }
 0xb42   : > { %4045 = vadd.xlane.f32.xlu0 %v7733_v9  ;;  %v7737_v5 = vadd.f32 %v3980_v46, %v8127_v15 }
 0xb44   : > { %4047 = vadd.xlane.f32.xlu1 %v7737_v5 }
 0xb67   : > { %v4736_v30 = vpop.f32.mrb[96].mxu1 }
 0xb68   : > { %v4737_v48 = vpop.f32.mrb[97].mxu1 }
 0xb69   : > { %v4800_v13 = vpop.f32.mrb[128].mxu0  ;;  %v4738_v56 = vadd.f32 %v4737_v48, %v4736_v30  ;;  %v4739_v40 = vpop.f32.mrb[98].mxu1 }
 0xb6a   : > { %v4801_v63 = vpop.f32.mrb[129].mxu0  ;;  %v4740_v31 = vpop.f32.mrb[99].mxu1 }
 0xb6b   : > { %v3888_v24 = vadd.f32 %v4738_v56, %v7698_v23  ;;  %v4802_v53 = vadd.f32 %v4801_v63, %v4800_v13  ;;  %v4803_v54 = vpop.f32.mrb[130].mxu0  ;;  %v4741_v7 = vadd.f32 %v4740_v31, %v4739_v40 }
 0xb6c   : > { %v4804_v59 = vpop.f32.mrb[131].mxu0 }
 0xb6d   : > { %v3985_v10 = vadd.f32 %v4802_v53, %v3888_v24  ;;  %v3891_v60 = vadd.f32 %v4741_v7, %v7698_v23  ;;  %v4805_v20 = vadd.f32 %v4804_v59, %v4803_v54  ;;  %v8132_v24 = vld [vmem:[#allocation17_spill] sm:$0xff]  ;;  %v8133_v7 = vld [vmem:[#allocation16_spill] sm:$0xff] }
 0xb6f   : > { %v3988_v57 = vadd.f32 %v4805_v20, %v3891_v60  ;;  %v4742_v34 = vpop.f32.mrb[100].mxu1  ;;  %v7743_v26 = vadd.f32 %v3985_v10, %v8128_v55 }
 0xb70   : > { %v4743_v3 = vpop.f32.mrb[101].mxu1 }
 0xb71   : > { %v4806_v2 = vpop.f32.mrb[132].mxu0  ;;  %v4744_v37 = vadd.f32 %v4743_v3, %v4742_v34  ;;  %v4745_v17 = vpop.f32.mrb[102].mxu1  ;;  %4049 = vadd.xlane.f32.xlu0 %v7743_v26  ;;  %v7747_v39 = vadd.f32 %v3988_v57, %v8129_v12 }
 0xb72   : > { %v4807_v8 = vpop.f32.mrb[133].mxu0  ;;  %v4746_v45 = vpop.f32.mrb[103].mxu1 }
 0xb73   : > { %v3896_v6 = vadd.f32 %v4744_v37, %v7698_v23  ;;  %v4808_v52 = vadd.f32 %v4807_v8, %v4806_v2  ;;  %v4809_v19 = vpop.f32.mrb[134].mxu0  ;;  %v4747_v18 = vadd.f32 %v4746_v45, %v4745_v17  ;;  %4051 = vadd.xlane.f32.xlu1 %v7747_v39  ;;  %v8134_v17 = vld [vmem:[#allocation22_spill] sm:$0xff]  ;;  %v8135_v8 = vld [vmem:[#allocation20_spill] sm:$0xff] }
 0xb74   : > { %v4810_v49 = vpop.f32.mrb[135].mxu0 }
 0xb75   : > { %v3993_v4 = vadd.f32 %v4808_v52, %v3896_v6  ;;  %v3899_v22 = vadd.f32 %v4747_v18, %v7698_v23  ;;  %v4811_v38 = vadd.f32 %v4810_v49, %v4809_v19 }
 0xb77   : > { %v3996_v28 = vadd.f32 %v4811_v38, %v3899_v22  ;;  %v7753_v27 = vadd.f32 %v3993_v4, %v8130_v50 }
 0xb79   : > { %4053 = vadd.xlane.f32.xlu0 %v7753_v27  ;;  %v7757_v25 = vadd.f32 %v3996_v28, %v8131_v33 }
 0xb7a   : > { %v4748_v16 = vpop.f32.mrb[104].mxu1 }
 0xb7b   : > { %4055 = vadd.xlane.f32.xlu1 %v7757_v25  ;;  %v4749_v0 = vpop.f32.mrb[105].mxu1 }
 0xb7c   : > { %v4750_v44 = vadd.f32 %v4749_v0, %v4748_v16  ;;  %v4751_v58 = vpop.f32.mrb[106].mxu1 }
 0xb7d   : > { %v4752_v1 = vpop.f32.mrb[107].mxu1 }
 0xb7e   : > { %v4753_v32 = vadd.f32 %v4752_v1, %v4751_v58  ;;  %v3904_v15 = vadd.f32 %v4750_v44, %v7698_v23 }
 0xb80   : > { %v3907_v56 = vadd.f32 %v4753_v32, %v7698_v23 }
 0xb83   : > { %v4754_v47 = vpop.f32.mrb[108].mxu1 }
 0xb84   : > { %v4755_v35 = vpop.f32.mrb[109].mxu1 }
 0xb85   : > { %v4756_v61 = vadd.f32 %v4755_v35, %v4754_v47  ;;  %v4757_v29 = vpop.f32.mrb[110].mxu1 }
 0xb86   : > { %v4758_v36 = vpop.f32.mrb[111].mxu1 }
 0xb87   : > { %v4759_v14 = vadd.f32 %v4758_v36, %v4757_v29  ;;  %v3912_v60 = vadd.f32 %v4756_v61, %v7698_v23 }
 0xb89   : > { %v3915_v55 = vadd.f32 %v4759_v14, %v7698_v23 }
 0xb8b   : > { %v4812_v46 = vpop.f32.mrb[112].mxu1 }
 0xb8c   : > { %v4813_v11 = vpop.f32.mrb[113].mxu1 }
 0xb8d   : > { %v4814_v30 = vadd.f32 %v4813_v11, %v4812_v46  ;;  %v4815_v48 = vpop.f32.mrb[114].mxu1 }
 0xb8e   : > { %v4816_v13 = vpop.f32.mrb[115].mxu1 }
 0xb8f   : > { %v4001_v40 = vadd.f32 %v4814_v30, %v3904_v15  ;;  %v4817_v63 = vadd.f32 %v4816_v13, %v4815_v48 }
 0xb91   : > { %v4004_v31 = vadd.f32 %v4817_v63, %v3907_v56  ;;  %v7763_v53 = vadd.f32 %v4001_v40, %v8132_v24 }
 0xb93   : > { %v4818_v54 = vpop.f32.mrb[116].mxu1  ;;  %4057 = vadd.xlane.f32.xlu0 %v7763_v53  ;;  %v7767_v59 = vadd.f32 %v4004_v31, %v8133_v7 }
 0xb94   : > { %v4819_v10 = vpop.f32.mrb[117].mxu1 }
 0xb95   : > { %v4820_v20 = vadd.f32 %v4819_v10, %v4818_v54  ;;  %v4821_v57 = vpop.f32.mrb[118].mxu1  ;;  %4059 = vadd.xlane.f32.xlu1 %v7767_v59 }
 0xb96   : > { %v4822_v34 = vpop.f32.mrb[119].mxu1 }
 0xb97   : > { %v4009_v3 = vadd.f32 %v4820_v20, %v3912_v60  ;;  %v4823_v2 = vadd.f32 %v4822_v34, %v4821_v57 }
 0xb99   : > { %v4012_v37 = vadd.f32 %v4823_v2, %v3915_v55  ;;  %v7773_v12 = vadd.f32 %v4009_v3, %v8134_v17 }
 0xb9b   : > { %4061 = vadd.xlane.f32.xlu0 %v7773_v12  ;;  %v7777_v45 = vadd.f32 %v4012_v37, %v8135_v8 }
 0xb9d   : > { %4063 = vadd.xlane.f32.xlu1 %v7777_v45 }
 0xba8   : > { %v4034_v6 = vpop.xlane.xlu0 %4033 }
 0xba9   : > { %v4065_v52 = vmul.f32 0.0078125, %v4034_v6 }
 0xbaa   : > { %v4036_v19 = vpop.xlane.xlu1 %4035 }
 0xbab   : > { %v7781_v18 = vsub.f32 %v7703_v62, %v4065_v52  ;;  %v4066_v23 = vmul.f32 0.0078125, %v4036_v19 }
 0xbad   : > { %v7784_v49 = vsub.f32 %v7707_v41, %v4066_v23  ;;  %v4097_v4 = vmul.f32 %v7781_v18, %v7781_v18 }
 0xbaf   : > { %4113 = vadd.xlane.f32.xlu0 %v4097_v4  ;;  %v4098_v22 = vmul.f32 %v7784_v49, %v7784_v49 }
 0xbb1   : > { %4115 = vadd.xlane.f32.xlu1 %v4098_v22 }
 0xbb3   : > { %v4038_v38 = vpop.xlane.xlu0 %4037 }
 0xbb4   : > { %v4067_v28 = vmul.f32 0.0078125, %v4038_v38 }
 0xbb5   : > { %v4040_v50 = vpop.xlane.xlu1 %4039 }
 0xbb6   : > { %v7791_v33 = vsub.f32 %v7713_v43, %v4067_v28  ;;  %v4068_v62 = vmul.f32 0.0078125, %v4040_v50 }
 0xbb8   : > { %v7794_v16 = vsub.f32 %v7717_v21, %v4068_v62  ;;  %v4099_v41 = vmul.f32 %v7791_v33, %v7791_v33 }
 0xbba   : > { %4117 = vadd.xlane.f32.xlu0 %v4099_v41  ;;  %v4100_v0 = vmul.f32 %v7794_v16, %v7794_v16 }
 0xbbc   : > { %4119 = vadd.xlane.f32.xlu1 %v4100_v0 }
 0xbc1   : > { %v4042_v44 = vpop.xlane.xlu0 %4041 }
 0xbc2   : > { %v4069_v58 = vmul.f32 0.0078125, %v4042_v44  ;;  %v7863_v44 = vld [vmem:[%s7946_s11] ss:$0 sm:$0xff] }
 0xbc3   : > { %v4044_v1 = vpop.xlane.xlu1 %4043 }
 0xbc4   : > { %v7801_v32 = vsub.f32 %v7723_v51, %v4069_v58  ;;  %v4070_v43 = vmul.f32 0.0078125, %v4044_v1 }
 0xbc6   : > { %v7804_v47 = vsub.f32 %v7727_v42, %v4070_v43  ;;  %v4101_v21 = vmul.f32 %v7801_v32, %v7801_v32 }
 0xbc8   : > { %4121 = vadd.xlane.f32.xlu0 %v4101_v21  ;;  %v4102_v35 = vmul.f32 %v7804_v47, %v7804_v47 }
 0xbca   : > { %4123 = vadd.xlane.f32.xlu1 %v4102_v35 }
 0xbcf   : > { %v4046_v61 = vpop.xlane.xlu0 %4045 }
 0xbd0   : > { %v4071_v29 = vmul.f32 0.0078125, %v4046_v61  ;;  %v7871_v61 = vld [vmem:[%s7947_s12] ss:$0 sm:$0xff] }
 0xbd1   : > { %v4048_v36 = vpop.xlane.xlu1 %4047 }
 0xbd2   : > { %v7811_v14 = vsub.f32 %v7733_v9, %v4071_v29  ;;  %v4072_v51 = vmul.f32 0.0078125, %v4048_v36 }
 0xbd4   : > { %v7814_v46 = vsub.f32 %v7737_v5, %v4072_v51  ;;  %v4103_v42 = vmul.f32 %v7811_v14, %v7811_v14 }
 0xbd6   : > { %4125 = vadd.xlane.f32.xlu0 %v4103_v42  ;;  %v4104_v11 = vmul.f32 %v7814_v46, %v7814_v46 }
 0xbd8   : > { %4127 = vadd.xlane.f32.xlu1 %v4104_v11 }
 0xbfe   : > { %v4050_v15 = vpop.xlane.xlu0 %4049 }
 0xbff   : > { %v4073_v30 = vmul.f32 0.0078125, %v4050_v15 }
 0xc00   : > { %v4052_v48 = vpop.xlane.xlu1 %4051 }
 0xc01   : > { %v7821_v13 = vsub.f32 %v7743_v26, %v4073_v30  ;;  %v4074_v9 = vmul.f32 0.0078125, %v4052_v48 }
 0xc03   : > { %v7824_v56 = vsub.f32 %v7747_v39, %v4074_v9  ;;  %v4105_v5 = vmul.f32 %v7821_v13, %v7821_v13 }
 0xc05   : > { %4129 = vadd.xlane.f32.xlu0 %v4105_v5  ;;  %v4106_v40 = vmul.f32 %v7824_v56, %v7824_v56 }
 0xc06   : > { %v4054_v63 = vpop.xlane.xlu0 %4053 }
 0xc07   : > { %v4075_v31 = vmul.f32 0.0078125, %v4054_v63  ;;  %4131 = vadd.xlane.f32.xlu1 %v4106_v40 }
 0xc08   : > { %v4056_v24 = vpop.xlane.xlu1 %4055 }
 0xc09   : > { %v7831_v54 = vsub.f32 %v7753_v27, %v4075_v31  ;;  %v4076_v26 = vmul.f32 0.0078125, %v4056_v24 }
 0xc0b   : > { %v7834_v7 = vsub.f32 %v7757_v25, %v4076_v26  ;;  %v4107_v39 = vmul.f32 %v7831_v54, %v7831_v54 }
 0xc0d   : > { %4133 = vadd.xlane.f32.xlu0 %v4107_v39  ;;  %v4108_v10 = vmul.f32 %v7834_v7, %v7834_v7 }
 0xc0f   : > { %4135 = vadd.xlane.f32.xlu1 %v4108_v10 }
 0xc20   : > { %v4058_v60 = vpop.xlane.xlu0 %4057 }
 0xc21   : > { %v4077_v20 = vmul.f32 0.0078125, %v4058_v60 }
 0xc22   : > { %v4060_v57 = vpop.xlane.xlu1 %4059 }
 0xc23   : > { %v7841_v34 = vsub.f32 %v7763_v53, %v4077_v20  ;;  %v4078_v27 = vmul.f32 0.0078125, %v4060_v57 }
 0xc25   : > { %v7844_v55 = vsub.f32 %v7767_v59, %v4078_v27  ;;  %v4109_v25 = vmul.f32 %v7841_v34, %v7841_v34 }
 0xc27   : > { %4137 = vadd.xlane.f32.xlu0 %v4109_v25  ;;  %v4110_v3 = vmul.f32 %v7844_v55, %v7844_v55 }
 0xc28   : > { %v4062_v2 = vpop.xlane.xlu0 %4061 }
 0xc29   : > { %v4079_v37 = vmul.f32 0.0078125, %v4062_v2  ;;  %4139 = vadd.xlane.f32.xlu1 %v4110_v3 }
 0xc2a   : > { %v4064_v17 = vpop.xlane.xlu1 %4063 }
 0xc2b   : > { %v7851_v8 = vsub.f32 %v7773_v12, %v4079_v37  ;;  %v4080_v53 = vmul.f32 0.0078125, %v4064_v17 }
 0xc2d   : > { %v7854_v6 = vsub.f32 %v7777_v45, %v4080_v53  ;;  %v4111_v59 = vmul.f32 %v7851_v8, %v7851_v8 }
 0xc2f   : > { %4141 = vadd.xlane.f32.xlu0 %v4111_v59  ;;  %v4112_v52 = vmul.f32 %v7854_v6, %v7854_v6 }
 0xc31   : > { %4143 = vadd.xlane.f32.xlu1 %v4112_v52 }
 0xc3c   : > { %v4114_v19 = vpop.xlane.xlu0 %4113 }
 0xc3d   : > { %v4145_v23 = vmul.f32 0.0078125, %v4114_v19 }
 0xc3e   : > { %v4116_v4 = vpop.xlane.xlu1 %4115 }
 0xc3f   : > { %v4161_v22 = vadd.f32 1e-12, %v4145_v23  ;;  %v4146_v38 = vmul.f32 0.0078125, %v4116_v4 }
 0xc41   : > { %5498 = vrsqrt.f32 %v4161_v22  ;;  %v4162_v12 = vadd.f32 1e-12, %v4146_v38 }
 0xc43   : > { %5500 = vrsqrt.f32 %v4162_v12 }
 0xc47   : > { %v4118_v28 = vpop.xlane.xlu0 %4117 }
 0xc48   : > { %v4147_v45 = vmul.f32 0.0078125, %v4118_v28 }
 0xc49   : > { %v4120_v50 = vpop.xlane.xlu1 %4119 }
 0xc4a   : > { %v4163_v62 = vadd.f32 1e-12, %v4147_v45  ;;  %v4148_v41 = vmul.f32 0.0078125, %v4120_v50 }
 0xc4b   : > { %v5499_v0 = vpop.eup %5498 }
 0xc4c   : > { %5502 = vrsqrt.f32 %v4163_v62  ;;  %v4164_v58 = vadd.f32 1e-12, %v4148_v41  ;;  %v4193_v1 = vmul.f32 %v5499_v0, %v7781_v18 }
 0xc4d   : > { %v5501_v43 = vpop.eup %5500 }
 0xc4e   : > { %5504 = vrsqrt.f32 %v4164_v58  ;;  %v4215_v21 = vmul.f32 %v7863_v44, %v4193_v1  ;;  %v4194_v35 = vmul.f32 %v5501_v43, %v7784_v49 }
 0xc50   : > { %v4216_v29 = vmul.f32 %v7863_v44, %v4194_v35  ;;  %v4237_v36 = vadd.f32 %v7871_v61, %v4215_v21 }
 0xc52   : > { %v4238_v51 = vadd.f32 %v7871_v61, %v4216_v29 }
 0xc54   : > { %v4556_v49 = vpack.c.bf16 %v4238_v51, %v4237_v36 }
 0xc55   : > { %v4122_v18 = vpop.xlane.xlu0 %4121 }
 0xc56   : > { %v4149_v42 = vmul.f32 0.0078125, %v4122_v18  ;;  %v5503_v11 = vpop.eup %5502  ;;  %4557 = vst [vmem:[%s7880_s17] sm:$0xff] %v4556_v49  }
 0xc57   : > { %v4124_v15 = vpop.xlane.xlu1 %4123  ;;  %v4195_v30 = vmul.f32 %v5503_v11, %v7791_v33 }
 0xc58   : > { %v4165_v48 = vadd.f32 1e-12, %v4149_v42  ;;  %v4150_v9 = vmul.f32 0.0078125, %v4124_v15  ;;  %v5505_v5 = vpop.eup %5504 }
 0xc59   : > { %v4217_v40 = vmul.f32 %v7863_v44, %v4195_v30  ;;  %v4196_v63 = vmul.f32 %v5505_v5, %v7794_v16 }
 0xc5a   : > { %5506 = vrsqrt.f32 %v4165_v48  ;;  %v4166_v31 = vadd.f32 1e-12, %v4150_v9 }
 0xc5b   : > { %v4218_v24 = vmul.f32 %v7863_v44, %v4196_v63  ;;  %v4239_v26 = vadd.f32 %v7871_v61, %v4217_v40 }
 0xc5c   : > { %5508 = vrsqrt.f32 %v4166_v31 }
 0xc5d   : > { %v4240_v39 = vadd.f32 %v7871_v61, %v4218_v24 }
 0xc5f   : > { %v4561_v10 = vpack.c.bf16 %v4240_v39, %v4239_v26 }
 0xc61   : > { %4593 = vst [vmem:[%s7880_s17 + $0x8] sm:$0xff] %v4561_v10  }
 0xc63   : > { %v4126_v60 = vpop.xlane.xlu0 %4125 }
 0xc64   : > { %v5507_v33 = vpop.eup %5506  ;;  %v4151_v20 = vmul.f32 0.0078125, %v4126_v60 }
 0xc65   : > { %v4197_v57 = vmul.f32 %v5507_v33, %v7801_v32  ;;  %v4128_v27 = vpop.xlane.xlu1 %4127 }
 0xc66   : > { %v5509_v25 = vpop.eup %5508  ;;  %v4167_v16 = vadd.f32 1e-12, %v4151_v20  ;;  %v4152_v3 = vmul.f32 0.0078125, %v4128_v27 }
 0xc67   : > { %v4219_v2 = vmul.f32 %v7863_v44, %v4197_v57  ;;  %v4198_v37 = vmul.f32 %v5509_v25, %v7804_v47 }
 0xc68   : > { %5510 = vrsqrt.f32 %v4167_v16  ;;  %v4168_v17 = vadd.f32 1e-12, %v4152_v3 }
 0xc69   : > { %v4220_v53 = vmul.f32 %v7863_v44, %v4198_v37  ;;  %v4241_v59 = vadd.f32 %v7871_v61, %v4219_v2 }
 0xc6a   : > { %5512 = vrsqrt.f32 %v4168_v17 }
 0xc6b   : > { %v4242_v52 = vadd.f32 %v7871_v61, %v4220_v53 }
 0xc6d   : > { %v4566_v19 = vpack.c.bf16 %v4242_v52, %v4241_v59 }
 0xc6f   : > { %4594 = vst [vmem:[%s7880_s17 + $0x10] sm:$0xff] %v4566_v19  }
 0xc72   : > { %v5511_v32 = vpop.eup %5510 }
 0xc73   : > { %v4199_v23 = vmul.f32 %v5511_v32, %v7811_v14 }
 0xc74   : > { %v5513_v4 = vpop.eup %5512 }
 0xc75   : > { %v4221_v22 = vmul.f32 %v7863_v44, %v4199_v23  ;;  %v4200_v47 = vmul.f32 %v5513_v4, %v7814_v46 }
 0xc77   : > { %v4222_v38 = vmul.f32 %v7863_v44, %v4200_v47  ;;  %v4243_v12 = vadd.f32 %v7871_v61, %v4221_v22 }
 0xc79   : > { %v4244_v28 = vadd.f32 %v7871_v61, %v4222_v38 }
 0xc7b   : > { %v4571_v45 = vpack.c.bf16 %v4244_v28, %v4243_v12 }
 0xc7d   : > { %4595 = vst [vmem:[%s7880_s17 + $0x18] sm:$0xff] %v4571_v45  }
 0xc92   : > { %v4130_v50 = vpop.xlane.xlu0 %4129 }
 0xc93   : > { %v4153_v62 = vmul.f32 0.0078125, %v4130_v50 }
 0xc94   : > { %v4132_v41 = vpop.xlane.xlu1 %4131 }
 0xc95   : > { %v4169_v0 = vadd.f32 1e-12, %v4153_v62  ;;  %v4154_v58 = vmul.f32 0.0078125, %v4132_v41 }
 0xc97   : > { %5514 = vrsqrt.f32 %v4169_v0  ;;  %v4170_v14 = vadd.f32 1e-12, %v4154_v58 }
 0xc99   : > { %5516 = vrsqrt.f32 %v4170_v14 }
 0xc9a   : > { %v4134_v1 = vpop.xlane.xlu0 %4133 }
 0xc9b   : > { %v4155_v43 = vmul.f32 0.0078125, %v4134_v1 }
 0xc9c   : > { %v4136_v21 = vpop.xlane.xlu1 %4135 }
 0xc9d   : > { %v4171_v46 = vadd.f32 1e-12, %v4155_v43  ;;  %v4156_v35 = vmul.f32 0.0078125, %v4136_v21 }
 0xc9f   : > { %5518 = vrsqrt.f32 %v4171_v46  ;;  %v4172_v29 = vadd.f32 1e-12, %v4156_v35 }
 0xca1   : > { %v5515_v36 = vpop.eup %5514  ;;  %5520 = vrsqrt.f32 %v4172_v29 }
 0xca2   : > { %v4201_v51 = vmul.f32 %v5515_v36, %v7821_v13 }
 0xca3   : > { %v5517_v18 = vpop.eup %5516 }
 0xca4   : > { %v4223_v49 = vmul.f32 %v7863_v44, %v4201_v51  ;;  %v4202_v42 = vmul.f32 %v5517_v18, %v7824_v56 }
 0xca6   : > { %v4224_v11 = vmul.f32 %v7863_v44, %v4202_v42  ;;  %v4245_v15 = vadd.f32 %v7871_v61, %v4223_v49 }
 0xca8   : > { %v4246_v30 = vadd.f32 %v7871_v61, %v4224_v11 }
 0xca9   : > { %v5519_v48 = vpop.eup %5518 }
 0xcaa   : > { %v4576_v9 = vpack.c.bf16 %v4246_v30, %v4245_v15  ;;  %v4203_v5 = vmul.f32 %v5519_v48, %v7831_v54 }
 0xcab   : > { %v5521_v40 = vpop.eup %5520 }
 0xcac   : > { %4596 = vst [vmem:[%s7880_s17 + $0x20] sm:$0xff] %v4576_v9   ;;  %v4225_v13 = vmul.f32 %v7863_v44, %v4203_v5  ;;  %v4204_v63 = vmul.f32 %v5521_v40, %v7834_v7 }
 0xcae   : > { %v4226_v31 = vmul.f32 %v7863_v44, %v4204_v63  ;;  %v4247_v56 = vadd.f32 %v7871_v61, %v4225_v13 }
 0xcb0   : > { %v4248_v24 = vadd.f32 %v7871_v61, %v4226_v31 }
 0xcb2   : > { %v4581_v26 = vpack.c.bf16 %v4248_v24, %v4247_v56 }
 0xcb4   : > { %4597 = vst [vmem:[%s7880_s17 + $0x28] sm:$0xff] %v4581_v26   ;;  %v4138_v39 = vpop.xlane.xlu0 %4137 }
 0xcb5   : > { %v4157_v10 = vmul.f32 0.0078125, %v4138_v39 }
 0xcb6   : > { %v4140_v60 = vpop.xlane.xlu1 %4139 }
 0xcb7   : > { %v4173_v33 = vadd.f32 1e-12, %v4157_v10  ;;  %v4158_v20 = vmul.f32 0.0078125, %v4140_v60 }
 0xcb9   : > { %5522 = vrsqrt.f32 %v4173_v33  ;;  %v4174_v54 = vadd.f32 1e-12, %v4158_v20 }
 0xcbb   : > { %5524 = vrsqrt.f32 %v4174_v54 }
 0xcbc   : > { %v4142_v57 = vpop.xlane.xlu0 %4141 }
 0xcbd   : > { %v4159_v27 = vmul.f32 0.0078125, %v4142_v57 }
 0xcbe   : > { %v4144_v25 = vpop.xlane.xlu1 %4143 }
 0xcbf   : > { %v4175_v7 = vadd.f32 1e-12, %v4159_v27  ;;  %v4160_v16 = vmul.f32 0.0078125, %v4144_v25 }
 0xcc1   : > { %5526 = vrsqrt.f32 %v4175_v7  ;;  %v4176_v3 = vadd.f32 1e-12, %v4160_v16 }
 0xcc3   : > { %v5523_v2 = vpop.eup %5522  ;;  %5528 = vrsqrt.f32 %v4176_v3 }
 0xcc4   : > { %v4205_v37 = vmul.f32 %v5523_v2, %v7841_v34 }
 0xcc5   : > { %v5525_v17 = vpop.eup %5524 }
 0xcc6   : > { %v4227_v53 = vmul.f32 %v7863_v44, %v4205_v37  ;;  %v4206_v59 = vmul.f32 %v5525_v17, %v7844_v55 }
 0xcc8   : > { %v4228_v52 = vmul.f32 %v7863_v44, %v4206_v59  ;;  %v4249_v19 = vadd.f32 %v7871_v61, %v4227_v53 }
 0xcca   : > { %v4250_v32 = vadd.f32 %v7871_v61, %v4228_v52 }
 0xccb   : > { %v5527_v23 = vpop.eup %5526 }
 0xccc   : > { %v4586_v4 = vpack.c.bf16 %v4250_v32, %v4249_v19  ;;  %v4207_v22 = vmul.f32 %v5527_v23, %v7851_v8 }
 0xccd   : > { %v5529_v47 = vpop.eup %5528 }
 0xcce   : > { %4598 = vst [vmem:[%s7880_s17 + $0x30] sm:$0xff] %v4586_v4   ;;  %v4229_v34 = vmul.f32 %v7863_v44, %v4207_v22  ;;  %v4208_v38 = vmul.f32 %v5529_v47, %v7854_v6 }
 0xcd0   : > { %v4230_v12 = vmul.f32 %v7863_v44, %v4208_v38  ;;  %v4251_v55 = vadd.f32 %v7871_v61, %v4229_v34 }
 0xcd2   : > { %v4252_v28 = vadd.f32 %v7871_v61, %v4230_v12 }
 0xcd4   : > { %v4591_v45 = vpack.c.bf16 %v4252_v28, %v4251_v55 }
 0xcd6   : > { %4599 = vst [vmem:[%s7880_s17 + $0x38] sm:$0xff] %v4591_v45  }
 0xcd7 PF: > { %s25_s18 = sadd.s32 1, %s5536_s18  }
 0xcd8   : > { %p22_p4 = scmp.ge.s32.totalorder %s25_s18, 4  }
 0xcda   :  { %24 = sbr.rel (!%p22_p4) target bundleno = 1 (0x1), region = 110 }

</bundles_post_ra>
